<compile_context>
chip_gen: v5e
topology: v5e:2x2
jax: 0.10.0
libtpu: 0.0.40
codegen_flags: <defaults>
</compile_context>

<pallas_src>
import functools

import jax
import jax.numpy as jnp
from jax.experimental import pallas as pl
from jax.experimental.pallas import tpu as pltpu

EPS = 1e-5              # PyTorch BatchNorm default eps
IMG = 32                # input spatial size (256 in the original, shrunk for test)
LOG_IMG = 5             # log2(IMG)
HW = IMG * IMG          # 1024 flat canvas positions per sample (lane axis)
NF = 8                  # num_filters; filt_org='same' -> every conv outputs 8 ch
N_LAYERS = 5
N_PRE = 2               # conv layers run on the full 32x32 canvas before compaction
IMG2 = IMG >> N_PRE     # 8: compact canvas side after the first two 2x2 pools
LOG_IMG2 = LOG_IMG - N_PRE
CHW = IMG2 * IMG2       # 64 compact positions per sample
NUM_DENSE = 32
NUM_CLASSES = 10


# ----------------------------------------------------------------------------
# Single fused kernel: whole CNN forward for the (lane-folded) batch, in VMEM.
# ----------------------------------------------------------------------------
def fused_cnn_kernel(x_ref, wconv_ref, cvec_ref, wf1_ref, dvec_ref,
                     wf2_ref, bf2_ref, o_ref, *, spb):
    """Whole CNN forward for `spb` lane-folded samples; everything stays in VMEM."""

    def conv_block(a, layer, img, log_img, stride, lanes):
        """conv3x3(pad=1) + bias + ReLU + eval-BN + maxpool2x2, in place.

        `a` is (NF, lanes) with lanes = spb * img * img (sample-major fold).
        Valid samples sit at per-sample (row, col) multiples of `stride`;
        after the pool they are at multiples of 2*stride.
        """
        pos = jax.lax.broadcasted_iota(jnp.int32, (1, lanes), 1)
        row = jnp.bitwise_and(jnp.right_shift(pos, log_img), img - 1)  # per-sample
        col = jnp.bitwise_and(pos, img - 1)                            # per-sample
        top = row >= stride
        bot = row < img - stride
        lft = col >= stride
        rgt = col < img - stride

        # 9 taps: roll + SAME-halo mask, one (8, 8) x (8, lanes) matmul each,
        # accumulated in f32 (no im2col stack, no concatenate, no padding).
        acc = None
        for kh in range(3):
            for kw in range(3):
                dh, dw = (kh - 1) * stride, (kw - 1) * stride
                d = dh * img + dw
                sh = a if d == 0 else pltpu.roll(a, shift=(-d) % lanes, axis=1)
                m = None
                if dh < 0:
                    m = top
                elif dh > 0:
                    m = bot
                if dw < 0:
                    m = lft if m is None else m & lft
                elif dw > 0:
                    m = rgt if m is None else m & rgt
                if m is not None:
                    sh = jnp.where(m, sh, 0.0)
                part = jnp.dot(wconv_ref[layer, kh * 3 + kw], sh,
                               preferred_element_type=jnp.float32)     # (NF, lanes)
                acc = part if acc is None else acc + part

        y = jnp.maximum(acc + cvec_ref[layer, 0], 0.0)        # conv bias + ReLU
        y = y * cvec_ref[layer, 1] + cvec_ref[layer, 2]       # eval BatchNorm2d
        # maxpool 2x2 / stride 2 without relayout: valid outputs stay in place
        # at row, col multiples of 2*stride; other lanes become don't-care.
        y = jnp.maximum(y, pltpu.roll(y, shift=lanes - stride, axis=1))        # + right
        y = jnp.maximum(y, pltpu.roll(y, shift=lanes - stride * img, axis=1))  # + below
        return y

    # ---- layers 1-2 on the full 32x32 canvas (lanes = spb * 1024) ------------
    lanes_full = spb * HW
    a = x_ref[0]                                   # (NF, spb*HW)
    stride = 1
    for l in range(N_PRE):
        a = conv_block(a, l, IMG, LOG_IMG, stride, lanes_full)
        stride *= 2

    # ---- dead-lane compaction after layer 2 ----------------------------------
    # Only 64 of 1024 lanes per sample are still valid (row, col multiples of
    # 4).  Gather them into a contiguous 8x8 canvas with a 0/1 selection
    # matmul:  src(j) = (j // 8) * (4*32) + (j % 8) * 4   for j in [0, 64).
    qq = jax.lax.broadcasted_iota(jnp.int32, (HW, CHW), 0)
    jj = jax.lax.broadcasted_iota(jnp.int32, (HW, CHW), 1)
    src = (jnp.left_shift(jnp.right_shift(jj, LOG_IMG2), LOG_IMG + N_PRE)
           + jnp.left_shift(jnp.bitwise_and(jj, IMG2 - 1), N_PRE))
    sel = (qq == src).astype(jnp.float32)          # (HW, CHW) one-hot columns
    a = jnp.concatenate(
        [jnp.dot(a[:, s * HW:(s + 1) * HW], sel, preferred_element_type=jnp.float32)
         for s in range(spb)], axis=1)             # (NF, spb*CHW) == (8, 128)

    # ---- layers 3-5 on the compact 8x8 canvas (lanes = spb * 64) -------------
    lanes_cmp = spb * CHW
    stride = 1
    for l in range(N_PRE, N_LAYERS):
        a = conv_block(a, l, IMG2, LOG_IMG2, stride, lanes_cmp)
        stride *= 2

    # ---- flatten + dense head (lane-major) -----------------------------------
    # After the last pool only compact position 0 of each sample is valid; its
    # 8 channels are exactly PyTorch's x.view(-1, x_shape) row for that sample.
    at = a.T                                                       # (spb*CHW, NF)
    feat = jnp.concatenate([at[s * CHW:s * CHW + 1] for s in range(spb)],
                           axis=0)                                 # (spb, NF)
    h = jnp.dot(feat, wf1_ref[...],
                preferred_element_type=jnp.float32) + dvec_ref[0]  # (spb, 32)
    h = jnp.maximum(h, 0.0)
    h = h * dvec_ref[1] + dvec_ref[2]                              # eval BatchNorm1d
    # TODO(synk): nn.Dropout(p=0.5) is identity in eval mode (as in
    # CNN.accuracy()); the training-mode RNG mask is not implemented.
    logits = jnp.dot(h, wf2_ref[...],
                     preferred_element_type=jnp.float32) + bf2_ref[...]  # (spb, 10)
    o_ref[0] = logits.astype(o_ref.dtype)


# ----------------------------------------------------------------------------
# One-time parameter packing (hoisted out of the per-call forward path).
# ----------------------------------------------------------------------------
def pack_params(params):
    wconv, cvec = [], []
    for p in params["convs"]:
        w = p["w"]                                             # (3, 3, cin, 8) HWIO
        if w.shape[2] < NF:                                    # layer 1: pad cin 3->8
            w = jnp.pad(w, ((0, 0), (0, 0), (0, NF - w.shape[2]), (0, 0)))
        # (3,3,cin,out) -> (9 taps, out, cin): one (8, 8) matrix per tap
        wconv.append(jnp.transpose(w, (0, 1, 3, 2)).reshape(9, NF, NF))
        scale = p["gamma"] * jax.lax.rsqrt(p["var"] + EPS)
        shift = p["beta"] - p["mean"] * scale
        cvec.append(jnp.stack([p["b"], scale, shift])[:, :, None])   # (3, 8, 1)

    d_scale = params["gamma_de"] * jax.lax.rsqrt(params["var_de"] + EPS)
    d_shift = params["beta_de"] - params["mu_de"] * d_scale
    return dict(
        wconv=jnp.stack(wconv).astype(jnp.float32),            # (5, 9, 8, 8)
        cvec=jnp.stack(cvec).astype(jnp.float32),               # (5, 3, 8, 1)
        wf1=params["w_fc1"].astype(jnp.float32),                # (8, 32) lane-major
        dvec=jnp.stack([params["b_fc1"], d_scale, d_shift])[:, None, :]
            .astype(jnp.float32),                               # (3, 1, 32)
        wf2=params["w_fc2"].astype(jnp.float32),                # (32, 10) lane-major
        bf2=params["b_fc2"][None, :].astype(jnp.float32),       # (1, 10)
    )


# ----------------------------------------------------------------------------
# Wrapper: input layout fold + a single pallas_call for the whole model.
# ----------------------------------------------------------------------------
@jax.jit
def cnn_forward(x_nchw, packed):
    """x_nchw: (B, 3, 32, 32) float32 (PyTorch-style NCHW).  Returns (B, 10)."""
    B, cin = x_nchw.shape[0], x_nchw.shape[1]
    spb = B                        # whole batch folded onto the lane axis of one
    nblk = B // spb                # grid step (best on 1-TC v5e/v6e; on v7x use
    lanes = spb * HW               # spb = B//2 to map one block per TensorCore)

    # input -> (nblk, 8, spb*1024): channels on sublanes, sample-major lane fold
    xf = x_nchw.astype(jnp.float32).reshape(B, cin, HW)
    xf = jnp.pad(xf, ((0, 0), (0, NF - cin), (0, 0)))
    xf = xf.reshape(nblk, spb, NF, HW).transpose(0, 2, 1, 3).reshape(nblk, NF, lanes)

    conv_flops = 2 * 9 * NF * NF * (N_PRE * lanes + (N_LAYERS - N_PRE) * spb * CHW) * nblk
    gather_flops = 2 * NF * HW * CHW * spb * nblk
    head_flops = 2 * B * (NF * NUM_DENSE + NUM_DENSE * NUM_CLASSES)
    bytes_acc = 4 * (xf.size + sum(v.size for v in packed.values()) + B * NUM_CLASSES)

    const = lambda shape: pl.BlockSpec(shape, lambda g: (0,) * len(shape))
    out = pl.pallas_call(
        functools.partial(fused_cnn_kernel, spb=spb),
        out_shape=jax.ShapeDtypeStruct((nblk, spb, NUM_CLASSES), jnp.float32),
        grid=(nblk,),
        in_specs=[
            pl.BlockSpec((1, NF, lanes), lambda g: (g, 0, 0)),   # lane-folded input
            const((N_LAYERS, 9, NF, NF)),     # per-tap conv weights
            const((N_LAYERS, 3, NF, 1)),      # conv bias / BN2d scale / BN2d shift
            const((NF, NUM_DENSE)),           # fc1 (lane-major)
            const((3, 1, NUM_DENSE)),         # fc1 bias / BN1d scale / BN1d shift
            const((NUM_DENSE, NUM_CLASSES)),  # fc2 (lane-major)
            const((1, NUM_CLASSES)),          # fc2 bias
        ],
        out_specs=pl.BlockSpec((1, spb, NUM_CLASSES), lambda g: (g, 0, 0)),
        compiler_params=pltpu.CompilerParams(dimension_semantics=("parallel",)),
        cost_estimate=pl.CostEstimate(flops=conv_flops + gather_flops + head_flops,
                                      transcendentals=0, bytes_accessed=bytes_acc),
    )(xf, packed["wconv"], packed["cvec"], packed["wf1"], packed["dvec"],
      packed["wf2"], packed["bf2"])
    return out.reshape(B, NUM_CLASSES)


# ----------------------------------------------------------------------------
# Deterministic parameter init (PyTorch-style fan-in uniform; non-trivial BN
# running stats so the eval-BN path is actually exercised).
# ----------------------------------------------------------------------------
def init_params(key):
    it = iter(jax.random.split(key, 40))
    params = {"convs": []}
    cin = 3
    for _ in range(N_LAYERS):
        bd = 1.0 / ((cin * 9) ** 0.5)
        params["convs"].append(dict(
            w=jax.random.uniform(next(it), (3, 3, cin, NF), jnp.float32, -bd, bd),
            b=jax.random.uniform(next(it), (NF,), jnp.float32, -bd, bd),
            gamma=jax.random.uniform(next(it), (NF,), jnp.float32, 0.9, 1.1),
            beta=jax.random.uniform(next(it), (NF,), jnp.float32, -0.1, 0.1),
            mean=jax.random.uniform(next(it), (NF,), jnp.float32, -0.1, 0.1),
            var=jax.random.uniform(next(it), (NF,), jnp.float32, 0.8, 1.2),
        ))
        cin = NF

    # x_shape exactly as the module computes it: 32 -> 16 -> 8 -> 4 -> 2 -> 1
    sz = IMG
    for _ in range(N_LAYERS):
        sz = (sz - 3 + 3) // 2
    x_shape = NF * sz * sz
    assert x_shape == NF, x_shape

    bd = 1.0 / (x_shape ** 0.5)
    params["w_fc1"] = jax.random.uniform(next(it), (x_shape, NUM_DENSE), jnp.float32, -bd, bd)
    params["b_fc1"] = jax.random.uniform(next(it), (NUM_DENSE,), jnp.float32, -bd, bd)
    params["gamma_de"] = jax.random.uniform(next(it), (NUM_DENSE,), jnp.float32, 0.9, 1.1)
    params["beta_de"] = jax.random.uniform(next(it), (NUM_DENSE,), jnp.float32, -0.1, 0.1)
    params["mu_de"] = jax.random.uniform(next(it), (NUM_DENSE,), jnp.float32, -0.1, 0.1)
    params["var_de"] = jax.random.uniform(next(it), (NUM_DENSE,), jnp.float32, 0.8, 1.2)
    bd = 1.0 / (NUM_DENSE ** 0.5)
    params["w_fc2"] = jax.random.uniform(next(it), (NUM_DENSE, NUM_CLASSES), jnp.float32, -bd, bd)
    params["b_fc2"] = jax.random.uniform(next(it), (NUM_CLASSES,), jnp.float32, -bd, bd)
    return params


# ----------------------------------------------------------------------------
# Pure-JAX reference (eval-mode forward) for correctness.
# ----------------------------------------------------------------------------
def reference_forward(x_nchw, params):
    y = x_nchw.astype(jnp.float32)
    for p in params["convs"]:
        y = jax.lax.conv_general_dilated(
            y, p["w"], window_strides=(1, 1), padding=[(1, 1), (1, 1)],
            dimension_numbers=("NCHW", "HWIO", "NCHW"))
        y = jnp.maximum(y + p["b"][None, :, None, None], 0.0)
        scale = p["gamma"] * jax.lax.rsqrt(p["var"] + EPS)
        shift = p["beta"] - p["mean"] * scale
        y = y * scale[None, :, None, None] + shift[None, :, None, None]
        y = jax.lax.reduce_window(y, -jnp.inf, jax.lax.max,
                                  (1, 1, 2, 2), (1, 1, 2, 2), "VALID")
    f = y.reshape(y.shape[0], -1)                     # PyTorch .view(-1, x_shape)
    h = jnp.maximum(f @ params["w_fc1"] + params["b_fc1"], 0.0)
    d_scale = params["gamma_de"] * jax.lax.rsqrt(params["var_de"] + EPS)
    d_shift = params["beta_de"] - params["mu_de"] * d_scale
    h = h * d_scale + d_shift
    return h @ params["w_fc2"] + params["b_fc2"]


if __name__ == "__main__":
    key = jax.random.PRNGKey(0)
    k_param, k_x = jax.random.split(key)

    B = 2
    params = init_params(k_param)
    packed = pack_params(params)          # one-time packing, out of the forward path
    x = jax.random.normal(k_x, (B, 3, IMG, IMG), jnp.float32)  # PyTorch-style NCHW

    out = jax.block_until_ready(cnn_forward(x, packed))
    assert out.shape == (B, NUM_CLASSES), out.shape

    ref = reference_forward(x, params)
    err = float(jnp.max(jnp.abs(out - ref)))
    tol = 2e-3 * max(1.0, float(jnp.max(jnp.abs(ref))))
    assert err <= tol, f"mismatch vs reference: err={err} tol={tol}"

    print("KERNEL_OK")
</pallas_src>

<mosaic_0001>
module attributes {stable_mosaic.version = 11 : i64} {
  func.func @fused_cnn_kernel(%arg0: i32, %arg1: memref<1x8x2048xf32, #tpu.memory_space<vmem>>, %arg2: memref<5x9x8x8xf32, #tpu.memory_space<vmem>>, %arg3: memref<5x3x8x1xf32, #tpu.memory_space<vmem>>, %arg4: memref<8x32xf32, #tpu.memory_space<vmem>>, %arg5: memref<3x1x32xf32, #tpu.memory_space<vmem>>, %arg6: memref<32x10xf32, #tpu.memory_space<vmem>>, %arg7: memref<1x10xf32, #tpu.memory_space<vmem>>, %arg8: memref<1x2x10xf32, #tpu.memory_space<vmem>>) attributes {dimension_semantics = [#tpu.dimension_semantics<parallel>], iteration_bounds = array<i64: 1>, scalar_prefetch = 0 : i64, scratch_operands = 0 : i64, tpu.core_type = #tpu.core_type<tc>, window_params = [{transform_indices = @transform_0, window_bounds = array<i64: 1, 8, 2048>}, {pipeline_mode = #tpu.pipeline_mode<synchronous>, transform_indices = @transform_1, window_bounds = array<i64: 5, 9, 8, 8>}, {pipeline_mode = #tpu.pipeline_mode<synchronous>, transform_indices = @transform_2, window_bounds = array<i64: 5, 3, 8, 1>}, {pipeline_mode = #tpu.pipeline_mode<synchronous>, transform_indices = @transform_3, window_bounds = array<i64: 8, 32>}, {pipeline_mode = #tpu.pipeline_mode<synchronous>, transform_indices = @transform_4, window_bounds = array<i64: 3, 1, 32>}, {pipeline_mode = #tpu.pipeline_mode<synchronous>, transform_indices = @transform_5, window_bounds = array<i64: 32, 10>}, {pipeline_mode = #tpu.pipeline_mode<synchronous>, transform_indices = @transform_6, window_bounds = array<i64: 1, 10>}, {transform_indices = @transform_7, window_bounds = array<i64: 1, 2, 10>}]} {
    %c0 = arith.constant 0 : index
    %c0_0 = arith.constant 0 : index
    %c0_1 = arith.constant 0 : index
    %0 = vector.load %arg1[%c0, %c0_0, %c0_1] : memref<1x8x2048xf32, #tpu.memory_space<vmem>>, vector<1x8x2048xf32>
    %1 = vector.shape_cast %0 : vector<1x8x2048xf32> to vector<8x2048xf32>
    %2 = tpu.iota {dimensions = array<i32: 1>} : vector<1x2048xi32>
    %c5_i32 = arith.constant 5 : i32
    %3 = vector.broadcast %c5_i32 : i32 to vector<1x2048xi32>
    %4 = arith.shrsi %2, %3 : vector<1x2048xi32>
    %c31_i32 = arith.constant 31 : i32
    %5 = vector.broadcast %c31_i32 : i32 to vector<1x2048xi32>
    %6 = arith.andi %4, %5 : vector<1x2048xi32>
    %c31_i32_2 = arith.constant 31 : i32
    %7 = vector.broadcast %c31_i32_2 : i32 to vector<1x2048xi32>
    %8 = arith.andi %2, %7 : vector<1x2048xi32>
    %c1_i32 = arith.constant 1 : i32
    %9 = vector.broadcast %c1_i32 : i32 to vector<1x2048xi32>
    %10 = arith.cmpi sge, %6, %9 : vector<1x2048xi32>
    %c31_i32_3 = arith.constant 31 : i32
    %11 = vector.broadcast %c31_i32_3 : i32 to vector<1x2048xi32>
    %12 = arith.cmpi slt, %6, %11 : vector<1x2048xi32>
    %c1_i32_4 = arith.constant 1 : i32
    %13 = vector.broadcast %c1_i32_4 : i32 to vector<1x2048xi32>
    %14 = arith.cmpi sge, %8, %13 : vector<1x2048xi32>
    %c31_i32_5 = arith.constant 31 : i32
    %15 = vector.broadcast %c31_i32_5 : i32 to vector<1x2048xi32>
    %16 = arith.cmpi slt, %8, %15 : vector<1x2048xi32>
    %c33_i32 = arith.constant 33 : i32
    %17 = tpu.dynamic_rotate %1 by %c33_i32 dim 1 : vector<8x2048xf32>, i32 -> vector<8x2048xf32>
    %18 = arith.andi %10, %14 : vector<1x2048xi1>
    %cst = arith.constant 0.000000e+00 : f32
    %19 = vector.shape_cast %18 : vector<1x2048xi1> to vector<1x2048xi1>
    %20 = vector.broadcast %19 : vector<1x2048xi1> to vector<8x2048xi1>
    %21 = vector.broadcast %cst : f32 to vector<8x2048xf32>
    %22 = arith.select %20, %17, %21 : vector<8x2048xi1>, vector<8x2048xf32>
    %c0_6 = arith.constant 0 : index
    %c0_7 = arith.constant 0 : index
    %c0_8 = arith.constant 0 : index
    %c0_9 = arith.constant 0 : index
    %23 = vector.load %arg2[%c0_6, %c0_7, %c0_8, %c0_9] : memref<5x9x8x8xf32, #tpu.memory_space<vmem>>, vector<1x1x8x8xf32>
    %24 = vector.shape_cast %23 : vector<1x1x8x8xf32> to vector<8x8xf32>
    %cst_10 = arith.constant dense<0.000000e+00> : vector<8x2048xf32>
    %25 = tpu.matmul %24, %22, %cst_10 {dimension_numbers = #tpu.dot_dimension_numbers<[1], [0], [0], [1], [0, 0, 1, 1], [], []>} : vector<8x8xf32>, vector<8x2048xf32>, vector<8x2048xf32> -> vector<8x2048xf32>
    %c32_i32 = arith.constant 32 : i32
    %26 = tpu.dynamic_rotate %1 by %c32_i32 dim 1 : vector<8x2048xf32>, i32 -> vector<8x2048xf32>
    %cst_11 = arith.constant 0.000000e+00 : f32
    %27 = vector.shape_cast %10 : vector<1x2048xi1> to vector<1x2048xi1>
    %28 = vector.broadcast %27 : vector<1x2048xi1> to vector<8x2048xi1>
    %29 = vector.broadcast %cst_11 : f32 to vector<8x2048xf32>
    %30 = arith.select %28, %26, %29 : vector<8x2048xi1>, vector<8x2048xf32>
    %c0_12 = arith.constant 0 : index
    %c1 = arith.constant 1 : index
    %c0_13 = arith.constant 0 : index
    %c0_14 = arith.constant 0 : index
    %31 = vector.load %arg2[%c0_12, %c1, %c0_13, %c0_14] : memref<5x9x8x8xf32, #tpu.memory_space<vmem>>, vector<1x1x8x8xf32>
    %32 = vector.shape_cast %31 : vector<1x1x8x8xf32> to vector<8x8xf32>
    %cst_15 = arith.constant dense<0.000000e+00> : vector<8x2048xf32>
    %33 = tpu.matmul %32, %30, %cst_15 {dimension_numbers = #tpu.dot_dimension_numbers<[1], [0], [0], [1], [0, 0, 1, 1], [], []>} : vector<8x8xf32>, vector<8x2048xf32>, vector<8x2048xf32> -> vector<8x2048xf32>
    %34 = arith.addf %25, %33 : vector<8x2048xf32>
    %c31_i32_16 = arith.constant 31 : i32
    %35 = tpu.dynamic_rotate %1 by %c31_i32_16 dim 1 : vector<8x2048xf32>, i32 -> vector<8x2048xf32>
    %36 = arith.andi %10, %16 : vector<1x2048xi1>
    %cst_17 = arith.constant 0.000000e+00 : f32
    %37 = vector.shape_cast %36 : vector<1x2048xi1> to vector<1x2048xi1>
    %38 = vector.broadcast %37 : vector<1x2048xi1> to vector<8x2048xi1>
    %39 = vector.broadcast %cst_17 : f32 to vector<8x2048xf32>
    %40 = arith.select %38, %35, %39 : vector<8x2048xi1>, vector<8x2048xf32>
    %c0_18 = arith.constant 0 : index
    %c2 = arith.constant 2 : index
    %c0_19 = arith.constant 0 : index
    %c0_20 = arith.constant 0 : index
    %41 = vector.load %arg2[%c0_18, %c2, %c0_19, %c0_20] : memref<5x9x8x8xf32, #tpu.memory_space<vmem>>, vector<1x1x8x8xf32>
    %42 = vector.shape_cast %41 : vector<1x1x8x8xf32> to vector<8x8xf32>
    %cst_21 = arith.constant dense<0.000000e+00> : vector<8x2048xf32>
    %43 = tpu.matmul %42, %40, %cst_21 {dimension_numbers = #tpu.dot_dimension_numbers<[1], [0], [0], [1], [0, 0, 1, 1], [], []>} : vector<8x8xf32>, vector<8x2048xf32>, vector<8x2048xf32> -> vector<8x2048xf32>
    %44 = arith.addf %34, %43 : vector<8x2048xf32>
    %c1_i32_22 = arith.constant 1 : i32
    %45 = tpu.dynamic_rotate %1 by %c1_i32_22 dim 1 : vector<8x2048xf32>, i32 -> vector<8x2048xf32>
    %cst_23 = arith.constant 0.000000e+00 : f32
    %46 = vector.shape_cast %14 : vector<1x2048xi1> to vector<1x2048xi1>
    %47 = vector.broadcast %46 : vector<1x2048xi1> to vector<8x2048xi1>
    %48 = vector.broadcast %cst_23 : f32 to vector<8x2048xf32>
    %49 = arith.select %47, %45, %48 : vector<8x2048xi1>, vector<8x2048xf32>
    %c0_24 = arith.constant 0 : index
    %c3 = arith.constant 3 : index
    %c0_25 = arith.constant 0 : index
    %c0_26 = arith.constant 0 : index
    %50 = vector.load %arg2[%c0_24, %c3, %c0_25, %c0_26] : memref<5x9x8x8xf32, #tpu.memory_space<vmem>>, vector<1x1x8x8xf32>
    %51 = vector.shape_cast %50 : vector<1x1x8x8xf32> to vector<8x8xf32>
    %cst_27 = arith.constant dense<0.000000e+00> : vector<8x2048xf32>
    %52 = tpu.matmul %51, %49, %cst_27 {dimension_numbers = #tpu.dot_dimension_numbers<[1], [0], [0], [1], [0, 0, 1, 1], [], []>} : vector<8x8xf32>, vector<8x2048xf32>, vector<8x2048xf32> -> vector<8x2048xf32>
    %53 = arith.addf %44, %52 : vector<8x2048xf32>
    %c0_28 = arith.constant 0 : index
    %c4 = arith.constant 4 : index
    %c0_29 = arith.constant 0 : index
    %c0_30 = arith.constant 0 : index
    %54 = vector.load %arg2[%c0_28, %c4, %c0_29, %c0_30] : memref<5x9x8x8xf32, #tpu.memory_space<vmem>>, vector<1x1x8x8xf32>
    %55 = vector.shape_cast %54 : vector<1x1x8x8xf32> to vector<8x8xf32>
    %cst_31 = arith.constant dense<0.000000e+00> : vector<8x2048xf32>
    %56 = tpu.matmul %55, %1, %cst_31 {dimension_numbers = #tpu.dot_dimension_numbers<[1], [0], [0], [1], [0, 0, 1, 1], [], []>} : vector<8x8xf32>, vector<8x2048xf32>, vector<8x2048xf32> -> vector<8x2048xf32>
    %57 = arith.addf %53, %56 : vector<8x2048xf32>
    %c2047_i32 = arith.constant 2047 : i32
    %58 = tpu.dynamic_rotate %1 by %c2047_i32 dim 1 : vector<8x2048xf32>, i32 -> vector<8x2048xf32>
    %cst_32 = arith.constant 0.000000e+00 : f32
    %59 = vector.shape_cast %16 : vector<1x2048xi1> to vector<1x2048xi1>
    %60 = vector.broadcast %59 : vector<1x2048xi1> to vector<8x2048xi1>
    %61 = vector.broadcast %cst_32 : f32 to vector<8x2048xf32>
    %62 = arith.select %60, %58, %61 : vector<8x2048xi1>, vector<8x2048xf32>
    %c0_33 = arith.constant 0 : index
    %c5 = arith.constant 5 : index
    %c0_34 = arith.constant 0 : index
    %c0_35 = arith.constant 0 : index
    %63 = vector.load %arg2[%c0_33, %c5, %c0_34, %c0_35] : memref<5x9x8x8xf32, #tpu.memory_space<vmem>>, vector<1x1x8x8xf32>
    %64 = vector.shape_cast %63 : vector<1x1x8x8xf32> to vector<8x8xf32>
    %cst_36 = arith.constant dense<0.000000e+00> : vector<8x2048xf32>
    %65 = tpu.matmul %64, %62, %cst_36 {dimension_numbers = #tpu.dot_dimension_numbers<[1], [0], [0], [1], [0, 0, 1, 1], [], []>} : vector<8x8xf32>, vector<8x2048xf32>, vector<8x2048xf32> -> vector<8x2048xf32>
    %66 = arith.addf %57, %65 : vector<8x2048xf32>
    %c2017_i32 = arith.constant 2017 : i32
    %67 = tpu.dynamic_rotate %1 by %c2017_i32 dim 1 : vector<8x2048xf32>, i32 -> vector<8x2048xf32>
    %68 = arith.andi %12, %14 : vector<1x2048xi1>
    %cst_37 = arith.constant 0.000000e+00 : f32
    %69 = vector.shape_cast %68 : vector<1x2048xi1> to vector<1x2048xi1>
    %70 = vector.broadcast %69 : vector<1x2048xi1> to vector<8x2048xi1>
    %71 = vector.broadcast %cst_37 : f32 to vector<8x2048xf32>
    %72 = arith.select %70, %67, %71 : vector<8x2048xi1>, vector<8x2048xf32>
    %c0_38 = arith.constant 0 : index
    %c6 = arith.constant 6 : index
    %c0_39 = arith.constant 0 : index
    %c0_40 = arith.constant 0 : index
    %73 = vector.load %arg2[%c0_38, %c6, %c0_39, %c0_40] : memref<5x9x8x8xf32, #tpu.memory_space<vmem>>, vector<1x1x8x8xf32>
    %74 = vector.shape_cast %73 : vector<1x1x8x8xf32> to vector<8x8xf32>
    %cst_41 = arith.constant dense<0.000000e+00> : vector<8x2048xf32>
    %75 = tpu.matmul %74, %72, %cst_41 {dimension_numbers = #tpu.dot_dimension_numbers<[1], [0], [0], [1], [0, 0, 1, 1], [], []>} : vector<8x8xf32>, vector<8x2048xf32>, vector<8x2048xf32> -> vector<8x2048xf32>
    %76 = arith.addf %66, %75 : vector<8x2048xf32>
    %c2016_i32 = arith.constant 2016 : i32
    %77 = tpu.dynamic_rotate %1 by %c2016_i32 dim 1 : vector<8x2048xf32>, i32 -> vector<8x2048xf32>
    %cst_42 = arith.constant 0.000000e+00 : f32
    %78 = vector.shape_cast %12 : vector<1x2048xi1> to vector<1x2048xi1>
    %79 = vector.broadcast %78 : vector<1x2048xi1> to vector<8x2048xi1>
    %80 = vector.broadcast %cst_42 : f32 to vector<8x2048xf32>
    %81 = arith.select %79, %77, %80 : vector<8x2048xi1>, vector<8x2048xf32>
    %c0_43 = arith.constant 0 : index
    %c7 = arith.constant 7 : index
    %c0_44 = arith.constant 0 : index
    %c0_45 = arith.constant 0 : index
    %82 = vector.load %arg2[%c0_43, %c7, %c0_44, %c0_45] : memref<5x9x8x8xf32, #tpu.memory_space<vmem>>, vector<1x1x8x8xf32>
    %83 = vector.shape_cast %82 : vector<1x1x8x8xf32> to vector<8x8xf32>
    %cst_46 = arith.constant dense<0.000000e+00> : vector<8x2048xf32>
    %84 = tpu.matmul %83, %81, %cst_46 {dimension_numbers = #tpu.dot_dimension_numbers<[1], [0], [0], [1], [0, 0, 1, 1], [], []>} : vector<8x8xf32>, vector<8x2048xf32>, vector<8x2048xf32> -> vector<8x2048xf32>
    %85 = arith.addf %76, %84 : vector<8x2048xf32>
    %c2015_i32 = arith.constant 2015 : i32
    %86 = tpu.dynamic_rotate %1 by %c2015_i32 dim 1 : vector<8x2048xf32>, i32 -> vector<8x2048xf32>
    %87 = arith.andi %12, %16 : vector<1x2048xi1>
    %cst_47 = arith.constant 0.000000e+00 : f32
    %88 = vector.shape_cast %87 : vector<1x2048xi1> to vector<1x2048xi1>
    %89 = vector.broadcast %88 : vector<1x2048xi1> to vector<8x2048xi1>
    %90 = vector.broadcast %cst_47 : f32 to vector<8x2048xf32>
    %91 = arith.select %89, %86, %90 : vector<8x2048xi1>, vector<8x2048xf32>
    %c0_48 = arith.constant 0 : index
    %c8 = arith.constant 8 : index
    %c0_49 = arith.constant 0 : index
    %c0_50 = arith.constant 0 : index
    %92 = vector.load %arg2[%c0_48, %c8, %c0_49, %c0_50] : memref<5x9x8x8xf32, #tpu.memory_space<vmem>>, vector<1x1x8x8xf32>
    %93 = vector.shape_cast %92 : vector<1x1x8x8xf32> to vector<8x8xf32>
    %cst_51 = arith.constant dense<0.000000e+00> : vector<8x2048xf32>
    %94 = tpu.matmul %93, %91, %cst_51 {dimension_numbers = #tpu.dot_dimension_numbers<[1], [0], [0], [1], [0, 0, 1, 1], [], []>} : vector<8x8xf32>, vector<8x2048xf32>, vector<8x2048xf32> -> vector<8x2048xf32>
    %95 = arith.addf %85, %94 : vector<8x2048xf32>
    %c0_52 = arith.constant 0 : index
    %c0_53 = arith.constant 0 : index
    %c0_54 = arith.constant 0 : index
    %c0_55 = arith.constant 0 : index
    %96 = vector.load %arg3[%c0_52, %c0_53, %c0_54, %c0_55] : memref<5x3x8x1xf32, #tpu.memory_space<vmem>>, vector<1x1x8x1xf32>
    %97 = vector.shape_cast %96 : vector<1x1x8x1xf32> to vector<8x1xf32>
    %98 = vector.broadcast %97 : vector<8x1xf32> to vector<8x2048xf32>
    %99 = arith.addf %95, %98 : vector<8x2048xf32>
    %cst_56 = arith.constant 0.000000e+00 : f32
    %100 = vector.broadcast %cst_56 : f32 to vector<8x2048xf32>
    %101 = arith.maximumf %99, %100 : vector<8x2048xf32>
    %c0_57 = arith.constant 0 : index
    %c1_58 = arith.constant 1 : index
    %c0_59 = arith.constant 0 : index
    %c0_60 = arith.constant 0 : index
    %102 = vector.load %arg3[%c0_57, %c1_58, %c0_59, %c0_60] : memref<5x3x8x1xf32, #tpu.memory_space<vmem>>, vector<1x1x8x1xf32>
    %103 = vector.shape_cast %102 : vector<1x1x8x1xf32> to vector<8x1xf32>
    %104 = vector.broadcast %103 : vector<8x1xf32> to vector<8x2048xf32>
    %105 = arith.mulf %101, %104 : vector<8x2048xf32>
    %c0_61 = arith.constant 0 : index
    %c2_62 = arith.constant 2 : index
    %c0_63 = arith.constant 0 : index
    %c0_64 = arith.constant 0 : index
    %106 = vector.load %arg3[%c0_61, %c2_62, %c0_63, %c0_64] : memref<5x3x8x1xf32, #tpu.memory_space<vmem>>, vector<1x1x8x1xf32>
    %107 = vector.shape_cast %106 : vector<1x1x8x1xf32> to vector<8x1xf32>
    %108 = vector.broadcast %107 : vector<8x1xf32> to vector<8x2048xf32>
    %109 = arith.addf %105, %108 : vector<8x2048xf32>
    %c2047_i32_65 = arith.constant 2047 : i32
    %110 = tpu.dynamic_rotate %109 by %c2047_i32_65 dim 1 : vector<8x2048xf32>, i32 -> vector<8x2048xf32>
    %111 = arith.maximumf %109, %110 : vector<8x2048xf32>
    %c2016_i32_66 = arith.constant 2016 : i32
    %112 = tpu.dynamic_rotate %111 by %c2016_i32_66 dim 1 : vector<8x2048xf32>, i32 -> vector<8x2048xf32>
    %113 = arith.maximumf %111, %112 : vector<8x2048xf32>
    %114 = tpu.iota {dimensions = array<i32: 1>} : vector<1x2048xi32>
    %c5_i32_67 = arith.constant 5 : i32
    %115 = vector.broadcast %c5_i32_67 : i32 to vector<1x2048xi32>
    %116 = arith.shrsi %114, %115 : vector<1x2048xi32>
    %c31_i32_68 = arith.constant 31 : i32
    %117 = vector.broadcast %c31_i32_68 : i32 to vector<1x2048xi32>
    %118 = arith.andi %116, %117 : vector<1x2048xi32>
    %c31_i32_69 = arith.constant 31 : i32
    %119 = vector.broadcast %c31_i32_69 : i32 to vector<1x2048xi32>
    %120 = arith.andi %114, %119 : vector<1x2048xi32>
    %c2_i32 = arith.constant 2 : i32
    %121 = vector.broadcast %c2_i32 : i32 to vector<1x2048xi32>
    %122 = arith.cmpi sge, %118, %121 : vector<1x2048xi32>
    %c30_i32 = arith.constant 30 : i32
    %123 = vector.broadcast %c30_i32 : i32 to vector<1x2048xi32>
    %124 = arith.cmpi slt, %118, %123 : vector<1x2048xi32>
    %c2_i32_70 = arith.constant 2 : i32
    %125 = vector.broadcast %c2_i32_70 : i32 to vector<1x2048xi32>
    %126 = arith.cmpi sge, %120, %125 : vector<1x2048xi32>
    %c30_i32_71 = arith.constant 30 : i32
    %127 = vector.broadcast %c30_i32_71 : i32 to vector<1x2048xi32>
    %128 = arith.cmpi slt, %120, %127 : vector<1x2048xi32>
    %c66_i32 = arith.constant 66 : i32
    %129 = tpu.dynamic_rotate %113 by %c66_i32 dim 1 : vector<8x2048xf32>, i32 -> vector<8x2048xf32>
    %130 = arith.andi %122, %126 : vector<1x2048xi1>
    %cst_72 = arith.constant 0.000000e+00 : f32
    %131 = vector.shape_cast %130 : vector<1x2048xi1> to vector<1x2048xi1>
    %132 = vector.broadcast %131 : vector<1x2048xi1> to vector<8x2048xi1>
    %133 = vector.broadcast %cst_72 : f32 to vector<8x2048xf32>
    %134 = arith.select %132, %129, %133 : vector<8x2048xi1>, vector<8x2048xf32>
    %c1_73 = arith.constant 1 : index
    %c0_74 = arith.constant 0 : index
    %c0_75 = arith.constant 0 : index
    %c0_76 = arith.constant 0 : index
    %135 = vector.load %arg2[%c1_73, %c0_74, %c0_75, %c0_76] : memref<5x9x8x8xf32, #tpu.memory_space<vmem>>, vector<1x1x8x8xf32>
    %136 = vector.shape_cast %135 : vector<1x1x8x8xf32> to vector<8x8xf32>
    %cst_77 = arith.constant dense<0.000000e+00> : vector<8x2048xf32>
    %137 = tpu.matmul %136, %134, %cst_77 {dimension_numbers = #tpu.dot_dimension_numbers<[1], [0], [0], [1], [0, 0, 1, 1], [], []>} : vector<8x8xf32>, vector<8x2048xf32>, vector<8x2048xf32> -> vector<8x2048xf32>
    %c64_i32 = arith.constant 64 : i32
    %138 = tpu.dynamic_rotate %113 by %c64_i32 dim 1 : vector<8x2048xf32>, i32 -> vector<8x2048xf32>
    %cst_78 = arith.constant 0.000000e+00 : f32
    %139 = vector.shape_cast %122 : vector<1x2048xi1> to vector<1x2048xi1>
    %140 = vector.broadcast %139 : vector<1x2048xi1> to vector<8x2048xi1>
    %141 = vector.broadcast %cst_78 : f32 to vector<8x2048xf32>
    %142 = arith.select %140, %138, %141 : vector<8x2048xi1>, vector<8x2048xf32>
    %c1_79 = arith.constant 1 : index
    %c1_80 = arith.constant 1 : index
    %c0_81 = arith.constant 0 : index
    %c0_82 = arith.constant 0 : index
    %143 = vector.load %arg2[%c1_79, %c1_80, %c0_81, %c0_82] : memref<5x9x8x8xf32, #tpu.memory_space<vmem>>, vector<1x1x8x8xf32>
    %144 = vector.shape_cast %143 : vector<1x1x8x8xf32> to vector<8x8xf32>
    %cst_83 = arith.constant dense<0.000000e+00> : vector<8x2048xf32>
    %145 = tpu.matmul %144, %142, %cst_83 {dimension_numbers = #tpu.dot_dimension_numbers<[1], [0], [0], [1], [0, 0, 1, 1], [], []>} : vector<8x8xf32>, vector<8x2048xf32>, vector<8x2048xf32> -> vector<8x2048xf32>
    %146 = arith.addf %137, %145 : vector<8x2048xf32>
    %c62_i32 = arith.constant 62 : i32
    %147 = tpu.dynamic_rotate %113 by %c62_i32 dim 1 : vector<8x2048xf32>, i32 -> vector<8x2048xf32>
    %148 = arith.andi %122, %128 : vector<1x2048xi1>
    %cst_84 = arith.constant 0.000000e+00 : f32
    %149 = vector.shape_cast %148 : vector<1x2048xi1> to vector<1x2048xi1>
    %150 = vector.broadcast %149 : vector<1x2048xi1> to vector<8x2048xi1>
    %151 = vector.broadcast %cst_84 : f32 to vector<8x2048xf32>
    %152 = arith.select %150, %147, %151 : vector<8x2048xi1>, vector<8x2048xf32>
    %c1_85 = arith.constant 1 : index
    %c2_86 = arith.constant 2 : index
    %c0_87 = arith.constant 0 : index
    %c0_88 = arith.constant 0 : index
    %153 = vector.load %arg2[%c1_85, %c2_86, %c0_87, %c0_88] : memref<5x9x8x8xf32, #tpu.memory_space<vmem>>, vector<1x1x8x8xf32>
    %154 = vector.shape_cast %153 : vector<1x1x8x8xf32> to vector<8x8xf32>
    %cst_89 = arith.constant dense<0.000000e+00> : vector<8x2048xf32>
    %155 = tpu.matmul %154, %152, %cst_89 {dimension_numbers = #tpu.dot_dimension_numbers<[1], [0], [0], [1], [0, 0, 1, 1], [], []>} : vector<8x8xf32>, vector<8x2048xf32>, vector<8x2048xf32> -> vector<8x2048xf32>
    %156 = arith.addf %146, %155 : vector<8x2048xf32>
    %c2_i32_90 = arith.constant 2 : i32
    %157 = tpu.dynamic_rotate %113 by %c2_i32_90 dim 1 : vector<8x2048xf32>, i32 -> vector<8x2048xf32>
    %cst_91 = arith.constant 0.000000e+00 : f32
    %158 = vector.shape_cast %126 : vector<1x2048xi1> to vector<1x2048xi1>
    %159 = vector.broadcast %158 : vector<1x2048xi1> to vector<8x2048xi1>
    %160 = vector.broadcast %cst_91 : f32 to vector<8x2048xf32>
    %161 = arith.select %159, %157, %160 : vector<8x2048xi1>, vector<8x2048xf32>
    %c1_92 = arith.constant 1 : index
    %c3_93 = arith.constant 3 : index
    %c0_94 = arith.constant 0 : index
    %c0_95 = arith.constant 0 : index
    %162 = vector.load %arg2[%c1_92, %c3_93, %c0_94, %c0_95] : memref<5x9x8x8xf32, #tpu.memory_space<vmem>>, vector<1x1x8x8xf32>
    %163 = vector.shape_cast %162 : vector<1x1x8x8xf32> to vector<8x8xf32>
    %cst_96 = arith.constant dense<0.000000e+00> : vector<8x2048xf32>
    %164 = tpu.matmul %163, %161, %cst_96 {dimension_numbers = #tpu.dot_dimension_numbers<[1], [0], [0], [1], [0, 0, 1, 1], [], []>} : vector<8x8xf32>, vector<8x2048xf32>, vector<8x2048xf32> -> vector<8x2048xf32>
    %165 = arith.addf %156, %164 : vector<8x2048xf32>
    %c1_97 = arith.constant 1 : index
    %c4_98 = arith.constant 4 : index
    %c0_99 = arith.constant 0 : index
    %c0_100 = arith.constant 0 : index
    %166 = vector.load %arg2[%c1_97, %c4_98, %c0_99, %c0_100] : memref<5x9x8x8xf32, #tpu.memory_space<vmem>>, vector<1x1x8x8xf32>
    %167 = vector.shape_cast %166 : vector<1x1x8x8xf32> to vector<8x8xf32>
    %cst_101 = arith.constant dense<0.000000e+00> : vector<8x2048xf32>
    %168 = tpu.matmul %167, %113, %cst_101 {dimension_numbers = #tpu.dot_dimension_numbers<[1], [0], [0], [1], [0, 0, 1, 1], [], []>} : vector<8x8xf32>, vector<8x2048xf32>, vector<8x2048xf32> -> vector<8x2048xf32>
    %169 = arith.addf %165, %168 : vector<8x2048xf32>
    %c2046_i32 = arith.constant 2046 : i32
    %170 = tpu.dynamic_rotate %113 by %c2046_i32 dim 1 : vector<8x2048xf32>, i32 -> vector<8x2048xf32>
    %cst_102 = arith.constant 0.000000e+00 : f32
    %171 = vector.shape_cast %128 : vector<1x2048xi1> to vector<1x2048xi1>
    %172 = vector.broadcast %171 : vector<1x2048xi1> to vector<8x2048xi1>
    %173 = vector.broadcast %cst_102 : f32 to vector<8x2048xf32>
    %174 = arith.select %172, %170, %173 : vector<8x2048xi1>, vector<8x2048xf32>
    %c1_103 = arith.constant 1 : index
    %c5_104 = arith.constant 5 : index
    %c0_105 = arith.constant 0 : index
    %c0_106 = arith.constant 0 : index
    %175 = vector.load %arg2[%c1_103, %c5_104, %c0_105, %c0_106] : memref<5x9x8x8xf32, #tpu.memory_space<vmem>>, vector<1x1x8x8xf32>
    %176 = vector.shape_cast %175 : vector<1x1x8x8xf32> to vector<8x8xf32>
    %cst_107 = arith.constant dense<0.000000e+00> : vector<8x2048xf32>
    %177 = tpu.matmul %176, %174, %cst_107 {dimension_numbers = #tpu.dot_dimension_numbers<[1], [0], [0], [1], [0, 0, 1, 1], [], []>} : vector<8x8xf32>, vector<8x2048xf32>, vector<8x2048xf32> -> vector<8x2048xf32>
    %178 = arith.addf %169, %177 : vector<8x2048xf32>
    %c1986_i32 = arith.constant 1986 : i32
    %179 = tpu.dynamic_rotate %113 by %c1986_i32 dim 1 : vector<8x2048xf32>, i32 -> vector<8x2048xf32>
    %180 = arith.andi %124, %126 : vector<1x2048xi1>
    %cst_108 = arith.constant 0.000000e+00 : f32
    %181 = vector.shape_cast %180 : vector<1x2048xi1> to vector<1x2048xi1>
    %182 = vector.broadcast %181 : vector<1x2048xi1> to vector<8x2048xi1>
    %183 = vector.broadcast %cst_108 : f32 to vector<8x2048xf32>
    %184 = arith.select %182, %179, %183 : vector<8x2048xi1>, vector<8x2048xf32>
    %c1_109 = arith.constant 1 : index
    %c6_110 = arith.constant 6 : index
    %c0_111 = arith.constant 0 : index
    %c0_112 = arith.constant 0 : index
    %185 = vector.load %arg2[%c1_109, %c6_110, %c0_111, %c0_112] : memref<5x9x8x8xf32, #tpu.memory_space<vmem>>, vector<1x1x8x8xf32>
    %186 = vector.shape_cast %185 : vector<1x1x8x8xf32> to vector<8x8xf32>
    %cst_113 = arith.constant dense<0.000000e+00> : vector<8x2048xf32>
    %187 = tpu.matmul %186, %184, %cst_113 {dimension_numbers = #tpu.dot_dimension_numbers<[1], [0], [0], [1], [0, 0, 1, 1], [], []>} : vector<8x8xf32>, vector<8x2048xf32>, vector<8x2048xf32> -> vector<8x2048xf32>
    %188 = arith.addf %178, %187 : vector<8x2048xf32>
    %c1984_i32 = arith.constant 1984 : i32
    %189 = tpu.dynamic_rotate %113 by %c1984_i32 dim 1 : vector<8x2048xf32>, i32 -> vector<8x2048xf32>
    %cst_114 = arith.constant 0.000000e+00 : f32
    %190 = vector.shape_cast %124 : vector<1x2048xi1> to vector<1x2048xi1>
    %191 = vector.broadcast %190 : vector<1x2048xi1> to vector<8x2048xi1>
    %192 = vector.broadcast %cst_114 : f32 to vector<8x2048xf32>
    %193 = arith.select %191, %189, %192 : vector<8x2048xi1>, vector<8x2048xf32>
    %c1_115 = arith.constant 1 : index
    %c7_116 = arith.constant 7 : index
    %c0_117 = arith.constant 0 : index
    %c0_118 = arith.constant 0 : index
    %194 = vector.load %arg2[%c1_115, %c7_116, %c0_117, %c0_118] : memref<5x9x8x8xf32, #tpu.memory_space<vmem>>, vector<1x1x8x8xf32>
    %195 = vector.shape_cast %194 : vector<1x1x8x8xf32> to vector<8x8xf32>
    %cst_119 = arith.constant dense<0.000000e+00> : vector<8x2048xf32>
    %196 = tpu.matmul %195, %193, %cst_119 {dimension_numbers = #tpu.dot_dimension_numbers<[1], [0], [0], [1], [0, 0, 1, 1], [], []>} : vector<8x8xf32>, vector<8x2048xf32>, vector<8x2048xf32> -> vector<8x2048xf32>
    %197 = arith.addf %188, %196 : vector<8x2048xf32>
    %c1982_i32 = arith.constant 1982 : i32
    %198 = tpu.dynamic_rotate %113 by %c1982_i32 dim 1 : vector<8x2048xf32>, i32 -> vector<8x2048xf32>
    %199 = arith.andi %124, %128 : vector<1x2048xi1>
    %cst_120 = arith.constant 0.000000e+00 : f32
    %200 = vector.shape_cast %199 : vector<1x2048xi1> to vector<1x2048xi1>
    %201 = vector.broadcast %200 : vector<1x2048xi1> to vector<8x2048xi1>
    %202 = vector.broadcast %cst_120 : f32 to vector<8x2048xf32>
    %203 = arith.select %201, %198, %202 : vector<8x2048xi1>, vector<8x2048xf32>
    %c1_121 = arith.constant 1 : index
    %c8_122 = arith.constant 8 : index
    %c0_123 = arith.constant 0 : index
    %c0_124 = arith.constant 0 : index
    %204 = vector.load %arg2[%c1_121, %c8_122, %c0_123, %c0_124] : memref<5x9x8x8xf32, #tpu.memory_space<vmem>>, vector<1x1x8x8xf32>
    %205 = vector.shape_cast %204 : vector<1x1x8x8xf32> to vector<8x8xf32>
    %cst_125 = arith.constant dense<0.000000e+00> : vector<8x2048xf32>
    %206 = tpu.matmul %205, %203, %cst_125 {dimension_numbers = #tpu.dot_dimension_numbers<[1], [0], [0], [1], [0, 0, 1, 1], [], []>} : vector<8x8xf32>, vector<8x2048xf32>, vector<8x2048xf32> -> vector<8x2048xf32>
    %207 = arith.addf %197, %206 : vector<8x2048xf32>
    %c1_126 = arith.constant 1 : index
    %c0_127 = arith.constant 0 : index
    %c0_128 = arith.constant 0 : index
    %c0_129 = arith.constant 0 : index
    %208 = vector.load %arg3[%c1_126, %c0_127, %c0_128, %c0_129] : memref<5x3x8x1xf32, #tpu.memory_space<vmem>>, vector<1x1x8x1xf32>
    %209 = vector.shape_cast %208 : vector<1x1x8x1xf32> to vector<8x1xf32>
    %210 = vector.broadcast %209 : vector<8x1xf32> to vector<8x2048xf32>
    %211 = arith.addf %207, %210 : vector<8x2048xf32>
    %cst_130 = arith.constant 0.000000e+00 : f32
    %212 = vector.broadcast %cst_130 : f32 to vector<8x2048xf32>
    %213 = arith.maximumf %211, %212 : vector<8x2048xf32>
    %c1_131 = arith.constant 1 : index
    %c1_132 = arith.constant 1 : index
    %c0_133 = arith.constant 0 : index
    %c0_134 = arith.constant 0 : index
    %214 = vector.load %arg3[%c1_131, %c1_132, %c0_133, %c0_134] : memref<5x3x8x1xf32, #tpu.memory_space<vmem>>, vector<1x1x8x1xf32>
    %215 = vector.shape_cast %214 : vector<1x1x8x1xf32> to vector<8x1xf32>
    %216 = vector.broadcast %215 : vector<8x1xf32> to vector<8x2048xf32>
    %217 = arith.mulf %213, %216 : vector<8x2048xf32>
    %c1_135 = arith.constant 1 : index
    %c2_136 = arith.constant 2 : index
    %c0_137 = arith.constant 0 : index
    %c0_138 = arith.constant 0 : index
    %218 = vector.load %arg3[%c1_135, %c2_136, %c0_137, %c0_138] : memref<5x3x8x1xf32, #tpu.memory_space<vmem>>, vector<1x1x8x1xf32>
    %219 = vector.shape_cast %218 : vector<1x1x8x1xf32> to vector<8x1xf32>
    %220 = vector.broadcast %219 : vector<8x1xf32> to vector<8x2048xf32>
    %221 = arith.addf %217, %220 : vector<8x2048xf32>
    %c2046_i32_139 = arith.constant 2046 : i32
    %222 = tpu.dynamic_rotate %221 by %c2046_i32_139 dim 1 : vector<8x2048xf32>, i32 -> vector<8x2048xf32>
    %223 = arith.maximumf %221, %222 : vector<8x2048xf32>
    %c1984_i32_140 = arith.constant 1984 : i32
    %224 = tpu.dynamic_rotate %223 by %c1984_i32_140 dim 1 : vector<8x2048xf32>, i32 -> vector<8x2048xf32>
    %225 = arith.maximumf %223, %224 : vector<8x2048xf32>
    %226 = tpu.iota {dimensions = array<i32: 0>} : vector<1024x64xi32>
    %227 = tpu.iota {dimensions = array<i32: 1>} : vector<1024x64xi32>
    %c3_i32 = arith.constant 3 : i32
    %228 = vector.broadcast %c3_i32 : i32 to vector<1024x64xi32>
    %229 = arith.shrsi %227, %228 : vector<1024x64xi32>
    %c7_i32 = arith.constant 7 : i32
    %230 = vector.broadcast %c7_i32 : i32 to vector<1024x64xi32>
    %231 = arith.shli %229, %230 : vector<1024x64xi32>
    %c7_i32_141 = arith.constant 7 : i32
    %232 = vector.broadcast %c7_i32_141 : i32 to vector<1024x64xi32>
    %233 = arith.andi %227, %232 : vector<1024x64xi32>
    %c2_i32_142 = arith.constant 2 : i32
    %234 = vector.broadcast %c2_i32_142 : i32 to vector<1024x64xi32>
    %235 = arith.shli %233, %234 : vector<1024x64xi32>
    %236 = arith.addi %231, %235 : vector<1024x64xi32>
    %237 = arith.cmpi eq, %226, %236 : vector<1024x64xi32>
    %238 = arith.extui %237 : vector<1024x64xi1> to vector<1024x64xi32>
    %239 = arith.sitofp %238 : vector<1024x64xi32> to vector<1024x64xf32>
    %240 = vector.extract_strided_slice %225 {offsets = [0, 0], sizes = [8, 1024], strides = [1, 1]} : vector<8x2048xf32> to vector<8x1024xf32>
    %cst_143 = arith.constant dense<0.000000e+00> : vector<8x64xf32>
    %241 = tpu.matmul %240, %239, %cst_143 {dimension_numbers = #tpu.dot_dimension_numbers<[1], [0], [0], [1], [0, 0, 1, 1], [], []>} : vector<8x1024xf32>, vector<1024x64xf32>, vector<8x64xf32> -> vector<8x64xf32>
    %242 = vector.extract_strided_slice %225 {offsets = [0, 1024], sizes = [8, 1024], strides = [1, 1]} : vector<8x2048xf32> to vector<8x1024xf32>
    %cst_144 = arith.constant dense<0.000000e+00> : vector<8x64xf32>
    %243 = tpu.matmul %242, %239, %cst_144 {dimension_numbers = #tpu.dot_dimension_numbers<[1], [0], [0], [1], [0, 0, 1, 1], [], []>} : vector<8x1024xf32>, vector<1024x64xf32>, vector<8x64xf32> -> vector<8x64xf32>
    %244 = tpu.concatenate %241, %243 in 1 : vector<8x64xf32>, vector<8x64xf32> -> vector<8x128xf32>
    %245 = tpu.iota {dimensions = array<i32: 1>} : vector<1x128xi32>
    %c3_i32_145 = arith.constant 3 : i32
    %246 = vector.broadcast %c3_i32_145 : i32 to vector<1x128xi32>
    %247 = arith.shrsi %245, %246 : vector<1x128xi32>
    %c7_i32_146 = arith.constant 7 : i32
    %248 = vector.broadcast %c7_i32_146 : i32 to vector<1x128xi32>
    %249 = arith.andi %247, %248 : vector<1x128xi32>
    %c7_i32_147 = arith.constant 7 : i32
    %250 = vector.broadcast %c7_i32_147 : i32 to vector<1x128xi32>
    %251 = arith.andi %245, %250 : vector<1x128xi32>
    %c1_i32_148 = arith.constant 1 : i32
    %252 = vector.broadcast %c1_i32_148 : i32 to vector<1x128xi32>
    %253 = arith.cmpi sge, %249, %252 : vector<1x128xi32>
    %c7_i32_149 = arith.constant 7 : i32
    %254 = vector.broadcast %c7_i32_149 : i32 to vector<1x128xi32>
    %255 = arith.cmpi slt, %249, %254 : vector<1x128xi32>
    %c1_i32_150 = arith.constant 1 : i32
    %256 = vector.broadcast %c1_i32_150 : i32 to vector<1x128xi32>
    %257 = arith.cmpi sge, %251, %256 : vector<1x128xi32>
    %c7_i32_151 = arith.constant 7 : i32
    %258 = vector.broadcast %c7_i32_151 : i32 to vector<1x128xi32>
    %259 = arith.cmpi slt, %251, %258 : vector<1x128xi32>
    %c9_i32 = arith.constant 9 : i32
    %260 = tpu.dynamic_rotate %244 by %c9_i32 dim 1 : vector<8x128xf32>, i32 -> vector<8x128xf32>
    %261 = arith.andi %253, %257 : vector<1x128xi1>
    %cst_152 = arith.constant 0.000000e+00 : f32
    %262 = vector.shape_cast %261 : vector<1x128xi1> to vector<1x128xi1>
    %263 = vector.broadcast %262 : vector<1x128xi1> to vector<8x128xi1>
    %264 = vector.broadcast %cst_152 : f32 to vector<8x128xf32>
    %265 = arith.select %263, %260, %264 : vector<8x128xi1>, vector<8x128xf32>
    %c2_153 = arith.constant 2 : index
    %c0_154 = arith.constant 0 : index
    %c0_155 = arith.constant 0 : index
    %c0_156 = arith.constant 0 : index
    %266 = vector.load %arg2[%c2_153, %c0_154, %c0_155, %c0_156] : memref<5x9x8x8xf32, #tpu.memory_space<vmem>>, vector<1x1x8x8xf32>
    %267 = vector.shape_cast %266 : vector<1x1x8x8xf32> to vector<8x8xf32>
    %cst_157 = arith.constant dense<0.000000e+00> : vector<8x128xf32>
    %268 = tpu.matmul %267, %265, %cst_157 {dimension_numbers = #tpu.dot_dimension_numbers<[1], [0], [0], [1], [0, 0, 1, 1], [], []>} : vector<8x8xf32>, vector<8x128xf32>, vector<8x128xf32> -> vector<8x128xf32>
    %c8_i32 = arith.constant 8 : i32
    %269 = tpu.dynamic_rotate %244 by %c8_i32 dim 1 : vector<8x128xf32>, i32 -> vector<8x128xf32>
    %cst_158 = arith.constant 0.000000e+00 : f32
    %270 = vector.shape_cast %253 : vector<1x128xi1> to vector<1x128xi1>
    %271 = vector.broadcast %270 : vector<1x128xi1> to vector<8x128xi1>
    %272 = vector.broadcast %cst_158 : f32 to vector<8x128xf32>
    %273 = arith.select %271, %269, %272 : vector<8x128xi1>, vector<8x128xf32>
    %c2_159 = arith.constant 2 : index
    %c1_160 = arith.constant 1 : index
    %c0_161 = arith.constant 0 : index
    %c0_162 = arith.constant 0 : index
    %274 = vector.load %arg2[%c2_159, %c1_160, %c0_161, %c0_162] : memref<5x9x8x8xf32, #tpu.memory_space<vmem>>, vector<1x1x8x8xf32>
    %275 = vector.shape_cast %274 : vector<1x1x8x8xf32> to vector<8x8xf32>
    %cst_163 = arith.constant dense<0.000000e+00> : vector<8x128xf32>
    %276 = tpu.matmul %275, %273, %cst_163 {dimension_numbers = #tpu.dot_dimension_numbers<[1], [0], [0], [1], [0, 0, 1, 1], [], []>} : vector<8x8xf32>, vector<8x128xf32>, vector<8x128xf32> -> vector<8x128xf32>
    %277 = arith.addf %268, %276 : vector<8x128xf32>
    %c7_i32_164 = arith.constant 7 : i32
    %278 = tpu.dynamic_rotate %244 by %c7_i32_164 dim 1 : vector<8x128xf32>, i32 -> vector<8x128xf32>
    %279 = arith.andi %253, %259 : vector<1x128xi1>
    %cst_165 = arith.constant 0.000000e+00 : f32
    %280 = vector.shape_cast %279 : vector<1x128xi1> to vector<1x128xi1>
    %281 = vector.broadcast %280 : vector<1x128xi1> to vector<8x128xi1>
    %282 = vector.broadcast %cst_165 : f32 to vector<8x128xf32>
    %283 = arith.select %281, %278, %282 : vector<8x128xi1>, vector<8x128xf32>
    %c2_166 = arith.constant 2 : index
    %c2_167 = arith.constant 2 : index
    %c0_168 = arith.constant 0 : index
    %c0_169 = arith.constant 0 : index
    %284 = vector.load %arg2[%c2_166, %c2_167, %c0_168, %c0_169] : memref<5x9x8x8xf32, #tpu.memory_space<vmem>>, vector<1x1x8x8xf32>
    %285 = vector.shape_cast %284 : vector<1x1x8x8xf32> to vector<8x8xf32>
    %cst_170 = arith.constant dense<0.000000e+00> : vector<8x128xf32>
    %286 = tpu.matmul %285, %283, %cst_170 {dimension_numbers = #tpu.dot_dimension_numbers<[1], [0], [0], [1], [0, 0, 1, 1], [], []>} : vector<8x8xf32>, vector<8x128xf32>, vector<8x128xf32> -> vector<8x128xf32>
    %287 = arith.addf %277, %286 : vector<8x128xf32>
    %c1_i32_171 = arith.constant 1 : i32
    %288 = tpu.dynamic_rotate %244 by %c1_i32_171 dim 1 : vector<8x128xf32>, i32 -> vector<8x128xf32>
    %cst_172 = arith.constant 0.000000e+00 : f32
    %289 = vector.shape_cast %257 : vector<1x128xi1> to vector<1x128xi1>
    %290 = vector.broadcast %289 : vector<1x128xi1> to vector<8x128xi1>
    %291 = vector.broadcast %cst_172 : f32 to vector<8x128xf32>
    %292 = arith.select %290, %288, %291 : vector<8x128xi1>, vector<8x128xf32>
    %c2_173 = arith.constant 2 : index
    %c3_174 = arith.constant 3 : index
    %c0_175 = arith.constant 0 : index
    %c0_176 = arith.constant 0 : index
    %293 = vector.load %arg2[%c2_173, %c3_174, %c0_175, %c0_176] : memref<5x9x8x8xf32, #tpu.memory_space<vmem>>, vector<1x1x8x8xf32>
    %294 = vector.shape_cast %293 : vector<1x1x8x8xf32> to vector<8x8xf32>
    %cst_177 = arith.constant dense<0.000000e+00> : vector<8x128xf32>
    %295 = tpu.matmul %294, %292, %cst_177 {dimension_numbers = #tpu.dot_dimension_numbers<[1], [0], [0], [1], [0, 0, 1, 1], [], []>} : vector<8x8xf32>, vector<8x128xf32>, vector<8x128xf32> -> vector<8x128xf32>
    %296 = arith.addf %287, %295 : vector<8x128xf32>
    %c2_178 = arith.constant 2 : index
    %c4_179 = arith.constant 4 : index
    %c0_180 = arith.constant 0 : index
    %c0_181 = arith.constant 0 : index
    %297 = vector.load %arg2[%c2_178, %c4_179, %c0_180, %c0_181] : memref<5x9x8x8xf32, #tpu.memory_space<vmem>>, vector<1x1x8x8xf32>
    %298 = vector.shape_cast %297 : vector<1x1x8x8xf32> to vector<8x8xf32>
    %cst_182 = arith.constant dense<0.000000e+00> : vector<8x128xf32>
    %299 = tpu.matmul %298, %244, %cst_182 {dimension_numbers = #tpu.dot_dimension_numbers<[1], [0], [0], [1], [0, 0, 1, 1], [], []>} : vector<8x8xf32>, vector<8x128xf32>, vector<8x128xf32> -> vector<8x128xf32>
    %300 = arith.addf %296, %299 : vector<8x128xf32>
    %c127_i32 = arith.constant 127 : i32
    %301 = tpu.dynamic_rotate %244 by %c127_i32 dim 1 : vector<8x128xf32>, i32 -> vector<8x128xf32>
    %cst_183 = arith.constant 0.000000e+00 : f32
    %302 = vector.shape_cast %259 : vector<1x128xi1> to vector<1x128xi1>
    %303 = vector.broadcast %302 : vector<1x128xi1> to vector<8x128xi1>
    %304 = vector.broadcast %cst_183 : f32 to vector<8x128xf32>
    %305 = arith.select %303, %301, %304 : vector<8x128xi1>, vector<8x128xf32>
    %c2_184 = arith.constant 2 : index
    %c5_185 = arith.constant 5 : index
    %c0_186 = arith.constant 0 : index
    %c0_187 = arith.constant 0 : index
    %306 = vector.load %arg2[%c2_184, %c5_185, %c0_186, %c0_187] : memref<5x9x8x8xf32, #tpu.memory_space<vmem>>, vector<1x1x8x8xf32>
    %307 = vector.shape_cast %306 : vector<1x1x8x8xf32> to vector<8x8xf32>
    %cst_188 = arith.constant dense<0.000000e+00> : vector<8x128xf32>
    %308 = tpu.matmul %307, %305, %cst_188 {dimension_numbers = #tpu.dot_dimension_numbers<[1], [0], [0], [1], [0, 0, 1, 1], [], []>} : vector<8x8xf32>, vector<8x128xf32>, vector<8x128xf32> -> vector<8x128xf32>
    %309 = arith.addf %300, %308 : vector<8x128xf32>
    %c121_i32 = arith.constant 121 : i32
    %310 = tpu.dynamic_rotate %244 by %c121_i32 dim 1 : vector<8x128xf32>, i32 -> vector<8x128xf32>
    %311 = arith.andi %255, %257 : vector<1x128xi1>
    %cst_189 = arith.constant 0.000000e+00 : f32
    %312 = vector.shape_cast %311 : vector<1x128xi1> to vector<1x128xi1>
    %313 = vector.broadcast %312 : vector<1x128xi1> to vector<8x128xi1>
    %314 = vector.broadcast %cst_189 : f32 to vector<8x128xf32>
    %315 = arith.select %313, %310, %314 : vector<8x128xi1>, vector<8x128xf32>
    %c2_190 = arith.constant 2 : index
    %c6_191 = arith.constant 6 : index
    %c0_192 = arith.constant 0 : index
    %c0_193 = arith.constant 0 : index
    %316 = vector.load %arg2[%c2_190, %c6_191, %c0_192, %c0_193] : memref<5x9x8x8xf32, #tpu.memory_space<vmem>>, vector<1x1x8x8xf32>
    %317 = vector.shape_cast %316 : vector<1x1x8x8xf32> to vector<8x8xf32>
    %cst_194 = arith.constant dense<0.000000e+00> : vector<8x128xf32>
    %318 = tpu.matmul %317, %315, %cst_194 {dimension_numbers = #tpu.dot_dimension_numbers<[1], [0], [0], [1], [0, 0, 1, 1], [], []>} : vector<8x8xf32>, vector<8x128xf32>, vector<8x128xf32> -> vector<8x128xf32>
    %319 = arith.addf %309, %318 : vector<8x128xf32>
    %c120_i32 = arith.constant 120 : i32
    %320 = tpu.dynamic_rotate %244 by %c120_i32 dim 1 : vector<8x128xf32>, i32 -> vector<8x128xf32>
    %cst_195 = arith.constant 0.000000e+00 : f32
    %321 = vector.shape_cast %255 : vector<1x128xi1> to vector<1x128xi1>
    %322 = vector.broadcast %321 : vector<1x128xi1> to vector<8x128xi1>
    %323 = vector.broadcast %cst_195 : f32 to vector<8x128xf32>
    %324 = arith.select %322, %320, %323 : vector<8x128xi1>, vector<8x128xf32>
    %c2_196 = arith.constant 2 : index
    %c7_197 = arith.constant 7 : index
    %c0_198 = arith.constant 0 : index
    %c0_199 = arith.constant 0 : index
    %325 = vector.load %arg2[%c2_196, %c7_197, %c0_198, %c0_199] : memref<5x9x8x8xf32, #tpu.memory_space<vmem>>, vector<1x1x8x8xf32>
    %326 = vector.shape_cast %325 : vector<1x1x8x8xf32> to vector<8x8xf32>
    %cst_200 = arith.constant dense<0.000000e+00> : vector<8x128xf32>
    %327 = tpu.matmul %326, %324, %cst_200 {dimension_numbers = #tpu.dot_dimension_numbers<[1], [0], [0], [1], [0, 0, 1, 1], [], []>} : vector<8x8xf32>, vector<8x128xf32>, vector<8x128xf32> -> vector<8x128xf32>
    %328 = arith.addf %319, %327 : vector<8x128xf32>
    %c119_i32 = arith.constant 119 : i32
    %329 = tpu.dynamic_rotate %244 by %c119_i32 dim 1 : vector<8x128xf32>, i32 -> vector<8x128xf32>
    %330 = arith.andi %255, %259 : vector<1x128xi1>
    %cst_201 = arith.constant 0.000000e+00 : f32
    %331 = vector.shape_cast %330 : vector<1x128xi1> to vector<1x128xi1>
    %332 = vector.broadcast %331 : vector<1x128xi1> to vector<8x128xi1>
    %333 = vector.broadcast %cst_201 : f32 to vector<8x128xf32>
    %334 = arith.select %332, %329, %333 : vector<8x128xi1>, vector<8x128xf32>
    %c2_202 = arith.constant 2 : index
    %c8_203 = arith.constant 8 : index
    %c0_204 = arith.constant 0 : index
    %c0_205 = arith.constant 0 : index
    %335 = vector.load %arg2[%c2_202, %c8_203, %c0_204, %c0_205] : memref<5x9x8x8xf32, #tpu.memory_space<vmem>>, vector<1x1x8x8xf32>
    %336 = vector.shape_cast %335 : vector<1x1x8x8xf32> to vector<8x8xf32>
    %cst_206 = arith.constant dense<0.000000e+00> : vector<8x128xf32>
    %337 = tpu.matmul %336, %334, %cst_206 {dimension_numbers = #tpu.dot_dimension_numbers<[1], [0], [0], [1], [0, 0, 1, 1], [], []>} : vector<8x8xf32>, vector<8x128xf32>, vector<8x128xf32> -> vector<8x128xf32>
    %338 = arith.addf %328, %337 : vector<8x128xf32>
    %c2_207 = arith.constant 2 : index
    %c0_208 = arith.constant 0 : index
    %c0_209 = arith.constant 0 : index
    %c0_210 = arith.constant 0 : index
    %339 = vector.load %arg3[%c2_207, %c0_208, %c0_209, %c0_210] : memref<5x3x8x1xf32, #tpu.memory_space<vmem>>, vector<1x1x8x1xf32>
    %340 = vector.shape_cast %339 : vector<1x1x8x1xf32> to vector<8x1xf32>
    %341 = vector.broadcast %340 : vector<8x1xf32> to vector<8x128xf32>
    %342 = arith.addf %338, %341 : vector<8x128xf32>
    %cst_211 = arith.constant 0.000000e+00 : f32
    %343 = vector.broadcast %cst_211 : f32 to vector<8x128xf32>
    %344 = arith.maximumf %342, %343 : vector<8x128xf32>
    %c2_212 = arith.constant 2 : index
    %c1_213 = arith.constant 1 : index
    %c0_214 = arith.constant 0 : index
    %c0_215 = arith.constant 0 : index
    %345 = vector.load %arg3[%c2_212, %c1_213, %c0_214, %c0_215] : memref<5x3x8x1xf32, #tpu.memory_space<vmem>>, vector<1x1x8x1xf32>
    %346 = vector.shape_cast %345 : vector<1x1x8x1xf32> to vector<8x1xf32>
    %347 = vector.broadcast %346 : vector<8x1xf32> to vector<8x128xf32>
    %348 = arith.mulf %344, %347 : vector<8x128xf32>
    %c2_216 = arith.constant 2 : index
    %c2_217 = arith.constant 2 : index
    %c0_218 = arith.constant 0 : index
    %c0_219 = arith.constant 0 : index
    %349 = vector.load %arg3[%c2_216, %c2_217, %c0_218, %c0_219] : memref<5x3x8x1xf32, #tpu.memory_space<vmem>>, vector<1x1x8x1xf32>
    %350 = vector.shape_cast %349 : vector<1x1x8x1xf32> to vector<8x1xf32>
    %351 = vector.broadcast %350 : vector<8x1xf32> to vector<8x128xf32>
    %352 = arith.addf %348, %351 : vector<8x128xf32>
    %c127_i32_220 = arith.constant 127 : i32
    %353 = tpu.dynamic_rotate %352 by %c127_i32_220 dim 1 : vector<8x128xf32>, i32 -> vector<8x128xf32>
    %354 = arith.maximumf %352, %353 : vector<8x128xf32>
    %c120_i32_221 = arith.constant 120 : i32
    %355 = tpu.dynamic_rotate %354 by %c120_i32_221 dim 1 : vector<8x128xf32>, i32 -> vector<8x128xf32>
    %356 = arith.maximumf %354, %355 : vector<8x128xf32>
    %357 = tpu.iota {dimensions = array<i32: 1>} : vector<1x128xi32>
    %c3_i32_222 = arith.constant 3 : i32
    %358 = vector.broadcast %c3_i32_222 : i32 to vector<1x128xi32>
    %359 = arith.shrsi %357, %358 : vector<1x128xi32>
    %c7_i32_223 = arith.constant 7 : i32
    %360 = vector.broadcast %c7_i32_223 : i32 to vector<1x128xi32>
    %361 = arith.andi %359, %360 : vector<1x128xi32>
    %c7_i32_224 = arith.constant 7 : i32
    %362 = vector.broadcast %c7_i32_224 : i32 to vector<1x128xi32>
    %363 = arith.andi %357, %362 : vector<1x128xi32>
    %c2_i32_225 = arith.constant 2 : i32
    %364 = vector.broadcast %c2_i32_225 : i32 to vector<1x128xi32>
    %365 = arith.cmpi sge, %361, %364 : vector<1x128xi32>
    %c6_i32 = arith.constant 6 : i32
    %366 = vector.broadcast %c6_i32 : i32 to vector<1x128xi32>
    %367 = arith.cmpi slt, %361, %366 : vector<1x128xi32>
    %c2_i32_226 = arith.constant 2 : i32
    %368 = vector.broadcast %c2_i32_226 : i32 to vector<1x128xi32>
    %369 = arith.cmpi sge, %363, %368 : vector<1x128xi32>
    %c6_i32_227 = arith.constant 6 : i32
    %370 = vector.broadcast %c6_i32_227 : i32 to vector<1x128xi32>
    %371 = arith.cmpi slt, %363, %370 : vector<1x128xi32>
    %c18_i32 = arith.constant 18 : i32
    %372 = tpu.dynamic_rotate %356 by %c18_i32 dim 1 : vector<8x128xf32>, i32 -> vector<8x128xf32>
    %373 = arith.andi %365, %369 : vector<1x128xi1>
    %cst_228 = arith.constant 0.000000e+00 : f32
    %374 = vector.shape_cast %373 : vector<1x128xi1> to vector<1x128xi1>
    %375 = vector.broadcast %374 : vector<1x128xi1> to vector<8x128xi1>
    %376 = vector.broadcast %cst_228 : f32 to vector<8x128xf32>
    %377 = arith.select %375, %372, %376 : vector<8x128xi1>, vector<8x128xf32>
    %c3_229 = arith.constant 3 : index
    %c0_230 = arith.constant 0 : index
    %c0_231 = arith.constant 0 : index
    %c0_232 = arith.constant 0 : index
    %378 = vector.load %arg2[%c3_229, %c0_230, %c0_231, %c0_232] : memref<5x9x8x8xf32, #tpu.memory_space<vmem>>, vector<1x1x8x8xf32>
    %379 = vector.shape_cast %378 : vector<1x1x8x8xf32> to vector<8x8xf32>
    %cst_233 = arith.constant dense<0.000000e+00> : vector<8x128xf32>
    %380 = tpu.matmul %379, %377, %cst_233 {dimension_numbers = #tpu.dot_dimension_numbers<[1], [0], [0], [1], [0, 0, 1, 1], [], []>} : vector<8x8xf32>, vector<8x128xf32>, vector<8x128xf32> -> vector<8x128xf32>
    %c16_i32 = arith.constant 16 : i32
    %381 = tpu.dynamic_rotate %356 by %c16_i32 dim 1 : vector<8x128xf32>, i32 -> vector<8x128xf32>
    %cst_234 = arith.constant 0.000000e+00 : f32
    %382 = vector.shape_cast %365 : vector<1x128xi1> to vector<1x128xi1>
    %383 = vector.broadcast %382 : vector<1x128xi1> to vector<8x128xi1>
    %384 = vector.broadcast %cst_234 : f32 to vector<8x128xf32>
    %385 = arith.select %383, %381, %384 : vector<8x128xi1>, vector<8x128xf32>
    %c3_235 = arith.constant 3 : index
    %c1_236 = arith.constant 1 : index
    %c0_237 = arith.constant 0 : index
    %c0_238 = arith.constant 0 : index
    %386 = vector.load %arg2[%c3_235, %c1_236, %c0_237, %c0_238] : memref<5x9x8x8xf32, #tpu.memory_space<vmem>>, vector<1x1x8x8xf32>
    %387 = vector.shape_cast %386 : vector<1x1x8x8xf32> to vector<8x8xf32>
    %cst_239 = arith.constant dense<0.000000e+00> : vector<8x128xf32>
    %388 = tpu.matmul %387, %385, %cst_239 {dimension_numbers = #tpu.dot_dimension_numbers<[1], [0], [0], [1], [0, 0, 1, 1], [], []>} : vector<8x8xf32>, vector<8x128xf32>, vector<8x128xf32> -> vector<8x128xf32>
    %389 = arith.addf %380, %388 : vector<8x128xf32>
    %c14_i32 = arith.constant 14 : i32
    %390 = tpu.dynamic_rotate %356 by %c14_i32 dim 1 : vector<8x128xf32>, i32 -> vector<8x128xf32>
    %391 = arith.andi %365, %371 : vector<1x128xi1>
    %cst_240 = arith.constant 0.000000e+00 : f32
    %392 = vector.shape_cast %391 : vector<1x128xi1> to vector<1x128xi1>
    %393 = vector.broadcast %392 : vector<1x128xi1> to vector<8x128xi1>
    %394 = vector.broadcast %cst_240 : f32 to vector<8x128xf32>
    %395 = arith.select %393, %390, %394 : vector<8x128xi1>, vector<8x128xf32>
    %c3_241 = arith.constant 3 : index
    %c2_242 = arith.constant 2 : index
    %c0_243 = arith.constant 0 : index
    %c0_244 = arith.constant 0 : index
    %396 = vector.load %arg2[%c3_241, %c2_242, %c0_243, %c0_244] : memref<5x9x8x8xf32, #tpu.memory_space<vmem>>, vector<1x1x8x8xf32>
    %397 = vector.shape_cast %396 : vector<1x1x8x8xf32> to vector<8x8xf32>
    %cst_245 = arith.constant dense<0.000000e+00> : vector<8x128xf32>
    %398 = tpu.matmul %397, %395, %cst_245 {dimension_numbers = #tpu.dot_dimension_numbers<[1], [0], [0], [1], [0, 0, 1, 1], [], []>} : vector<8x8xf32>, vector<8x128xf32>, vector<8x128xf32> -> vector<8x128xf32>
    %399 = arith.addf %389, %398 : vector<8x128xf32>
    %c2_i32_246 = arith.constant 2 : i32
    %400 = tpu.dynamic_rotate %356 by %c2_i32_246 dim 1 : vector<8x128xf32>, i32 -> vector<8x128xf32>
    %cst_247 = arith.constant 0.000000e+00 : f32
    %401 = vector.shape_cast %369 : vector<1x128xi1> to vector<1x128xi1>
    %402 = vector.broadcast %401 : vector<1x128xi1> to vector<8x128xi1>
    %403 = vector.broadcast %cst_247 : f32 to vector<8x128xf32>
    %404 = arith.select %402, %400, %403 : vector<8x128xi1>, vector<8x128xf32>
    %c3_248 = arith.constant 3 : index
    %c3_249 = arith.constant 3 : index
    %c0_250 = arith.constant 0 : index
    %c0_251 = arith.constant 0 : index
    %405 = vector.load %arg2[%c3_248, %c3_249, %c0_250, %c0_251] : memref<5x9x8x8xf32, #tpu.memory_space<vmem>>, vector<1x1x8x8xf32>
    %406 = vector.shape_cast %405 : vector<1x1x8x8xf32> to vector<8x8xf32>
    %cst_252 = arith.constant dense<0.000000e+00> : vector<8x128xf32>
    %407 = tpu.matmul %406, %404, %cst_252 {dimension_numbers = #tpu.dot_dimension_numbers<[1], [0], [0], [1], [0, 0, 1, 1], [], []>} : vector<8x8xf32>, vector<8x128xf32>, vector<8x128xf32> -> vector<8x128xf32>
    %408 = arith.addf %399, %407 : vector<8x128xf32>
    %c3_253 = arith.constant 3 : index
    %c4_254 = arith.constant 4 : index
    %c0_255 = arith.constant 0 : index
    %c0_256 = arith.constant 0 : index
    %409 = vector.load %arg2[%c3_253, %c4_254, %c0_255, %c0_256] : memref<5x9x8x8xf32, #tpu.memory_space<vmem>>, vector<1x1x8x8xf32>
    %410 = vector.shape_cast %409 : vector<1x1x8x8xf32> to vector<8x8xf32>
    %cst_257 = arith.constant dense<0.000000e+00> : vector<8x128xf32>
    %411 = tpu.matmul %410, %356, %cst_257 {dimension_numbers = #tpu.dot_dimension_numbers<[1], [0], [0], [1], [0, 0, 1, 1], [], []>} : vector<8x8xf32>, vector<8x128xf32>, vector<8x128xf32> -> vector<8x128xf32>
    %412 = arith.addf %408, %411 : vector<8x128xf32>
    %c126_i32 = arith.constant 126 : i32
    %413 = tpu.dynamic_rotate %356 by %c126_i32 dim 1 : vector<8x128xf32>, i32 -> vector<8x128xf32>
    %cst_258 = arith.constant 0.000000e+00 : f32
    %414 = vector.shape_cast %371 : vector<1x128xi1> to vector<1x128xi1>
    %415 = vector.broadcast %414 : vector<1x128xi1> to vector<8x128xi1>
    %416 = vector.broadcast %cst_258 : f32 to vector<8x128xf32>
    %417 = arith.select %415, %413, %416 : vector<8x128xi1>, vector<8x128xf32>
    %c3_259 = arith.constant 3 : index
    %c5_260 = arith.constant 5 : index
    %c0_261 = arith.constant 0 : index
    %c0_262 = arith.constant 0 : index
    %418 = vector.load %arg2[%c3_259, %c5_260, %c0_261, %c0_262] : memref<5x9x8x8xf32, #tpu.memory_space<vmem>>, vector<1x1x8x8xf32>
    %419 = vector.shape_cast %418 : vector<1x1x8x8xf32> to vector<8x8xf32>
    %cst_263 = arith.constant dense<0.000000e+00> : vector<8x128xf32>
    %420 = tpu.matmul %419, %417, %cst_263 {dimension_numbers = #tpu.dot_dimension_numbers<[1], [0], [0], [1], [0, 0, 1, 1], [], []>} : vector<8x8xf32>, vector<8x128xf32>, vector<8x128xf32> -> vector<8x128xf32>
    %421 = arith.addf %412, %420 : vector<8x128xf32>
    %c114_i32 = arith.constant 114 : i32
    %422 = tpu.dynamic_rotate %356 by %c114_i32 dim 1 : vector<8x128xf32>, i32 -> vector<8x128xf32>
    %423 = arith.andi %367, %369 : vector<1x128xi1>
    %cst_264 = arith.constant 0.000000e+00 : f32
    %424 = vector.shape_cast %423 : vector<1x128xi1> to vector<1x128xi1>
    %425 = vector.broadcast %424 : vector<1x128xi1> to vector<8x128xi1>
    %426 = vector.broadcast %cst_264 : f32 to vector<8x128xf32>
    %427 = arith.select %425, %422, %426 : vector<8x128xi1>, vector<8x128xf32>
    %c3_265 = arith.constant 3 : index
    %c6_266 = arith.constant 6 : index
    %c0_267 = arith.constant 0 : index
    %c0_268 = arith.constant 0 : index
    %428 = vector.load %arg2[%c3_265, %c6_266, %c0_267, %c0_268] : memref<5x9x8x8xf32, #tpu.memory_space<vmem>>, vector<1x1x8x8xf32>
    %429 = vector.shape_cast %428 : vector<1x1x8x8xf32> to vector<8x8xf32>
    %cst_269 = arith.constant dense<0.000000e+00> : vector<8x128xf32>
    %430 = tpu.matmul %429, %427, %cst_269 {dimension_numbers = #tpu.dot_dimension_numbers<[1], [0], [0], [1], [0, 0, 1, 1], [], []>} : vector<8x8xf32>, vector<8x128xf32>, vector<8x128xf32> -> vector<8x128xf32>
    %431 = arith.addf %421, %430 : vector<8x128xf32>
    %c112_i32 = arith.constant 112 : i32
    %432 = tpu.dynamic_rotate %356 by %c112_i32 dim 1 : vector<8x128xf32>, i32 -> vector<8x128xf32>
    %cst_270 = arith.constant 0.000000e+00 : f32
    %433 = vector.shape_cast %367 : vector<1x128xi1> to vector<1x128xi1>
    %434 = vector.broadcast %433 : vector<1x128xi1> to vector<8x128xi1>
    %435 = vector.broadcast %cst_270 : f32 to vector<8x128xf32>
    %436 = arith.select %434, %432, %435 : vector<8x128xi1>, vector<8x128xf32>
    %c3_271 = arith.constant 3 : index
    %c7_272 = arith.constant 7 : index
    %c0_273 = arith.constant 0 : index
    %c0_274 = arith.constant 0 : index
    %437 = vector.load %arg2[%c3_271, %c7_272, %c0_273, %c0_274] : memref<5x9x8x8xf32, #tpu.memory_space<vmem>>, vector<1x1x8x8xf32>
    %438 = vector.shape_cast %437 : vector<1x1x8x8xf32> to vector<8x8xf32>
    %cst_275 = arith.constant dense<0.000000e+00> : vector<8x128xf32>
    %439 = tpu.matmul %438, %436, %cst_275 {dimension_numbers = #tpu.dot_dimension_numbers<[1], [0], [0], [1], [0, 0, 1, 1], [], []>} : vector<8x8xf32>, vector<8x128xf32>, vector<8x128xf32> -> vector<8x128xf32>
    %440 = arith.addf %431, %439 : vector<8x128xf32>
    %c110_i32 = arith.constant 110 : i32
    %441 = tpu.dynamic_rotate %356 by %c110_i32 dim 1 : vector<8x128xf32>, i32 -> vector<8x128xf32>
    %442 = arith.andi %367, %371 : vector<1x128xi1>
    %cst_276 = arith.constant 0.000000e+00 : f32
    %443 = vector.shape_cast %442 : vector<1x128xi1> to vector<1x128xi1>
    %444 = vector.broadcast %443 : vector<1x128xi1> to vector<8x128xi1>
    %445 = vector.broadcast %cst_276 : f32 to vector<8x128xf32>
    %446 = arith.select %444, %441, %445 : vector<8x128xi1>, vector<8x128xf32>
    %c3_277 = arith.constant 3 : index
    %c8_278 = arith.constant 8 : index
    %c0_279 = arith.constant 0 : index
    %c0_280 = arith.constant 0 : index
    %447 = vector.load %arg2[%c3_277, %c8_278, %c0_279, %c0_280] : memref<5x9x8x8xf32, #tpu.memory_space<vmem>>, vector<1x1x8x8xf32>
    %448 = vector.shape_cast %447 : vector<1x1x8x8xf32> to vector<8x8xf32>
    %cst_281 = arith.constant dense<0.000000e+00> : vector<8x128xf32>
    %449 = tpu.matmul %448, %446, %cst_281 {dimension_numbers = #tpu.dot_dimension_numbers<[1], [0], [0], [1], [0, 0, 1, 1], [], []>} : vector<8x8xf32>, vector<8x128xf32>, vector<8x128xf32> -> vector<8x128xf32>
    %450 = arith.addf %440, %449 : vector<8x128xf32>
    %c3_282 = arith.constant 3 : index
    %c0_283 = arith.constant 0 : index
    %c0_284 = arith.constant 0 : index
    %c0_285 = arith.constant 0 : index
    %451 = vector.load %arg3[%c3_282, %c0_283, %c0_284, %c0_285] : memref<5x3x8x1xf32, #tpu.memory_space<vmem>>, vector<1x1x8x1xf32>
    %452 = vector.shape_cast %451 : vector<1x1x8x1xf32> to vector<8x1xf32>
    %453 = vector.broadcast %452 : vector<8x1xf32> to vector<8x128xf32>
    %454 = arith.addf %450, %453 : vector<8x128xf32>
    %cst_286 = arith.constant 0.000000e+00 : f32
    %455 = vector.broadcast %cst_286 : f32 to vector<8x128xf32>
    %456 = arith.maximumf %454, %455 : vector<8x128xf32>
    %c3_287 = arith.constant 3 : index
    %c1_288 = arith.constant 1 : index
    %c0_289 = arith.constant 0 : index
    %c0_290 = arith.constant 0 : index
    %457 = vector.load %arg3[%c3_287, %c1_288, %c0_289, %c0_290] : memref<5x3x8x1xf32, #tpu.memory_space<vmem>>, vector<1x1x8x1xf32>
    %458 = vector.shape_cast %457 : vector<1x1x8x1xf32> to vector<8x1xf32>
    %459 = vector.broadcast %458 : vector<8x1xf32> to vector<8x128xf32>
    %460 = arith.mulf %456, %459 : vector<8x128xf32>
    %c3_291 = arith.constant 3 : index
    %c2_292 = arith.constant 2 : index
    %c0_293 = arith.constant 0 : index
    %c0_294 = arith.constant 0 : index
    %461 = vector.load %arg3[%c3_291, %c2_292, %c0_293, %c0_294] : memref<5x3x8x1xf32, #tpu.memory_space<vmem>>, vector<1x1x8x1xf32>
    %462 = vector.shape_cast %461 : vector<1x1x8x1xf32> to vector<8x1xf32>
    %463 = vector.broadcast %462 : vector<8x1xf32> to vector<8x128xf32>
    %464 = arith.addf %460, %463 : vector<8x128xf32>
    %c126_i32_295 = arith.constant 126 : i32
    %465 = tpu.dynamic_rotate %464 by %c126_i32_295 dim 1 : vector<8x128xf32>, i32 -> vector<8x128xf32>
    %466 = arith.maximumf %464, %465 : vector<8x128xf32>
    %c112_i32_296 = arith.constant 112 : i32
    %467 = tpu.dynamic_rotate %466 by %c112_i32_296 dim 1 : vector<8x128xf32>, i32 -> vector<8x128xf32>
    %468 = arith.maximumf %466, %467 : vector<8x128xf32>
    %469 = tpu.iota {dimensions = array<i32: 1>} : vector<1x128xi32>
    %c3_i32_297 = arith.constant 3 : i32
    %470 = vector.broadcast %c3_i32_297 : i32 to vector<1x128xi32>
    %471 = arith.shrsi %469, %470 : vector<1x128xi32>
    %c7_i32_298 = arith.constant 7 : i32
    %472 = vector.broadcast %c7_i32_298 : i32 to vector<1x128xi32>
    %473 = arith.andi %471, %472 : vector<1x128xi32>
    %c7_i32_299 = arith.constant 7 : i32
    %474 = vector.broadcast %c7_i32_299 : i32 to vector<1x128xi32>
    %475 = arith.andi %469, %474 : vector<1x128xi32>
    %c4_i32 = arith.constant 4 : i32
    %476 = vector.broadcast %c4_i32 : i32 to vector<1x128xi32>
    %477 = arith.cmpi sge, %473, %476 : vector<1x128xi32>
    %c4_i32_300 = arith.constant 4 : i32
    %478 = vector.broadcast %c4_i32_300 : i32 to vector<1x128xi32>
    %479 = arith.cmpi slt, %473, %478 : vector<1x128xi32>
    %c4_i32_301 = arith.constant 4 : i32
    %480 = vector.broadcast %c4_i32_301 : i32 to vector<1x128xi32>
    %481 = arith.cmpi sge, %475, %480 : vector<1x128xi32>
    %c4_i32_302 = arith.constant 4 : i32
    %482 = vector.broadcast %c4_i32_302 : i32 to vector<1x128xi32>
    %483 = arith.cmpi slt, %475, %482 : vector<1x128xi32>
    %c36_i32 = arith.constant 36 : i32
    %484 = tpu.dynamic_rotate %468 by %c36_i32 dim 1 : vector<8x128xf32>, i32 -> vector<8x128xf32>
    %485 = arith.andi %477, %481 : vector<1x128xi1>
    %cst_303 = arith.constant 0.000000e+00 : f32
    %486 = vector.shape_cast %485 : vector<1x128xi1> to vector<1x128xi1>
    %487 = vector.broadcast %486 : vector<1x128xi1> to vector<8x128xi1>
    %488 = vector.broadcast %cst_303 : f32 to vector<8x128xf32>
    %489 = arith.select %487, %484, %488 : vector<8x128xi1>, vector<8x128xf32>
    %c4_304 = arith.constant 4 : index
    %c0_305 = arith.constant 0 : index
    %c0_306 = arith.constant 0 : index
    %c0_307 = arith.constant 0 : index
    %490 = vector.load %arg2[%c4_304, %c0_305, %c0_306, %c0_307] : memref<5x9x8x8xf32, #tpu.memory_space<vmem>>, vector<1x1x8x8xf32>
    %491 = vector.shape_cast %490 : vector<1x1x8x8xf32> to vector<8x8xf32>
    %cst_308 = arith.constant dense<0.000000e+00> : vector<8x128xf32>
    %492 = tpu.matmul %491, %489, %cst_308 {dimension_numbers = #tpu.dot_dimension_numbers<[1], [0], [0], [1], [0, 0, 1, 1], [], []>} : vector<8x8xf32>, vector<8x128xf32>, vector<8x128xf32> -> vector<8x128xf32>
    %c32_i32_309 = arith.constant 32 : i32
    %493 = tpu.dynamic_rotate %468 by %c32_i32_309 dim 1 : vector<8x128xf32>, i32 -> vector<8x128xf32>
    %cst_310 = arith.constant 0.000000e+00 : f32
    %494 = vector.shape_cast %477 : vector<1x128xi1> to vector<1x128xi1>
    %495 = vector.broadcast %494 : vector<1x128xi1> to vector<8x128xi1>
    %496 = vector.broadcast %cst_310 : f32 to vector<8x128xf32>
    %497 = arith.select %495, %493, %496 : vector<8x128xi1>, vector<8x128xf32>
    %c4_311 = arith.constant 4 : index
    %c1_312 = arith.constant 1 : index
    %c0_313 = arith.constant 0 : index
    %c0_314 = arith.constant 0 : index
    %498 = vector.load %arg2[%c4_311, %c1_312, %c0_313, %c0_314] : memref<5x9x8x8xf32, #tpu.memory_space<vmem>>, vector<1x1x8x8xf32>
    %499 = vector.shape_cast %498 : vector<1x1x8x8xf32> to vector<8x8xf32>
    %cst_315 = arith.constant dense<0.000000e+00> : vector<8x128xf32>
    %500 = tpu.matmul %499, %497, %cst_315 {dimension_numbers = #tpu.dot_dimension_numbers<[1], [0], [0], [1], [0, 0, 1, 1], [], []>} : vector<8x8xf32>, vector<8x128xf32>, vector<8x128xf32> -> vector<8x128xf32>
    %501 = arith.addf %492, %500 : vector<8x128xf32>
    %c28_i32 = arith.constant 28 : i32
    %502 = tpu.dynamic_rotate %468 by %c28_i32 dim 1 : vector<8x128xf32>, i32 -> vector<8x128xf32>
    %503 = arith.andi %477, %483 : vector<1x128xi1>
    %cst_316 = arith.constant 0.000000e+00 : f32
    %504 = vector.shape_cast %503 : vector<1x128xi1> to vector<1x128xi1>
    %505 = vector.broadcast %504 : vector<1x128xi1> to vector<8x128xi1>
    %506 = vector.broadcast %cst_316 : f32 to vector<8x128xf32>
    %507 = arith.select %505, %502, %506 : vector<8x128xi1>, vector<8x128xf32>
    %c4_317 = arith.constant 4 : index
    %c2_318 = arith.constant 2 : index
    %c0_319 = arith.constant 0 : index
    %c0_320 = arith.constant 0 : index
    %508 = vector.load %arg2[%c4_317, %c2_318, %c0_319, %c0_320] : memref<5x9x8x8xf32, #tpu.memory_space<vmem>>, vector<1x1x8x8xf32>
    %509 = vector.shape_cast %508 : vector<1x1x8x8xf32> to vector<8x8xf32>
    %cst_321 = arith.constant dense<0.000000e+00> : vector<8x128xf32>
    %510 = tpu.matmul %509, %507, %cst_321 {dimension_numbers = #tpu.dot_dimension_numbers<[1], [0], [0], [1], [0, 0, 1, 1], [], []>} : vector<8x8xf32>, vector<8x128xf32>, vector<8x128xf32> -> vector<8x128xf32>
    %511 = arith.addf %501, %510 : vector<8x128xf32>
    %c4_i32_322 = arith.constant 4 : i32
    %512 = tpu.dynamic_rotate %468 by %c4_i32_322 dim 1 : vector<8x128xf32>, i32 -> vector<8x128xf32>
    %cst_323 = arith.constant 0.000000e+00 : f32
    %513 = vector.shape_cast %481 : vector<1x128xi1> to vector<1x128xi1>
    %514 = vector.broadcast %513 : vector<1x128xi1> to vector<8x128xi1>
    %515 = vector.broadcast %cst_323 : f32 to vector<8x128xf32>
    %516 = arith.select %514, %512, %515 : vector<8x128xi1>, vector<8x128xf32>
    %c4_324 = arith.constant 4 : index
    %c3_325 = arith.constant 3 : index
    %c0_326 = arith.constant 0 : index
    %c0_327 = arith.constant 0 : index
    %517 = vector.load %arg2[%c4_324, %c3_325, %c0_326, %c0_327] : memref<5x9x8x8xf32, #tpu.memory_space<vmem>>, vector<1x1x8x8xf32>
    %518 = vector.shape_cast %517 : vector<1x1x8x8xf32> to vector<8x8xf32>
    %cst_328 = arith.constant dense<0.000000e+00> : vector<8x128xf32>
    %519 = tpu.matmul %518, %516, %cst_328 {dimension_numbers = #tpu.dot_dimension_numbers<[1], [0], [0], [1], [0, 0, 1, 1], [], []>} : vector<8x8xf32>, vector<8x128xf32>, vector<8x128xf32> -> vector<8x128xf32>
    %520 = arith.addf %511, %519 : vector<8x128xf32>
    %c4_329 = arith.constant 4 : index
    %c4_330 = arith.constant 4 : index
    %c0_331 = arith.constant 0 : index
    %c0_332 = arith.constant 0 : index
    %521 = vector.load %arg2[%c4_329, %c4_330, %c0_331, %c0_332] : memref<5x9x8x8xf32, #tpu.memory_space<vmem>>, vector<1x1x8x8xf32>
    %522 = vector.shape_cast %521 : vector<1x1x8x8xf32> to vector<8x8xf32>
    %cst_333 = arith.constant dense<0.000000e+00> : vector<8x128xf32>
    %523 = tpu.matmul %522, %468, %cst_333 {dimension_numbers = #tpu.dot_dimension_numbers<[1], [0], [0], [1], [0, 0, 1, 1], [], []>} : vector<8x8xf32>, vector<8x128xf32>, vector<8x128xf32> -> vector<8x128xf32>
    %524 = arith.addf %520, %523 : vector<8x128xf32>
    %c124_i32 = arith.constant 124 : i32
    %525 = tpu.dynamic_rotate %468 by %c124_i32 dim 1 : vector<8x128xf32>, i32 -> vector<8x128xf32>
    %cst_334 = arith.constant 0.000000e+00 : f32
    %526 = vector.shape_cast %483 : vector<1x128xi1> to vector<1x128xi1>
    %527 = vector.broadcast %526 : vector<1x128xi1> to vector<8x128xi1>
    %528 = vector.broadcast %cst_334 : f32 to vector<8x128xf32>
    %529 = arith.select %527, %525, %528 : vector<8x128xi1>, vector<8x128xf32>
    %c4_335 = arith.constant 4 : index
    %c5_336 = arith.constant 5 : index
    %c0_337 = arith.constant 0 : index
    %c0_338 = arith.constant 0 : index
    %530 = vector.load %arg2[%c4_335, %c5_336, %c0_337, %c0_338] : memref<5x9x8x8xf32, #tpu.memory_space<vmem>>, vector<1x1x8x8xf32>
    %531 = vector.shape_cast %530 : vector<1x1x8x8xf32> to vector<8x8xf32>
    %cst_339 = arith.constant dense<0.000000e+00> : vector<8x128xf32>
    %532 = tpu.matmul %531, %529, %cst_339 {dimension_numbers = #tpu.dot_dimension_numbers<[1], [0], [0], [1], [0, 0, 1, 1], [], []>} : vector<8x8xf32>, vector<8x128xf32>, vector<8x128xf32> -> vector<8x128xf32>
    %533 = arith.addf %524, %532 : vector<8x128xf32>
    %c100_i32 = arith.constant 100 : i32
    %534 = tpu.dynamic_rotate %468 by %c100_i32 dim 1 : vector<8x128xf32>, i32 -> vector<8x128xf32>
    %535 = arith.andi %479, %481 : vector<1x128xi1>
    %cst_340 = arith.constant 0.000000e+00 : f32
    %536 = vector.shape_cast %535 : vector<1x128xi1> to vector<1x128xi1>
    %537 = vector.broadcast %536 : vector<1x128xi1> to vector<8x128xi1>
    %538 = vector.broadcast %cst_340 : f32 to vector<8x128xf32>
    %539 = arith.select %537, %534, %538 : vector<8x128xi1>, vector<8x128xf32>
    %c4_341 = arith.constant 4 : index
    %c6_342 = arith.constant 6 : index
    %c0_343 = arith.constant 0 : index
    %c0_344 = arith.constant 0 : index
    %540 = vector.load %arg2[%c4_341, %c6_342, %c0_343, %c0_344] : memref<5x9x8x8xf32, #tpu.memory_space<vmem>>, vector<1x1x8x8xf32>
    %541 = vector.shape_cast %540 : vector<1x1x8x8xf32> to vector<8x8xf32>
    %cst_345 = arith.constant dense<0.000000e+00> : vector<8x128xf32>
    %542 = tpu.matmul %541, %539, %cst_345 {dimension_numbers = #tpu.dot_dimension_numbers<[1], [0], [0], [1], [0, 0, 1, 1], [], []>} : vector<8x8xf32>, vector<8x128xf32>, vector<8x128xf32> -> vector<8x128xf32>
    %543 = arith.addf %533, %542 : vector<8x128xf32>
    %c96_i32 = arith.constant 96 : i32
    %544 = tpu.dynamic_rotate %468 by %c96_i32 dim 1 : vector<8x128xf32>, i32 -> vector<8x128xf32>
    %cst_346 = arith.constant 0.000000e+00 : f32
    %545 = vector.shape_cast %479 : vector<1x128xi1> to vector<1x128xi1>
    %546 = vector.broadcast %545 : vector<1x128xi1> to vector<8x128xi1>
    %547 = vector.broadcast %cst_346 : f32 to vector<8x128xf32>
    %548 = arith.select %546, %544, %547 : vector<8x128xi1>, vector<8x128xf32>
    %c4_347 = arith.constant 4 : index
    %c7_348 = arith.constant 7 : index
    %c0_349 = arith.constant 0 : index
    %c0_350 = arith.constant 0 : index
    %549 = vector.load %arg2[%c4_347, %c7_348, %c0_349, %c0_350] : memref<5x9x8x8xf32, #tpu.memory_space<vmem>>, vector<1x1x8x8xf32>
    %550 = vector.shape_cast %549 : vector<1x1x8x8xf32> to vector<8x8xf32>
    %cst_351 = arith.constant dense<0.000000e+00> : vector<8x128xf32>
    %551 = tpu.matmul %550, %548, %cst_351 {dimension_numbers = #tpu.dot_dimension_numbers<[1], [0], [0], [1], [0, 0, 1, 1], [], []>} : vector<8x8xf32>, vector<8x128xf32>, vector<8x128xf32> -> vector<8x128xf32>
    %552 = arith.addf %543, %551 : vector<8x128xf32>
    %c92_i32 = arith.constant 92 : i32
    %553 = tpu.dynamic_rotate %468 by %c92_i32 dim 1 : vector<8x128xf32>, i32 -> vector<8x128xf32>
    %554 = arith.andi %479, %483 : vector<1x128xi1>
    %cst_352 = arith.constant 0.000000e+00 : f32
    %555 = vector.shape_cast %554 : vector<1x128xi1> to vector<1x128xi1>
    %556 = vector.broadcast %555 : vector<1x128xi1> to vector<8x128xi1>
    %557 = vector.broadcast %cst_352 : f32 to vector<8x128xf32>
    %558 = arith.select %556, %553, %557 : vector<8x128xi1>, vector<8x128xf32>
    %c4_353 = arith.constant 4 : index
    %c8_354 = arith.constant 8 : index
    %c0_355 = arith.constant 0 : index
    %c0_356 = arith.constant 0 : index
    %559 = vector.load %arg2[%c4_353, %c8_354, %c0_355, %c0_356] : memref<5x9x8x8xf32, #tpu.memory_space<vmem>>, vector<1x1x8x8xf32>
    %560 = vector.shape_cast %559 : vector<1x1x8x8xf32> to vector<8x8xf32>
    %cst_357 = arith.constant dense<0.000000e+00> : vector<8x128xf32>
    %561 = tpu.matmul %560, %558, %cst_357 {dimension_numbers = #tpu.dot_dimension_numbers<[1], [0], [0], [1], [0, 0, 1, 1], [], []>} : vector<8x8xf32>, vector<8x128xf32>, vector<8x128xf32> -> vector<8x128xf32>
    %562 = arith.addf %552, %561 : vector<8x128xf32>
    %c4_358 = arith.constant 4 : index
    %c0_359 = arith.constant 0 : index
    %c0_360 = arith.constant 0 : index
    %c0_361 = arith.constant 0 : index
    %563 = vector.load %arg3[%c4_358, %c0_359, %c0_360, %c0_361] : memref<5x3x8x1xf32, #tpu.memory_space<vmem>>, vector<1x1x8x1xf32>
    %564 = vector.shape_cast %563 : vector<1x1x8x1xf32> to vector<8x1xf32>
    %565 = vector.broadcast %564 : vector<8x1xf32> to vector<8x128xf32>
    %566 = arith.addf %562, %565 : vector<8x128xf32>
    %cst_362 = arith.constant 0.000000e+00 : f32
    %567 = vector.broadcast %cst_362 : f32 to vector<8x128xf32>
    %568 = arith.maximumf %566, %567 : vector<8x128xf32>
    %c4_363 = arith.constant 4 : index
    %c1_364 = arith.constant 1 : index
    %c0_365 = arith.constant 0 : index
    %c0_366 = arith.constant 0 : index
    %569 = vector.load %arg3[%c4_363, %c1_364, %c0_365, %c0_366] : memref<5x3x8x1xf32, #tpu.memory_space<vmem>>, vector<1x1x8x1xf32>
    %570 = vector.shape_cast %569 : vector<1x1x8x1xf32> to vector<8x1xf32>
    %571 = vector.broadcast %570 : vector<8x1xf32> to vector<8x128xf32>
    %572 = arith.mulf %568, %571 : vector<8x128xf32>
    %c4_367 = arith.constant 4 : index
    %c2_368 = arith.constant 2 : index
    %c0_369 = arith.constant 0 : index
    %c0_370 = arith.constant 0 : index
    %573 = vector.load %arg3[%c4_367, %c2_368, %c0_369, %c0_370] : memref<5x3x8x1xf32, #tpu.memory_space<vmem>>, vector<1x1x8x1xf32>
    %574 = vector.shape_cast %573 : vector<1x1x8x1xf32> to vector<8x1xf32>
    %575 = vector.broadcast %574 : vector<8x1xf32> to vector<8x128xf32>
    %576 = arith.addf %572, %575 : vector<8x128xf32>
    %c124_i32_371 = arith.constant 124 : i32
    %577 = tpu.dynamic_rotate %576 by %c124_i32_371 dim 1 : vector<8x128xf32>, i32 -> vector<8x128xf32>
    %578 = arith.maximumf %576, %577 : vector<8x128xf32>
    %c96_i32_372 = arith.constant 96 : i32
    %579 = tpu.dynamic_rotate %578 by %c96_i32_372 dim 1 : vector<8x128xf32>, i32 -> vector<8x128xf32>
    %580 = arith.maximumf %578, %579 : vector<8x128xf32>
    %581 = tpu.transpose %580, [1, 0] : vector<8x128xf32> -> vector<128x8xf32>
    %582 = vector.extract_strided_slice %581 {offsets = [0, 0], sizes = [1, 8], strides = [1, 1]} : vector<128x8xf32> to vector<1x8xf32>
    %583 = vector.extract_strided_slice %581 {offsets = [64, 0], sizes = [1, 8], strides = [1, 1]} : vector<128x8xf32> to vector<1x8xf32>
    %584 = tpu.concatenate %582, %583 in 0 : vector<1x8xf32>, vector<1x8xf32> -> vector<2x8xf32>
    %c0_373 = arith.constant 0 : index
    %c0_374 = arith.constant 0 : index
    %585 = vector.load %arg4[%c0_373, %c0_374] : memref<8x32xf32, #tpu.memory_space<vmem>>, vector<8x32xf32>
    %cst_375 = arith.constant dense<0.000000e+00> : vector<2x32xf32>
    %586 = tpu.matmul %584, %585, %cst_375 {dimension_numbers = #tpu.dot_dimension_numbers<[1], [0], [0], [1], [0, 0, 1, 1], [], []>} : vector<2x8xf32>, vector<8x32xf32>, vector<2x32xf32> -> vector<2x32xf32>
    %c0_376 = arith.constant 0 : index
    %c0_377 = arith.constant 0 : index
    %c0_378 = arith.constant 0 : index
    %587 = vector.load %arg5[%c0_376, %c0_377, %c0_378] : memref<3x1x32xf32, #tpu.memory_space<vmem>>, vector<1x1x32xf32>
    %588 = vector.shape_cast %587 : vector<1x1x32xf32> to vector<1x32xf32>
    %589 = vector.broadcast %588 : vector<1x32xf32> to vector<2x32xf32>
    %590 = arith.addf %586, %589 : vector<2x32xf32>
    %cst_379 = arith.constant 0.000000e+00 : f32
    %591 = vector.broadcast %cst_379 : f32 to vector<2x32xf32>
    %592 = arith.maximumf %590, %591 : vector<2x32xf32>
    %c1_380 = arith.constant 1 : index
    %c0_381 = arith.constant 0 : index
    %c0_382 = arith.constant 0 : index
    %593 = vector.load %arg5[%c1_380, %c0_381, %c0_382] : memref<3x1x32xf32, #tpu.memory_space<vmem>>, vector<1x1x32xf32>
    %594 = vector.shape_cast %593 : vector<1x1x32xf32> to vector<1x32xf32>
    %595 = vector.broadcast %594 : vector<1x32xf32> to vector<2x32xf32>
    %596 = arith.mulf %592, %595 : vector<2x32xf32>
    %c2_383 = arith.constant 2 : index
    %c0_384 = arith.constant 0 : index
    %c0_385 = arith.constant 0 : index
    %597 = vector.load %arg5[%c2_383, %c0_384, %c0_385] : memref<3x1x32xf32, #tpu.memory_space<vmem>>, vector<1x1x32xf32>
    %598 = vector.shape_cast %597 : vector<1x1x32xf32> to vector<1x32xf32>
    %599 = vector.broadcast %598 : vector<1x32xf32> to vector<2x32xf32>
    %600 = arith.addf %596, %599 : vector<2x32xf32>
    %c0_386 = arith.constant 0 : index
    %c0_387 = arith.constant 0 : index
    %601 = vector.load %arg6[%c0_386, %c0_387] : memref<32x10xf32, #tpu.memory_space<vmem>>, vector<32x10xf32>
    %cst_388 = arith.constant dense<0.000000e+00> : vector<2x10xf32>
    %602 = tpu.matmul %600, %601, %cst_388 {dimension_numbers = #tpu.dot_dimension_numbers<[1], [0], [0], [1], [0, 0, 1, 1], [], []>} : vector<2x32xf32>, vector<32x10xf32>, vector<2x10xf32> -> vector<2x10xf32>
    %c0_389 = arith.constant 0 : index
    %c0_390 = arith.constant 0 : index
    %603 = vector.load %arg7[%c0_389, %c0_390] : memref<1x10xf32, #tpu.memory_space<vmem>>, vector<1x10xf32>
    %604 = vector.broadcast %603 : vector<1x10xf32> to vector<2x10xf32>
    %605 = arith.addf %602, %604 : vector<2x10xf32>
    %c0_391 = arith.constant 0 : index
    %c0_392 = arith.constant 0 : index
    %c0_393 = arith.constant 0 : index
    %606 = vector.load %arg8[%c0_391, %c0_392, %c0_393] : memref<1x2x10xf32, #tpu.memory_space<vmem>>, vector<1x2x10xf32>
    %607 = vector.shape_cast %606 : vector<1x2x10xf32> to vector<2x10xf32>
    %608 = vector.shape_cast %605 : vector<2x10xf32> to vector<1x2x10xf32>
    tpu.vector_store %arg8[%c0_391, %c0_392, %c0_393], %608 {strides = array<i32>} : memref<1x2x10xf32, #tpu.memory_space<vmem>>, vector<1x2x10xf32>,
    return
  }
  func.func @transform_0(%arg0: i32) -> (i32, i32, i32) {
    %c0_i32 = arith.constant 0 : i32
    %c0_i32_0 = arith.constant 0 : i32
    %c0_i32_1 = arith.constant 0 : i32
    return %arg0, %c0_i32, %c0_i32_0 : i32, i32, i32
  }
  func.func @transform_1(%arg0: i32) -> (i32, i32, i32, i32) {
    %c0_i32 = arith.constant 0 : i32
    %c0_i32_0 = arith.constant 0 : i32
    %c0_i32_1 = arith.constant 0 : i32
    %c0_i32_2 = arith.constant 0 : i32
    %c0_i32_3 = arith.constant 0 : i32
    return %c0_i32, %c0_i32_0, %c0_i32_1, %c0_i32_2 : i32, i32, i32, i32
  }
  func.func @transform_2(%arg0: i32) -> (i32, i32, i32, i32) {
    %c0_i32 = arith.constant 0 : i32
    %c0_i32_0 = arith.constant 0 : i32
    %c0_i32_1 = arith.constant 0 : i32
    %c0_i32_2 = arith.constant 0 : i32
    %c0_i32_3 = arith.constant 0 : i32
    return %c0_i32, %c0_i32_0, %c0_i32_1, %c0_i32_2 : i32, i32, i32, i32
  }
  func.func @transform_3(%arg0: i32) -> (i32, i32) {
    %c0_i32 = arith.constant 0 : i32
    %c0_i32_0 = arith.constant 0 : i32
    %c0_i32_1 = arith.constant 0 : i32
    return %c0_i32, %c0_i32_0 : i32, i32
  }
  func.func @transform_4(%arg0: i32) -> (i32, i32, i32) {
    %c0_i32 = arith.constant 0 : i32
    %c0_i32_0 = arith.constant 0 : i32
    %c0_i32_1 = arith.constant 0 : i32
    %c0_i32_2 = arith.constant 0 : i32
    return %c0_i32, %c0_i32_0, %c0_i32_1 : i32, i32, i32
  }
  func.func @transform_5(%arg0: i32) -> (i32, i32) {
    %c0_i32 = arith.constant 0 : i32
    %c0_i32_0 = arith.constant 0 : i32
    %c0_i32_1 = arith.constant 0 : i32
    return %c0_i32, %c0_i32_0 : i32, i32
  }
  func.func @transform_6(%arg0: i32) -> (i32, i32) {
    %c0_i32 = arith.constant 0 : i32
    %c0_i32_0 = arith.constant 0 : i32
    %c0_i32_1 = arith.constant 0 : i32
    return %c0_i32, %c0_i32_0 : i32, i32
  }
  func.func @transform_7(%arg0: i32) -> (i32, i32, i32) {
    %c0_i32 = arith.constant 0 : i32
    %c0_i32_0 = arith.constant 0 : i32
    %c0_i32_1 = arith.constant 0 : i32
    return %arg0, %c0_i32, %c0_i32_0 : i32, i32, i32
  }
}

</mosaic_0001>

<bundles_post_ra>
// kernel: cnn_forward.1
= control target key start
LH: loop header
LB: loop body
LE: loop exit
PB: predicated region body
PF: predicated region fallthrough
CT: control target
= control target key end

     0   :  { %s11374_s30 = smov 32   ;;  %s18037_s0 = inlined_call_operand.vmem [shape: f32[1,8,2048], index: 0, kind: input, shape index: {}]   ;;  %s18038_s1 = inlined_call_operand.vmem [shape: f32[5,9,8,8], index: 1, kind: input, shape index: {}]   ;;  %s18039_s2 = inlined_call_operand.vmem [shape: f32[5,3,8,1], index: 2, kind: input, shape index: {}]   ;;  %s18040_s3 = inlined_call_operand.vmem [shape: f32[8,32], index: 3, kind: input, shape index: {}]   ;;  %s18041_s4 = inlined_call_operand.vmem [shape: f32[3,1,32], index: 4, kind: input, shape index: {}]   ;;  %s18042_s5 = inlined_call_operand.vmem [shape: f32[32,10], index: 5, kind: input, shape index: {}]   ;;  %s18043_s6 = inlined_call_operand.vmem [shape: f32[1,10], index: 6, kind: input, shape index: {}]   ;;  %s18044_s7 = inlined_call_operand.hbm [shape: f32[1,2,10], index: 7, kind: output, shape index: {}]  }
   0x1   :  { %v11451_v0 = vld [vmem:[%s18037_s0 + $0x50] sm:$0xff]  ;;  %v11472_v3 = vld [vmem:[%s18037_s0 + $0x58] sm:$0xff] }
   0x2   :  { %v11456_v1 = vld [vmem:[%s18037_s0 + $0x30] sm:$0xff]  ;;  %306 = vrot.lane.b32.xlu2 %v11451_v0, %s11374_s30  ;;  %v11477_v4 = vld [vmem:[%s18037_s0 + $0x38] sm:$0xff] }
   0x3   :  { %v11461_v2 = vld [vmem:[%s18037_s0 + $0x10] sm:$0xff]  ;;  %298 = vrot.lane.b32.xlu1 %v11456_v1, %s11374_s30 }
   0x4   :  { %290 = vrot.lane.b32.xlu0 %v11461_v2, %s11374_s30 }
   0x5   :  { %12 = vsyncpa [#allocation3], 0  ;;  %v11482_v5 = vld [vmem:[%s18037_s0 + $0x18] sm:$0xff]  ;;  %v11493_v6 = vld [vmem:[%s18037_s0 + $0x70] sm:$0xff]  ;;  %s11375_s22 = smov 33   ;;  %s11376_s13 = smov 31   ;;  %v18050_v18 = vlaneseq }
   0x6   :  { %18493 = vst [vmem:[#allocation5_spill] sm:$0xff] %v11493_v6  ;;  %v11498_v7 = vld [vmem:[%s18037_s0 + $0x8] sm:$0xff]  ;;  %v11503_v8 = vld [vmem:[%s18037_s0] sm:$0xff]  ;;  %v11514_v9 = vld [vmem:[%s18037_s0 + $0x78] sm:$0xff]  ;;  %s11377_s14 = smov 1   ;;  %vm18274_vm2 = vcmask 64512  }
   0x7   :  { %v11525_v10 = vld [vmem:[%s18037_s0 + $0x28] sm:$0xff]  ;;  %v11530_v11 = vld [vmem:[%s18037_s0 + $0x20] sm:$0xff]  ;;  %v11617_v19 = vand.u32 127, %v18050_v18  ;;  %s11378_s19 = smov 127   ;;  %s11380_s25 = smov 96  }
   0x8   :  { %v11541_v12 = vld [vmem:[%s18037_s0 + $0x48] sm:$0xff]  ;;  %v11546_v13 = vld [vmem:[%s18037_s0 + $0x40] sm:$0xff]  ;;  %s11381_s29 = smov 95   ;;  %s11383_s15 = smov 66  }
   0x9   :  { %18494 = vst [vmem:[#allocation6_spill] sm:$0xff] %v11541_v12  ;;  %v11557_v14 = vld [vmem:[%s18037_s0 + $0x60] sm:$0xff]  ;;  %v11568_v15 = vld [vmem:[%s18037_s0 + $0x68] sm:$0xff]  ;;  %v47_v21 = vadd.s32 384, %v11617_v19  ;;  %v11627_v22 = vadd.s32 896, %v11617_v19  ;;  %v11632_v23 = vadd.s32 1408, %v11617_v19 }
   0xa   :  { %308 = vrot.lane.b32.xlu2 %v11472_v3, %s11374_s30  ;;  %18495 = vst [vmem:[#allocation7_spill] sm:$0xff] %v11568_v15  ;;  %v11641_v30 = vadd.s32 256, %v11617_v19  ;;  %v11646_v32 = vadd.s32 128, %v11617_v19  ;;  %vm318_vm0 = vcmp.lt.s32.totalorder %v11617_v19, 32  ;;  %v11671_v40 = vld [vmem:[%s18038_s1 + $0x8] sm:$0xff]  ;;  %v11691_v45 = vadd.s32 1920, %v11617_v19 }
   0xb   :  { %300 = vrot.lane.b32.xlu1 %v11477_v4, %s11374_s30  ;;  %18496 = vst [vmem:[#allocation8_spill] sm:$0xff] %v11617_v19  ;;  %v63_v26 = vshra.s32 %v47_v21, 5  ;;  %v67_v28 = vshra.s32 %v11627_v22, 5  ;;  %v71_v29 = vshra.s32 %v11632_v23, 5  ;;  %v60_v49 = vshra.s32 %v11617_v19, 5  ;;  %s11384_s16 = smov 64  }
   0xc   :  { %292 = vrot.lane.b32.xlu0 %v11482_v5, %s11374_s30  ;;  %v62_v35 = vshra.s32 %v11641_v30, 5  ;;  %v61_v38 = vshra.s32 %v11646_v32, 5  ;;  %v75_v50 = vshra.s32 %v11691_v45, 5  ;;  %v11719_v54 = vand.u32 31, %v47_v21  ;;  %s11385_s17 = smov 62   ;;  %s11386_s18 = smov 2  }
   0xd   :  { %v11643_v31 = vand.u32 31, %v63_v26  ;;  %v11652_v33 = vand.u32 31, %v67_v28  ;;  %v11657_v34 = vand.u32 31, %v71_v29  ;;  %v11724_v55 = vadd.s32 768, %v11617_v19  ;;  %s11389_s28 = smov 8   ;;  %s11391_s8 = smov 120  }
   0xe   :  { %v11684_v43 = vand.u32 31, %v62_v35  ;;  %v11688_v44 = vand.u32 31, %v61_v38  ;;  %18502 = vst [vmem:[#allocation14_spill] sm:$0xff] %v11719_v54  ;;  %v11730_v56 = vand.u32 31, %v60_v49  ;;  %v11732_v57 = vand.u32 31, %v75_v50  ;;  %s11392_s9 = smov 121  }
   0xf   :  { %18497 = vst [vmem:[#allocation9_spill] sm:$0xff] %v11643_v31  ;;  %vm111_vm1 = vcmp.ge.s32.totalorder %v11643_v31, 1  ;;  %vm18058_vm3 = vcmp.ge.s32.totalorder %v11652_v33, 1  ;;  %vm18056_vm4 = vcmp.ge.s32.totalorder %v11657_v34, 1  ;;  %v11735_v58 = vadd.s32 512, %v11617_v19  ;;  %s11393_s10 = smov 9  }
  0x10   :  { %18498 = vst [vmem:[#allocation10_spill] sm:$0xff] %v11652_v33  ;;  %vm18070_vm5 = vcmp.ge.s32.totalorder %v11684_v43, 1  ;;  %vm109_vm6 = vcmp.ge.s32.totalorder %v11688_v44, 1  ;;  %v11738_v59 = vadd.s32 640, %v11617_v19  ;;  %v11743_v60 = vadd.s32 1280, %v11617_v19  ;;  %s11395_s20 = smov 16  }
  0x11   :  { %18499 = vst [vmem:[#allocation11_spill] sm:$0xff] %v11657_v34  ;;  %vm18045_vm7 = vcmp.ge.s32.totalorder %v11719_v54, 1  ;;  %vm204_vm8 = vcmp.lt.s32.totalorder %v11617_v19, 33  ;;  %v66_v61 = vshra.s32 %v11724_v55, 5  ;;  %vm108_vm9 = vcmp.ge.s32.totalorder %v11730_v56, 1  ;;  %s11396_s21 = smov 14  }
  0x12   :  { %314 = vrot.lane.b32.xlu2 %v11493_v6, %s11374_s30  ;;  %18500 = vst [vmem:[#allocation12_spill] sm:$0xff] %v11684_v43  ;;  %vm123_vm10 = vcmp.ge.s32.totalorder %v11732_v57, 1  ;;  %v64_v21 = vshra.s32 %v11735_v58, 5  ;;  %v65_v26 = vshra.s32 %v11738_v59, 5  ;;  %v70_v28 = vshra.s32 %v11743_v60, 5  ;;  %vm224_vm11 = vmand %vm111_vm1, %vm18045_vm7  ;;  %s11397_s23 = smov 18  }
  0x13   :  { %288 = vrot.lane.b32.xlu1 %v11498_v7, %s11374_s30  ;;  %18501 = vst [vmem:[#allocation13_spill] sm:$0xff] %v11688_v44  ;;  %v11797_v50 = vadd.s32 1536, %v11617_v19  ;;  %v11940_v18 = vand.u32 31, %v11646_v32  ;;  %s11400_s26 = smov 112   ;;  %s11405_s11 = smov 124  }
  0x14   :  { %286 = vrot.lane.b32.xlu0 %v11503_v8, %s11374_s30  ;;  %18503 = vst [vmem:[#allocation15_spill] sm:$0xff] %v11730_v56  ;;  %v11792_v49 = vand.u32 31, %v65_v26 }
  0x15   :  { %18504 = vst [vmem:[#allocation16_spill] sm:$0xff] %v11732_v57  ;;  %v72_v26 = vshra.s32 %v11797_v50, 5 }
  0x16   :  { %18507 = vst [vmem:[#allocation19_spill] sm:$0xff] %v11792_v49  ;;  %vm18048_vm14 = vcmp.ge.s32.totalorder %v11792_v49, 1 }
  0x17   :  { %18515 = vst [vmem:[#allocation27_spill] sm:$0xff] %v11940_v18 }
  0x1a   :  { %178 = vrot.lane.b32.xlu2 %v11482_v5, %s11375_s22 }
  0x1b   :  { %176 = vrot.lane.b32.xlu1 %v11461_v2, %s11375_s22 }
  0x1c   :  { %316 = vrot.lane.b32.xlu0 %v11514_v9, %s11374_s30 }
  0x22   :  { %184 = vrot.lane.b32.xlu2 %v11456_v1, %s11375_s22 }
  0x23   :  { %296 = vrot.lane.b32.xlu1 %v11525_v10, %s11374_s30 }
  0x24   :  { %294 = vrot.lane.b32.xlu0 %v11530_v11, %s11374_s30 }
  0x2a   :  { %304 = vrot.lane.b32.xlu2 %v11541_v12, %s11374_s30 }
  0x2b   :  { %302 = vrot.lane.b32.xlu1 %v11546_v13, %s11374_s30 }
  0x2c   :  { %186 = vrot.lane.b32.xlu0 %v11477_v4, %s11375_s22 }
  0x32   :  { %310 = vrot.lane.b32.xlu2 %v11557_v14, %s11374_s30 }
  0x33   :  { %194 = vrot.lane.b32.xlu1 %v11472_v3, %s11375_s22 }
  0x34   :  { %192 = vrot.lane.b32.xlu0 %v11451_v0, %s11375_s22 }
  0x3a   :  { %174 = vrot.lane.b32.xlu2 %v11498_v7, %s11375_s22 }
  0x3b   :  { %172 = vrot.lane.b32.xlu1 %v11503_v8, %s11375_s22 }
  0x3c   :  { %312 = vrot.lane.b32.xlu0 %v11568_v15, %s11374_s30 }
  0x42   :  { %180 = vrot.lane.b32.xlu2 %v11530_v11, %s11375_s22 }
  0x43   :  { %202 = vrot.lane.b32.xlu1 %v11514_v9, %s11375_s22 }
  0x44   :  { %200 = vrot.lane.b32.xlu0 %v11493_v6, %s11375_s22 }
  0x4a   :  { %1038 = vrot.lane.b32.xlu2 %v11482_v5, %s11376_s13 }
  0x4b   :  { %1036 = vrot.lane.b32.xlu1 %v11461_v2, %s11376_s13 }
  0x4c   :  { %182 = vrot.lane.b32.xlu0 %v11525_v10, %s11375_s22 }
  0x52   :  { %1044 = vrot.lane.b32.xlu2 %v11456_v1, %s11376_s13 }
  0x53   :  { %190 = vrot.lane.b32.xlu1 %v11541_v12, %s11375_s22 }
  0x54   :  { %188 = vrot.lane.b32.xlu0 %v11546_v13, %s11375_s22 }
  0x5a   :  { %198 = vrot.lane.b32.xlu2 %v11568_v15, %s11375_s22 }
  0x5b   :  { %196 = vrot.lane.b32.xlu1 %v11557_v14, %s11375_s22  ;;  %s11379_s22 = smov 97  }
  0x5c   :  { %1046 = vrot.lane.b32.xlu0 %v11477_v4, %s11376_s13  ;;  %v11600_v16 = vpop.permute.xlu2 %306 }
  0x62   :  { %1032 = vrot.lane.b32.xlu2 %v11503_v8, %s11376_s13 }
  0x63   :  { %1054 = vrot.lane.b32.xlu1 %v11472_v3, %s11376_s13 }
  0x64   :  { %1052 = vrot.lane.b32.xlu0 %v11451_v0, %s11376_s13  ;;  %v11608_v17 = vpop.permute.xlu2 %308 }
  0x65   :  { %v323_v46 = vsel %vm318_vm0, %v11600_v16, %v11608_v17 }
  0x6a   :  { %1062 = vrot.lane.b32.xlu2 %v11514_v9, %s11376_s13 }
  0x6b   :  { %1060 = vrot.lane.b32.xlu1 %v11493_v6, %s11376_s13 }
  0x6c   :  { %1034 = vrot.lane.b32.xlu0 %v11498_v7, %s11376_s13  ;;  %v11619_v20 = vpop.permute.xlu2 %314 }
  0x72   :  { %1490 = vrot.lane.b32.xlu2 %v11461_v2, %s11377_s14 }
  0x73   :  { %1042 = vrot.lane.b32.xlu1 %v11525_v10, %s11376_s13 }
  0x74   :  { %1040 = vrot.lane.b32.xlu0 %v11530_v11, %s11376_s13  ;;  %v11636_v25 = vpop.permute.xlu2 %178 }
  0x75   :  { %v11634_v24 = vpop.permute.xlu1 %298 }
  0x76   :  { %v291_v27 = vpop.permute.xlu0 %290 }
  0x7a   :  { %1050 = vrot.lane.b32.xlu2 %v11541_v12, %s11376_s13 }
  0x7b   :  { %1048 = vrot.lane.b32.xlu1 %v11546_v13, %s11376_s13 }
  0x7c   :  { %1492 = vrot.lane.b32.xlu0 %v11482_v5, %s11377_s14  ;;  %v11662_v37 = vpop.permute.xlu2 %184 }
  0x7d   :  { %v11660_v36 = vpop.permute.xlu1 %300 }
  0x7e   :  { %v11666_v39 = vpop.permute.xlu0 %292  ;;  %v327_v42 = vsel %vm318_vm0, %v11634_v24, %v11660_v36 }
  0x7f   :  { %v331_v41 = vsel %vm318_vm0, %v291_v27, %v11666_v39 }
  0x80   :  { %10181 = vmatpush.msk.msra.mxu3 %vm111_vm1, %v331_v41  ;;  %v11780_v41 = vand.u32 31, %v66_v61 }
  0x81   :  { %10182 = vmatmul.msk.f32.vlgmr.msra.gmra.mxu3 %vm18274_vm2, %v11671_v40 }
  0x82   :  { %10189 = vmatpush.msk.msrb.mxu3 %vm18058_vm3, %v327_v42  ;;  %1056 = vrot.lane.b32.xlu2 %v11557_v14, %s11376_s13  ;;  %18505 = vst [vmem:[#allocation17_spill] sm:$0xff] %v11780_v41  ;;  %v11783_v42 = vadd.s32 1024, %v11617_v19  ;;  %vm18047_vm12 = vcmp.ge.s32.totalorder %v11780_v41, 1 }
  0x83   :  { %1500 = vrot.lane.b32.xlu1 %v11477_v4, %s11377_s14 }
  0x84   :  { %10197 = vmatpush.msk.msra.mxu3 %vm18056_vm4, %v323_v46  ;;  %1498 = vrot.lane.b32.xlu0 %v11456_v1, %s11377_s14  ;;  %v11708_v47 = vpop.permute.xlu2 %304  ;;  %v11786_v46 = vadd.s32 1152, %v11617_v19 }
  0x85   :  { %v289_v48 = vpop.permute.xlu1 %288 }
  0x86   :  { %v287_v51 = vpop.permute.xlu0 %286  ;;  %v332_v52 = vsel %vm318_vm0, %v289_v48, %v291_v27 }
  0x87   :  { %v333_v53 = vsel %vm318_vm0, %v287_v51, %v289_v48  ;;  %10179 = vmatpush.msk.msra.mxu2 %vm18070_vm5, %v332_v52  ;;  %v11790_v48 = vand.u32 31, %v64_v21  ;;  %v68_v52 = vshra.s32 %v11783_v42, 5 }
  0x88   :  { %10177 = vmatpush.msk.msra.mxu1 %vm109_vm6, %v333_v53  ;;  %10180 = vmatmul.msk.f32.vlgmr.msra.gmra.mxu2 %vm18274_vm2, %v11671_v40  ;;  %v69_v53 = vshra.s32 %v11786_v46, 5 }
  0x89   :  { %10190 = vmatmul.msk.f32.vlgmr.msrb.gmra.mxu3 %vm18274_vm2, %v11671_v40  ;;  %10178 = vmatmul.msk.f32.vlgmr.msra.gmra.mxu1 %vm18274_vm2, %v11671_v40  ;;  %18506 = vst [vmem:[#allocation18_spill] sm:$0xff] %v11790_v48  ;;  %vm18074_vm13 = vcmp.ge.s32.totalorder %v11790_v48, 1 }
  0x8a   :  { %1508 = vrot.lane.b32.xlu2 %v11472_v3, %s11377_s14 }
  0x8b   :  { %1506 = vrot.lane.b32.xlu1 %v11451_v0, %s11377_s14 }
  0x8c   :  { %1058 = vrot.lane.b32.xlu0 %v11568_v15, %s11376_s13  ;;  %v11754_v62 = vpop.permute.xlu2 %310 }
  0x8d   :  { %v11756_v63 = vpop.permute.xlu1 %176 }
  0x8e   :  { %v317_v27 = vpop.permute.xlu0 %316  ;;  %v217_v29 = vsel %vm204_vm8, %v11756_v63, %v11636_v25 }
  0x8f   :  { %v319_v35 = vsel %vm318_vm0, %v11619_v20, %v317_v27  ;;  %v334_v38 = vsel %vm318_vm0, %v317_v27, %v287_v51  ;;  %v11799_v51 = vand.u32 31, %v70_v28  ;;  %v11816_v27 = vand.u32 31, %v11627_v22 }
  0x90   :  { %10175 = vmatpush.msk.msra.mxu0 %vm108_vm9, %v334_v38  ;;  %10205 = vmatpush.msk.msrb.mxu3 %vm123_vm10, %v319_v35  ;;  %v324_v22 = vsel %vm318_vm0, %v11708_v47, %v11600_v16 }
  0x91   :  { %10198 = vmatmul.msk.f32.vlgmr.msra.gmra.mxu3 %vm18274_vm2, %v11671_v40  ;;  %10176 = vmatmul.msk.f32.vlgmr.msra.gmra.mxu0 %vm18274_vm2, %v11671_v40  ;;  %18508 = vst [vmem:[#allocation20_spill] sm:$0xff] %v11799_v51  ;;  %vm18046_vm15 = vcmp.ge.s32.totalorder %v11799_v51, 1 }
  0x92   :  { %10213 = vmatpush.msk.msra.mxu3 %vm224_vm11, %v217_v29  ;;  %1514 = vrot.lane.b32.xlu2 %v11493_v6, %s11377_s14  ;;  %18509 = vst [vmem:[#allocation21_spill] sm:$0xff] %v11816_v27  ;;  %vm18049_vm11 = vcmp.ge.s32.totalorder %v11816_v27, 1 }
  0x93   :  { %1488 = vrot.lane.b32.xlu1 %v11498_v7, %s11377_s14 }
  0x94   :  { %1486 = vrot.lane.b32.xlu0 %v11503_v8, %s11377_s14  ;;  %v11810_v61 = vpop.permute.xlu2 %174 }
  0x95   :  { %v297_v21 = vpop.permute.xlu1 %296  ;;  %v218_v44 = vsel %vm204_vm8, %v11810_v61, %v11756_v63 }
  0x96   :  { %v295_v28 = vpop.permute.xlu0 %294  ;;  %v328_v29 = vsel %vm318_vm0, %v297_v21, %v11634_v24  ;;  %v11837_v24 = vand.u32 31, %v68_v52 }
  0x97   :  { %v330_v35 = vsel %vm318_vm0, %v11666_v39, %v295_v28  ;;  %v329_v38 = vsel %vm318_vm0, %v295_v28, %v297_v21  ;;  %10187 = vmatpush.msk.msrb.mxu2 %vm18047_vm12, %v328_v29  ;;  %v11839_v39 = vand.u32 31, %v69_v53  ;;  %v11845_v21 = vand.u32 31, %v72_v26  ;;  %vm228_vm12 = vmand %vm18058_vm3, %vm18049_vm11  ;;  %v11880_v29 = vld [vmem:[%s18038_s1] sm:$0xff] }
  0x98   :  { %10183 = vmatpush.msk.msrb.mxu0 %vm18074_vm13, %v330_v35  ;;  %10185 = vmatpush.msk.msrb.mxu1 %vm18048_vm14, %v329_v38  ;;  %18510 = vst [vmem:[#allocation22_spill] sm:$0xff] %v11837_v24  ;;  %vm18079_vm7 = vcmp.ge.s32.totalorder %v11837_v24, 1  ;;  %v11883_v35 = vand.u32 31, %v11632_v23  ;;  %v322_v38 = vsel %vm318_vm0, %v11608_v17, %v11754_v62  ;;  %v11902_v17 = vadd.s32 1664, %v11617_v19 }
  0x99   :  { %18511 = vst [vmem:[#allocation23_spill] sm:$0xff] %v11839_v39  ;;  %10195 = vmatpush.msk.msra.mxu2 %vm18046_vm15, %v324_v22  ;;  %10206 = vmatmul.msk.f32.vlgmr.msrb.gmra.mxu3 %vm18274_vm2, %v11671_v40  ;;  %vm18059_vm15 = vcmp.ge.s32.totalorder %v11839_v39, 1  ;;  %vm18057_vm14 = vcmp.ge.s32.totalorder %v11845_v21, 1  ;;  %v11905_v23 = vadd.s32 1792, %v11617_v19 }
  0x9a   :  { %18512 = vst [vmem:[#allocation24_spill] sm:$0xff] %v11845_v21  ;;  %10184 = vmatmul.msk.f32.vlgmr.msrb.gmra.mxu0 %vm18274_vm2, %v11671_v40  ;;  %10186 = vmatmul.msk.f32.vlgmr.msrb.gmra.mxu1 %vm18274_vm2, %v11671_v40  ;;  %vm18055_vm11 = vcmp.ge.s32.totalorder %v11883_v35, 1 }
  0x9b   :  { %1496 = vrot.lane.b32.xlu2 %v11525_v10, %s11377_s14  ;;  %10188 = vmatmul.msk.f32.vlgmr.msrb.gmra.mxu2 %vm18274_vm2, %v11671_v40  ;;  %18513 = vst [vmem:[#allocation25_spill] sm:$0xff] %v11883_v35 }
  0x9c   :  { %1494 = vrot.lane.b32.xlu1 %v11530_v11, %s11377_s14  ;;  %1516 = vrot.lane.b32.xlu0 %v11514_v9, %s11377_s14  ;;  %v11866_v16 = vpop.permute.xlu2 %180 }
  0x9d   :  { %v303_v52 = vpop.permute.xlu1 %302 }
  0x9e   :  { %v325_v53 = vsel %vm318_vm0, %v303_v52, %v11708_v47  ;;  %v326_v26 = vsel %vm318_vm0, %v11660_v36, %v303_v52  ;;  %v11875_v28 = vpop.permute.xlu0 %186  ;;  %v73_v52 = vshra.s32 %v11902_v17, 5 }
  0x9f   :  { %v213_v36 = vsel %vm204_vm8, %v11662_v37, %v11875_v28  ;;  %10191 = vmatpush.msk.msra.mxu0 %vm18079_vm7, %v326_v26  ;;  %10193 = vmatpush.msk.msra.mxu1 %vm18059_vm15, %v325_v53  ;;  %v74_v53 = vshra.s32 %v11905_v23, 5 }
  0xa0   :  { %10221 = vmatpush.msk.msrb.mxu3 %vm228_vm12, %v213_v36  ;;  %vm232_vm12 = vmand %vm18056_vm4, %vm18055_vm11  ;;  %v11944_v6 = vand.u32 31, %v73_v52  ;;  %vm18069_vm4 = vcmp.ge.s32.totalorder %v11940_v18, 1 }
  0xa1   :  { %10199 = vmatpush.msk.msrb.mxu0 %vm18057_vm14, %v322_v38  ;;  %10214 = vmatmul.msk.f32.vlgmr.msra.gmra.mxu3 %vm18274_vm2, %v11880_v29  ;;  %v11933_v38 = vand.u32 31, %v11641_v30  ;;  %v11946_v34 = vand.u32 31, %v74_v53  ;;  %v11959_v30 = vand.u32 31, %v11617_v19  ;;  %vm222_vm15 = vmand %vm109_vm6, %vm18069_vm4 }
  0xa2   :  { %10192 = vmatmul.msk.f32.vlgmr.msra.gmra.mxu0 %vm18274_vm2, %v11671_v40  ;;  %10194 = vmatmul.msk.f32.vlgmr.msra.gmra.mxu1 %vm18274_vm2, %v11671_v40  ;;  %18516 = vst [vmem:[#allocation28_spill] sm:$0xff] %v11944_v6 }
  0xa3   :  { %1510 = vrot.lane.b32.xlu2 %v11557_v14, %s11377_s14  ;;  %10196 = vmatmul.msk.f32.vlgmr.msra.gmra.mxu2 %vm18274_vm2, %v11671_v40  ;;  %18514 = vst [vmem:[#allocation26_spill] sm:$0xff] %v11933_v38  ;;  %vm18068_vm11 = vcmp.ge.s32.totalorder %v11933_v38, 1  ;;  %vm18083_vm14 = vcmp.ge.s32.totalorder %v11946_v34, 1 }
  0xa4   :  { %1504 = vrot.lane.b32.xlu1 %v11541_v12, %s11377_s14  ;;  %1502 = vrot.lane.b32.xlu0 %v11546_v13, %s11377_s14  ;;  %v11920_v47 = vpop.permute.xlu2 %1038  ;;  %18517 = vst [vmem:[#allocation29_spill] sm:$0xff] %v11946_v34  ;;  %vm223_vm3 = vmand %vm18070_vm5, %vm18068_vm11  ;;  %vm18073_vm11 = vcmp.ge.s32.totalorder %v11959_v30, 1 }
  0xa5   :  { %v11922_v22 = vpop.permute.xlu1 %194  ;;  %18518 = vst [vmem:[#allocation30_spill] sm:$0xff] %v11959_v30  ;;  %vm221_vm5 = vmand %vm108_vm9, %vm18073_vm11 }
  0xa6   :  { %v11930_v26 = vpop.permute.xlu0 %192 }
  0xa7   :  { %v209_v36 = vsel %vm204_vm8, %v11930_v26, %v11922_v22 }
  0xa8   :  { %10229 = vmatpush.msk.msra.mxu3 %vm232_vm12, %v209_v36  ;;  %vm121_vm12 = vcmp.ge.s32.totalorder %v11944_v6, 1  ;;  %v11970_v36 = vand.u32 31, %v11691_v45 }
  0xa9   :  { %10222 = vmatmul.msk.f32.vlgmr.msrb.gmra.mxu3 %vm18274_vm2, %v11880_v29 }
  0xaa   :  { %10200 = vmatmul.msk.f32.vlgmr.msrb.gmra.mxu0 %vm18274_vm2, %v11671_v40  ;;  %18519 = vst [vmem:[#allocation31_spill] sm:$0xff] %v11970_v36 }
  0xab   :  { %2273 = vrot.lane.b32.xlu2 %v11530_v11, %s11378_s19 }
  0xac   :  { %2271 = vrot.lane.b32.xlu1 %v11482_v5, %s11378_s19  ;;  %1512 = vrot.lane.b32.xlu0 %v11568_v15, %s11377_s14  ;;  %v11961_v32 = vpop.permute.xlu2 %1044  ;;  %v11977_v15 = vand.u32 31, %v11735_v58 }
  0xad   :  { %v173_v52 = vpop.permute.xlu1 %172 }
  0xae   :  { %v313_v53 = vpop.permute.xlu0 %312  ;;  %18520 = vst [vmem:[#allocation32_spill] sm:$0xff] %v11977_v15  ;;  %v219_v12 = vsel %vm204_vm8, %v173_v52, %v11810_v61  ;;  %vm18072_vm4 = vcmp.ge.s32.totalorder %v11977_v15, 1 }
  0xaf   :  { %v320_v43 = vsel %vm318_vm0, %v313_v53, %v11619_v20  ;;  %v321_v45 = vsel %vm318_vm0, %v11754_v62, %v313_v53  ;;  %vm18071_vm0 = vcmp.ge.s32.totalorder %v11970_v36, 1  ;;  %v216_v62 = vsel %vm204_vm8, %v11636_v25, %v11866_v16 }
  0xb0   :  { %10201 = vmatpush.msk.msrb.mxu1 %vm121_vm12, %v321_v45  ;;  %10203 = vmatpush.msk.msrb.mxu2 %vm18083_vm14, %v320_v43 }
  0xb1   :  { %10202 = vmatmul.msk.f32.vlgmr.msrb.gmra.mxu1 %vm18274_vm2, %v11671_v40  ;;  %10230 = vmatmul.msk.f32.vlgmr.msra.gmra.mxu3 %vm18274_vm2, %v11880_v29 }
  0xb2   :  { %10211 = vmatpush.msk.msra.mxu2 %vm223_vm3, %v218_v44  ;;  %10209 = vmatpush.msk.msra.mxu1 %vm222_vm15, %v219_v12  ;;  %v12016_v12 = vand.u32 31, %v11738_v59  ;;  %vm236_vm3 = vmand %vm123_vm10, %vm18071_vm0  ;;  %vm18075_vm0 = vcmp.lt.s32.totalorder %v11719_v54, 31 }
  0xb3   :  { %2287 = vrot.lane.b32.xlu2 %v11472_v3, %s11378_s19  ;;  %10204 = vmatmul.msk.f32.vlgmr.msrb.gmra.mxu2 %vm18274_vm2, %v11671_v40  ;;  %vm225_vm15 = vmand %vm18074_vm13, %vm18072_vm4  ;;  %v12029_v40 = vand.u32 31, %v11724_v55  ;;  %v12073_v55 = vand.u32 31, %v11783_v42  ;;  %v12091_v42 = vand.u32 31, %v11786_v46  ;;  %v12108_v46 = vand.u32 31, %v11905_v23 }
  0xb4   :  { %2281 = vrot.lane.b32.xlu1 %v11546_v13, %s11378_s19  ;;  %2279 = vrot.lane.b32.xlu0 %v11477_v4, %s11378_s19  ;;  %18521 = vst [vmem:[#allocation33_spill] sm:$0xff] %v12016_v12  ;;  %v12018_v20 = vpop.permute.xlu2 %198  ;;  %vm18076_vm4 = vcmp.ge.s32.totalorder %v12016_v12, 1 }
  0xb5   :  { %v203_v43 = vpop.permute.xlu1 %202  ;;  %18522 = vst [vmem:[#allocation34_spill] sm:$0xff] %v12029_v40  ;;  %vm18077_vm11 = vcmp.ge.s32.totalorder %v12029_v40, 1 }
  0xb6   :  { %v220_v44 = vsel %vm204_vm8, %v203_v43, %v173_v52  ;;  %v12033_v58 = vpop.permute.xlu0 %200  ;;  %18526 = vst [vmem:[#allocation35_spill] sm:$0xff] %v12073_v55  ;;  %v12084_v52 = vand.u32 31, %v11743_v60  ;;  %v12104_v60 = vld [vmem:[%s18038_s1 + $0x10] sm:$0xff] }
  0xb7   :  { %v205_v59 = vsel %vm204_vm8, %v12033_v58, %v203_v43  ;;  %10207 = vmatpush.msk.msra.mxu0 %vm221_vm5, %v220_v44  ;;  %vm12055_vm5 = vmand %vm111_vm1, %vm18075_vm0  ;;  %vm18527_vm1 = vcmp.ge.s32.totalorder %v11780_v41, 1  ;;  %18529 = vst [vmem:[#allocation37_spill] sm:$0xff] %v12091_v42 }
  0xb8   :  { %10237 = vmatpush.msk.msrb.mxu3 %vm236_vm3, %v205_v59  ;;  %10208 = vmatmul.msk.f32.vlgmr.msra.gmra.mxu0 %vm18274_vm2, %v11880_v29  ;;  %vm1064_vm3 = vcmp.lt.s32.totalorder %v11617_v19, 31  ;;  %vm227_vm0 = vmand %vm18527_vm1, %vm18077_vm11  ;;  %18528 = vst [vmem:[#allocation36_spill] sm:$0xff] %v12084_v52  ;;  %vm18082_vm1 = vcmp.ge.s32.totalorder %v12091_v42, 1  ;;  %vm18081_vm11 = vcmp.ge.s32.totalorder %v12108_v46, 1 }
  0xb9   :  { %10210 = vmatmul.msk.f32.vlgmr.msra.gmra.mxu1 %vm18274_vm2, %v11880_v29  ;;  %10215 = vmatpush.msk.msrb.mxu0 %vm225_vm15, %v216_v62  ;;  %vm18525_vm15 = vcmp.ge.s32.totalorder %v11792_v49, 1  ;;  %18530 = vst [vmem:[#allocation38_spill] sm:$0xff] %v12108_v46  ;;  %v12149_v62 = vand.u32 31, %v11902_v17  ;;  %v206_v17 = vsel %vm204_vm8, %v12018_v20, %v12033_v58 }
  0xba   :  { %10238 = vmatmul.msk.f32.vlgmr.msrb.gmra.mxu3 %vm18274_vm2, %v11880_v29  ;;  %vm226_vm13 = vmand %vm18525_vm15, %vm18076_vm4  ;;  %vm18078_vm15 = vcmp.ge.s32.totalorder %v12073_v55, 1 }
  0xbb   :  { %2267 = vrot.lane.b32.xlu2 %v11498_v7, %s11378_s19  ;;  %10212 = vmatmul.msk.f32.vlgmr.msra.gmra.mxu2 %vm18274_vm2, %v11880_v29  ;;  %18536 = vst [vmem:[#allocation40_spill] sm:$0xff] %v12149_v62 }
  0xbc   :  { %2265 = vrot.lane.b32.xlu1 %v11503_v8, %s11378_s19  ;;  %2289 = vrot.lane.b32.xlu0 %v11557_v14, %s11378_s19  ;;  %v12079_v63 = vpop.permute.xlu2 %1032 }
  0xbd   :  { %v12081_v61 = vpop.permute.xlu1 %1036 }
  0xbe   :  { %v1077_v53 = vsel %vm1064_vm3, %v12081_v61, %v11920_v47  ;;  %v183_v45 = vpop.permute.xlu0 %182 }
  0xbf   :  { %v214_v43 = vsel %vm204_vm8, %v183_v45, %v11662_v37  ;;  %v215_v44 = vsel %vm204_vm8, %v11866_v16, %v183_v45  ;;  %10246 = vmatpush.msk.msra.mxu3 %vm12055_vm5, %v1077_v53  ;;  %vm18080_vm5 = vcmp.ge.s32.totalorder %v12084_v52, 1  ;;  %v12140_v16 = vand.u32 31, %v11797_v50 }
  0xc0   :  { %10217 = vmatpush.msk.msrb.mxu1 %vm226_vm13, %v215_v44  ;;  %10219 = vmatpush.msk.msrb.mxu2 %vm227_vm0, %v214_v43  ;;  %vm12124_vm13 = vmand %vm18079_vm7, %vm18078_vm15  ;;  %vm18533_vm0 = vcmp.ge.s32.totalorder %v11799_v51, 1  ;;  %vm18535_vm15 = vcmp.ge.s32.totalorder %v11839_v39, 1 }
  0xc1   :  { %10216 = vmatmul.msk.f32.vlgmr.msrb.gmra.mxu0 %vm18274_vm2, %v11880_v29  ;;  %10218 = vmatmul.msk.f32.vlgmr.msrb.gmra.mxu1 %vm18274_vm2, %v11880_v29  ;;  %vm231_vm4 = vmand %vm18533_vm0, %vm18080_vm5  ;;  %18534 = vst [vmem:[#allocation39_spill] sm:$0xff] %v12140_v16  ;;  %vm18103_vm0 = vcmp.lt.s32.totalorder %v11816_v27, 31  ;;  %vm152_vm5 = vcmp.ge.s32.totalorder %v12140_v16, 1 }
  0xc2   :  { %10247 = vmatmul.msk.f32.vlgmr.msra.gmra.mxu3 %vm18274_vm2, %v12104_v60  ;;  %vm230_vm7 = vmand %vm18535_vm15, %vm18082_vm1  ;;  %vm18540_vm1 = vcmp.ge.s32.totalorder %v11845_v21, 1 }
  0xc3   :  { %2275 = vrot.lane.b32.xlu2 %v11525_v10, %s11378_s19  ;;  %10220 = vmatmul.msk.f32.vlgmr.msrb.gmra.mxu2 %vm18274_vm2, %v11880_v29  ;;  %vm235_vm15 = vmand %vm18083_vm14, %vm18081_vm11  ;;  %vm18084_vm11 = vcmp.lt.s32.totalorder %v11959_v30, 31 }
  0xc4   :  { %2295 = vrot.lane.b32.xlu1 %v11514_v9, %s11378_s19  ;;  %2269 = vrot.lane.b32.xlu0 %v11461_v2, %s11378_s19  ;;  %v12142_v23 = vpop.permute.xlu2 %1062  ;;  %vm233_vm14 = vmand %vm18540_vm1, %vm152_vm5  ;;  %vm18102_vm1 = vcmp.lt.s32.totalorder %v11940_v18, 31 }
  0xc5   :  { %v191_v59 = vpop.permute.xlu1 %190 }
  0xc6   :  { %v210_v25 = vsel %vm204_vm8, %v191_v59, %v11930_v26  ;;  %v189_v53 = vpop.permute.xlu0 %188  ;;  %v1080_v26 = vsel %vm1064_vm3, %v12142_v23, %v12079_v63 }
  0xc7   :  { %v211_v50 = vsel %vm204_vm8, %v189_v53, %v191_v59  ;;  %v212_v45 = vsel %vm204_vm8, %v11875_v28, %v189_v53  ;;  %10227 = vmatpush.msk.msra.mxu2 %vm231_vm4, %v210_v25  ;;  %vm153_vm4 = vcmp.ge.s32.totalorder %v12149_v62, 1  ;;  %v18545_v28 = vld [vmem:[#allocation5_spill] sm:$0xff] }
  0xc8   :  { %10223 = vmatpush.msk.msra.mxu0 %vm12124_vm13, %v212_v45  ;;  %10225 = vmatpush.msk.msra.mxu1 %vm230_vm7, %v211_v50  ;;  %vm18537_vm13 = vcmp.ge.s32.totalorder %v11652_v33, 1  ;;  %v18542_v50 = vld [vmem:[#allocation11_spill] sm:$0xff] }
  0xc9   :  { %10224 = vmatmul.msk.f32.vlgmr.msra.gmra.mxu0 %vm18274_vm2, %v11880_v29  ;;  %10226 = vmatmul.msk.f32.vlgmr.msra.gmra.mxu1 %vm18274_vm2, %v11880_v29  ;;  %vm12180_vm7 = vmand %vm18537_vm13, %vm18103_vm0 }
  0xca   :  { %10235 = vmatpush.msk.msrb.mxu2 %vm235_vm15, %v206_v17  ;;  %vm234_vm15 = vmand %vm121_vm12, %vm153_vm4  ;;  %v18544_v17 = vld [vmem:[#allocation13_spill] sm:$0xff] }
  0xcb   :  { %2711 = vrot.lane.b32.xlu2 %v11530_v11, %s11379_s22  ;;  %10228 = vmatmul.msk.f32.vlgmr.msra.gmra.mxu2 %vm18274_vm2, %v11880_v29  ;;  %vm1081_vm13 = vmand %vm108_vm9, %vm18084_vm11  ;;  %vm18543_vm9 = vcmp.ge.s32.totalorder %v18542_v50, 1 }
  0xcc   :  { %2709 = vrot.lane.b32.xlu1 %v11482_v5, %s11379_s22  ;;  %2277 = vrot.lane.b32.xlu0 %v11456_v1, %s11378_s19  ;;  %v12209_v58 = vpop.permute.xlu2 %1490 }
  0xcd   :  { %v197_v43 = vpop.permute.xlu1 %196 }
  0xce   :  { %v207_v44 = vsel %vm204_vm8, %v197_v43, %v12018_v20  ;;  %v208_v37 = vsel %vm204_vm8, %v11922_v22, %v197_v43  ;;  %v12217_v59 = vpop.permute.xlu0 %1046  ;;  %vm18090_vm8 = vcmp.lt.s32.totalorder %v11883_v35, 31  ;;  %v18541_v22 = vld [vmem:[#allocation6_spill] sm:$0xff]  ;;  %v18547_v43 = vld [vmem:[#allocation12_spill] sm:$0xff] }
  0xcf   :  { %v1073_v25 = vsel %vm1064_vm3, %v11961_v32, %v12217_v59  ;;  %10231 = vmatpush.msk.msrb.mxu0 %vm233_vm14, %v208_v37  ;;  %10233 = vmatpush.msk.msrb.mxu1 %vm234_vm15, %v207_v44  ;;  %vm1092_vm14 = vmand %vm18543_vm9, %vm18090_vm8  ;;  %vm18091_vm15 = vcmp.lt.s32.totalorder %v11933_v38, 31  ;;  %vm18551_vm8 = vcmp.ge.s32.totalorder %v11792_v49, 1 }
  0xd0   :  { %10254 = vmatpush.msk.msrb.mxu3 %vm12180_vm7, %v1073_v25  ;;  %vm18089_vm7 = vcmp.lt.s32.totalorder %v11970_v36, 31 }
  0xd1   :  { %10240 = vmatpush.msk.msra.mxu0 %vm1081_vm13, %v1080_v26  ;;  %10234 = vmatmul.msk.f32.vlgmr.msrb.gmra.mxu1 %vm18274_vm2, %v11880_v29  ;;  %vm1082_vm13 = vmand %vm109_vm6, %vm18102_vm1  ;;  %v18546_v26 = vld [vmem:[#allocation7_spill] sm:$0xff]  ;;  %vm18092_vm6 = vcmp.lt.s32.totalorder %v11977_v15, 31 }
  0xd2   :  { %10232 = vmatmul.msk.f32.vlgmr.msrb.gmra.mxu0 %vm18274_vm2, %v11880_v29  ;;  %10255 = vmatmul.msk.f32.vlgmr.msrb.gmra.mxu3 %vm18274_vm2, %v12104_v60  ;;  %vm1096_vm9 = vmand %vm123_vm10, %vm18089_vm7  ;;  %vm18093_vm10 = vcmp.lt.s32.totalorder %v12029_v40, 31 }
  0xd3   :  { %2717 = vrot.lane.b32.xlu2 %v11477_v4, %s11379_s22  ;;  %10236 = vmatmul.msk.f32.vlgmr.msrb.gmra.mxu2 %vm18274_vm2, %v11880_v29 }
  0xd4   :  { %2285 = vrot.lane.b32.xlu1 %v11451_v0, %s11378_s19  ;;  %2283 = vrot.lane.b32.xlu0 %v18541_v22, %s11378_s19  ;;  %v12240_v20 = vpop.permute.xlu2 %1050 }
  0xd5   :  { %v12242_v53 = vpop.permute.xlu1 %1054 }
  0xd6   :  { %v1053_v45 = vpop.permute.xlu0 %1052 }
  0xd7   :  { %v1069_v29 = vsel %vm1064_vm3, %v1053_v45, %v12242_v53 }
  0xd8   :  { %10262 = vmatpush.msk.msra.mxu3 %vm1092_vm14, %v1069_v29  ;;  %vm18548_vm14 = vcmp.ge.s32.totalorder %v18547_v43, 1 }
  0xd9   :  { %vm1083_vm11 = vmand %vm18548_vm14, %vm18091_vm15  ;;  %vm18096_vm14 = vcmp.lt.s32.totalorder %v12016_v12, 31 }
  0xda   :  { %10241 = vmatmul.msk.f32.vlgmr.msra.gmra.mxu0 %vm18274_vm2, %v12104_v60  ;;  %10263 = vmatmul.msk.f32.vlgmr.msra.gmra.mxu3 %vm18274_vm2, %v12104_v60  ;;  %vm1086_vm15 = vmand %vm18551_vm8, %vm18096_vm14  ;;  %vm18552_vm8 = vcmp.ge.s32.totalorder %v11799_v51, 1 }
  0xdb   :  { %2293 = vrot.lane.b32.xlu2 %v18545_v28, %s11378_s19 }
  0xdc   :  { %2291 = vrot.lane.b32.xlu1 %v18546_v26, %s11378_s19  ;;  %2719 = vrot.lane.b32.xlu0 %v11546_v13, %s11379_s22  ;;  %v12276_v44 = vpop.permute.xlu2 %1056 }
  0xdd   :  { %v12278_v37 = vpop.permute.xlu1 %1060 }
  0xde   :  { %v1065_v25 = vsel %vm1064_vm3, %v12278_v37, %v12142_v23  ;;  %v1035_v29 = vpop.permute.xlu0 %1034 }
  0xdf   :  { %v1078_v57 = vsel %vm1064_vm3, %v1035_v29, %v12081_v61  ;;  %v1079_v56 = vsel %vm1064_vm3, %v12079_v63, %v1035_v29  ;;  %10270 = vmatpush.msk.msrb.mxu3 %vm1096_vm9, %v1065_v25  ;;  %vm18549_vm9 = vcmp.ge.s32.totalorder %v11790_v48, 1 }
  0xe0   :  { %10242 = vmatpush.msk.msra.mxu1 %vm1082_vm13, %v1079_v56  ;;  %10244 = vmatpush.msk.msra.mxu2 %vm1083_vm11, %v1078_v57  ;;  %vm1085_vm7 = vmand %vm18549_vm9, %vm18092_vm6  ;;  %vm18550_vm11 = vcmp.ge.s32.totalorder %v11780_v41, 1  ;;  %vm18094_vm9 = vcmp.lt.s32.totalorder %v12084_v52, 31  ;;  %vm18095_vm6 = vcmp.lt.s32.totalorder %v12073_v55, 31 }
  0xe1   :  { %10243 = vmatmul.msk.f32.vlgmr.msra.gmra.mxu1 %vm18274_vm2, %v12104_v60  ;;  %10245 = vmatmul.msk.f32.vlgmr.msra.gmra.mxu2 %vm18274_vm2, %v12104_v60  ;;  %vm1087_vm13 = vmand %vm18550_vm11, %vm18093_vm10  ;;  %vm18101_vm10 = vcmp.lt.s32.totalorder %v12091_v42, 31 }
  0xe2   :  { %10271 = vmatmul.msk.f32.vlgmr.msrb.gmra.mxu3 %vm18274_vm2, %v12104_v60  ;;  %vm1091_vm11 = vmand %vm18552_vm8, %vm18094_vm9  ;;  %vm1518_vm8 = vcmp.lt.s32.totalorder %v11617_v19, 1 }
  0xe3   :  { %2703 = vrot.lane.b32.xlu2 %v11503_v8, %s11379_s22 }
  0xe4   :  { %2727 = vrot.lane.b32.xlu1 %v11557_v14, %s11379_s22  ;;  %2725 = vrot.lane.b32.xlu0 %v11472_v3, %s11379_s22  ;;  %v12317_v56 = vpop.permute.xlu2 %1508 }
  0xe5   :  { %v1043_v57 = vpop.permute.xlu1 %1042 }
  0xe6   :  { %v1074_v63 = vsel %vm1064_vm3, %v1043_v57, %v11961_v32  ;;  %v1041_v61 = vpop.permute.xlu0 %1040 }
  0xe7   :  { %v1075_v23 = vsel %vm1064_vm3, %v1041_v61, %v1043_v57  ;;  %v1076_v25 = vsel %vm1064_vm3, %v11920_v47, %v1041_v61  ;;  %10252 = vmatpush.msk.msrb.mxu2 %vm1087_vm13, %v1074_v63  ;;  %v1070_v47 = vsel %vm1064_vm3, %v12240_v20, %v1053_v45  ;;  %v1068_v57 = vsel %vm1064_vm3, %v12242_v53, %v12276_v44 }
  0xe8   :  { %10248 = vmatpush.msk.msrb.mxu0 %vm1085_vm7, %v1076_v25  ;;  %10250 = vmatpush.msk.msrb.mxu1 %vm1086_vm15, %v1075_v23  ;;  %vm18100_vm7 = vcmp.lt.s32.totalorder %v12140_v16, 31  ;;  %vm18553_vm15 = vcmp.ge.s32.totalorder %v11837_v24, 1 }
  0xe9   :  { %10249 = vmatmul.msk.f32.vlgmr.msrb.gmra.mxu0 %vm18274_vm2, %v12104_v60  ;;  %10251 = vmatmul.msk.f32.vlgmr.msrb.gmra.mxu1 %vm18274_vm2, %v12104_v60  ;;  %vm1089_vm13 = vmand %vm18553_vm15, %vm18095_vm6  ;;  %vm18555_vm15 = vcmp.ge.s32.totalorder %v11845_v21, 1 }
  0xea   :  { %10253 = vmatmul.msk.f32.vlgmr.msrb.gmra.mxu2 %vm18274_vm2, %v12104_v60  ;;  %vm1093_vm6 = vmand %vm18555_vm15, %vm18100_vm7 }
  0xeb   :  { %10260 = vmatpush.msk.msra.mxu2 %vm1091_vm11, %v1070_v47  ;;  %2733 = vrot.lane.b32.xlu2 %v11514_v9, %s11379_s22  ;;  %vm18554_vm11 = vcmp.ge.s32.totalorder %v11839_v39, 1 }
  0xec   :  { %2707 = vrot.lane.b32.xlu1 %v11461_v2, %s11379_s22  ;;  %2705 = vrot.lane.b32.xlu0 %v11498_v7, %s11379_s22  ;;  %vm1090_vm9 = vmand %vm18554_vm11, %vm18101_vm10  ;;  %v12359_v32 = vpop.permute.xlu2 %1514  ;;  %vm18556_vm11 = vcmp.ge.s32.totalorder %v11719_v54, 1 }
  0xed   :  { %v1049_v9 = vpop.permute.xlu1 %1048 }
  0xee   :  { %v1071_v2 = vsel %vm1064_vm3, %v1049_v9, %v12240_v20  ;;  %v1072_v45 = vsel %vm1064_vm3, %v12217_v59, %v1049_v9  ;;  %v12371_v29 = vpop.permute.xlu0 %1492  ;;  %v12384_v20 = vld [vmem:[%s18038_s1 + $0x18] sm:$0xff] }
  0xef   :  { %v1531_v63 = vsel %vm1518_vm8, %v12209_v58, %v12371_v29  ;;  %10256 = vmatpush.msk.msra.mxu0 %vm1089_vm13, %v1072_v45  ;;  %10258 = vmatpush.msk.msra.mxu1 %vm1090_vm9, %v1071_v2  ;;  %vm18098_vm9 = vcmp.lt.s32.totalorder %v12149_v62, 31  ;;  %vm18099_vm13 = vcmp.lt.s32.totalorder %v12108_v46, 31 }
  0xf0   :  { %10279 = vmatpush.msk.msra.mxu3 %vm18556_vm11, %v1531_v63  ;;  %vm1094_vm15 = vmand %vm121_vm12, %vm18098_vm9  ;;  %vm18558_vm11 = vcmp.ge.s32.totalorder %v11946_v34, 1  ;;  %vm18559_vm12 = vcmp.ge.s32.totalorder %v11883_v35, 1 }
  0xf1   :  { %10264 = vmatpush.msk.msrb.mxu0 %vm1093_vm6, %v1068_v57  ;;  %10259 = vmatmul.msk.f32.vlgmr.msra.gmra.mxu1 %vm18274_vm2, %v12104_v60  ;;  %vm18557_vm6 = vcmp.ge.s32.totalorder %v11816_v27, 1 }
  0xf2   :  { %10257 = vmatmul.msk.f32.vlgmr.msra.gmra.mxu0 %vm18274_vm2, %v12104_v60  ;;  %10261 = vmatmul.msk.f32.vlgmr.msra.gmra.mxu2 %vm18274_vm2, %v12104_v60 }
  0xf3   :  { %10280 = vmatmul.msk.f32.vlgmr.msra.gmra.mxu3 %vm18274_vm2, %v12384_v20  ;;  %3163 = vrot.lane.b32.xlu2 %v11482_v5, %s11380_s25 }
  0xf4   :  { %2715 = vrot.lane.b32.xlu1 %v11456_v1, %s11379_s22  ;;  %2713 = vrot.lane.b32.xlu0 %v11525_v10, %s11379_s22 }
  0xf5   :  { %v1497_v59 = vpop.permute.xlu2 %1496  ;;  %v12402_v53 = vpop.permute.xlu1 %1500 }
  0xf6   :  { %v1499_v61 = vpop.permute.xlu0 %1498 }
  0xf7   :  { %v1527_v23 = vsel %vm1518_vm8, %v1499_v61, %v12402_v53 }
  0xf8   :  { %10287 = vmatpush.msk.msrb.mxu3 %vm18557_vm6, %v1527_v23  ;;  %vm1095_vm6 = vmand %vm18558_vm11, %vm18099_vm13  ;;  %vm18562_vm11 = vcmp.ge.s32.totalorder %v12029_v40, 1 }
  0xfa   :  { %10265 = vmatmul.msk.f32.vlgmr.msrb.gmra.mxu0 %vm18274_vm2, %v12104_v60 }
  0xfb   :  { %10288 = vmatmul.msk.f32.vlgmr.msrb.gmra.mxu3 %vm18274_vm2, %v12384_v20  ;;  %2723 = vrot.lane.b32.xlu2 %v11451_v0, %s11379_s22 }
  0xfc   :  { %2721 = vrot.lane.b32.xlu1 %v18541_v22, %s11379_s22  ;;  %3165 = vrot.lane.b32.xlu0 %v11530_v11, %s11380_s25 }
  0xfd   :  { %v12425_v1 = vpop.permute.xlu2 %1510  ;;  %v1507_v5 = vpop.permute.xlu1 %1506 }
  0xfe   :  { %v1059_v0 = vpop.permute.xlu0 %1058  ;;  %v1523_v10 = vsel %vm1518_vm8, %v1507_v5, %v12317_v56 }
  0xff   :  { %v1066_v11 = vsel %vm1064_vm3, %v1059_v0, %v12278_v37  ;;  %v1067_v22 = vsel %vm1064_vm3, %v12276_v44, %v1059_v0  ;;  %10295 = vmatpush.msk.msra.mxu3 %vm18559_vm12, %v1523_v10  ;;  %vm18560_vm3 = vcmp.ge.s32.totalorder %v11940_v18, 1  ;;  %vm18565_vm12 = vcmp.ge.s32.totalorder %v12016_v12, 1  ;;  %v12532_v0 = vld [vmem:[%s18037_s0 + $0x38] sm:$0xff] }
 0x100   :  { %10266 = vmatpush.msk.msrb.mxu1 %vm1094_vm15, %v1067_v22  ;;  %10268 = vmatpush.msk.msrb.mxu2 %vm1095_vm6, %v1066_v11  ;;  %vm18561_vm15 = vcmp.ge.s32.totalorder %v11933_v38, 1  ;;  %vm18564_vm6 = vcmp.ge.s32.totalorder %v11959_v30, 1  ;;  %v12551_v22 = vld [vmem:[%s18038_s1 + $0x20] sm:$0xff] }
 0x101   :  { %10267 = vmatmul.msk.f32.vlgmr.msrb.gmra.mxu1 %vm18274_vm2, %v12104_v60  ;;  %10269 = vmatmul.msk.f32.vlgmr.msrb.gmra.mxu2 %vm18274_vm2, %v12104_v60 }
 0x103   :  { %10296 = vmatmul.msk.f32.vlgmr.msra.gmra.mxu3 %vm18274_vm2, %v12384_v20  ;;  %2729 = vrot.lane.b32.xlu2 %v18546_v26, %s11379_s22  ;;  %v1528_v26 = vsel %vm1518_vm8, %v1497_v59, %v1499_v61 }
 0x104   :  { %3173 = vrot.lane.b32.xlu1 %v11546_v13, %s11380_s25  ;;  %3171 = vrot.lane.b32.xlu0 %v11477_v4, %s11380_s25  ;;  %v12454_v44 = vpop.f32.mrf.mxu3 }
 0x105   :  { %v12456_v37 = vpop.permute.xlu2 %2273  ;;  %v1489_v25 = vpop.permute.xlu1 %1488 }
 0x106   :  { %v1487_v47 = vpop.permute.xlu0 %1486  ;;  %v1532_v60 = vsel %vm1518_vm8, %v1489_v25, %v12209_v58  ;;  %v12524_v63 = vpop.f32.mrf.mxu1 }
 0x107   :  { %v1533_v9 = vsel %vm1518_vm8, %v1487_v47, %v1489_v25  ;;  %10277 = vmatpush.msk.msra.mxu2 %vm18561_vm15, %v1532_v60  ;;  %vm18567_vm15 = vcmp.ge.s32.totalorder %v11977_v15, 1  ;;  %18568 = vst [vmem:[#allocation5_spill] sm:$0xff] %v12524_v63  ;;  %v12590_v60 = vld [vmem:[%s18037_s0 + $0x78] sm:$0xff] }
 0x108   :  { %10275 = vmatpush.msk.msra.mxu1 %vm18560_vm3, %v1533_v9  ;;  %vm18566_vm3 = vcmp.ge.s32.totalorder %v11970_v36, 1 }
 0x109   :  { %10276 = vmatmul.msk.f32.vlgmr.msra.gmra.mxu1 %vm18274_vm2, %v12384_v20  ;;  %10285 = vmatpush.msk.msrb.mxu2 %vm18562_vm11, %v1528_v26  ;;  %vm18569_vm11 = vcmp.ge.s32.totalorder %v12073_v55, 1  ;;  %v12599_v26 = vld [vmem:[%s18037_s0 + $0x58] sm:$0xff] }
 0x10a   :  { %10278 = vmatmul.msk.f32.vlgmr.msra.gmra.mxu2 %vm18274_vm2, %v12384_v20 }
 0x10b   :  { %3181 = vrot.lane.b32.xlu2 %v11557_v14, %s11380_s25 }
 0x10c   :  { %3179 = vrot.lane.b32.xlu1 %v11472_v3, %s11380_s25  ;;  %2731 = vrot.lane.b32.xlu0 %v18545_v28, %s11379_s22  ;;  %v12483_v2 = vpop.f32.mrf.mxu3  ;;  %v12514_v28 = vld [vmem:[%s18037_s0 + $0x10] sm:$0xff]  ;;  %s11387_s22 = smov 126  }
 0x10d   :  { %v12481_v4 = vpop.permute.xlu2 %2287  ;;  %18563 = vst [vmem:[#allocation6_spill] sm:$0xff] %v12483_v2 }
 0x10e   :  { %v1495_v13 = vpop.permute.xlu1 %1494  ;;  %v1517_v58 = vpop.permute.xlu0 %1516 }
 0x10f   :  { %v1529_v45 = vsel %vm1518_vm8, %v1495_v13, %v1497_v59  ;;  %v1530_v57 = vsel %vm1518_vm8, %v12371_v29, %v1495_v13  ;;  %v1519_v3 = vsel %vm1518_vm8, %v12359_v32, %v1517_v58  ;;  %v1534_v14 = vsel %vm1518_vm8, %v1517_v58, %v1487_v47  ;;  %v11333_v59 = vld [vmem:[%s18037_s0 + $0x18] sm:$0xff]  ;;  %v12542_v11 = vpop.f32.mrf.mxu0  ;;  %v12583_v47 = vld [vmem:[%s18037_s0 + $0x28] sm:$0xff] }
 0x110   :  { %10273 = vmatpush.msk.msra.mxu0 %vm18564_vm6, %v1534_v14  ;;  %10283 = vmatpush.msk.msrb.mxu1 %vm18565_vm12, %v1529_v45  ;;  %vm18570_vm6 = vcmp.ge.s32.totalorder %v12091_v42, 1  ;;  %vm18572_vm12 = vcmp.ge.s32.totalorder %v12084_v52, 1  ;;  %v12621_v14 = vld [vmem:[%s18037_s0 + $0x8] sm:$0xff] }
 0x111   :  { %10303 = vmatpush.msk.msrb.mxu3 %vm18566_vm3, %v1519_v3  ;;  %10274 = vmatmul.msk.f32.vlgmr.msra.gmra.mxu0 %vm18274_vm2, %v12384_v20  ;;  %vm18575_vm3 = vcmp.ge.s32.totalorder %v12108_v46, 1 }
 0x112   :  { %10281 = vmatpush.msk.msrb.mxu0 %vm18567_vm15, %v1530_v57  ;;  %10284 = vmatmul.msk.f32.vlgmr.msrb.gmra.mxu1 %vm18274_vm2, %v12384_v20  ;;  %vm18581_vm15 = vcmp.lt.s32.totalorder %v11719_v54, 31 }
 0x113   :  { %10286 = vmatmul.msk.f32.vlgmr.msrb.gmra.mxu2 %vm18274_vm2, %v12384_v20  ;;  %10304 = vmatmul.msk.f32.vlgmr.msrb.gmra.mxu3 %vm18274_vm2, %v12384_v20 }
 0x114   :  { %3161 = vrot.lane.b32.xlu2 %v12514_v28, %s11380_s25  ;;  %3159 = vrot.lane.b32.xlu1 %v11498_v7, %s11380_s25  ;;  %v12557_v25 = vpop.f32.mrf.mxu3 }
 0x115   :  { %3157 = vrot.lane.b32.xlu0 %v11503_v8, %s11380_s25  ;;  %v12522_v29 = vpop.permute.xlu2 %2267  ;;  %2004 = vmatpush.msra.mxu3 %v11333_v59  ;;  %18571 = vst [vmem:[#allocation7_spill] sm:$0xff] %v12557_v25 }
 0x116   :  { %v1505_v61 = vpop.permute.xlu1 %1504  ;;  %v1503_v23 = vpop.permute.xlu0 %1502 }
 0x117   :  { %2084 = vmatpush.msrb.mxu3 %v12532_v0  ;;  %v1524_v7 = vsel %vm1518_vm8, %v1505_v61, %v1507_v5  ;;  %v1525_v8 = vsel %vm1518_vm8, %v1503_v23, %v1505_v61  ;;  %v1526_v10 = vsel %vm1518_vm8, %v12402_v53, %v1503_v23  ;;  %v1522_v5 = vsel %vm1518_vm8, %v12317_v56, %v12425_v1  ;;  %v12567_v53 = vpop.f32.mrf.mxu2  ;;  %v12576_v56 = vld [vmem:[%s18037_s0 + $0x30] sm:$0xff]  ;;  %v12604_v45 = vpop.f32.mrf.mxu1  ;;  %v12638_v61 = vld [vmem:[%s18037_s0 + $0x48] sm:$0xff]  ;;  %v11341_v23 = vld [vmem:[%s18037_s0 + $0x20] sm:$0xff] }
 0x118   :  { %10289 = vmatpush.msk.msra.mxu0 %vm18569_vm11, %v1526_v10  ;;  %10291 = vmatpush.msk.msra.mxu1 %vm18570_vm6, %v1525_v8  ;;  %18573 = vst [vmem:[#allocation41_spill] sm:$0xff] %v12567_v53  ;;  %vm18588_vm11 = vcmp.lt.s32.totalorder %v11933_v38, 31  ;;  %vm18590_vm6 = vcmp.lt.s32.totalorder %v11883_v35, 31 }
 0x119   :  { %10293 = vmatpush.msk.msra.mxu2 %vm18572_vm12, %v1524_v7  ;;  %10282 = vmatmul.msk.f32.vlgmr.msrb.gmra.mxu0 %vm18274_vm2, %v12384_v20  ;;  %18574 = vst [vmem:[#allocation42_spill] sm:$0xff] %v12604_v45  ;;  %vm18591_vm12 = vcmp.lt.s32.totalorder %v11959_v30, 31 }
 0x11a   :  { %10292 = vmatmul.msk.f32.vlgmr.msra.gmra.mxu1 %vm18274_vm2, %v12384_v20  ;;  %10297 = vmatpush.msk.msrb.mxu0 %vm152_vm5, %v1522_v5 }
 0x11b   :  { %10294 = vmatmul.msk.f32.vlgmr.msra.gmra.mxu2 %vm18274_vm2, %v12384_v20  ;;  %10309 = vmatmul.msk.f32.vlgmr.msra.gmra.mxu3 %vm18274_vm2, %v12551_v22 }
 0x11c   :  { %3169 = vrot.lane.b32.xlu2 %v12576_v56, %s11380_s25  ;;  %3167 = vrot.lane.b32.xlu1 %v12583_v47, %s11380_s25 }
 0x11d   :  { %3187 = vrot.lane.b32.xlu0 %v12590_v60, %s11380_s25  ;;  %v12594_v9 = vpop.permute.xlu2 %2275  ;;  %2164 = vmatpush.msra.mxu3 %v12599_v26 }
 0x11e   :  { %v12602_v13 = vpop.permute.xlu1 %2271  ;;  %v1513_v58 = vpop.permute.xlu0 %1512 }
 0x11f   :  { %v1520_v57 = vsel %vm1518_vm8, %v1513_v58, %v12359_v32  ;;  %v1521_v3 = vsel %vm1518_vm8, %v12425_v1, %v1513_v58  ;;  %v12624_v32 = vpop.f32.mrf.mxu0  ;;  %v12629_v1 = vpop.f32.mrf.mxu3  ;;  %vm18097_vm8 = vcmp.lt.s32.totalorder %v11617_v19, 127  ;;  %v11342_v58 = vld [vmem:[%s18037_s0] sm:$0xff] }
 0x120   :  { %10299 = vmatpush.msk.msrb.mxu1 %vm153_vm4, %v1521_v3  ;;  %10301 = vmatpush.msk.msrb.mxu2 %vm18575_vm3, %v1520_v57  ;;  %18576 = vst [vmem:[#allocation43_spill] sm:$0xff] %v12624_v32  ;;  %v12646_v7 = vpop.f32.mrf.mxu2  ;;  %v12666_v57 = vpop.f32.mrf.mxu1  ;;  %vm18592_vm3 = vcmp.lt.s32.totalorder %v12029_v40, 31 }
 0x121   :  { %10290 = vmatmul.msk.f32.vlgmr.msra.gmra.mxu0 %vm18274_vm2, %v12384_v20  ;;  %18577 = vst [vmem:[#allocation44_spill] sm:$0xff] %v12629_v1 }
 0x122   :  { %1964 = vmatpush.msra.mxu1 %v12621_v14  ;;  %1984 = vmatpush.msra.mxu2 %v12514_v28  ;;  %18578 = vst [vmem:[#allocation45_spill] sm:$0xff] %v12646_v7  ;;  %v11343_v7 = vld [vmem:[%s18037_s0 + $0x40] sm:$0xff] }
 0x123   :  { %10300 = vmatmul.msk.f32.vlgmr.msrb.gmra.mxu1 %vm18274_vm2, %v12384_v20  ;;  %10302 = vmatmul.msk.f32.vlgmr.msrb.gmra.mxu2 %vm18274_vm2, %v12384_v20  ;;  %18579 = vst [vmem:[#allocation46_spill] sm:$0xff] %v12666_v57 }
 0x124   :  { %10313 = vmatmul.msk.f32.vlgmr.msrb.gmra.mxu3 %vm18274_vm2, %v12551_v22  ;;  %3175 = vrot.lane.b32.xlu2 %v12638_v61, %s11380_s25 }
 0x125   :  { %3603 = vrot.lane.b32.xlu1 %v11341_v23, %s11381_s29  ;;  %3601 = vrot.lane.b32.xlu0 %v11333_v59, %s11381_s29  ;;  %v12649_v8 = vpop.permute.xlu2 %2711  ;;  %v2309_v59 = vsel %vm18097_vm8, %v12602_v13, %v12456_v37 }
 0x126   :  { %2244 = vmatpush.msrb.mxu3 %v12590_v60  ;;  %v12653_v10 = vpop.permute.xlu1 %2281  ;;  %v12655_v5 = vpop.permute.xlu0 %2279  ;;  %1944 = vmatpush.msra.mxu0 %v11342_v58 }
 0x127   :  { %2044 = vmatpush.msrb.mxu1 %v12583_v47  ;;  %2064 = vmatpush.msrb.mxu2 %v12576_v56  ;;  %v12676_v3 = vpop.f32.mrf.mxu0 }
 0x128   :  { %18580 = vst [vmem:[#allocation47_spill] sm:$0xff] %v12676_v3  ;;  %v12697_v3 = vpop.f32.mrf.mxu2 }
 0x129   :  { %10298 = vmatmul.msk.f32.vlgmr.msrb.gmra.mxu0 %vm18274_vm2, %v12384_v20  ;;  %v12684_v20 = vpop.f32.mrf.mxu3  ;;  %18583 = vst [vmem:[#allocation49_spill] sm:$0xff] %v12697_v3  ;;  %v12731_v3 = vld [vmem:[%s18037_s0 + $0x68] sm:$0xff] }
 0x12a   :  { %2024 = vmatpush.msrb.mxu0 %v11341_v23  ;;  %18582 = vst [vmem:[#allocation48_spill] sm:$0xff] %v12684_v20  ;;  %v12691_v23 = vld [vmem:[%s18037_s0 + $0x50] sm:$0xff] }
 0x12b   :  { %10307 = vmatmul.msk.f32.vlgmr.msra.gmra.mxu1 %vm18274_vm2, %v12551_v22  ;;  %10308 = vmatmul.msk.f32.vlgmr.msra.gmra.mxu2 %vm18274_vm2, %v12551_v22 }
 0x12c   :  { %10317 = vmatmul.msk.f32.vlgmr.msra.gmra.mxu3 %vm18274_vm2, %v12551_v22  ;;  %3611 = vrot.lane.b32.xlu2 %v11343_v7, %s11381_s29 }
 0x12d   :  { %10329 = vmatpush.msk.msra.mxu3 %vm18581_vm15, %v2309_v59  ;;  %3609 = vrot.lane.b32.xlu1 %v12532_v0, %s11381_s29  ;;  %v12695_v59 = vpop.permute.xlu2 %2717  ;;  %v2305_v0 = vsel %vm18097_vm8, %v12655_v5, %v12653_v10  ;;  %vm18593_vm15 = vcmp.lt.s32.totalorder %v11970_v36, 31 }
 0x12e   :  { %3177 = vrot.lane.b32.xlu0 %v12691_v23, %s11380_s25  ;;  %v2266_v57 = vpop.permute.xlu1 %2265  ;;  %2124 = vmatpush.msra.mxu1 %v12638_v61  ;;  %v12701_v53 = vpop.permute.xlu0 %2289 }
 0x12f   :  { %2144 = vmatpush.msra.mxu2 %v12691_v23  ;;  %v12711_v45 = vpop.f32.mrf.mxu1  ;;  %v12743_v1 = vpop.f32.mrf.mxu0 }
 0x130   :  { %18584 = vst [vmem:[#allocation50_spill] sm:$0xff] %v12711_v45 }
 0x131   :  { %10306 = vmatmul.msk.f32.vlgmr.msra.gmra.mxu0 %vm18274_vm2, %v12551_v22  ;;  %18586 = vst [vmem:[#allocation52_spill] sm:$0xff] %v12743_v1  ;;  %v11347_v1 = vld [vmem:[%s18037_s0 + $0x60] sm:$0xff] }
 0x132   :  { %2104 = vmatpush.msra.mxu0 %v11343_v7  ;;  %v12724_v7 = vld [vmem:[%s18037_s0 + $0x70] sm:$0xff]  ;;  %s11398_s0 = smov 114  }
 0x133   :  { %10311 = vmatmul.msk.f32.vlgmr.msrb.gmra.mxu1 %vm18274_vm2, %v12551_v22  ;;  %10312 = vmatmul.msk.f32.vlgmr.msrb.gmra.mxu2 %vm18274_vm2, %v12551_v22 }
 0x134   :  { %10321 = vmatmul.msk.f32.vlgmr.msrb.gmra.mxu3 %vm18274_vm2, %v12551_v22  ;;  %3617 = vrot.lane.b32.xlu2 %v12599_v26, %s11381_s29  ;;  %v12741_v26 = vpop.f32.mrf.mxu3 }
 0x135   :  { %10337 = vmatpush.msk.msrb.mxu3 %vm18103_vm0, %v2305_v0  ;;  %3185 = vrot.lane.b32.xlu1 %v12724_v7, %s11380_s25  ;;  %v12735_v0 = vpop.permute.xlu2 %2293  ;;  %18585 = vst [vmem:[#allocation51_spill] sm:$0xff] %v12741_v26  ;;  %v12758_v26 = vld [vmem:[%s18038_s1 + $0x28] sm:$0xff] }
 0x136   :  { %3183 = vrot.lane.b32.xlu0 %v12731_v3, %s11380_s25  ;;  %v12737_v45 = vpop.permute.xlu1 %2295  ;;  %2204 = vmatpush.msrb.mxu1 %v12731_v3  ;;  %v2270_v32 = vpop.permute.xlu0 %2269 }
 0x137   :  { %2224 = vmatpush.msrb.mxu2 %v12724_v7  ;;  %v2311_v25 = vsel %vm18097_vm8, %v12522_v29, %v2270_v32  ;;  %v12748_v63 = vpop.f32.mrf.mxu2  ;;  %v2310_v2 = vsel %vm18097_vm8, %v2270_v32, %v12602_v13  ;;  %v2301_v13 = vsel %vm18097_vm8, %v12481_v4, %v12701_v53  ;;  %v12777_v32 = vpop.f32.mrf.mxu1 }
 0x138   :  { %18587 = vst [vmem:[#allocation53_spill] sm:$0xff] %v12748_v63 }
 0x139   :  { %10310 = vmatmul.msk.f32.vlgmr.msrb.gmra.mxu0 %vm18274_vm2, %v12551_v22  ;;  %18589 = vst [vmem:[#allocation54_spill] sm:$0xff] %v12777_v32 }
 0x13a   :  { %2184 = vmatpush.msrb.mxu0 %v11347_v1 }
 0x13b   :  { %10315 = vmatmul.msk.f32.vlgmr.msra.gmra.mxu1 %vm18274_vm2, %v12551_v22  ;;  %10316 = vmatmul.msk.f32.vlgmr.msra.gmra.mxu2 %vm18274_vm2, %v12551_v22 }
 0x13c   :  { %10325 = vmatpush.msk.msra.mxu1 %vm18102_vm1, %v2311_v25  ;;  %10327 = vmatpush.msk.msra.mxu2 %vm18588_vm11, %v2310_v2  ;;  %vm2735_vm11 = vcmp.lt.s32.totalorder %v11617_v19, 97 }
 0x13d   :  { %10330 = vmatmul.msk.f32.vlgmr.msra.gmra.mxu3 %vm18274_vm2, %v12758_v26  ;;  %3597 = vrot.lane.b32.xlu2 %v12621_v14, %s11381_s29  ;;  %v12783_v25 = vpop.permute.xlu2 %2703  ;;  %v12797_v14 = vpop.f32.mrf.mxu3 }
 0x13e   :  { %10345 = vmatpush.msk.msra.mxu3 %vm18590_vm6, %v2301_v13  ;;  %3595 = vrot.lane.b32.xlu1 %v11342_v58, %s11381_s29  ;;  %v12787_v63 = vpop.permute.xlu1 %2709  ;;  %v2278_v2 = vpop.permute.xlu0 %2277  ;;  %v2312_v13 = vsel %vm18097_vm8, %v2266_v57, %v12522_v29  ;;  %v2313_v29 = vsel %vm18097_vm8, %v12737_v45, %v2266_v57  ;;  %vm127_vm6 = vcmp.lt.s32.totalorder %v11643_v31, 31 }
 0x13f   :  { %3619 = vrot.lane.b32.xlu0 %v11347_v1, %s11381_s29  ;;  %v2307_v20 = vsel %vm18097_vm8, %v12594_v9, %v2278_v2  ;;  %v12792_v32 = vpop.f32.mrf.mxu2  ;;  %v2306_v58 = vsel %vm18097_vm8, %v2278_v2, %v12655_v5  ;;  %v12804_v1 = vpop.f32.mrf.mxu0 }
 0x141   :  { %10314 = vmatmul.msk.f32.vlgmr.msra.gmra.mxu0 %vm18274_vm2, %v12551_v22 }
 0x142   :  { %10323 = vmatpush.msk.msra.mxu0 %vm18591_vm12, %v2312_v13  ;;  %vm18594_vm12 = vcmp.lt.s32.totalorder %v11977_v15, 31 }
 0x143   :  { %10319 = vmatmul.msk.f32.vlgmr.msrb.gmra.mxu1 %vm18274_vm2, %v12551_v22  ;;  %10320 = vmatmul.msk.f32.vlgmr.msrb.gmra.mxu2 %vm18274_vm2, %v12551_v22 }
 0x144   :  { %10333 = vmatpush.msk.msrb.mxu1 %vm18096_vm14, %v2307_v20  ;;  %10335 = vmatpush.msk.msrb.mxu2 %vm18592_vm3, %v2306_v58  ;;  %v12832_v20 = vpop.f32.mrf.mxu1  ;;  %vm18595_vm3 = vcmp.ge.s32.totalorder %v11719_v54, 1  ;;  %vm18597_vm14 = vcmp.lt.s32.totalorder %v12084_v52, 31 }
 0x145   :  { %10338 = vmatmul.msk.f32.vlgmr.msrb.gmra.mxu3 %vm18274_vm2, %v12758_v26  ;;  %3605 = vrot.lane.b32.xlu2 %v12583_v47, %s11381_s29  ;;  %v12825_v5 = vpop.permute.xlu2 %2733  ;;  %v2308_v47 = vsel %vm18097_vm8, %v12456_v37, %v12594_v9 }
 0x146   :  { %10353 = vmatpush.msk.msrb.mxu3 %vm18593_vm15, %v2313_v29  ;;  %3625 = vrot.lane.b32.xlu1 %v12590_v60, %s11381_s29  ;;  %v2286_v57 = vpop.permute.xlu1 %2285  ;;  %v2284_v2 = vpop.permute.xlu0 %2283  ;;  %v2747_v60 = vsel %vm2735_vm11, %v12787_v63, %v12649_v8  ;;  %vm2755_vm15 = vmand %vm127_vm6, %vm18595_vm3  ;;  %vm18599_vm3 = vcmp.ge.s32.totalorder %v11816_v27, 1 }
 0x147   :  { %3599 = vrot.lane.b32.xlu0 %v12514_v28, %s11381_s29  ;;  %v2303_v13 = vsel %vm18097_vm8, %v2284_v2, %v2286_v57  ;;  %v2302_v28 = vsel %vm18097_vm8, %v2286_v57, %v12481_v4  ;;  %v12858_v37 = vpop.f32.mrf.mxu2  ;;  %v12860_v4 = vpop.f32.mrf.mxu3 }
 0x148   :  { %18596 = vst [vmem:[#allocation55_spill] sm:$0xff] %v12858_v37 }
 0x149   :  { %10318 = vmatmul.msk.f32.vlgmr.msrb.gmra.mxu0 %vm18274_vm2, %v12551_v22  ;;  %v12866_v22 = vpop.f32.mrf.mxu0 }
 0x14a   :  { %10331 = vmatpush.msk.msrb.mxu0 %vm18594_vm12, %v2308_v47  ;;  %vm18598_vm12 = vcmp.lt.s32.totalorder %v12073_v55, 31 }
 0x14b   :  { %10326 = vmatmul.msk.f32.vlgmr.msra.gmra.mxu1 %vm18274_vm2, %v12758_v26  ;;  %10328 = vmatmul.msk.f32.vlgmr.msra.gmra.mxu2 %vm18274_vm2, %v12758_v26 }
 0x14c   :  { %10341 = vmatpush.msk.msra.mxu1 %vm18101_vm10, %v2303_v13  ;;  %10343 = vmatpush.msk.msra.mxu2 %vm18597_vm14, %v2302_v28  ;;  %vm131_vm14 = vcmp.lt.s32.totalorder %v11652_v33, 31  ;;  %v12886_v13 = vpop.f32.mrf.mxu1  ;;  %vm18607_vm10 = vcmp.ge.s32.totalorder %v11940_v18, 1 }
 0x14d   :  { %10346 = vmatmul.msk.f32.vlgmr.msra.gmra.mxu3 %vm18274_vm2, %v12758_v26  ;;  %v12872_v9 = vpop.permute.xlu2 %3163  ;;  %3615 = vrot.lane.b32.xlu2 %v12691_v23, %s11381_s29  ;;  %v2304_v23 = vsel %vm18097_vm8, %v12653_v10, %v2284_v2 }
 0x14e   :  { %10362 = vmatpush.msk.msra.mxu3 %vm2755_vm15, %v2747_v60  ;;  %3613 = vrot.lane.b32.xlu1 %v12638_v61, %s11381_s29  ;;  %v2292_v58 = vpop.permute.xlu1 %2291  ;;  %v12880_v29 = vpop.permute.xlu0 %2719  ;;  %vm2759_vm15 = vmand %vm131_vm14, %vm18599_vm3  ;;  %v2298_v61 = vsel %vm18097_vm8, %v12735_v0, %v12737_v45  ;;  %vm18601_vm3 = vcmp.ge.s32.totalorder %v11883_v35, 1 }
 0x14f   :  { %3607 = vrot.lane.b32.xlu0 %v12576_v56, %s11381_s29  ;;  %v2299_v57 = vsel %vm18097_vm8, %v2292_v58, %v12735_v0  ;;  %v2743_v56 = vsel %vm2735_vm11, %v12695_v59, %v12880_v29  ;;  %v12917_v10 = vpop.f32.mrf.mxu2  ;;  %v12919_v2 = vpop.f32.mrf.mxu3  ;;  %v2300_v60 = vsel %vm18097_vm8, %v12701_v53, %v2292_v58  ;;  %vm18107_vm8 = vcmp.lt.s32.totalorder %v18547_v43, 31  ;;  %v18603_v58 = vld [vmem:[#allocation15_spill] sm:$0xff] }
 0x150   :  { %18600 = vst [vmem:[#allocation56_spill] sm:$0xff] %v12917_v10 }
 0x151   :  { %10324 = vmatmul.msk.f32.vlgmr.msra.gmra.mxu0 %vm18274_vm2, %v12758_v26  ;;  %v12923_v45 = vpop.f32.mrf.mxu0 }
 0x152   :  { %10339 = vmatpush.msk.msra.mxu0 %vm18598_vm12, %v2304_v23  ;;  %vm18108_vm12 = vcmp.lt.s32.totalorder %v18542_v50, 31 }
 0x153   :  { %10334 = vmatmul.msk.f32.vlgmr.msrb.gmra.mxu1 %vm18274_vm2, %v12758_v26  ;;  %10336 = vmatmul.msk.f32.vlgmr.msrb.gmra.mxu2 %vm18274_vm2, %v12758_v26 }
 0x154   :  { %10349 = vmatpush.msk.msrb.mxu1 %vm18098_vm9, %v2299_v57  ;;  %10351 = vmatpush.msk.msrb.mxu2 %vm18099_vm13, %v2298_v61  ;;  %v12957_v53 = vpop.f32.mrf.mxu1  ;;  %vm18106_vm9 = vcmp.lt.s32.totalorder %v18544_v17, 31  ;;  %vm18104_vm13 = vcmp.lt.s32.totalorder %v18603_v58, 31 }
 0x155   :  { %10354 = vmatmul.msk.f32.vlgmr.msrb.gmra.mxu3 %vm18274_vm2, %v12758_v26  ;;  %v12921_v47 = vpop.permute.xlu2 %2723  ;;  %18602 = vst [vmem:[#allocation57_spill] sm:$0xff] %v12957_v53  ;;  %vm2753_vm1 = vmand %vm18106_vm9, %vm18607_vm10  ;;  %vm18611_vm10 = vcmp.ge.s32.totalorder %v11970_v36, 1 }
 0x156   :  { %10370 = vmatpush.msk.msrb.mxu3 %vm2759_vm15, %v2743_v56  ;;  %v12927_v0 = vpop.permute.xlu1 %2727  ;;  %3623 = vrot.lane.b32.xlu1 %v12724_v7, %s11381_s29  ;;  %v12931_v28 = vpop.permute.xlu0 %2725  ;;  %vm2763_vm15 = vmand %vm18108_vm12, %vm18601_vm3 }
 0x157   :  { %3621 = vrot.lane.b32.xlu0 %v12731_v3, %s11381_s29  ;;  %v12942_v3 = vld [vmem:[%s18038_s1 + $0x30] sm:$0xff]  ;;  %v2739_v7 = vsel %vm2735_vm11, %v12931_v28, %v12927_v0  ;;  %v12965_v57 = vpop.f32.mrf.mxu3  ;;  %v12971_v23 = vpop.f32.mrf.mxu2  ;;  %s11390_s29 = smov 7  }
 0x158   :  { %18604 = vst [vmem:[#allocation58_spill] sm:$0xff] %v12965_v57  ;;  %v18609_v57 = vld [vmem:[#allocation16_spill] sm:$0xff] }
 0x159   :  { %10332 = vmatmul.msk.f32.vlgmr.msrb.gmra.mxu0 %vm18274_vm2, %v12758_v26  ;;  %18606 = vst [vmem:[#allocation59_spill] sm:$0xff] %v12971_v23  ;;  %vm18105_vm0 = vcmp.lt.s32.totalorder %v18609_v57, 31  ;;  %v12987_v23 = vpop.f32.mrf.mxu0 }
 0x15a   :  { %10347 = vmatpush.msk.msrb.mxu0 %vm18100_vm7, %v2300_v60  ;;  %vm18605_vm7 = vcmp.ge.s32.totalorder %v11933_v38, 1  ;;  %18610 = vst [vmem:[#allocation60_spill] sm:$0xff] %v12987_v23 }
 0x15b   :  { %10342 = vmatmul.msk.f32.vlgmr.msra.gmra.mxu1 %vm18274_vm2, %v12758_v26  ;;  %10344 = vmatmul.msk.f32.vlgmr.msra.gmra.mxu2 %vm18274_vm2, %v12758_v26  ;;  %vm2754_vm3 = vmand %vm18107_vm8, %vm18605_vm7  ;;  %vm18109_vm8 = vcmp.lt.s32.totalorder %v11799_v51, 31 }
 0x15d   :  { %10363 = vmatmul.msk.f32.vlgmr.msra.gmra.mxu3 %vm18274_vm2, %v12942_v3  ;;  %v12977_v61 = vpop.permute.xlu2 %2729 }
 0x15e   :  { %10378 = vmatpush.msk.msra.mxu3 %vm2763_vm15, %v2739_v7  ;;  %v2708_v56 = vpop.permute.xlu1 %2707  ;;  %v2706_v7 = vpop.permute.xlu0 %2705  ;;  %vm18608_vm15 = vcmp.ge.s32.totalorder %v11959_v30, 1 }
 0x15f   :  { %v2748_v60 = vsel %vm2735_vm11, %v2708_v56, %v12787_v63  ;;  %vm2752_vm7 = vmand %vm18104_vm13, %vm18608_vm15  ;;  %v2749_v10 = vsel %vm2735_vm11, %v2706_v7, %v2708_v56  ;;  %v2750_v53 = vsel %vm2735_vm11, %v12783_v25, %v2706_v7  ;;  %v2751_v63 = vsel %vm2735_vm11, %v12825_v5, %v12783_v25 }
 0x160   :  { %10360 = vmatpush.msk.msra.mxu2 %vm2754_vm3, %v2748_v60  ;;  %10358 = vmatpush.msk.msra.mxu1 %vm2753_vm1, %v2749_v10  ;;  %vm2767_vm15 = vmand %vm18105_vm0, %vm18611_vm10  ;;  %vm130_vm3 = vcmp.lt.s32.totalorder %v11780_v41, 31  ;;  %v13007_v10 = vpop.f32.mrf.mxu1  ;;  %vm129_vm1 = vcmp.lt.s32.totalorder %v11792_v49, 31  ;;  %vm128_vm13 = vcmp.lt.s32.totalorder %v11790_v48, 31  ;;  %vm18613_vm0 = vcmp.ge.s32.totalorder %v12016_v12, 1  ;;  %v13031_v60 = vpop.f32.mrf.mxu3 }
 0x161   :  { %10340 = vmatmul.msk.f32.vlgmr.msra.gmra.mxu0 %vm18274_vm2, %v12758_v26  ;;  %vm2757_vm9 = vmand %vm129_vm1, %vm18613_vm0  ;;  %18615 = vst [vmem:[#allocation61_spill] sm:$0xff] %v13031_v60  ;;  %vm18617_vm0 = vcmp.ge.s32.totalorder %v12084_v52, 1 }
 0x162   :  { %10356 = vmatpush.msk.msra.mxu0 %vm2752_vm7, %v2750_v53  ;;  %vm18612_vm7 = vcmp.ge.s32.totalorder %v12029_v40, 1 }
 0x163   :  { %10350 = vmatmul.msk.f32.vlgmr.msrb.gmra.mxu1 %vm18274_vm2, %v12758_v26  ;;  %10352 = vmatmul.msk.f32.vlgmr.msrb.gmra.mxu2 %vm18274_vm2, %v12758_v26  ;;  %vm2758_vm10 = vmand %vm130_vm3, %vm18612_vm7 }
 0x164   :  { %v13038_v23 = vpop.f32.mrf.mxu2  ;;  %vm2762_vm7 = vmand %vm18109_vm8, %vm18617_vm0  ;;  %vm18120_vm0 = vcmp.lt.s32.totalorder %v11617_v19, 96 }
 0x165   :  { %10371 = vmatmul.msk.f32.vlgmr.msrb.gmra.mxu3 %vm18274_vm2, %v12942_v3  ;;  %18616 = vst [vmem:[#allocation62_spill] sm:$0xff] %v13038_v23  ;;  %v13040_v37 = vpop.permute.xlu2 %3181 }
 0x166   :  { %10386 = vmatpush.msk.msrb.mxu3 %vm2767_vm15, %v2751_v63  ;;  %v2716_v25 = vpop.permute.xlu1 %2715  ;;  %v2714_v56 = vpop.permute.xlu0 %2713  ;;  %vm18614_vm15 = vcmp.ge.s32.totalorder %v11977_v15, 1 }
 0x167   :  { %v2744_v53 = vsel %vm2735_vm11, %v2716_v25, %v12695_v59  ;;  %vm2756_vm12 = vmand %vm128_vm13, %vm18614_vm15  ;;  %v2745_v7 = vsel %vm2735_vm11, %v2714_v56, %v2716_v25  ;;  %v2746_v63 = vsel %vm2735_vm11, %v12649_v8, %v2714_v56  ;;  %v13048_v59 = vpop.f32.mrf.mxu0  ;;  %v2740_v8 = vsel %vm2735_vm11, %v12921_v47, %v12931_v28 }
 0x168   :  { %10368 = vmatpush.msk.msrb.mxu2 %vm2758_vm10, %v2744_v53  ;;  %10366 = vmatpush.msk.msrb.mxu1 %vm2757_vm9, %v2745_v7  ;;  %vm18111_vm10 = vcmp.lt.s32.totalorder %v11839_v39, 31  ;;  %vm132_vm9 = vcmp.lt.s32.totalorder %v11837_v24, 31 }
 0x169   :  { %10348 = vmatmul.msk.f32.vlgmr.msrb.gmra.mxu0 %vm18274_vm2, %v12758_v26  ;;  %v13061_v26 = vpop.f32.mrf.mxu1 }
 0x16a   :  { %10364 = vmatpush.msk.msrb.mxu0 %vm2756_vm12, %v2746_v63  ;;  %18618 = vst [vmem:[#allocation63_spill] sm:$0xff] %v13061_v26  ;;  %vm18619_vm12 = vcmp.ge.s32.totalorder %v12091_v42, 1 }
 0x16b   :  { %10359 = vmatmul.msk.f32.vlgmr.msra.gmra.mxu1 %vm18274_vm2, %v12942_v3  ;;  %10361 = vmatmul.msk.f32.vlgmr.msra.gmra.mxu2 %vm18274_vm2, %v12942_v3  ;;  %vm2761_vm15 = vmand %vm18111_vm10, %vm18619_vm12  ;;  %vm18110_vm12 = vcmp.lt.s32.totalorder %v11845_v21, 31  ;;  %vm18629_vm10 = vcmp.lt.s32.totalorder %v18542_v50, 31 }
 0x16c   :  { %10376 = vmatpush.msk.msra.mxu2 %vm2762_vm7, %v2740_v8  ;;  %vm18620_vm7 = vcmp.ge.s32.totalorder %v12073_v55, 1 }
 0x16d   :  { %10379 = vmatmul.msk.f32.vlgmr.msra.gmra.mxu3 %vm18274_vm2, %v12942_v3  ;;  %vm2760_vm8 = vmand %vm132_vm9, %vm18620_vm7 }
 0x16e   :  { %v2722_v25 = vpop.permute.xlu1 %2721  ;;  %v13075_v56 = vpop.permute.xlu0 %3165 }
 0x16f   :  { %v2741_v28 = vsel %vm2735_vm11, %v2722_v25, %v12921_v47  ;;  %v2742_v53 = vsel %vm2735_vm11, %v12880_v29, %v2722_v25  ;;  %v3201_v7 = vsel %vm18120_vm0, %v12872_v9, %v13075_v56  ;;  %v13087_v47 = vpop.f32.mrf.mxu3  ;;  %v13089_v63 = vpop.f32.mrf.mxu0 }
 0x170   :  { %10374 = vmatpush.msk.msra.mxu1 %vm2761_vm15, %v2741_v28  ;;  %18621 = vst [vmem:[#allocation64_spill] sm:$0xff] %v13087_v47  ;;  %10395 = vmatpush.msk.msra.mxu3 %vm127_vm6, %v3201_v7  ;;  %v13095_v29 = vpop.f32.mrf.mxu2  ;;  %v3162_v8 = vpop.permute.xlu2 %3161  ;;  %vm2764_vm15 = vmand %vm18110_vm12, %vm152_vm5  ;;  %vm137_vm5 = vcmp.lt.s32.totalorder %v11944_v6, 31 }
 0x171   :  { %10357 = vmatmul.msk.f32.vlgmr.msra.gmra.mxu0 %vm18274_vm2, %v12942_v3  ;;  %18622 = vst [vmem:[#allocation65_spill] sm:$0xff] %v13089_v63  ;;  %v13104_v28 = vpop.f32.mrf.mxu1  ;;  %vm2765_vm7 = vmand %vm137_vm5, %vm153_vm4  ;;  %vm18631_vm4 = vcmp.lt.s32.totalorder %v18547_v43, 31 }
 0x172   :  { %18623 = vst [vmem:[#allocation66_spill] sm:$0xff] %v13095_v29  ;;  %10372 = vmatpush.msk.msra.mxu0 %vm2760_vm8, %v2742_v53  ;;  %v13118_v53 = vld [vmem:[%s18038_s1 + $0x38] sm:$0xff]  ;;  %vm138_vm8 = vcmp.lt.s32.totalorder %v11946_v34, 31 }
 0x173   :  { %10367 = vmatmul.msk.f32.vlgmr.msrb.gmra.mxu1 %vm18274_vm2, %v12942_v3  ;;  %10369 = vmatmul.msk.f32.vlgmr.msrb.gmra.mxu2 %vm18274_vm2, %v12942_v3  ;;  %18624 = vst [vmem:[#allocation67_spill] sm:$0xff] %v13104_v28  ;;  %v2738_v28 = vsel %vm2735_vm11, %v12927_v0, %v12977_v61 }
 0x175   :  { %10387 = vmatmul.msk.f32.vlgmr.msrb.gmra.mxu3 %vm18274_vm2, %v12942_v3 }
 0x176   :  { %v13102_v25 = vpop.permute.xlu1 %3173  ;;  %v3172_v7 = vpop.permute.xlu0 %3171 }
 0x177   :  { %v3197_v29 = vsel %vm18120_vm0, %v3172_v7, %v13102_v25  ;;  %v13124_v26 = vpop.f32.mrf.mxu3  ;;  %v13133_v63 = vpop.f32.mrf.mxu0 }
 0x178   :  { %10403 = vmatpush.msk.msrb.mxu3 %vm131_vm14, %v3197_v29  ;;  %18625 = vst [vmem:[#allocation68_spill] sm:$0xff] %v13133_v63  ;;  %v13138_v0 = vpop.f32.mrf.mxu2  ;;  %v3170_v47 = vpop.permute.xlu2 %3169 }
 0x179   :  { %10365 = vmatmul.msk.f32.vlgmr.msrb.gmra.mxu0 %vm18274_vm2, %v12942_v3  ;;  %18626 = vst [vmem:[#allocation69_spill] sm:$0xff] %v13138_v0 }
 0x17a   :  { %10380 = vmatpush.msk.msrb.mxu0 %vm2764_vm15, %v2738_v28  ;;  %vm18628_vm15 = vcmp.ge.s32.totalorder %v12108_v46, 1 }
 0x17b   :  { %10375 = vmatmul.msk.f32.vlgmr.msra.gmra.mxu1 %vm18274_vm2, %v12942_v3  ;;  %10377 = vmatmul.msk.f32.vlgmr.msra.gmra.mxu2 %vm18274_vm2, %v12942_v3  ;;  %vm2766_vm12 = vmand %vm138_vm8, %vm18628_vm15  ;;  %vm18644_vm15 = vcmp.lt.s32.totalorder %v11719_v54, 31 }
 0x17d   :  { %10396 = vmatmul.msk.f32.vlgmr.msra.gmra.mxu3 %vm18274_vm2, %v13118_v53 }
 0x17e   :  { %v13140_v29 = vpop.permute.xlu1 %3179  ;;  %v13150_v63 = vpop.f32.mrf.mxu1 }
 0x17f   :  { %v3193_v28 = vsel %vm18120_vm0, %v13140_v29, %v13040_v37  ;;  %18627 = vst [vmem:[#allocation70_spill] sm:$0xff] %v13150_v63  ;;  %v2732_v0 = vpop.permute.xlu0 %2731  ;;  %v3202_v63 = vsel %vm18120_vm0, %v3162_v8, %v12872_v9 }
 0x180   :  { %10411 = vmatpush.msk.msra.mxu3 %vm18629_vm10, %v3193_v28  ;;  %v2736_v23 = vsel %vm2735_vm11, %v2732_v0, %v12825_v5  ;;  %v2737_v60 = vsel %vm2735_vm11, %v12977_v61, %v2732_v0  ;;  %v3198_v5 = vsel %vm18120_vm0, %v3170_v47, %v3172_v7  ;;  %v13175_v28 = vpop.f32.mrf.mxu3  ;;  %vm18634_vm11 = vcmp.lt.s32.totalorder %v18544_v17, 31 }
 0x181   :  { %10373 = vmatmul.msk.f32.vlgmr.msra.gmra.mxu0 %vm18274_vm2, %v12942_v3  ;;  %10382 = vmatpush.msk.msrb.mxu1 %vm2765_vm7, %v2737_v60  ;;  %18630 = vst [vmem:[#allocation71_spill] sm:$0xff] %v13175_v28  ;;  %v13187_v60 = vpop.permute.xlu2 %3175  ;;  %vm18635_vm10 = vcmp.lt.s32.totalorder %v18603_v58, 31  ;;  %vm3627_vm7 = vcmp.lt.s32.totalorder %v11617_v19, 95 }
 0x182   :  { %10384 = vmatpush.msk.msrb.mxu2 %vm2766_vm12, %v2736_v23  ;;  %v13185_v23 = vpop.f32.mrf.mxu0  ;;  %vm18639_vm12 = vcmp.lt.s32.totalorder %v18609_v57, 31 }
 0x183   :  { %10383 = vmatmul.msk.f32.vlgmr.msrb.gmra.mxu1 %vm18274_vm2, %v12942_v3  ;;  %10385 = vmatmul.msk.f32.vlgmr.msrb.gmra.mxu2 %vm18274_vm2, %v12942_v3  ;;  %18633 = vst [vmem:[#allocation73_spill] sm:$0xff] %v13185_v23 }
 0x184   :  { %10393 = vmatpush.msk.msra.mxu2 %vm18631_vm4, %v3202_v63  ;;  %v13183_v9 = vpop.f32.mrf.mxu2  ;;  %vm3647_vm4 = vmand %vm127_vm6, %vm18644_vm15  ;;  %vm18647_vm6 = vcmp.lt.s32.totalorder %v11816_v27, 31  ;;  %vm18654_vm15 = vcmp.lt.s32.totalorder %v11959_v30, 31 }
 0x185   :  { %10404 = vmatmul.msk.f32.vlgmr.msrb.gmra.mxu3 %vm18274_vm2, %v13118_v53  ;;  %18632 = vst [vmem:[#allocation72_spill] sm:$0xff] %v13183_v9 }
 0x186   :  { %10401 = vmatpush.msk.msrb.mxu2 %vm130_vm3, %v3198_v5  ;;  %v3160_v61 = vpop.permute.xlu1 %3159  ;;  %v13191_v0 = vpop.f32.mrf.mxu1 }
 0x187   :  { %v3203_v7 = vsel %vm18120_vm0, %v3160_v61, %v3162_v8  ;;  %v3158_v28 = vpop.permute.xlu0 %3157 }
 0x188   :  { %10391 = vmatpush.msk.msra.mxu1 %vm18634_vm11, %v3203_v7  ;;  %v3204_v63 = vsel %vm18120_vm0, %v3158_v28, %v3160_v61  ;;  %v13209_v5 = vpop.f32.mrf.mxu3  ;;  %vm3651_vm11 = vmand %vm131_vm14, %vm18647_vm6  ;;  %vm18650_vm14 = vcmp.lt.s32.totalorder %v11839_v39, 31 }
 0x189   :  { %10381 = vmatmul.msk.f32.vlgmr.msrb.gmra.mxu0 %vm18274_vm2, %v12942_v3  ;;  %18637 = vst [vmem:[#allocation75_spill] sm:$0xff] %v13209_v5  ;;  %v13228_v5 = vpop.permute.xlu2 %3611 }
 0x18a   :  { %10389 = vmatpush.msk.msra.mxu0 %vm18635_vm10, %v3204_v63  ;;  %vm18651_vm10 = vcmp.lt.s32.totalorder %v11799_v51, 31 }
 0x18b   :  { %10392 = vmatmul.msk.f32.vlgmr.msra.gmra.mxu1 %vm18274_vm2, %v13118_v53  ;;  %10394 = vmatmul.msk.f32.vlgmr.msra.gmra.mxu2 %vm18274_vm2, %v13118_v53 }
 0x18d   :  { %10412 = vmatmul.msk.f32.vlgmr.msra.gmra.mxu3 %vm18274_vm2, %v13118_v53  ;;  %v13207_v8 = vpop.f32.mrf.mxu2 }
 0x18e   :  { %18636 = vst [vmem:[#allocation74_spill] sm:$0xff] %v13207_v8  ;;  %v3168_v61 = vpop.permute.xlu1 %3167  ;;  %v13216_v63 = vpop.f32.mrf.mxu0 }
 0x18f   :  { %v3199_v3 = vsel %vm18120_vm0, %v3168_v61, %v3170_v47  ;;  %v3200_v7 = vsel %vm18120_vm0, %v13075_v56, %v3168_v61  ;;  %v13218_v9 = vpop.f32.mrf.mxu1  ;;  %v3188_v23 = vpop.permute.xlu0 %3187  ;;  %v3196_v47 = vsel %vm18120_vm0, %v13102_v25, %v13187_v60  ;;  %v10454_v61 = vld [vmem:[%s18039_s2 + $0x8] sm:$0xff]  ;;  %v11382_v25 = vmov 0  }
 0x190   :  { %18638 = vst [vmem:[#allocation76_spill] sm:$0xff] %v13218_v9  ;;  %10397 = vmatpush.msk.msrb.mxu0 %vm128_vm13, %v3200_v7  ;;  %10399 = vmatpush.msk.msrb.mxu1 %vm129_vm1, %v3199_v3  ;;  %v3205_v56 = vsel %vm18120_vm0, %v3188_v23, %v3158_v28  ;;  %v10455_v28 = vld [vmem:[%s18039_s2 + $0x10] sm:$0xff] }
 0x191   :  { %10390 = vmatmul.msk.f32.vlgmr.msra.gmra.mxu0 %vm18274_vm2, %v13118_v53  ;;  %10419 = vmatpush.msk.msrb.mxu3 %vm18639_vm12, %v3205_v56  ;;  %vm18653_vm12 = vcmp.lt.s32.totalorder %v11845_v21, 31 }
 0x192   :  { %10405 = vmatpush.msk.msra.mxu0 %vm132_vm9, %v3196_v47  ;;  %11251 = vset.pattern.permute.xlu0 %v11382_v25 }
 0x193   :  { %10400 = vmatmul.msk.f32.vlgmr.msrb.gmra.mxu1 %vm18274_vm2, %v13118_v53  ;;  %10402 = vmatmul.msk.f32.vlgmr.msrb.gmra.mxu2 %vm18274_vm2, %v13118_v53 }
 0x194   :  { %4091 = vperm.xlu0 %11251, %v10454_v61   ;;  %11252 = vset.pattern.permute.xlu1 %v11382_v25 }
 0x195   :  { %10420 = vmatmul.msk.f32.vlgmr.msrb.gmra.mxu3 %vm18274_vm2, %v13118_v53  ;;  %4114 = vperm.xlu1 %11252, %v10455_v28  }
 0x196   :  { %v13250_v3 = vpop.f32.mrf.mxu2  ;;  %v13252_v7 = vpop.f32.mrf.mxu3  ;;  %11250 = vset.pattern.permute.xlu2 %v11382_v25  ;;  %v13270_v25 = vld [vmem:[%s18038_s1 + $0x40] sm:$0xff] }
 0x197   :  { %18640 = vst [vmem:[#allocation77_spill] sm:$0xff] %v13250_v3  ;;  %v3604_v47 = vpop.permute.xlu1 %3603  ;;  %v13255_v56 = vpop.f32.mrf.mxu0 }
 0x198   :  { %18641 = vst [vmem:[#allocation78_spill] sm:$0xff] %v13252_v7  ;;  %v13257_v9 = vpop.f32.mrf.mxu1  ;;  %v13263_v61 = vpop.permute.xlu0 %3601 }
 0x199   :  { %18642 = vst [vmem:[#allocation79_spill] sm:$0xff] %v13255_v56  ;;  %10398 = vmatmul.msk.f32.vlgmr.msrb.gmra.mxu0 %vm18274_vm2, %v13118_v53  ;;  %v3639_v28 = vsel %vm3627_vm7, %v13263_v61, %v3604_v47 }
 0x19a   :  { %18643 = vst [vmem:[#allocation80_spill] sm:$0xff] %v13257_v9  ;;  %v13275_v9 = vpop.permute.xlu2 %3617  ;;  %10428 = vmatpush.msk.msra.mxu3 %vm3647_vm4, %v3639_v28  ;;  %vm18655_vm4 = vcmp.lt.s32.totalorder %v18603_v58, 31 }
 0x19b   :  { %vm3644_vm6 = vmand %vm18655_vm4, %vm18654_vm15  ;;  %vm18660_vm15 = vcmp.lt.s32.totalorder %v18544_v17, 31 }
 0x19d   :  { %10429 = vmatmul.msk.f32.vlgmr.msra.gmra.mxu3 %vm18274_vm2, %v13270_v25 }
 0x19e   :  { %v13279_v54 = vpop.f32.mrf.mxu2  ;;  %v13281_v31 = vpop.f32.mrf.mxu3 }
 0x19f   :  { %18645 = vst [vmem:[#allocation81_spill] sm:$0xff] %v13279_v54  ;;  %v13287_v7 = vpop.permute.xlu1 %3609  ;;  %v13293_v28 = vpop.f32.mrf.mxu0 }
 0x1a0   :  { %18646 = vst [vmem:[#allocation82_spill] sm:$0xff] %v13281_v31  ;;  %v3635_v3 = vsel %vm3627_vm7, %v13287_v7, %v13228_v5  ;;  %v13295_v56 = vpop.f32.mrf.mxu1  ;;  %v3178_v8 = vpop.permute.xlu0 %3177 }
 0x1a1   :  { %18648 = vst [vmem:[#allocation83_spill] sm:$0xff] %v13293_v28  ;;  %10436 = vmatpush.msk.msrb.mxu3 %vm3651_vm11, %v3635_v3  ;;  %10406 = vmatmul.msk.f32.vlgmr.msra.gmra.mxu0 %vm18274_vm2, %v13118_v53  ;;  %v3194_v27 = vsel %vm18120_vm0, %v3178_v8, %v13140_v29  ;;  %v3195_v33 = vsel %vm18120_vm0, %v13187_v60, %v3178_v8  ;;  %v4049_v29 = vld [vmem:[%s18039_s2] sm:$0xff]  ;;  %vm18656_vm11 = vcmp.lt.s32.totalorder %v11883_v35, 31 }
 0x1a2   :  { %18649 = vst [vmem:[#allocation84_spill] sm:$0xff] %v13295_v56  ;;  %10407 = vmatpush.msk.msra.mxu1 %vm18650_vm14, %v3195_v33  ;;  %10409 = vmatpush.msk.msra.mxu2 %vm18651_vm10, %v3194_v27  ;;  %v3598_v3 = vpop.permute.xlu2 %3597  ;;  %vm18657_vm14 = vcmp.lt.s32.totalorder %v18542_v50, 31 }
 0x1a3   :  { %10408 = vmatmul.msk.f32.vlgmr.msra.gmra.mxu1 %vm18274_vm2, %v13118_v53  ;;  %10410 = vmatmul.msk.f32.vlgmr.msra.gmra.mxu2 %vm18274_vm2, %v13118_v53  ;;  %vm3655_vm10 = vmand %vm18657_vm14, %vm18656_vm11  ;;  %vm18661_vm11 = vcmp.lt.s32.totalorder %v11970_v36, 31  ;;  %vm18663_vm14 = vcmp.lt.s32.totalorder %v11933_v38, 31 }
 0x1a4   :  { %4052 = vperm.xlu2 %11250, %v4049_v29  }
 0x1a5   :  { %10437 = vmatmul.msk.f32.vlgmr.msrb.gmra.mxu3 %vm18274_vm2, %v13270_v25 }
 0x1a6   :  { %v13318_v60 = vpop.f32.mrf.mxu2 }
 0x1a7   :  { %18652 = vst [vmem:[#allocation85_spill] sm:$0xff] %v13318_v60  ;;  %v13320_v33 = vpop.f32.mrf.mxu3  ;;  %v3186_v27 = vpop.permute.xlu1 %3185 }
 0x1a8   :  { %v3190_v8 = vsel %vm18120_vm0, %v3186_v27, %v3188_v23  ;;  %v13324_v56 = vpop.f32.mrf.mxu0  ;;  %v13326_v54 = vpop.f32.mrf.mxu1 }
 0x1a9   :  { %v3184_v28 = vpop.permute.xlu0 %3183  ;;  %10417 = vmatpush.msk.msrb.mxu2 %vm138_vm8, %v3190_v8 }
 0x1aa   :  { %v3191_v31 = vsel %vm18120_vm0, %v3184_v28, %v3186_v27  ;;  %v3192_v60 = vsel %vm18120_vm0, %v13040_v37, %v3184_v28  ;;  %v3606_v37 = vpop.permute.xlu2 %3605 }
 0x1ab   :  { %10413 = vmatpush.msk.msrb.mxu0 %vm18653_vm12, %v3192_v60  ;;  %10415 = vmatpush.msk.msrb.mxu1 %vm137_vm5, %v3191_v31  ;;  %vm18658_vm12 = vcmp.lt.s32.totalorder %v11977_v15, 31  ;;  %v3638_v8 = vsel %vm3627_vm7, %v3604_v47, %v3606_v37 }
 0x1ac   :  { %10414 = vmatmul.msk.f32.vlgmr.msrb.gmra.mxu0 %vm18274_vm2, %v13118_v53  ;;  %10416 = vmatmul.msk.f32.vlgmr.msrb.gmra.mxu1 %vm18274_vm2, %v13118_v53  ;;  %vm3648_vm0 = vmand %vm128_vm13, %vm18658_vm12  ;;  %vm18659_vm13 = vcmp.lt.s32.totalorder %v11940_v18, 31 }
 0x1ad   :  { %10418 = vmatmul.msk.f32.vlgmr.msrb.gmra.mxu2 %vm18274_vm2, %v13118_v53  ;;  %vm3645_vm4 = vmand %vm18660_vm15, %vm18659_vm13  ;;  %vm18666_vm13 = vcmp.lt.s32.totalorder %v12016_v12, 31 }
 0x1ae   :  { %v13345_v23 = vpop.f32.mrf.mxu2  ;;  %vm3649_vm15 = vmand %vm129_vm1, %vm18666_vm13  ;;  %vm18670_vm1 = vcmp.lt.s32.totalorder %v12084_v52, 31  ;;  %vm18675_vm13 = vcmp.lt.s32.totalorder %v12140_v16, 31 }
 0x1af   :  { %v13347_v29 = vpop.f32.mrf.mxu3 }
 0x1b0   :  { %v3596_v31 = vpop.permute.xlu1 %3595  ;;  %v13357_v28 = vpop.f32.mrf.mxu0 }
 0x1b1   :  { %v3642_v53 = vsel %vm3627_vm7, %v3596_v31, %v3598_v3  ;;  %v13365_v60 = vpop.f32.mrf.mxu1  ;;  %v13367_v27 = vpop.permute.xlu0 %3619 }
 0x1b2   :  { %v3631_v35 = vsel %vm3627_vm7, %v13275_v9, %v13367_v27  ;;  %10422 = vmatpush.msk.msra.mxu0 %vm3644_vm6, %v3642_v53  ;;  %vm18662_vm6 = vcmp.lt.s32.totalorder %v18609_v57, 31 }
 0x1b3   :  { %10444 = vmatpush.msk.msra.mxu3 %vm3655_vm10, %v3631_v35  ;;  %vm18664_vm10 = vcmp.lt.s32.totalorder %v18547_v43, 31 }
 0x1b4   :  { %10430 = vmatpush.msk.msrb.mxu0 %vm3648_vm0, %v3638_v8  ;;  %10445 = vmatmul.msk.f32.vlgmr.msra.gmra.mxu3 %vm18274_vm2, %v13270_v25  ;;  %vm3659_vm0 = vmand %vm18662_vm6, %vm18661_vm11  ;;  %vm18668_vm6 = vcmp.lt.s32.totalorder %v12029_v40, 31 }
 0x1b5   :  { %10423 = vmatmul.msk.f32.vlgmr.msra.gmra.mxu0 %vm18274_vm2, %v13270_v25  ;;  %vm3646_vm12 = vmand %vm18664_vm10, %vm18663_vm14  ;;  %vm18672_vm14 = vcmp.lt.s32.totalorder %v12091_v42, 31  ;;  %vm18673_vm10 = vcmp.lt.s32.totalorder %v11839_v39, 31 }
 0x1b6   :  { %v13379_v15 = vpop.f32.mrf.mxu2 }
 0x1b7   :  { %v13381_v30 = vpop.f32.mrf.mxu3 }
 0x1b8   :  { %v3626_v35 = vpop.permute.xlu1 %3625  ;;  %v13391_v47 = vpop.f32.mrf.mxu0 }
 0x1b9   :  { %v3643_v53 = vsel %vm3627_vm7, %v3626_v35, %v3596_v31  ;;  %v13399_v8 = vpop.f32.mrf.mxu1  ;;  %v3600_v18 = vpop.permute.xlu0 %3599 }
 0x1ba   :  { %v3640_v36 = vsel %vm3627_vm7, %v3600_v18, %v13263_v61  ;;  %v3641_v57 = vsel %vm3627_vm7, %v3598_v3, %v3600_v18  ;;  %10452 = vmatpush.msk.msrb.mxu3 %vm3659_vm0, %v3643_v53  ;;  %v3616_v18 = vpop.permute.xlu2 %3615  ;;  %vm3650_vm0 = vmand %vm130_vm3, %vm18668_vm6 }
 0x1bb   :  { %10424 = vmatpush.msk.msra.mxu1 %vm3645_vm4, %v3641_v57  ;;  %10426 = vmatpush.msk.msra.mxu2 %vm3646_vm12, %v3640_v36  ;;  %vm18667_vm4 = vcmp.lt.s32.totalorder %v12073_v55, 31  ;;  %vm3653_vm12 = vmand %vm18673_vm10, %vm18672_vm14 }
 0x1bc   :  { %10425 = vmatmul.msk.f32.vlgmr.msra.gmra.mxu1 %vm18274_vm2, %v13270_v25  ;;  %10427 = vmatmul.msk.f32.vlgmr.msra.gmra.mxu2 %vm18274_vm2, %v13270_v25  ;;  %vm3652_vm11 = vmand %vm132_vm9, %vm18667_vm4  ;;  %vm18671_vm9 = vcmp.lt.s32.totalorder %v11799_v51, 31 }
 0x1bd   :  { %10431 = vmatmul.msk.f32.vlgmr.msrb.gmra.mxu0 %vm18274_vm2, %v13270_v25  ;;  %10453 = vmatmul.msk.f32.vlgmr.msrb.gmra.mxu3 %vm18274_vm2, %v13270_v25  ;;  %vm3654_vm3 = vmand %vm18671_vm9, %vm18670_vm1 }
 0x1be   :  { %v13414_v31 = vpop.f32.mrf.mxu2 }
 0x1bf   :  { %18665 = vst [vmem:[#allocation86_spill] sm:$0xff] %v13414_v31 }
 0x1c0   :  { %v13420_v36 = vpop.f32.mrf.mxu3  ;;  %v3614_v57 = vpop.permute.xlu1 %3613 }
 0x1c1   :  { %v13426_v61 = vpop.f32.mrf.mxu0  ;;  %v3634_v3 = vsel %vm3627_vm7, %v13228_v5, %v3614_v57  ;;  %v13435_v53 = vpop.f32.mrf.mxu1  ;;  %v3633_v40 = vsel %vm3627_vm7, %v3614_v57, %v3616_v18 }
 0x1c2   :  { %18669 = vst [vmem:[#allocation87_spill] sm:$0xff] %v13435_v53  ;;  %v3608_v12 = vpop.permute.xlu0 %3607  ;;  %10438 = vmatpush.msk.msra.mxu0 %vm3652_vm11, %v3634_v3  ;;  %vm18677_vm11 = vcmp.lt.s32.totalorder %v12108_v46, 31 }
 0x1c3   :  { %v3636_v55 = vsel %vm3627_vm7, %v3608_v12, %v13287_v7  ;;  %v3637_v38 = vsel %vm3627_vm7, %v3606_v37, %v3608_v12  ;;  %v3632_v12 = vsel %vm3627_vm7, %v3616_v18, %v13275_v9  ;;  %vm3658_vm6 = vmand %vm138_vm8, %vm18677_vm11 }
 0x1c4   :  { %10432 = vmatpush.msk.msrb.mxu1 %vm3649_vm15, %v3637_v38  ;;  %10434 = vmatpush.msk.msrb.mxu2 %vm3650_vm0, %v3636_v55  ;;  %vm18676_vm15 = vcmp.lt.s32.totalorder %v11845_v21, 31  ;;  %vm18679_vm0 = vcmp.lt.s32.totalorder %v12149_v62, 31 }
 0x1c5   :  { %10433 = vmatmul.msk.f32.vlgmr.msrb.gmra.mxu1 %vm18274_vm2, %v13270_v25  ;;  %10435 = vmatmul.msk.f32.vlgmr.msrb.gmra.mxu2 %vm18274_vm2, %v13270_v25  ;;  %vm3656_vm4 = vmand %vm18676_vm15, %vm18675_vm13 }
 0x1c6   :  { %10439 = vmatmul.msk.f32.vlgmr.msra.gmra.mxu0 %vm18274_vm2, %v13270_v25  ;;  %10442 = vmatpush.msk.msra.mxu2 %vm3654_vm3, %v3632_v12  ;;  %v13461_v38 = vpop.f32.mrf.mxu2  ;;  %vm3657_vm1 = vmand %vm137_vm5, %vm18679_vm0 }
 0x1c7   :  { %18674 = vst [vmem:[#allocation88_spill] sm:$0xff] %v13461_v38  ;;  %10440 = vmatpush.msk.msra.mxu1 %vm3653_vm12, %v3633_v40 }
 0x1c8   :  { %v13467_v55 = vpop.f32.mrf.mxu3  ;;  %v3624_v5 = vpop.permute.xlu1 %3623 }
 0x1c9   :  { %v13473_v9 = vpop.f32.mrf.mxu0  ;;  %v13479_v40 = vpop.f32.mrf.mxu1  ;;  %v3628_v37 = vsel %vm3627_vm7, %v3624_v5, %v3626_v35 }
 0x1ca   :  { %18678 = vst [vmem:[#allocation89_spill] sm:$0xff] %v13473_v9  ;;  %v3622_v7 = vpop.permute.xlu0 %3621  ;;  %10450 = vmatpush.msk.msrb.mxu2 %vm3658_vm6, %v3628_v37 }
 0x1cb   :  { %v3630_v18 = vsel %vm3627_vm7, %v13367_v27, %v3622_v7  ;;  %v3629_v57 = vsel %vm3627_vm7, %v3622_v7, %v3624_v5 }
 0x1cc   :  { %10446 = vmatpush.msk.msrb.mxu0 %vm3656_vm4, %v3630_v18  ;;  %10448 = vmatpush.msk.msrb.mxu1 %vm3657_vm1, %v3629_v57 }
 0x1cd   :  { %10441 = vmatmul.msk.f32.vlgmr.msra.gmra.mxu1 %vm18274_vm2, %v13270_v25  ;;  %10443 = vmatmul.msk.f32.vlgmr.msra.gmra.mxu2 %vm18274_vm2, %v13270_v25 }
 0x1ce   :  { %10447 = vmatmul.msk.f32.vlgmr.msrb.gmra.mxu0 %vm18274_vm2, %v13270_v25  ;;  %v13494_v35 = vpop.f32.mrf.mxu2 }
 0x1d0   :  { %v13496_v3 = vpop.f32.mrf.mxu3 }
 0x1d1   :  { %18680 = vst [vmem:[#allocation90_spill] sm:$0xff] %v13496_v3  ;;  %v2384_v27 = vpop.f32.mrf.mxu0  ;;  %v13498_v12 = vpop.f32.mrf.mxu1 }
 0x1d5   :  { %10449 = vmatmul.msk.f32.vlgmr.msrb.gmra.mxu1 %vm18274_vm2, %v13270_v25  ;;  %10451 = vmatmul.msk.f32.vlgmr.msrb.gmra.mxu2 %vm18274_vm2, %v13270_v25 }
 0x1d6   :  { %v13504_v5 = vpop.f32.mrf.mxu2 }
 0x1d8   :  { %v13506_v7 = vpop.f32.mrf.mxu3 }
 0x1d9   :  { %18681 = vst [vmem:[#allocation91_spill] sm:$0xff] %v13506_v7  ;;  %v13508_v37 = vpop.f32.mrf.mxu0  ;;  %v13510_v18 = vpop.f32.mrf.mxu1 }
 0x1da   :  { %18682 = vst [vmem:[#allocation92_spill] sm:$0xff] %v13510_v18  ;;  %v18704_v18 = vld [vmem:[#allocation51_spill] sm:$0xff] }
 0x1de   :  { %v13512_v57 = vpop.f32.mrf.mxu2 }
 0x1df   :  { %18683 = vst [vmem:[#allocation93_spill] sm:$0xff] %v13512_v57 }
 0x1e0   :  { %v13516_v62 = vpop.f32.mrf.mxu3 }
 0x1e1   :  { %v13514_v46 = vpop.f32.mrf.mxu0  ;;  %v13518_v16 = vpop.f32.mrf.mxu1 }
 0x1e2   :  { %18684 = vst [vmem:[#allocation94_spill] sm:$0xff] %v13518_v16 }
 0x1e6   :  { %v13522_v42 = vpop.f32.mrf.mxu2 }
 0x1e7   :  { %18686 = vst [vmem:[#allocation96_spill] sm:$0xff] %v13522_v42 }
 0x1e8   :  { %v13524_v25 = vpop.f32.mrf.mxu3 }
 0x1e9   :  { %v13520_v52 = vpop.f32.mrf.mxu0  ;;  %18687 = vst [vmem:[#allocation97_spill] sm:$0xff] %v13524_v25  ;;  %v13526_v6 = vpop.f32.mrf.mxu1  ;;  %v18703_v25 = vld [vmem:[#allocation6_spill] sm:$0xff] }
 0x1ea   :  { %18685 = vst [vmem:[#allocation95_spill] sm:$0xff] %v13520_v52 }
 0x1ee   :  { %v13528_v34 = vpop.f32.mrf.mxu2 }
 0x1f0   :  { %v13530_v24 = vpop.f32.mrf.mxu3 }
 0x1f1   :  { %v2838_v21 = vpop.f32.mrf.mxu0  ;;  %18688 = vst [vmem:[#allocation98_spill] sm:$0xff] %v13530_v24  ;;  %v13532_v48 = vpop.f32.mrf.mxu1  ;;  %v18702_v24 = vld [vmem:[#allocation48_spill] sm:$0xff] }
 0x1f6   :  { %v13536_v50 = vpop.f32.mrf.mxu2 }
 0x1f7   :  { %18689 = vst [vmem:[#allocation99_spill] sm:$0xff] %v13536_v50  ;;  %v790_v50 = vadd.f32 %v18702_v24, %v12454_v44  ;;  %v18711_v24 = vld [vmem:[#allocation42_spill] sm:$0xff] }
 0x1f8   :  { %v13538_v51 = vpop.f32.mrf.mxu3  ;;  %v830_v44 = vadd.f32 %v12832_v20, %v18711_v24  ;;  %v18719_v24 = vld [vmem:[#allocation50_spill] sm:$0xff] }
 0x1f9   :  { %v13534_v58 = vpop.f32.mrf.mxu0  ;;  %18690 = vst [vmem:[#allocation100_spill] sm:$0xff] %v13538_v51  ;;  %v13542_v41 = vpop.f32.mrf.mxu1 }
 0x1fa   :  { %18691 = vst [vmem:[#allocation101_spill] sm:$0xff] %v13542_v41 }
 0x1fe   :  { %v13544_v49 = vpop.f32.mrf.mxu2 }
 0x1ff   :  { %18692 = vst [vmem:[#allocation102_spill] sm:$0xff] %v13544_v49 }
 0x200   :  { %v13548_v17 = vpop.f32.mrf.mxu3 }
 0x201   :  { %v13540_v39 = vpop.f32.mrf.mxu0  ;;  %v13550_v19 = vpop.f32.mrf.mxu1 }
 0x202   :  { %18694 = vst [vmem:[#allocation104_spill] sm:$0xff] %v13550_v19  ;;  %v730_v19 = vadd.f32 %v12804_v1, %v12542_v11  ;;  %v870_v11 = vadd.f32 %v18704_v18, %v18703_v25  ;;  %v18705_v1 = vld [vmem:[#allocation5_spill] sm:$0xff] }
 0x203   :  { %v18712_v18 = vld [vmem:[#allocation41_spill] sm:$0xff] }
 0x206   :  { %v13552_v16 = vpop.f32.mrf.mxu2 }
 0x207   :  { %18695 = vst [vmem:[#allocation105_spill] sm:$0xff] %v13552_v16  ;;  %v1470_v16 = vadd.f32 %v13048_v59, %v730_v19  ;;  %v18707_v59 = vld [vmem:[#allocation7_spill] sm:$0xff] }
 0x208   :  { %v13554_v38 = vpop.f32.mrf.mxu3 }
 0x209   :  { %v13546_v43 = vpop.f32.mrf.mxu0  ;;  %18696 = vst [vmem:[#allocation106_spill] sm:$0xff] %v13554_v38  ;;  %v13556_v53 = vpop.f32.mrf.mxu1  ;;  %v1908_v31 = vadd.f32 %v13216_v63, %v1470_v16  ;;  %v18708_v16 = vld [vmem:[#allocation44_spill] sm:$0xff] }
 0x20a   :  { %18693 = vst [vmem:[#allocation103_spill] sm:$0xff] %v13546_v43  ;;  %v1030_v63 = vadd.f32 %v12860_v4, %v18708_v16  ;;  %v18714_v4 = vld [vmem:[#allocation46_spill] sm:$0xff]  ;;  %v18718_v16 = vld [vmem:[#allocation60_spill] sm:$0xff] }
 0x20e   :  { %v13560_v52 = vpop.f32.mrf.mxu2 }
 0x210   :  { %v13562_v7 = vpop.f32.mrf.mxu3 }
 0x211   :  { %v3276_v42 = vpop.f32.mrf.mxu0  ;;  %18697 = vst [vmem:[#allocation107_spill] sm:$0xff] %v13562_v7  ;;  %v13564_v49 = vpop.f32.mrf.mxu1  ;;  %v2249_v7 = vadd.f32 %v13357_v28, %v1908_v31  ;;  %v1473_v28 = vadd.f32 %v12919_v2, %v790_v50 }
 0x213   :  { %v2687_v19 = vadd.f32 %v2384_v27, %v2249_v7  ;;  %v1911_v2 = vadd.f32 %v13124_v26, %v1473_v28  ;;  %v18728_v26 = vld [vmem:[#allocation82_spill] sm:$0xff] }
 0x215   :  { %v3141_v7 = vadd.f32 %v2838_v21, %v2687_v19  ;;  %v2252_v28 = vadd.f32 %v18728_v26, %v1911_v2  ;;  %v13632_v2 = vpop.permute.xlu2 %4052  ;;  %v18735_v26 = vld [vmem:[#allocation66_spill] sm:$0xff] }
 0x216   :  { %v13570_v57 = vpop.f32.mrf.mxu2 }
 0x217   :  { %18698 = vst [vmem:[#allocation108_spill] sm:$0xff] %v13570_v57  ;;  %v18706_v57 = vld [vmem:[#allocation54_spill] sm:$0xff] }
 0x218   :  { %v13576_v38 = vpop.f32.mrf.mxu3  ;;  %v750_v3 = vadd.f32 %v18706_v57, %v18705_v1  ;;  %v770_v57 = vadd.f32 %v12792_v32, %v18712_v18  ;;  %v910_v1 = vadd.f32 %v12886_v13, %v18714_v4  ;;  %v18724_v18 = vld [vmem:[#allocation58_spill] sm:$0xff]  ;;  %v18726_v4 = vld [vmem:[#allocation59_spill] sm:$0xff] }
 0x219   :  { %v13558_v51 = vpop.f32.mrf.mxu0  ;;  %18700 = vst [vmem:[#allocation110_spill] sm:$0xff] %v13576_v38  ;;  %v18709_v38 = vld [vmem:[#allocation43_spill] sm:$0xff]  ;;  %v1477_v13 = vadd.f32 %v18724_v18, %v870_v11  ;;  %v18733_v11 = vld [vmem:[#allocation65_spill] sm:$0xff] }
 0x21a   :  { %v1471_v27 = vadd.f32 %v13007_v10, %v750_v3  ;;  %v3579_v10 = vadd.f32 %v3276_v42, %v3141_v7  ;;  %v18722_v3 = vld [vmem:[#allocation49_spill] sm:$0xff]  ;;  %v18732_v7 = vld [vmem:[#allocation64_spill] sm:$0xff]  ;;  %v18734_v18 = vld [vmem:[#allocation63_spill] sm:$0xff] }
 0x21c   :  { %v1909_v21 = vadd.f32 %v13191_v0, %v1471_v27 }
 0x21e   :  { %v2250_v42 = vadd.f32 %v13326_v54, %v1909_v21  ;;  %v18737_v21 = vld [vmem:[#allocation67_spill] sm:$0xff] }
 0x220   :  { %v13573_v9 = vpop.f32.mrf.mxu1  ;;  %v3790_v0 = vpop.f32.mrf.mxu3 }
 0x221   :  { %v13566_v43 = vpop.f32.mrf.mxu0  ;;  %18699 = vst [vmem:[#allocation109_spill] sm:$0xff] %v13573_v9  ;;  %v950_v9 = vadd.f32 %v12797_v14, %v18707_v59  ;;  %v18713_v14 = vld [vmem:[#allocation47_spill] sm:$0xff]  ;;  %v18717_v59 = vld [vmem:[#allocation52_spill] sm:$0xff] }
 0x222   :  { %v890_v25 = vadd.f32 %v12923_v45, %v18713_v14  ;;  %v970_v20 = vadd.f32 %v18718_v16, %v18717_v59  ;;  %v18723_v45 = vld [vmem:[#allocation56_spill] sm:$0xff]  ;;  %v18725_v14 = vld [vmem:[#allocation53_spill] sm:$0xff] }
 0x223   :  { %v930_v19 = vadd.f32 %v18723_v45, %v18722_v3  ;;  %v18730_v16 = vld [vmem:[#allocation61_spill] sm:$0xff]  ;;  %v1485_v3 = vadd.f32 %v18732_v7, %v1030_v63 }
 0x226   :  { %v13594_v31 = vpop.f32.mrf.mxu2 }
 0x227   :  { %18710 = vst [vmem:[#allocation48_spill] sm:$0xff] %v13594_v31  ;;  %v18720_v31 = vld [vmem:[#allocation57_spill] sm:$0xff] }
 0x228   :  { %v13612_v32 = vadd.f32 %v18720_v31, %v18719_v24  ;;  %v1481_v31 = vadd.f32 %v18730_v16, %v950_v9  ;;  %v18731_v24 = vld [vmem:[#allocation62_spill] sm:$0xff]  ;;  %v18739_v16 = vld [vmem:[#allocation73_spill] sm:$0xff] }
 0x229   :  { %v13578_v41 = vpop.f32.mrf.mxu0 }
 0x22a   :  { %18701 = vst [vmem:[#allocation111_spill] sm:$0xff] %v13578_v41  ;;  %v810_v41 = vadd.f32 %v12866_v22, %v18709_v38  ;;  %v18715_v22 = vld [vmem:[#allocation45_spill] sm:$0xff]  ;;  %v18716_v38 = vld [vmem:[#allocation55_spill] sm:$0xff] }
 0x22b   :  { %v850_v50 = vadd.f32 %v18716_v38, %v18715_v22  ;;  %18721 = vst [vmem:[#allocation6_spill] sm:$0xff] %v13612_v32  ;;  %v13620_v22 = vadd.f32 %v18726_v4, %v18725_v14  ;;  %v13623_v38 = vpop.f32.mrf.mxu1  ;;  %v1472_v32 = vadd.f32 %v18731_v24, %v770_v57  ;;  %v1475_v14 = vadd.f32 %v18734_v18, %v830_v44  ;;  %v18740_v24 = vld [vmem:[#allocation74_spill] sm:$0xff] }
 0x22c   :  { %18729 = vst [vmem:[#allocation5_spill] sm:$0xff] %v13623_v38  ;;  %v1474_v45 = vadd.f32 %v18733_v11, %v810_v41  ;;  %v2690_v4 = vadd.f32 %v13420_v36, %v2252_v28  ;;  %v2688_v57 = vadd.f32 %v13479_v40, %v2250_v42  ;;  %v1482_v41 = vadd.f32 %v18739_v16, %v970_v20  ;;  %v18741_v28 = vld [vmem:[#allocation79_spill] sm:$0xff]  ;;  %v18747_v16 = vld [vmem:[#allocation78_spill] sm:$0xff] }
 0x22d   :  { %18727 = vst [vmem:[#allocation51_spill] sm:$0xff] %v13620_v22  ;;  %v1476_v38 = vadd.f32 %v18735_v26, %v850_v50  ;;  %v18736_v22 = vld [vmem:[#allocation68_spill] sm:$0xff]  ;;  %v1910_v36 = vadd.f32 %v18740_v24, %v1472_v32  ;;  %v18743_v40 = vld [vmem:[#allocation75_spill] sm:$0xff] }
 0x22e   :  { %v1478_v9 = vadd.f32 %v18736_v22, %v890_v25  ;;  %v3144_v44 = vadd.f32 %v13516_v62, %v2690_v4  ;;  %v1912_v7 = vadd.f32 %v18741_v28, %v1474_v45  ;;  %v3142_v50 = vadd.f32 %v13526_v6, %v2688_v57  ;;  %v18742_v25 = vld [vmem:[#allocation71_spill] sm:$0xff]  ;;  %v18745_v4 = vld [vmem:[#allocation77_spill] sm:$0xff] }
 0x22f   :  { %v1915_v22 = vadd.f32 %v18742_v25, %v1477_v13  ;;  %v1919_v42 = vadd.f32 %v18743_v40, %v1481_v31  ;;  %v2251_v62 = vadd.f32 %v13345_v23, %v1910_v36  ;;  %v1914_v13 = vadd.f32 %v18745_v4, %v1476_v38  ;;  %v18746_v26 = vld [vmem:[#allocation83_spill] sm:$0xff]  ;;  %v18748_v38 = vld [vmem:[#allocation80_spill] sm:$0xff] }
 0x230   :  { %v13651_v20 = vpop.f32.mrf.mxu2  ;;  %v2253_v32 = vadd.f32 %v13391_v47, %v1912_v7  ;;  %v3580_v45 = vadd.f32 %v13556_v53, %v3142_v50  ;;  %v1916_v31 = vadd.f32 %v18746_v26, %v1478_v9  ;;  %v18749_v9 = vld [vmem:[#allocation81_spill] sm:$0xff]  ;;  %v18753_v4 = vld [vmem:[#allocation99_spill] sm:$0xff] }
 0x231   :  { %v2255_v25 = vadd.f32 %v13379_v15, %v1914_v13 }
 0x232   :  { %v3730_v59 = vpop.f32.mrf.mxu0  ;;  %v2691_v23 = vadd.f32 %v13508_v37, %v2253_v32  ;;  %v3870_v37 = vpop.f32.mrf.mxu3  ;;  %v18751_v32 = vld [vmem:[#allocation92_spill] sm:$0xff] }
 0x233   :  { %v4033_v27 = vadd.f32 %v3730_v59, %v3579_v10  ;;  %v1479_v10 = vadd.f32 %v18737_v21, %v910_v1  ;;  %v18738_v59 = vld [vmem:[#allocation69_spill] sm:$0xff]  ;;  %v3582_v1 = vadd.f32 %v13548_v17, %v3144_v44  ;;  %v13660_v17 = vpop.permute.xlu1 %4114  ;;  %v2689_v21 = vadd.f32 %v13494_v35, %v2251_v62 }
 0x234   :  { %v1480_v63 = vadd.f32 %v18738_v59, %v930_v19  ;;  %v13649_v19 = vpop.permute.xlu0 %4091  ;;  %v1923_v44 = vadd.f32 %v18747_v16, %v1485_v3  ;;  %v3145_v35 = vadd.f32 %v13534_v58, %v2691_v23  ;;  %v2256_v3 = vadd.f32 %v13320_v33, %v1915_v22  ;;  %v18756_v23 = vld [vmem:[#allocation106_spill] sm:$0xff]  ;;  %v18757_v16 = vld [vmem:[#allocation108_spill] sm:$0xff] }
 0x235   :  { %v4055_v54 = vadd.f32 %v13632_v2, %v4033_v27  ;;  %v18744_v27 = vld [vmem:[#allocation76_spill] sm:$0xff]  ;;  %v4036_v57 = vadd.f32 %v3790_v0, %v3582_v1  ;;  %v1917_v24 = vadd.f32 %v18748_v38, %v1479_v10  ;;  %v3143_v28 = vadd.f32 %v13528_v34, %v2689_v21  ;;  %v18750_v1 = vld [vmem:[#allocation90_spill] sm:$0xff] }
 0x236   :  { %v1913_v18 = vadd.f32 %v18744_v27, %v1475_v14  ;;  %v1918_v36 = vadd.f32 %v18749_v9, %v1480_v63  ;;  %v1920_v10 = vadd.f32 %v13324_v56, %v1482_v41  ;;  %v3583_v58 = vadd.f32 %v13558_v51, %v3145_v35 }
 0x237   :  { %v4071_v11 = vmax.f32 %v4055_v54, 0.0  ;;  %v3581_v34 = vadd.f32 %v13560_v52, %v3143_v28  ;;  %v2264_v40 = vadd.f32 %v13381_v30, %v1923_v44  ;;  %v2258_v52 = vadd.f32 %v13399_v8, %v1917_v24  ;;  %v18752_v8 = vld [vmem:[#allocation97_spill] sm:$0xff]  ;;  %v18759_v28 = vld [vmem:[#allocation107_spill] sm:$0xff] }
 0x238   :  { %v2254_v14 = vadd.f32 %v13365_v60, %v1913_v18  ;;  %v2257_v60 = vadd.f32 %v13426_v61, %v1916_v31  ;;  %v4058_v61 = vadd.f32 %v13632_v2, %v4036_v57  ;;  %v2694_v51 = vadd.f32 %v13467_v55, %v2256_v3 }
 0x239   :  { %v4094_v6 = vmul.f32 %v13649_v19, %v4071_v11  ;;  %v3750_v54 = vpop.f32.mrf.mxu1  ;;  %v2260_v11 = vadd.f32 %v13347_v29, %v1919_v42  ;;  %v2693_v15 = vadd.f32 %v13504_v5, %v2255_v25 }
 0x23a   :  { %v4034_v59 = vadd.f32 %v3750_v54, %v3580_v45  ;;  %v3810_v47 = vpop.f32.mrf.mxu0  ;;  %v2692_v0 = vadd.f32 %v13498_v12, %v2254_v14  ;;  %v2695_v63 = vadd.f32 %v13514_v46, %v2257_v60  ;;  %v4074_v42 = vmax.f32 %v4058_v61, 0.0  ;;  %v3950_v13 = vpop.f32.mrf.mxu3  ;;  %v18754_v14 = vld [vmem:[#allocation98_spill] sm:$0xff]  ;;  %v18755_v54 = vld [vmem:[#allocation101_spill] sm:$0xff] }
 0x23b   :  { %v13665_v53 = vadd.f32 %v13660_v17, %v4094_v6  ;;  %v4037_v41 = vadd.f32 %v3810_v47, %v3583_v58  ;;  %v2698_v62 = vadd.f32 %v18750_v1, %v2260_v11  ;;  %v2696_v45 = vadd.f32 %v18751_v32, %v2258_v52  ;;  %v18758_v60 = vld [vmem:[#allocation86_spill] sm:$0xff]  ;;  %v18761_v11 = vld [vmem:[#allocation89_spill] sm:$0xff] }
 0x23c   :  { %v4056_v7 = vadd.f32 %v13632_v2, %v4034_v59  ;;  %v3146_v12 = vadd.f32 %v13532_v48, %v2692_v0  ;;  %v3149_v33 = vadd.f32 %v13540_v39, %v2695_v63  ;;  %v3148_v6 = vadd.f32 %v18752_v8, %v2694_v51  ;;  %v18763_v51 = vld [vmem:[#allocation6_spill] sm:$0xff] }
 0x23d   :  { %4133 = vrot.lane.b32.xlu2 %v13665_v53, %s11378_s19  ;;  %v4059_v26 = vadd.f32 %v13632_v2, %v4037_v41  ;;  %v3152_v57 = vadd.f32 %v18754_v14, %v2698_v62  ;;  %v3150_v21 = vadd.f32 %v18755_v54, %v2696_v45  ;;  %v4097_v47 = vmul.f32 %v13649_v19, %v4074_v42  ;;  %v18766_v42 = vld [vmem:[#allocation72_spill] sm:$0xff]  ;;  %v18769_v62 = vld [vmem:[#allocation102_spill] sm:$0xff] }
 0x23e   :  { %v4072_v50 = vmax.f32 %v4056_v7, 0.0  ;;  %v3584_v46 = vadd.f32 %v13564_v49, %v3146_v12  ;;  %v3587_v27 = vadd.f32 %v13566_v43, %v3149_v33  ;;  %v3147_v43 = vadd.f32 %v18753_v4, %v2693_v15  ;;  %v18760_v7 = vld [vmem:[#allocation109_spill] sm:$0xff] }
 0x23f   :  { %v3770_v56 = vpop.f32.mrf.mxu2  ;;  %v3586_v59 = vadd.f32 %v18756_v23, %v3148_v6  ;;  %v2259_v0 = vadd.f32 %v18758_v60, %v1918_v36  ;;  %v3590_v35 = vadd.f32 %v18759_v28, %v3152_v57  ;;  %v3588_v3 = vadd.f32 %v18760_v7, %v3150_v21  ;;  %v18762_v33 = vld [vmem:[#allocation93_spill] sm:$0xff]  ;;  %v18777_v28 = vld [vmem:[#allocation111_spill] sm:$0xff] }
 0x240   :  { %v4035_v22 = vadd.f32 %v3770_v56, %v3581_v34  ;;  %v4095_v48 = vmul.f32 %v13649_v19, %v4072_v50  ;;  %v3585_v44 = vadd.f32 %v18757_v16, %v3147_v43  ;;  %v4075_v12 = vmax.f32 %v4059_v26, 0.0  ;;  %v18771_v43 = vld [vmem:[#allocation100_spill] sm:$0xff]  ;;  %v18775_v16 = vld [vmem:[#allocation87_spill] sm:$0xff] }
 0x241   :  { %v4040_v63 = vadd.f32 %v3870_v37, %v3586_v59  ;;  %v2261_v25 = vadd.f32 %v18761_v11, %v1920_v10  ;;  %v2697_v56 = vadd.f32 %v18762_v33, %v2259_v0  ;;  %v13723_v36 = vadd.f32 %v13660_v17, %v4097_v47  ;;  %v18774_v59 = vld [vmem:[#allocation85_spill] sm:$0xff] }
 0x242   :  { %v3830_v29 = vpop.f32.mrf.mxu1  ;;  %v4057_v30 = vadd.f32 %v13632_v2, %v4035_v22  ;;  %v13696_v49 = vadd.f32 %v13660_v17, %v4095_v48  ;;  %v4098_v6 = vmul.f32 %v13649_v19, %v4075_v12  ;;  %v4030_v57 = vpop.f32.mrf.mxu3  ;;  %v18779_v12 = vld [vmem:[#allocation94_spill] sm:$0xff] }
 0x243   :  { %v4038_v39 = vadd.f32 %v3830_v29, %v3584_v46  ;;  %v3890_v18 = vpop.f32.mrf.mxu0  ;;  %v4044_v46 = vadd.f32 %v3950_v13, %v3590_v35  ;;  %v18765_v29 = vld [vmem:[#allocation51_spill] sm:$0xff]  ;;  %v3151_v32 = vadd.f32 %v18769_v62, %v2697_v56  ;;  %v4062_v45 = vadd.f32 %v13632_v2, %v4040_v63  ;;  %v18778_v63 = vld [vmem:[#allocation88_spill] sm:$0xff] }
 0x244   :  { %v4041_v55 = vadd.f32 %v3890_v18, %v3587_v27  ;;  %v4073_v5 = vmax.f32 %v4057_v30, 0.0  ;;  %4135 = vrot.lane.b32.xlu1 %v13696_v49, %s11378_s19  ;;  %v18764_v27 = vld [vmem:[#allocation70_spill] sm:$0xff]  ;;  %v1484_v15 = vadd.f32 %v18766_v42, %v18765_v29  ;;  %v18767_v30 = vld [vmem:[#allocation91_spill] sm:$0xff] }
 0x245   :  { %v4060_v31 = vadd.f32 %v13632_v2, %v4038_v39  ;;  %v1483_v10 = vadd.f32 %v18764_v27, %v18763_v51  ;;  %v2702_v39 = vadd.f32 %v18767_v30, %v2264_v40  ;;  %v18768_v18 = vld [vmem:[#allocation95_spill] sm:$0xff]  ;;  %v4078_v0 = vmax.f32 %v4062_v45, 0.0  ;;  %v18783_v30 = vld [vmem:[#allocation5_spill] sm:$0xff] }
 0x246   :  { %v4063_v24 = vadd.f32 %v13632_v2, %v4041_v55  ;;  %v4096_v9 = vmul.f32 %v13649_v19, %v4073_v5  ;;  %v2699_v1 = vadd.f32 %v18768_v18, %v2261_v25  ;;  %v18770_v55 = vld [vmem:[#allocation84_spill] sm:$0xff]  ;;  %v18772_v40 = vld [vmem:[#allocation103_spill] sm:$0xff]  ;;  %v4066_v5 = vadd.f32 %v13632_v2, %v4044_v46 }
 0x247   :  { %v4076_v38 = vmax.f32 %v4060_v31, 0.0  ;;  %v1921_v4 = vadd.f32 %v18770_v55, %v1483_v10  ;;  %v3156_v13 = vadd.f32 %v18771_v43, %v2702_v39  ;;  %v18773_v31 = vld [vmem:[#allocation48_spill] sm:$0xff]  ;;  %v1922_v47 = vadd.f32 %v18774_v59, %v1484_v15  ;;  %v18782_v10 = vld [vmem:[#allocation105_spill] sm:$0xff] }
 0x248   :  { %v3850_v61 = vpop.f32.mrf.mxu2  ;;  %v13717_v58 = vadd.f32 %v13660_v17, %v4096_v9  ;;  %v4079_v22 = vmax.f32 %v4063_v24, 0.0  ;;  %v3153_v26 = vadd.f32 %v18772_v40, %v2699_v1  ;;  %v3589_v14 = vadd.f32 %v18773_v31, %v3151_v32 }
 0x249   :  { %v4039_v34 = vadd.f32 %v3850_v61, %v3585_v44  ;;  %v4099_v50 = vmul.f32 %v13649_v19, %v4076_v38  ;;  %v2262_v44 = vadd.f32 %v18775_v16, %v1921_v4  ;;  %v18776_v38 = vld [vmem:[#allocation110_spill] sm:$0xff]  ;;  %v2263_v61 = vadd.f32 %v18778_v63, %v1922_v47 }
 0x24a   :  { %v3910_v41 = vpop.f32.mrf.mxu1  ;;  %4137 = vrot.lane.b32.xlu2 %v13717_v58, %s11378_s19  ;;  %v4102_v21 = vmul.f32 %v13649_v19, %v4079_v22  ;;  %v3594_v24 = vadd.f32 %v18776_v38, %v3156_v13  ;;  %v3591_v35 = vadd.f32 %v18777_v28, %v3153_v26  ;;  %v4101_v27 = vmul.f32 %v13649_v19, %v4078_v0  ;;  %v18784_v28 = vld [vmem:[#allocation8_spill] sm:$0xff] }
 0x24b   :  { %v4061_v37 = vadd.f32 %v13632_v2, %v4039_v34  ;;  %v4042_v48 = vadd.f32 %v3910_v41, %v3588_v3  ;;  %v13729_v52 = vadd.f32 %v13660_v17, %v4099_v50  ;;  %v3970_v9 = vpop.f32.mrf.mxu0  ;;  %v13757_v3 = vadd.f32 %v13660_v17, %v4098_v6  ;;  %v18780_v41 = vld [vmem:[#allocation96_spill] sm:$0xff] }
 0x24c   :  { %4139 = vrot.lane.b32.xlu1 %v13723_v36, %s11378_s19  ;;  %v2700_v34 = vadd.f32 %v18779_v12, %v2262_v44  ;;  %v4082_v50 = vmax.f32 %v4066_v5, 0.0  ;;  %v4048_v11 = vadd.f32 %v4030_v57, %v3594_v24  ;;  %v4045_v33 = vadd.f32 %v3970_v9, %v3591_v35 }
 0x24d   :  { %v4077_v8 = vmax.f32 %v4061_v37, 0.0  ;;  %4143 = vrot.lane.b32.xlu0 %v13729_v52, %s11378_s19  ;;  %v4064_v54 = vadd.f32 %v13632_v2, %v4042_v48  ;;  %v13764_v56 = vadd.f32 %v13660_v17, %v4102_v21  ;;  %v2701_v22 = vadd.f32 %v18780_v41, %v2263_v61  ;;  %v18781_v37 = vld [vmem:[#allocation104_spill] sm:$0xff] }
 0x24e   :  { %v3154_v48 = vadd.f32 %v18781_v37, %v2700_v34  ;;  %v4105_v15 = vmul.f32 %v13649_v19, %v4082_v50  ;;  %v4070_v18 = vadd.f32 %v13632_v2, %v4048_v11  ;;  %v4067_v1 = vadd.f32 %v13632_v2, %v4045_v33 }
 0x24f   :  { %v4100_v23 = vmul.f32 %v13649_v19, %v4077_v8  ;;  %v4080_v25 = vmax.f32 %v4064_v54, 0.0  ;;  %v3155_v29 = vadd.f32 %v18782_v10, %v2701_v22  ;;  %v4124_v55 = vadd.f32 %v13660_v17, %v4101_v27 }
 0x250   :  { %v3930_v60 = vpop.f32.mrf.mxu2  ;;  %v3592_v39 = vadd.f32 %v18783_v30, %v3154_v48  ;;  %v13786_v4 = vadd.f32 %v13660_v17, %v4105_v15  ;;  %v4086_v43 = vmax.f32 %v4070_v18, 0.0  ;;  %v4083_v13 = vmax.f32 %v4067_v1, 0.0 }
 0x251   :  { %v4043_v7 = vadd.f32 %v3930_v60, %v3589_v14  ;;  %v13767_v46 = vadd.f32 %v13660_v17, %v4100_v23  ;;  %v4103_v62 = vmul.f32 %v13649_v19, %v4080_v25  ;;  %v3593_v45 = vadd.f32 %v13651_v20, %v3155_v29 }
 0x252   :  { %4141 = vrot.lane.b32.xlu2 %v13757_v3, %s11378_s19  ;;  %v3990_v42 = vpop.f32.mrf.mxu1  ;;  %v4109_v14 = vmul.f32 %v13649_v19, %v4086_v43  ;;  %v4106_v57 = vmul.f32 %v13649_v19, %v4083_v13  ;;  %vm18785_vm5 = vcmp.lt.s32.totalorder %v18784_v28, 127 }
 0x253   :  { %v4065_v51 = vadd.f32 %v13632_v2, %v4043_v7  ;;  %v4046_v6 = vadd.f32 %v3990_v42, %v3592_v39  ;;  %v13790_v26 = vadd.f32 %v13660_v17, %v4103_v62  ;;  %vm18786_vm8 = vmmov %vm18785_vm5 }
 0x254   :  { %4145 = vrot.lane.b32.xlu1 %v13767_v46, %s11378_s19  ;;  %v4132_v59 = vadd.f32 %v13660_v17, %v4109_v14  ;;  %v4129_v47 = vadd.f32 %v13660_v17, %v4106_v57  ;;  %vm18787_vm7 = vmmov %vm18785_vm5 }
 0x255   :  { %4149 = vrot.lane.b32.xlu0 %v13764_v56, %s11378_s19  ;;  %v4081_v8 = vmax.f32 %v4065_v51, 0.0  ;;  %v4068_v5 = vadd.f32 %v13632_v2, %v4046_v6  ;;  %vm18788_vm9 = vmmov %vm18785_vm5 }
 0x256   :  { %vm18789_vm3 = vmmov %vm18785_vm5 }
 0x257   :  { %v4104_v20 = vmul.f32 %v13649_v19, %v4081_v8  ;;  %v4084_v54 = vmax.f32 %v4068_v5, 0.0  ;;  %vm18790_vm14 = vmmov %vm18789_vm3 }
 0x258   :  { %v4010_v32 = vpop.f32.mrf.mxu2  ;;  %vm18791_vm10 = vmmov %vm18789_vm3 }
 0x259   :  { %v4047_v40 = vadd.f32 %v4010_v32, %v3593_v45  ;;  %v4127_v21 = vadd.f32 %v13660_v17, %v4104_v20  ;;  %vm18792_vm12 = vmmov %vm18789_vm3 }
 0x25a   :  { %4147 = vrot.lane.b32.xlu2 %v4124_v55, %s11378_s19  ;;  %vm18793_vm13 = vmmov %vm18789_vm3 }
 0x25b   :  { %v4069_v31 = vadd.f32 %v13632_v2, %v4047_v40  ;;  %v4107_v2 = vmul.f32 %v13649_v19, %v4084_v54  ;;  %vm18794_vm15 = vmmov %vm18789_vm3 }
 0x25c   :  { %4151 = vrot.lane.b32.xlu1 %v13790_v26, %s11378_s19  ;;  %vm18795_vm4 = vmmov %vm18789_vm3 }
 0x25d   :  { %4155 = vrot.lane.b32.xlu0 %v13786_v4, %s11378_s19  ;;  %v4085_v23 = vmax.f32 %v4069_v31, 0.0  ;;  %v13810_v44 = vadd.f32 %v13660_v17, %v4107_v2  ;;  %vm18796_vm11 = vmmov %vm18789_vm3 }
 0x25e   :  { %vm18797_vm6 = vmmov %vm18789_vm3 }
 0x25f   :  { %v4108_v16 = vmul.f32 %v13649_v19, %v4085_v23  ;;  %vm18798_vm0 = vmmov %vm18789_vm3 }
 0x260   :  { %vm18799_vm1 = vmmov %vm18798_vm0 }
 0x261   :  { %v13815_v38 = vadd.f32 %v13660_v17, %v4108_v16 }
 0x262   :  { %4153 = vrot.lane.b32.xlu2 %v4127_v21, %s11378_s19 }
 0x264   :  { %4157 = vrot.lane.b32.xlu1 %v4129_v47, %s11378_s19 }
 0x265   :  { %4163 = vrot.lane.b32.xlu0 %v4132_v59, %s11378_s19 }
 0x26a   :  { %4159 = vrot.lane.b32.xlu2 %v13810_v44, %s11378_s19 }
 0x26d   :  { %4161 = vrot.lane.b32.xlu0 %v13815_v38, %s11378_s19 }
 0x297   :  { %v4134_v24 = vpop.permute.xlu2 %4133 }
 0x2a4   :  { %v4138_v9 = vpop.permute.xlu2 %4137 }
 0x2ac   :  { %v4142_v0 = vpop.permute.xlu2 %4141 }
 0x2b4   :  { %v4148_v25 = vpop.permute.xlu2 %4147 }
 0x2b6   :  { %v4136_v60 = vpop.permute.xlu1 %4135 }
 0x2b7   :  { %v4178_v35 = vsel %vm18785_vm5, %v4136_v60, %v4138_v9  ;;  %v4179_v19 = vsel %vm18786_vm8, %v4134_v24, %v4136_v60  ;;  %vm18800_vm5 = vmmov %vm18798_vm0  ;;  %vm18801_vm8 = vcmp.lt.s32.totalorder %v18784_v28, 96 }
 0x2b8   :  { %v4181_v7 = vmax.f32 %v13665_v53, %v4179_v19  ;;  %v13825_v63 = vmax.f32 %v13696_v49, %v4178_v35 }
 0x2ba   :  { %4197 = vrot.lane.b32.xlu1 %v4181_v7, %s11380_s25  ;;  %4199 = vrot.lane.b32.xlu2 %v13825_v63, %s11380_s25 }
 0x2bc   :  { %v4154_v51 = vpop.permute.xlu2 %4153 }
 0x2be   :  { %v4140_v61 = vpop.permute.xlu1 %4139 }
 0x2bf   :  { %v4144_v17 = vpop.permute.xlu0 %4143  ;;  %v4176_v34 = vsel %vm18788_vm9, %v4140_v61, %v4142_v0  ;;  %v4177_v50 = vsel %vm18789_vm3, %v4138_v9, %v4140_v61 }
 0x2c0   :  { %v4175_v12 = vsel %vm18787_vm7, %v4142_v0, %v4144_v17  ;;  %v13840_v49 = vmax.f32 %v13717_v58, %v4177_v50  ;;  %v4184_v11 = vmax.f32 %v13723_v36, %v4176_v34  ;;  %vm18802_vm7 = vmmov %vm18801_vm8 }
 0x2c1   :  { %v13837_v53 = vmax.f32 %v13757_v3, %v4175_v12  ;;  %vm18803_vm9 = vmmov %vm18802_vm7 }
 0x2c2   :  { %4201 = vrot.lane.b32.xlu1 %v13840_v49, %s11380_s25  ;;  %4203 = vrot.lane.b32.xlu2 %v4184_v11, %s11380_s25  ;;  %vm18804_vm3 = vmmov %vm18802_vm7 }
 0x2c3   :  { %4205 = vrot.lane.b32.xlu0 %v13837_v53, %s11380_s25 }
 0x2c4   :  { %v4160_v39 = vpop.permute.xlu2 %4159 }
 0x2c6   :  { %v4146_v41 = vpop.permute.xlu1 %4145 }
 0x2c7   :  { %v4150_v33 = vpop.permute.xlu0 %4149  ;;  %v4173_v58 = vsel %vm18791_vm10, %v4146_v41, %v4148_v25  ;;  %v4174_v36 = vsel %vm18792_vm12, %v4144_v17, %v4146_v41  ;;  %vm18806_vm10 = vmmov %vm18804_vm3 }
 0x2c8   :  { %v4172_v3 = vsel %vm18790_vm14, %v4148_v25, %v4150_v33  ;;  %v13857_v37 = vmax.f32 %v13729_v52, %v4174_v36  ;;  %v13860_v48 = vmax.f32 %v13767_v46, %v4173_v58  ;;  %vm18805_vm14 = vmmov %vm18804_vm3 }
 0x2c9   :  { %v13854_v22 = vmax.f32 %v4124_v55, %v4172_v3  ;;  %vm18807_vm12 = vmmov %vm18804_vm3 }
 0x2ca   :  { %4207 = vrot.lane.b32.xlu1 %v13857_v37, %s11380_s25  ;;  %4209 = vrot.lane.b32.xlu2 %v13860_v48, %s11380_s25 }
 0x2cb   :  { %4211 = vrot.lane.b32.xlu0 %v13854_v22, %s11380_s25 }
 0x2ce   :  { %v4152_v10 = vpop.permute.xlu1 %4151 }
 0x2cf   :  { %v4156_v27 = vpop.permute.xlu0 %4155  ;;  %v4170_v52 = vsel %vm18794_vm15, %v4152_v10, %v4154_v51  ;;  %v4171_v46 = vsel %vm18795_vm4, %v4150_v33, %v4152_v10  ;;  %vm18809_vm15 = vmmov %vm18804_vm3 }
 0x2d0   :  { %v4169_v29 = vsel %vm18793_vm13, %v4154_v51, %v4156_v27  ;;  %v13877_v15 = vmax.f32 %v13764_v56, %v4171_v46  ;;  %v13880_v30 = vmax.f32 %v13790_v26, %v4170_v52  ;;  %vm18808_vm13 = vmmov %vm18804_vm3 }
 0x2d1   :  { %v13874_v42 = vmax.f32 %v4127_v21, %v4169_v29  ;;  %vm18811_vm4 = vmmov %vm18804_vm3 }
 0x2d2   :  { %4213 = vrot.lane.b32.xlu1 %v13877_v15, %s11380_s25  ;;  %4215 = vrot.lane.b32.xlu2 %v13880_v30, %s11380_s25 }
 0x2d3   :  { %4217 = vrot.lane.b32.xlu0 %v13874_v42, %s11380_s25 }
 0x2d6   :  { %v4158_v1 = vpop.permute.xlu1 %4157 }
 0x2d7   :  { %v4164_v18 = vpop.permute.xlu0 %4163  ;;  %v4167_v56 = vsel %vm18797_vm6, %v4158_v1, %v4160_v39  ;;  %v4168_v32 = vsel %vm18798_vm0, %v4156_v27, %v4158_v1  ;;  %vm18813_vm6 = vmmov %vm18804_vm3 }
 0x2d8   :  { %v4180_v62 = vsel %vm18796_vm11, %v4164_v18, %v4134_v24  ;;  %v13897_v8 = vmax.f32 %v13786_v4, %v4168_v32  ;;  %v13899_v6 = vmax.f32 %v4129_v47, %v4167_v56  ;;  %vm18812_vm11 = vmmov %vm18804_vm3  ;;  %v18825_v32 = vld [vmem:[#allocation13_spill] sm:$0xff] }
 0x2d9   :  { %v13894_v45 = vmax.f32 %v4132_v59, %v4180_v62  ;;  %vm18816_vm0 = vmmov %vm18804_vm3 }
 0x2da   :  { %4219 = vrot.lane.b32.xlu1 %v13897_v8, %s11380_s25  ;;  %4221 = vrot.lane.b32.xlu2 %v13899_v6, %s11380_s25 }
 0x2db   :  { %4227 = vrot.lane.b32.xlu0 %v13894_v45, %s11380_s25 }
 0x2df   :  { %v4162_v55 = vpop.permute.xlu0 %4161 }
 0x2e0   :  { %v4165_v43 = vsel %vm18799_vm1, %v4162_v55, %v4164_v18  ;;  %v4166_v13 = vsel %vm18800_vm5, %v4160_v39, %v4162_v55  ;;  %vm18818_vm1 = vmmov %vm18816_vm0  ;;  %v18827_v55 = vld [vmem:[#allocation9_spill] sm:$0xff] }
 0x2e1   :  { %v13912_v4 = vmax.f32 %v13810_v44, %v4166_v13  ;;  %v13915_v40 = vmax.f32 %v13815_v38, %v4165_v43  ;;  %vm18819_vm5 = vmmov %vm18816_vm0 }
 0x2e3   :  { %4225 = vrot.lane.b32.xlu1 %v13915_v40, %s11380_s25  ;;  %4223 = vrot.lane.b32.xlu0 %v13912_v4, %s11380_s25 }
 0x314   :  { %v4200_v26 = vpop.permute.xlu2 %4199 }
 0x31c   :  { %v4204_v57 = vpop.permute.xlu2 %4203 }
 0x324   :  { %v4210_v24 = vpop.permute.xlu2 %4209 }
 0x32c   :  { %v4198_v5 = vpop.permute.xlu1 %4197  ;;  %v4216_v61 = vpop.permute.xlu2 %4215 }
 0x32d   :  { %v4243_v20 = vsel %vm18801_vm8, %v4198_v5, %v4200_v26  ;;  %vm18822_vm8 = vmmov %vm18816_vm0 }
 0x32e   :  { %v13923_v31 = vmax.f32 %v4181_v7, %v4243_v20 }
 0x330   :  { %4325 = vrot.lane.b32.xlu0 %v13923_v31, %s11383_s15  ;;  %4440 = vrot.lane.b32.xlu2 %v13923_v31, %s11384_s16 }
 0x334   :  { %v4202_v14 = vpop.permute.xlu1 %4201 }
 0x335   :  { %v4242_v54 = vsel %vm18802_vm7, %v4200_v26, %v4202_v14  ;;  %v4206_v21 = vpop.permute.xlu0 %4205  ;;  %v4241_v2 = vsel %vm18804_vm3, %v4202_v14, %v4204_v57  ;;  %vm4357_vm7 = vcmp.lt.s32.totalorder %v18784_v28, 66  ;;  %vm18199_vm3 = vcmp.ge.s32.totalorder %v18825_v32, 2 }
 0x336   :  { %v13932_v23 = vmax.f32 %v13825_v63, %v4242_v54  ;;  %v4240_v59 = vsel %vm18803_vm9, %v4204_v57, %v4206_v21  ;;  %v13947_v38 = vmax.f32 %v13840_v49, %v4241_v2  ;;  %vm18198_vm9 = vcmp.lt.s32.totalorder %v18784_v28, 64  ;;  %v18831_v57 = vld [vmem:[#allocation19_spill] sm:$0xff] }
 0x337   :  { %v13936_v47 = vmax.f32 %v4184_v11, %v4240_v59  ;;  %v18832_v59 = vld [vmem:[#allocation17_spill] sm:$0xff] }
 0x338   :  { %4327 = vrot.lane.b32.xlu2 %v13932_v23, %s11383_s15  ;;  %4442 = vrot.lane.b32.xlu1 %v13932_v23, %s11384_s16 }
 0x339   :  { %4446 = vrot.lane.b32.xlu0 %v13936_v47, %s11384_s16 }
 0x33c   :  { %v4208_v16 = vpop.permute.xlu1 %4207 }
 0x33d   :  { %v4212_v44 = vpop.permute.xlu0 %4211  ;;  %v4238_v9 = vsel %vm18805_vm14, %v4208_v16, %v4210_v24  ;;  %v4239_v60 = vsel %vm18806_vm10, %v4206_v21, %v4208_v16  ;;  %vm18189_vm10 = vcmp.ge.s32.totalorder %v18827_v55, 2 }
 0x33e   :  { %v4237_v0 = vsel %vm18807_vm12, %v4210_v24, %v4212_v44  ;;  %v13962_v35 = vmax.f32 %v13837_v53, %v4239_v60  ;;  %v13965_v19 = vmax.f32 %v13857_v37, %v4238_v9  ;;  %vm18216_vm12 = vcmp.ge.s32.totalorder %v18831_v57, 2  ;;  %v18835_v24 = vld [vmem:[#allocation10_spill] sm:$0xff] }
 0x33f   :  { %v13968_v63 = vmax.f32 %v13860_v48, %v4237_v0  ;;  %v18836_v0 = vld [vmem:[#allocation23_spill] sm:$0xff] }
 0x340   :  { %4444 = vrot.lane.b32.xlu2 %v13947_v38, %s11384_s16  ;;  %4331 = vrot.lane.b32.xlu1 %v13936_v47, %s11383_s15 }
 0x341   :  { %4329 = vrot.lane.b32.xlu0 %v13947_v38, %s11383_s15 }
 0x344   :  { %v4214_v7 = vpop.permute.xlu1 %4213 }
 0x345   :  { %v4218_v17 = vpop.permute.xlu0 %4217  ;;  %v4236_v12 = vsel %vm18808_vm13, %v4212_v44, %v4214_v7  ;;  %v4235_v25 = vsel %vm18811_vm4, %v4214_v7, %v4216_v61  ;;  %vm18208_vm13 = vcmp.ge.s32.totalorder %v18832_v59, 2  ;;  %vm18175_vm4 = vcmp.ge.s32.totalorder %v18836_v0, 2 }
 0x346   :  { %v4234_v34 = vsel %vm18809_vm15, %v4216_v61, %v4218_v17  ;;  %v13981_v50 = vmax.f32 %v13854_v22, %v4236_v12  ;;  %v13999_v3 = vmax.f32 %v13877_v15, %v4235_v25  ;;  %v4222_v22 = vpop.permute.xlu2 %4221  ;;  %vm18187_vm15 = vcmp.ge.s32.totalorder %v18835_v24, 2  ;;  %v18839_v12 = vld [vmem:[#allocation20_spill] sm:$0xff]  ;;  %v18841_v25 = vld [vmem:[#allocation15_spill] sm:$0xff] }
 0x347   :  { %v13984_v53 = vmax.f32 %v13880_v30, %v4234_v34  ;;  %v18840_v34 = vld [vmem:[#allocation11_spill] sm:$0xff] }
 0x348   :  { %4448 = vrot.lane.b32.xlu1 %v13962_v35, %s11384_s16  ;;  %4450 = vrot.lane.b32.xlu2 %v13965_v19, %s11384_s16 }
 0x349   :  { %4452 = vrot.lane.b32.xlu0 %v13968_v63, %s11384_s16  ;;  %18810 = vst [vmem:[#allocation54_spill] sm:$0xff] %v13984_v53 }
 0x34c   :  { %v4220_v49 = vpop.permute.xlu1 %4219 }
 0x34d   :  { %v4228_v11 = vpop.permute.xlu0 %4227  ;;  %v4233_v33 = vsel %vm18812_vm11, %v4218_v17, %v4220_v49  ;;  %v4232_v37 = vsel %vm18816_vm0, %v4220_v49, %v4222_v22  ;;  %vm18174_vm11 = vcmp.ge.s32.totalorder %v18839_v12, 2  ;;  %vm4261_vm0 = vcmp.ge.s32.totalorder %v18841_v25, 2 }
 0x34e   :  { %v4244_v41 = vsel %vm18813_vm6, %v4228_v11, %v4198_v5  ;;  %v14002_v58 = vmax.f32 %v13874_v42, %v4233_v33  ;;  %v14016_v48 = vmax.f32 %v13897_v8, %v4232_v37  ;;  %vm18195_vm6 = vcmp.ge.s32.totalorder %v18840_v34, 2 }
 0x34f   :  { %v14005_v36 = vmax.f32 %v13894_v45, %v4244_v41  ;;  %v18826_v45 = vld [vmem:[#allocation12_spill] sm:$0xff] }
 0x350   :  { %4454 = vrot.lane.b32.xlu1 %v13981_v50, %s11384_s16  ;;  %4333 = vrot.lane.b32.xlu2 %v13962_v35, %s11383_s15  ;;  %18814 = vst [vmem:[#allocation7_spill] sm:$0xff] %v14002_v58  ;;  %vm18201_vm14 = vcmp.ge.s32.totalorder %v18826_v45, 2 }
 0x351   :  { %4458 = vrot.lane.b32.xlu0 %v13984_v53, %s11384_s16  ;;  %18815 = vst [vmem:[#allocation44_spill] sm:$0xff] %v14005_v36 }
 0x352   :  { %18817 = vst [vmem:[#allocation43_spill] sm:$0xff] %v14016_v48 }
 0x355   :  { %v4226_v51 = vpop.permute.xlu1 %4225  ;;  %v4224_v27 = vpop.permute.xlu0 %4223 }
 0x356   :  { %v4230_v10 = vsel %vm18818_vm1, %v4224_v27, %v4226_v51  ;;  %v4231_v29 = vsel %vm18819_vm5, %v4222_v22, %v4224_v27  ;;  %v4229_v42 = vsel %vm18822_vm8, %v4226_v51, %v4228_v11  ;;  %v18845_v51 = vld [vmem:[#allocation18_spill] sm:$0xff] }
 0x357   :  { %v14035_v52 = vmax.f32 %v13912_v4, %v4230_v10  ;;  %v14038_v46 = vmax.f32 %v13899_v6, %v4231_v29  ;;  %v14049_v15 = vmax.f32 %v13915_v40, %v4229_v42  ;;  %v14124_v40 = vld [vmem:[%s18038_s1 + $0x50] sm:$0xff]  ;;  %vm18177_vm1 = vcmp.ge.s32.totalorder %v18845_v51, 2 }
 0x358   :  { %4460 = vrot.lane.b32.xlu1 %v14002_v58, %s11384_s16  ;;  %4456 = vrot.lane.b32.xlu2 %v13999_v3, %s11384_s16  ;;  %v18846_v27 = vld [vmem:[#allocation22_spill] sm:$0xff] }
 0x359   :  { %4470 = vrot.lane.b32.xlu0 %v14005_v36, %s11384_s16  ;;  %18820 = vst [vmem:[#allocation42_spill] sm:$0xff] %v14035_v52  ;;  %vm18176_vm5 = vcmp.ge.s32.totalorder %v18846_v27, 2  ;;  %v18849_v42 = vld [vmem:[#allocation14_spill] sm:$0xff] }
 0x35a   :  { %18821 = vst [vmem:[#allocation41_spill] sm:$0xff] %v14038_v46  ;;  %vm18185_vm8 = vcmp.ge.s32.totalorder %v18849_v42, 2 }
 0x35b   :  { %18823 = vst [vmem:[#allocation47_spill] sm:$0xff] %v14049_v15 }
 0x360   :  { %4337 = vrot.lane.b32.xlu1 %v13968_v63, %s11383_s15  ;;  %4462 = vrot.lane.b32.xlu2 %v14016_v48, %s11384_s16 }
 0x361   :  { %4335 = vrot.lane.b32.xlu0 %v13965_v19, %s11383_s15 }
 0x368   :  { %4343 = vrot.lane.b32.xlu1 %v13984_v53, %s11383_s15  ;;  %4339 = vrot.lane.b32.xlu2 %v13981_v50, %s11383_s15 }
 0x369   :  { %4341 = vrot.lane.b32.xlu0 %v13999_v3, %s11383_s15 }
 0x370   :  { %4466 = vrot.lane.b32.xlu1 %v14035_v52, %s11384_s16  ;;  %4345 = vrot.lane.b32.xlu2 %v14002_v58, %s11383_s15 }
 0x371   :  { %4464 = vrot.lane.b32.xlu0 %v14038_v46, %s11384_s16 }
 0x378   :  { %4355 = vrot.lane.b32.xlu1 %v14005_v36, %s11383_s15  ;;  %4468 = vrot.lane.b32.xlu2 %v14049_v15, %s11384_s16 }
 0x379   :  { %4347 = vrot.lane.b32.xlu0 %v14016_v48, %s11383_s15 }
 0x380   :  { %5185 = vrot.lane.b32.xlu1 %v13923_v31, %s11385_s17  ;;  %5191 = vrot.lane.b32.xlu2 %v13936_v47, %s11385_s17 }
 0x381   :  { %5187 = vrot.lane.b32.xlu0 %v13932_v23, %s11385_s17 }
 0x388   :  { %5189 = vrot.lane.b32.xlu1 %v13947_v38, %s11385_s17  ;;  %5197 = vrot.lane.b32.xlu2 %v13968_v63, %s11385_s17 }
 0x389   :  { %5193 = vrot.lane.b32.xlu0 %v13962_v35, %s11385_s17 }
 0x38a   :  { %v14069_v30 = vpop.permute.xlu2 %4440 }
 0x390   :  { %4351 = vrot.lane.b32.xlu2 %v14035_v52, %s11383_s15  ;;  %4349 = vrot.lane.b32.xlu1 %v14038_v46, %s11383_s15 }
 0x391   :  { %4353 = vrot.lane.b32.xlu0 %v14049_v15, %s11383_s15 }
 0x392   :  { %v14077_v39 = vpop.permute.xlu2 %4327 }
 0x398   :  { %5215 = vrot.lane.b32.xlu2 %v14005_v36, %s11385_s17  ;;  %5195 = vrot.lane.b32.xlu1 %v13965_v19, %s11385_s17 }
 0x399   :  { %5199 = vrot.lane.b32.xlu0 %v13981_v50, %s11385_s17 }
 0x39a   :  { %v4445_v18 = vpop.permute.xlu2 %4444 }
 0x3a0   :  { %5203 = vrot.lane.b32.xlu2 %v13984_v53, %s11385_s17  ;;  %5201 = vrot.lane.b32.xlu1 %v13999_v3, %s11385_s17 }
 0x3a1   :  { %5205 = vrot.lane.b32.xlu0 %v14002_v58, %s11385_s17 }
 0x3a2   :  { %v14092_v1 = vpop.permute.xlu0 %4325  ;;  %v4451_v62 = vpop.permute.xlu2 %4450 }
 0x3a3   :  { %v14098_v56 = vsel %vm4357_vm7, %v14092_v1, %v14077_v39 }
 0x3a4   :  { %18824 = vst [vmem:[#allocation46_spill] sm:$0xff] %v14098_v56 }
 0x3a8   :  { %5639 = vrot.lane.b32.xlu2 %v13923_v31, %s11386_s18  ;;  %5207 = vrot.lane.b32.xlu1 %v14016_v48, %s11385_s17 }
 0x3a9   :  { %5645 = vrot.lane.b32.xlu0 %v13936_v47, %s11386_s18 }
 0x3aa   :  { %v4443_v8 = vpop.permute.xlu1 %4442  ;;  %v14109_v6 = vpop.permute.xlu2 %4333 }
 0x3ab   :  { %v14114_v43 = vsel %vm18198_vm9, %v4443_v8, %v4445_v18  ;;  %v14119_v13 = vsel %vm18198_vm9, %v14069_v30, %v4443_v8  ;;  %v4447_v4 = vpop.permute.xlu0 %4446 }
 0x3ac   :  { %18828 = vst [vmem:[#allocation45_spill] sm:$0xff] %v14114_v43  ;;  %v14128_v26 = vsel %vm18198_vm9, %v4445_v18, %v4447_v4  ;;  %10460 = vmatpush.msk.msra.mxu1 %vm18199_vm3, %v14119_v13  ;;  %10462 = vmatpush.msk.msra.mxu2 %vm18201_vm14, %v14114_v43  ;;  %v18851_v18 = vld [vmem:[#allocation21_spill] sm:$0xff]  ;;  %v18864_v43 = vld [vmem:[#allocation34_spill] sm:$0xff] }
 0x3ad   :  { %18829 = vst [vmem:[#allocation55_spill] sm:$0xff] %v14119_v13  ;;  %10464 = vmatpush.msk.msra.mxu3 %vm18189_vm10, %v14128_v26  ;;  %10461 = vmatmul.msk.f32.vlgmr.msra.gmra.mxu1 %vm18274_vm2, %v14124_v40 }
 0x3ae   :  { %18830 = vst [vmem:[#allocation52_spill] sm:$0xff] %v14128_v26  ;;  %10465 = vmatmul.msk.f32.vlgmr.msra.gmra.mxu3 %vm18274_vm2, %v14124_v40  ;;  %10463 = vmatmul.msk.f32.vlgmr.msra.gmra.mxu2 %vm18274_vm2, %v14124_v40  ;;  %v18880_v26 = vld [vmem:[#allocation37_spill] sm:$0xff] }
 0x3b0   :  { %5209 = vrot.lane.b32.xlu2 %v14038_v46, %s11385_s17  ;;  %5641 = vrot.lane.b32.xlu1 %v13932_v23, %s11386_s18 }
 0x3b1   :  { %5211 = vrot.lane.b32.xlu0 %v14035_v52, %s11385_s17 }
 0x3b2   :  { %v14151_v5 = vpop.permute.xlu1 %4331  ;;  %v4457_v20 = vpop.permute.xlu2 %4456 }
 0x3b3   :  { %v14153_v14 = vpop.permute.xlu0 %4329 }
 0x3b8   :  { %5643 = vrot.lane.b32.xlu2 %v13947_v38, %s11386_s18  ;;  %5213 = vrot.lane.b32.xlu1 %v14049_v15, %s11385_s17 }
 0x3b9   :  { %5669 = vrot.lane.b32.xlu0 %v14005_v36, %s11386_s18 }
 0x3ba   :  { %v4449_v54 = vpop.permute.xlu1 %4448  ;;  %v14162_v21 = vpop.permute.xlu2 %4462 }
 0x3bb   :  { %v14167_v2 = vsel %vm18198_vm9, %v4449_v54, %v4451_v62  ;;  %v4453_v16 = vpop.permute.xlu0 %4452  ;;  %v14251_v10 = vsel %vm18198_vm9, %v4447_v4, %v4449_v54  ;;  %v14295_v54 = vsel %vm4357_vm7, %v14153_v14, %v14151_v5 }
 0x3bc   :  { %18833 = vst [vmem:[#allocation60_spill] sm:$0xff] %v14167_v2  ;;  %v14171_v44 = vsel %vm18198_vm9, %v4451_v62, %v4453_v16  ;;  %10468 = vmatpush.msk.msrb.mxu1 %vm18216_vm12, %v14167_v2 }
 0x3bd   :  { %18834 = vst [vmem:[#allocation50_spill] sm:$0xff] %v14171_v44  ;;  %10470 = vmatpush.msk.msrb.mxu2 %vm18208_vm13, %v14171_v44  ;;  %10469 = vmatmul.msk.f32.vlgmr.msrb.gmra.mxu1 %vm18274_vm2, %v14124_v40  ;;  %v18860_v44 = vld [vmem:[#allocation33_spill] sm:$0xff] }
 0x3be   :  { %10471 = vmatmul.msk.f32.vlgmr.msrb.gmra.mxu2 %vm18274_vm2, %v14124_v40  ;;  %18847 = vst [vmem:[#allocation59_spill] sm:$0xff] %v14251_v10 }
 0x3bf   :  { %18853 = vst [vmem:[#allocation62_spill] sm:$0xff] %v14295_v54 }
 0x3c0   :  { %5649 = vrot.lane.b32.xlu2 %v13965_v19, %s11386_s18  ;;  %5647 = vrot.lane.b32.xlu1 %v13962_v35, %s11386_s18 }
 0x3c1   :  { %5651 = vrot.lane.b32.xlu0 %v13968_v63, %s11386_s18 }
 0x3c2   :  { %v4455_v9 = vpop.permute.xlu1 %4454  ;;  %v14190_v60 = vpop.permute.xlu2 %4339 }
 0x3c3   :  { %v14195_v7 = vsel %vm18198_vm9, %v4453_v16, %v4455_v9  ;;  %v4459_v17 = vpop.permute.xlu0 %4458  ;;  %v14259_v29 = vsel %vm18198_vm9, %v4455_v9, %v4457_v20 }
 0x3c4   :  { %18837 = vst [vmem:[#allocation57_spill] sm:$0xff] %v14195_v7  ;;  %v14199_v61 = vsel %vm18198_vm9, %v4457_v20, %v4459_v17  ;;  %10472 = vmatpush.msk.msrb.mxu3 %vm18187_vm15, %v14195_v7  ;;  %v18859_v7 = vld [vmem:[#allocation28_spill] sm:$0xff] }
 0x3c5   :  { %18838 = vst [vmem:[#allocation49_spill] sm:$0xff] %v14199_v61  ;;  %10476 = vmatpush.msk.msra.mxu1 %vm18175_vm4, %v14199_v61  ;;  %10473 = vmatmul.msk.f32.vlgmr.msrb.gmra.mxu3 %vm18274_vm2, %v14124_v40  ;;  %vm18181_vm4 = vcmp.ge.s32.totalorder %v18851_v18, 2 }
 0x3c6   :  { %10477 = vmatmul.msk.f32.vlgmr.msra.gmra.mxu1 %vm18274_vm2, %v14124_v40  ;;  %18848 = vst [vmem:[#allocation82_spill] sm:$0xff] %v14259_v29 }
 0x3c8   :  { %5655 = vrot.lane.b32.xlu2 %v13999_v3, %s11386_s18  ;;  %5653 = vrot.lane.b32.xlu1 %v13981_v50, %s11386_s18 }
 0x3c9   :  { %5657 = vrot.lane.b32.xlu0 %v13984_v53, %s11386_s18 }
 0x3ca   :  { %v4461_v49 = vpop.permute.xlu1 %4460  ;;  %v14219_v11 = vpop.permute.xlu2 %4345 }
 0x3cb   :  { %v14225_v33 = vsel %vm18198_vm9, %v4461_v49, %v14162_v21  ;;  %v14229_v41 = vsel %vm18198_vm9, %v4459_v17, %v4461_v49  ;;  %v4471_v22 = vpop.permute.xlu0 %4470  ;;  %v14321_v49 = vld [vmem:[%s18038_s1 + $0x48] sm:$0xff] }
 0x3cc   :  { %18842 = vst [vmem:[#allocation56_spill] sm:$0xff] %v14225_v33  ;;  %v14234_v37 = vsel %vm18198_vm9, %v4471_v22, %v14069_v30  ;;  %10478 = vmatpush.msk.msra.mxu2 %vm18174_vm11, %v14229_v41  ;;  %10480 = vmatpush.msk.msra.mxu3 %vm18195_vm6, %v14225_v33  ;;  %v18850_v30 = vld [vmem:[#allocation16_spill] sm:$0xff]  ;;  %v18857_v33 = vld [vmem:[#allocation26_spill] sm:$0xff]  ;;  %vm18207_vm6 = vcmp.ge.s32.totalorder %v18864_v43, 2 }
 0x3cd   :  { %18843 = vst [vmem:[#allocation58_spill] sm:$0xff] %v14229_v41  ;;  %10458 = vmatpush.msk.msra.mxu0 %vm4261_vm0, %v14234_v37  ;;  %10481 = vmatmul.msk.f32.vlgmr.msra.gmra.mxu3 %vm18274_vm2, %v14124_v40  ;;  %vm18192_vm11 = vcmp.ge.s32.totalorder %v18850_v30, 2 }
 0x3ce   :  { %18844 = vst [vmem:[#allocation53_spill] sm:$0xff] %v14234_v37  ;;  %10459 = vmatmul.msk.f32.vlgmr.msra.gmra.mxu0 %vm18274_vm2, %v14124_v40  ;;  %10479 = vmatmul.msk.f32.vlgmr.msra.gmra.mxu2 %vm18274_vm2, %v14124_v40  ;;  %v18855_v37 = vld [vmem:[#allocation27_spill] sm:$0xff] }
 0x3cf   :  { %10466 = vmatpush.msk.msrb.mxu0 %vm18177_vm1, %v14251_v10  ;;  %vm4381_vm1 = vmand %vm18187_vm15, %vm18181_vm4  ;;  %vm18200_vm4 = vcmp.ge.s32.totalorder %v18857_v33, 2  ;;  %vm4274_vm15 = vcmp.ge.s32.totalorder %v18859_v7, 2 }
 0x3d0   :  { %5661 = vrot.lane.b32.xlu2 %v14016_v48, %s11386_s18  ;;  %5659 = vrot.lane.b32.xlu1 %v14002_v58, %s11386_s18 }
 0x3d1   :  { %10474 = vmatpush.msk.msra.mxu0 %vm18176_vm5, %v14259_v29  ;;  %5663 = vrot.lane.b32.xlu0 %v14038_v46, %s11386_s18  ;;  %vm4377_vm5 = vmand %vm18189_vm10, %vm18185_vm8  ;;  %v18858_v29 = vld [vmem:[#allocation24_spill] sm:$0xff]  ;;  %vm18204_vm10 = vcmp.ge.s32.totalorder %v18860_v44, 2 }
 0x3d2   :  { %v4338_v62 = vpop.permute.xlu1 %4337  ;;  %v4469_v8 = vpop.permute.xlu2 %4468  ;;  %vm4273_vm8 = vcmp.ge.s32.totalorder %v18858_v29, 2 }
 0x3d3   :  { %v4336_v4 = vpop.permute.xlu0 %4335  ;;  %v14278_v20 = vsel %vm18198_vm9, %v4469_v8, %v4471_v22  ;;  %v14302_v16 = vsel %vm4357_vm7, %v4338_v62, %v14190_v60 }
 0x3d4   :  { %18852 = vst [vmem:[#allocation61_spill] sm:$0xff] %v14278_v20  ;;  %10488 = vmatpush.msk.msrb.mxu3 %vm18192_vm11, %v14278_v20  ;;  %v18856_v20 = vld [vmem:[#allocation29_spill] sm:$0xff] }
 0x3d5   :  { %10489 = vmatmul.msk.f32.vlgmr.msrb.gmra.mxu3 %vm18274_vm2, %v14124_v40  ;;  %18854 = vst [vmem:[#allocation64_spill] sm:$0xff] %v14302_v16 }
 0x3d6   :  { %10467 = vmatmul.msk.f32.vlgmr.msrb.gmra.mxu0 %vm18274_vm2, %v14124_v40  ;;  %10496 = vmatpush.msk.msra.mxu3 %vm4377_vm5, %v14295_v54  ;;  %vm18239_vm5 = vcmp.ge.s32.totalorder %v18856_v20, 2  ;;  %v14467_v54 = vsel %vm4357_vm7, %v14151_v5, %v14109_v6 }
 0x3d7   :  { %18885 = vst [vmem:[#allocation74_spill] sm:$0xff] %v14467_v54 }
 0x3d8   :  { %10504 = vmatpush.msk.msrb.mxu3 %vm4381_vm1, %v14302_v16  ;;  %5667 = vrot.lane.b32.xlu2 %v14049_v15, %s11386_s18  ;;  %vm18197_vm1 = vcmp.ge.s32.totalorder %v18855_v37, 2  ;;  %v14415_v16 = vsel %vm4357_vm7, %v14109_v6, %v4336_v4 }
 0x3d9   :  { %5665 = vrot.lane.b32.xlu1 %v14035_v52, %s11386_s18  ;;  %6418 = vrot.lane.b32.xlu0 %v13923_v31, %s11387_s22  ;;  %vm14351_vm11 = vmand %vm18199_vm3, %vm18197_vm1  ;;  %18874 = vst [vmem:[#allocation69_spill] sm:$0xff] %v14415_v16 }
 0x3da   :  { %v14314_v9 = vpop.permute.xlu1 %4343  ;;  %v14316_v17 = vpop.permute.xlu2 %5191  ;;  %vm4376_vm1 = vmand %vm18201_vm14, %vm18200_vm4 }
 0x3db   :  { %v14323_v22 = vpop.permute.xlu0 %4341  ;;  %vm4380_vm4 = vmand %vm18208_vm13, %vm18207_vm6  ;;  %vm18228_vm13 = vcmp.ge.s32.totalorder %v18880_v26, 2  ;;  %v14507_v6 = vsel %vm4357_vm7, %v14314_v9, %v14219_v11 }
 0x3dc   :  { %18891 = vst [vmem:[#allocation75_spill] sm:$0xff] %v14507_v6  ;;  %v14516_v5 = vsel %vm4357_vm7, %v14190_v60, %v14323_v22 }
 0x3dd   :  { %10497 = vmatmul.msk.f32.vlgmr.msra.gmra.mxu3 %vm18274_vm2, %v14321_v49  ;;  %18892 = vst [vmem:[#allocation76_spill] sm:$0xff] %v14516_v5 }
 0x3de   :  { %10475 = vmatmul.msk.f32.vlgmr.msra.gmra.mxu0 %vm18274_vm2, %v14124_v40 }
 0x3e0   :  { %6422 = vrot.lane.b32.xlu2 %v13947_v38, %s11387_s22 }
 0x3e1   :  { %6420 = vrot.lane.b32.xlu1 %v13932_v23, %s11387_s22  ;;  %6424 = vrot.lane.b32.xlu0 %v13936_v47, %s11387_s22 }
 0x3e2   :  { %v4467_v41 = vpop.permute.xlu1 %4466  ;;  %v14338_v61 = vpop.permute.xlu2 %5197 }
 0x3e3   :  { %v14345_v2 = vsel %vm18198_vm9, %v4467_v41, %v4469_v8  ;;  %v4465_v10 = vpop.permute.xlu0 %4464 }
 0x3e4   :  { %18861 = vst [vmem:[#allocation65_spill] sm:$0xff] %v14345_v2  ;;  %v14358_v13 = vsel %vm18198_vm9, %v4465_v10, %v4467_v41  ;;  %v14363_v8 = vsel %vm18198_vm9, %v14162_v21, %v4465_v10  ;;  %10486 = vmatpush.msk.msrb.mxu2 %vm18239_vm5, %v14345_v2  ;;  %vm14382_vm9 = vmand %vm18216_vm12, %vm18204_vm10  ;;  %v18869_v41 = vld [vmem:[#allocation30_spill] sm:$0xff]  ;;  %v18870_v10 = vld [vmem:[#allocation25_spill] sm:$0xff]  ;;  %v14400_v2 = vsel %vm4357_vm7, %v14077_v39, %v14153_v14 }
 0x3e5   :  { %18865 = vst [vmem:[#allocation63_spill] sm:$0xff] %v14358_v13  ;;  %10482 = vmatpush.msk.msrb.mxu0 %vm4273_vm8, %v14363_v8  ;;  %10484 = vmatpush.msk.msrb.mxu1 %vm4274_vm15, %v14358_v13  ;;  %vm18215_vm3 = vcmp.ge.s32.totalorder %v18869_v41, 2  ;;  %vm18211_vm14 = vcmp.ge.s32.totalorder %v18870_v10, 2  ;;  %v18872_v13 = vld [vmem:[#allocation32_spill] sm:$0xff] }
 0x3e6   :  { %18866 = vst [vmem:[#allocation66_spill] sm:$0xff] %v14363_v8  ;;  %10483 = vmatmul.msk.f32.vlgmr.msrb.gmra.mxu0 %vm18274_vm2, %v14124_v40  ;;  %10485 = vmatmul.msk.f32.vlgmr.msrb.gmra.mxu1 %vm18274_vm2, %v14124_v40  ;;  %vm18214_vm10 = vcmp.ge.s32.totalorder %v18872_v13, 2  ;;  %v14410_v8 = vsel %vm4357_vm7, %v4336_v4, %v4338_v62  ;;  %v18882_v4 = vld [vmem:[#allocation36_spill] sm:$0xff] }
 0x3e7   :  { %18871 = vst [vmem:[#allocation68_spill] sm:$0xff] %v14400_v2  ;;  %10487 = vmatmul.msk.f32.vlgmr.msrb.gmra.mxu2 %vm18274_vm2, %v14124_v40  ;;  %10492 = vmatpush.msk.msra.mxu1 %vm14351_vm11, %v14098_v56  ;;  %vm14424_vm11 = vmand %vm4261_vm0, %vm18215_vm3  ;;  %vm18888_vm3 = vcmp.ge.s32.totalorder %v18839_v12, 2  ;;  %v18893_v40 = vld [vmem:[#allocation39_spill] sm:$0xff] }
 0x3e8   :  { %18873 = vst [vmem:[#allocation67_spill] sm:$0xff] %v14410_v8  ;;  %10494 = vmatpush.msk.msra.mxu2 %vm4376_vm1, %v14400_v2  ;;  %10505 = vmatmul.msk.f32.vlgmr.msrb.gmra.mxu3 %vm18274_vm2, %v14321_v49  ;;  %vm18877_vm1 = vcmp.ge.s32.totalorder %v18840_v34, 2 }
 0x3e9   :  { %10500 = vmatpush.msk.msrb.mxu1 %vm14382_vm9, %v14415_v16  ;;  %vm14436_vm6 = vmand %vm18877_vm1, %vm18211_vm14  ;;  %6428 = vrot.lane.b32.xlu2 %v13965_v19, %s11387_s22  ;;  %vm18881_vm9 = vcmp.ge.s32.totalorder %v18845_v51, 2  ;;  %vm18225_vm1 = vcmp.ge.s32.totalorder %v18882_v4, 2  ;;  %v18884_v16 = vld [vmem:[#allocation35_spill] sm:$0xff] }
 0x3ea   :  { %10502 = vmatpush.msk.msrb.mxu2 %vm4380_vm4, %v14410_v8  ;;  %6426 = vrot.lane.b32.xlu1 %v13962_v35, %s11387_s22  ;;  %v14445_v14 = vpop.permute.xlu1 %4355  ;;  %v14447_v62 = vpop.permute.xlu2 %4351  ;;  %vm4378_vm4 = vmand %vm18881_vm9, %vm18214_vm10  ;;  %vm18236_vm14 = vcmp.ge.s32.totalorder %v18884_v16, 2  ;;  %vm18887_vm9 = vcmp.ge.s32.totalorder %v18836_v0, 2 }
 0x3eb   :  { %6430 = vrot.lane.b32.xlu0 %v13968_v63, %s11387_s22  ;;  %v14460_v21 = vsel %vm4357_vm7, %v14445_v14, %v14092_v1  ;;  %v4348_v8 = vpop.permute.xlu0 %4347  ;;  %vm4383_vm10 = vmand %vm18887_vm9, %vm18228_vm13  ;;  %v14493_v1 = vsel %vm4357_vm7, %v14323_v22, %v14314_v9 }
 0x3ec   :  { %18883 = vst [vmem:[#allocation73_spill] sm:$0xff] %v14460_v21  ;;  %v14472_v2 = vsel %vm4357_vm7, %v14219_v11, %v4348_v8  ;;  %10490 = vmatpush.msk.msra.mxu0 %vm14424_vm11, %v14460_v21  ;;  %vm4384_vm12 = vmand %vm18888_vm3, %vm18225_vm1  ;;  %vm18223_vm3 = vcmp.ge.s32.totalorder %v18893_v40, 2  ;;  %v18894_v21 = vld [vmem:[#allocation40_spill] sm:$0xff]  ;;  %vm18266_vm1 = vcmp.lt.s32.totalorder %v18855_v37, 30 }
 0x3ed   :  { %18886 = vst [vmem:[#allocation79_spill] sm:$0xff] %v14472_v2  ;;  %10512 = vmatpush.msk.msra.mxu3 %vm14436_vm6, %v14472_v2  ;;  %vm18890_vm6 = vcmp.ge.s32.totalorder %v18846_v27, 2 }
 0x3ee   :  { %10498 = vmatpush.msk.msrb.mxu0 %vm4378_vm4, %v14467_v54  ;;  %18889 = vst [vmem:[#allocation71_spill] sm:$0xff] %v14493_v1  ;;  %10493 = vmatmul.msk.f32.vlgmr.msra.gmra.mxu1 %vm18274_vm2, %v14321_v49  ;;  %vm4382_vm11 = vmand %vm18890_vm6, %vm18236_vm14  ;;  %vm5217_vm14 = vcmp.lt.s32.totalorder %v18784_v28, 62 }
 0x3ef   :  { %10491 = vmatmul.msk.f32.vlgmr.msra.gmra.mxu0 %vm18274_vm2, %v14321_v49  ;;  %10495 = vmatmul.msk.f32.vlgmr.msra.gmra.mxu2 %vm18274_vm2, %v14321_v49  ;;  %vm14559_vm4 = vmand %vm4273_vm8, %vm18223_vm3 }
 0x3f0   :  { %10508 = vmatpush.msk.msra.mxu1 %vm4383_vm10, %v14493_v1  ;;  %10510 = vmatpush.msk.msra.mxu2 %vm4384_vm12, %v14507_v6  ;;  %vm18227_vm10 = vcmp.ge.s32.totalorder %v18894_v21, 2  ;;  %v18895_v6 = vld [vmem:[#allocation38_spill] sm:$0xff] }
 0x3f1   :  { %10513 = vmatmul.msk.f32.vlgmr.msra.gmra.mxu3 %vm18274_vm2, %v14321_v49  ;;  %10506 = vmatpush.msk.msra.mxu0 %vm4382_vm11, %v14516_v5  ;;  %vm18230_vm12 = vcmp.ge.s32.totalorder %v18895_v6, 2  ;;  %v18898_v5 = vld [vmem:[#allocation31_spill] sm:$0xff]  ;;  %vm14568_vm6 = vmand %vm4274_vm15, %vm18227_vm10  ;;  %vm18238_vm11 = vcmp.lt.s32.totalorder %v18869_v41, 30  ;;  %vm18903_vm10 = vcmp.ge.s32.totalorder %v18850_v30, 2 }
 0x3f2   :  { %6434 = vrot.lane.b32.xlu2 %v13999_v3, %s11387_s22  ;;  %6432 = vrot.lane.b32.xlu1 %v13981_v50, %s11387_s22  ;;  %v5186_v11 = vpop.permute.xlu1 %5185  ;;  %v14528_v60 = vpop.permute.xlu2 %5215  ;;  %vm18235_vm9 = vcmp.ge.s32.totalorder %v18898_v5, 2  ;;  %vm14577_vm3 = vmand %vm18239_vm5, %vm18230_vm12  ;;  %vm18265_vm12 = vcmp.lt.s32.totalorder %v18857_v33, 30  ;;  %vm18243_vm5 = vcmp.lt.s32.totalorder %v18872_v13, 30 }
 0x3f3   :  { %6436 = vrot.lane.b32.xlu0 %v13984_v53, %s11387_s22  ;;  %v5188_v9 = vpop.permute.xlu0 %5187  ;;  %vm14590_vm13 = vmand %vm18903_vm10, %vm18235_vm9  ;;  %vm18240_vm9 = vcmp.lt.s32.totalorder %v18849_v42, 30  ;;  %v14676_v54 = vsel %vm5217_vm14, %v14528_v60, %v5186_v11 }
 0x3f4   :  { %vm14610_vm10 = vmand %vm4261_vm0, %vm18238_vm11  ;;  %vm18910_vm0 = vcmp.ge.s32.totalorder %v18825_v32, 2  ;;  %v14671_v56 = vsel %vm5217_vm14, %v5186_v11, %v5188_v9  ;;  %18919 = vst [vmem:[#allocation78_spill] sm:$0xff] %v14676_v54 }
 0x3f5   :  { %vm14636_vm11 = vmand %vm18910_vm0, %vm18266_vm1  ;;  %vm18245_vm0 = vcmp.lt.s32.totalorder %v18864_v43, 30 }
 0x3f6   :  { %10501 = vmatmul.msk.f32.vlgmr.msrb.gmra.mxu1 %vm18274_vm2, %v14321_v49 }
 0x3f7   :  { %10499 = vmatmul.msk.f32.vlgmr.msrb.gmra.mxu0 %vm18274_vm2, %v14321_v49  ;;  %10503 = vmatmul.msk.f32.vlgmr.msrb.gmra.mxu2 %vm18274_vm2, %v14321_v49 }
 0x3fa   :  { %6440 = vrot.lane.b32.xlu2 %v14016_v48, %s11387_s22  ;;  %6438 = vrot.lane.b32.xlu1 %v14002_v58, %s11387_s22  ;;  %v5190_v22 = vpop.permute.xlu1 %5189  ;;  %v14546_v2 = vpop.permute.xlu2 %5203  ;;  %v14761_v48 = vld [vmem:[%s18038_s1 + $0x58] sm:$0xff] }
 0x3fb   :  { %6442 = vrot.lane.b32.xlu0 %v14038_v46, %s11387_s22  ;;  %v14542_v39 = vpop.permute.xlu0 %5193  ;;  %v14697_v1 = vsel %vm5217_vm14, %v5190_v22, %v14316_v17 }
 0x3fc   :  { %v14729_v53 = vsel %vm5217_vm14, %v14316_v17, %v14542_v39 }
 0x3fe   :  { %10509 = vmatmul.msk.f32.vlgmr.msra.gmra.mxu1 %vm18274_vm2, %v14321_v49 }
 0x3ff   :  { %10507 = vmatmul.msk.f32.vlgmr.msra.gmra.mxu0 %vm18274_vm2, %v14321_v49  ;;  %10511 = vmatmul.msk.f32.vlgmr.msra.gmra.mxu2 %vm18274_vm2, %v14321_v49 }
 0x402   :  { %6446 = vrot.lane.b32.xlu2 %v14049_v15, %s11387_s22  ;;  %6444 = vrot.lane.b32.xlu1 %v14035_v52, %s11387_s22  ;;  %v4350_v46 = vpop.permute.xlu1 %4349  ;;  %v14703_v11 = vpop.permute.xlu2 %5639 }
 0x403   :  { %6448 = vrot.lane.b32.xlu0 %v14005_v36, %s11387_s22  ;;  %v14600_v15 = vsel %vm4357_vm7, %v4350_v46, %v14447_v62  ;;  %v14604_v52 = vsel %vm4357_vm7, %v4348_v8, %v4350_v46  ;;  %v4354_v58 = vpop.permute.xlu0 %4353 }
 0x404   :  { %v14619_v36 = vsel %vm4357_vm7, %v4354_v58, %v14445_v14  ;;  %v14624_v46 = vsel %vm4357_vm7, %v14447_v62, %v4354_v58  ;;  %10514 = vmatpush.msk.msrb.mxu0 %vm14559_vm4, %v14604_v52  ;;  %10516 = vmatpush.msk.msrb.mxu1 %vm14568_vm6, %v14600_v15  ;;  %vm18913_vm7 = vcmp.ge.s32.totalorder %v18826_v45, 2  ;;  %vm18264_vm6 = vcmp.lt.s32.totalorder %v18860_v44, 30  ;;  %v10738_v62 = vld [vmem:[%s18039_s2 + $0x20] sm:$0xff] }
 0x405   :  { %18908 = vst [vmem:[#allocation77_spill] sm:$0xff] %v14619_v36  ;;  %10518 = vmatpush.msk.msrb.mxu2 %vm14577_vm3, %v14624_v46  ;;  %10520 = vmatpush.msk.msrb.mxu3 %vm14590_vm13, %v14619_v36  ;;  %vm14651_vm4 = vmand %vm18913_vm7, %vm18265_vm12  ;;  %vm18916_vm13 = vcmp.ge.s32.totalorder %v18827_v55, 2  ;;  %vm18920_vm7 = vcmp.ge.s32.totalorder %v18845_v51, 2  ;;  %v10737_v36 = vld [vmem:[%s18039_s2 + $0x18] sm:$0xff] }
 0x406   :  { %18909 = vst [vmem:[#allocation83_spill] sm:$0xff] %v14624_v46  ;;  %10517 = vmatmul.msk.f32.vlgmr.msrb.gmra.mxu1 %vm18274_vm2, %v14321_v49  ;;  %vm14664_vm3 = vmand %vm18916_vm13, %vm18240_vm9  ;;  %10521 = vmatmul.msk.f32.vlgmr.msrb.gmra.mxu3 %vm18274_vm2, %v14321_v49  ;;  %vm18244_vm9 = vcmp.lt.s32.totalorder %v18851_v18, 30  ;;  %v10739_v46 = vld [vmem:[%s18039_s2 + $0x28] sm:$0xff] }
 0x407   :  { %10515 = vmatmul.msk.f32.vlgmr.msrb.gmra.mxu0 %vm18274_vm2, %v14321_v49  ;;  %10519 = vmatmul.msk.f32.vlgmr.msrb.gmra.mxu2 %vm18274_vm2, %v14321_v49  ;;  %vm14686_vm13 = vmand %vm18920_vm7, %vm18243_vm5  ;;  %v14701_v49 = vsel %vm5217_vm14, %v5188_v9, %v5190_v22  ;;  %vm18923_vm7 = vcmp.ge.s32.totalorder %v18831_v57, 2 }
 0x408   :  { %10523 = vmatpush.msk.msra.mxu0 %vm14610_vm10, %v14676_v54  ;;  %10525 = vmatpush.msk.msra.mxu1 %vm14636_vm11, %v14671_v56  ;;  %vm14721_vm5 = vmand %vm18923_vm7, %vm18264_vm6  ;;  %vm18926_vm11 = vcmp.ge.s32.totalorder %v18832_v59, 2  ;;  %vm18927_vm7 = vcmp.ge.s32.totalorder %v18835_v24, 2 }
 0x409   :  { %10527 = vmatpush.msk.msra.mxu2 %vm14651_vm4, %v14701_v49  ;;  %10529 = vmatpush.msk.msra.mxu3 %vm14664_vm3, %v14697_v1  ;;  %vm5240_vm10 = vmand %vm18926_vm11, %vm18245_vm0  ;;  %vm18262_vm3 = vcmp.lt.s32.totalorder %v18884_v16, 30  ;;  %vm18929_vm11 = vcmp.ge.s32.totalorder %v18846_v27, 2 }
 0x40a   :  { %10531 = vmatpush.msk.msrb.mxu0 %vm14686_vm13, %v14729_v53  ;;  %8098 = vperm.xlu2 %11250, %v10738_v62   ;;  %v5196_v17 = vpop.permute.xlu1 %5195  ;;  %vm5241_vm4 = vmand %vm18927_vm7, %vm18244_vm9  ;;  %vm18261_vm13 = vcmp.lt.s32.totalorder %v18880_v26, 30  ;;  %vm18930_vm7 = vcmp.ge.s32.totalorder %v18836_v0, 2  ;;  %vm18931_vm9 = vcmp.ge.s32.totalorder %v18839_v12, 2 }
 0x40b   :  { %8059 = vperm.xlu1 %11252, %v10737_v36   ;;  %8121 = vperm.xlu0 %11251, %v10739_v46   ;;  %v14751_v22 = vsel %vm5217_vm14, %v5196_v17, %v14338_v61  ;;  %v14756_v8 = vsel %vm5217_vm14, %v14542_v39, %v5196_v17  ;;  %v5200_v58 = vpop.permute.xlu0 %5199 }
 0x40c   :  { %v14766_v36 = vsel %vm5217_vm14, %v14338_v61, %v5200_v58  ;;  %10533 = vmatpush.msk.msrb.mxu1 %vm14721_vm5, %v14756_v8  ;;  %10535 = vmatpush.msk.msrb.mxu2 %vm5240_vm10, %v14751_v22  ;;  %vm18260_vm5 = vcmp.lt.s32.totalorder %v18882_v4, 30  ;;  %vm5242_vm10 = vmand %vm18929_vm11, %vm18262_vm3  ;;  %v5210_v61 = vpop.permute.xlu2 %5209  ;;  %vm18251_vm11 = vcmp.lt.s32.totalorder %v18893_v40, 30 }
 0x40d   :  { %18928 = vst [vmem:[#allocation80_spill] sm:$0xff] %v14766_v36  ;;  %10537 = vmatpush.msk.msrb.mxu3 %vm5241_vm4, %v14766_v36  ;;  %vm5243_vm4 = vmand %vm18930_vm7, %vm18261_vm13 }
 0x40e   :  { %10526 = vmatmul.msk.f32.vlgmr.msra.gmra.mxu1 %vm18274_vm2, %v14761_v48  ;;  %10530 = vmatmul.msk.f32.vlgmr.msra.gmra.mxu3 %vm18274_vm2, %v14761_v48  ;;  %vm5244_vm0 = vmand %vm18931_vm9, %vm18260_vm5  ;;  %vm18252_vm9 = vcmp.lt.s32.totalorder %v18870_v10, 30 }
 0x40f   :  { %10524 = vmatmul.msk.f32.vlgmr.msra.gmra.mxu0 %vm18274_vm2, %v14761_v48  ;;  %10528 = vmatmul.msk.f32.vlgmr.msra.gmra.mxu2 %vm18274_vm2, %v14761_v48  ;;  %vm5246_vm7 = vmand %vm4273_vm8, %vm18251_vm11  ;;  %vm18250_vm8 = vcmp.lt.s32.totalorder %v18894_v21, 30 }
 0x412   :  { %v5202_v39 = vpop.permute.xlu1 %5201 }
 0x413   :  { %v14799_v46 = vsel %vm5217_vm14, %v5202_v39, %v14546_v2  ;;  %v14803_v14 = vsel %vm5217_vm14, %v5200_v58, %v5202_v39  ;;  %v5206_v62 = vpop.permute.xlu0 %5205 }
 0x414   :  { %18932 = vst [vmem:[#allocation81_spill] sm:$0xff] %v14799_v46  ;;  %v14808_v9 = vsel %vm5217_vm14, %v14546_v2, %v5206_v62  ;;  %10539 = vmatpush.msk.msra.mxu0 %vm5242_vm10, %v14803_v14  ;;  %10541 = vmatpush.msk.msra.mxu1 %vm5243_vm4, %v14799_v46  ;;  %v5644_v54 = vpop.permute.xlu2 %5643  ;;  %vm5247_vm4 = vmand %vm4274_vm15, %vm18250_vm8  ;;  %vm18259_vm15 = vcmp.lt.s32.totalorder %v18898_v5, 30  ;;  %vm18940_vm8 = vcmp.ge.s32.totalorder %v18856_v20, 2 }
 0x415   :  { %18933 = vst [vmem:[#allocation90_spill] sm:$0xff] %v14803_v14  ;;  %10543 = vmatpush.msk.msra.mxu2 %vm5244_vm0, %v14808_v9  ;;  %vm18935_vm0 = vcmp.ge.s32.totalorder %v18840_v34, 2  ;;  %v14891_v14 = vld [vmem:[%s18038_s1 + $0x60] sm:$0xff] }
 0x416   :  { %18934 = vst [vmem:[#allocation92_spill] sm:$0xff] %v14808_v9  ;;  %10534 = vmatmul.msk.f32.vlgmr.msrb.gmra.mxu1 %vm18274_vm2, %v14761_v48  ;;  %10538 = vmatmul.msk.f32.vlgmr.msrb.gmra.mxu3 %vm18274_vm2, %v14761_v48  ;;  %vm5245_vm10 = vmand %vm18935_vm0, %vm18252_vm9  ;;  %vm5671_vm0 = vcmp.lt.s32.totalorder %v18784_v28, 2 }
 0x417   :  { %10532 = vmatmul.msk.f32.vlgmr.msrb.gmra.mxu0 %vm18274_vm2, %v14761_v48  ;;  %10536 = vmatmul.msk.f32.vlgmr.msrb.gmra.mxu2 %vm18274_vm2, %v14761_v48 }
 0x41a   :  { %v5208_v2 = vpop.permute.xlu1 %5207 }
 0x41b   :  { %v14833_v17 = vsel %vm5217_vm14, %v5208_v2, %v5210_v61  ;;  %v14837_v58 = vsel %vm5217_vm14, %v5206_v62, %v5208_v2  ;;  %v5646_v39 = vpop.permute.xlu0 %5645 }
 0x41c   :  { %18936 = vst [vmem:[#allocation97_spill] sm:$0xff] %v14833_v17  ;;  %10545 = vmatpush.msk.msra.mxu3 %vm5245_vm10, %v14837_v58  ;;  %10547 = vmatpush.msk.msrb.mxu0 %vm5246_vm7, %v14833_v17  ;;  %vm18258_vm10 = vcmp.lt.s32.totalorder %v18895_v6, 30  ;;  %v5650_v9 = vpop.permute.xlu2 %5649  ;;  %vm18939_vm7 = vcmp.ge.s32.totalorder %v18855_v37, 2 }
 0x41d   :  { %18937 = vst [vmem:[#allocation99_spill] sm:$0xff] %v14837_v58  ;;  %vm5248_vm11 = vmand %vm18940_vm8, %vm18258_vm10  ;;  %vm18942_vm8 = vcmp.ge.s32.totalorder %v18869_v41, 2 }
 0x41e   :  { %10542 = vmatmul.msk.f32.vlgmr.msra.gmra.mxu1 %vm18274_vm2, %v14761_v48  ;;  %10546 = vmatmul.msk.f32.vlgmr.msra.gmra.mxu3 %vm18274_vm2, %v14761_v48 }
 0x41f   :  { %10540 = vmatmul.msk.f32.vlgmr.msra.gmra.mxu0 %vm18274_vm2, %v14761_v48  ;;  %10544 = vmatmul.msk.f32.vlgmr.msra.gmra.mxu2 %vm18274_vm2, %v14761_v48 }
 0x422   :  { %v5642_v62 = vpop.permute.xlu1 %5641 }
 0x423   :  { %v5212_v2 = vpop.permute.xlu0 %5211  ;;  %v5686_v17 = vsel %vm5671_vm0, %v14703_v11, %v5642_v62 }
 0x424   :  { %v14860_v58 = vsel %vm5217_vm14, %v5210_v61, %v5212_v2 }
 0x425   :  { %18938 = vst [vmem:[#allocation98_spill] sm:$0xff] %v14860_v58  ;;  %10549 = vmatpush.msk.msrb.mxu1 %vm5247_vm4, %v14860_v58  ;;  %vm18941_vm4 = vcmp.ge.s32.totalorder %v18850_v30, 2 }
 0x426   :  { %10550 = vmatmul.msk.f32.vlgmr.msrb.gmra.mxu1 %vm18274_vm2, %v14761_v48  ;;  %vm5249_vm9 = vmand %vm18941_vm4, %vm18259_vm15  ;;  %vm18947_vm4 = vcmp.ge.s32.totalorder %v18864_v43, 2 }
 0x427   :  { %10548 = vmatmul.msk.f32.vlgmr.msrb.gmra.mxu0 %vm18274_vm2, %v14761_v48  ;;  %10558 = vmatpush.msk.msra.mxu1 %vm18939_vm7, %v5686_v17  ;;  %vm18946_vm7 = vcmp.ge.s32.totalorder %v18860_v44, 2 }
 0x42a   :  { %v5214_v61 = vpop.permute.xlu1 %5213 }
 0x42b   :  { %v14882_v58 = vsel %vm5217_vm14, %v5214_v61, %v14528_v60  ;;  %v14886_v46 = vsel %vm5217_vm14, %v5212_v2, %v5214_v61  ;;  %v5670_v17 = vpop.permute.xlu0 %5669  ;;  %v5685_v60 = vsel %vm5671_vm0, %v5642_v62, %v5644_v54  ;;  %vm18943_vm14 = vcmp.ge.s32.totalorder %v18857_v33, 2 }
 0x42c   :  { %v5687_v36 = vsel %vm5671_vm0, %v5670_v17, %v14703_v11  ;;  %10551 = vmatpush.msk.msrb.mxu2 %vm5248_vm11, %v14886_v46  ;;  %10553 = vmatpush.msk.msrb.mxu3 %vm5249_vm9, %v14882_v58  ;;  %v5684_v11 = vsel %vm5671_vm0, %v5644_v54, %v5646_v39  ;;  %vm18944_vm9 = vcmp.ge.s32.totalorder %v18849_v42, 2  ;;  %vm18945_vm11 = vcmp.ge.s32.totalorder %v18872_v13, 2 }
 0x42d   :  { %10556 = vmatpush.msk.msra.mxu0 %vm18942_vm8, %v5687_v36  ;;  %10552 = vmatmul.msk.f32.vlgmr.msrb.gmra.mxu2 %vm18274_vm2, %v14761_v48  ;;  %v5656_v36 = vpop.permute.xlu2 %5655  ;;  %vm18948_vm8 = vcmp.ge.s32.totalorder %v18851_v18, 2 }
 0x42e   :  { %10554 = vmatmul.msk.f32.vlgmr.msrb.gmra.mxu3 %vm18274_vm2, %v14761_v48  ;;  %10559 = vmatmul.msk.f32.vlgmr.msra.gmra.mxu1 %vm18274_vm2, %v14891_v14 }
 0x42f   :  { %10557 = vmatmul.msk.f32.vlgmr.msra.gmra.mxu0 %vm18274_vm2, %v14891_v14  ;;  %10560 = vmatpush.msk.msra.mxu2 %vm18943_vm14, %v5685_v60  ;;  %vm18949_vm14 = vcmp.ge.s32.totalorder %v18884_v16, 2 }
 0x430   :  { %10562 = vmatpush.msk.msra.mxu3 %vm18944_vm9, %v5684_v11  ;;  %vm18950_vm9 = vcmp.ge.s32.totalorder %v18880_v26, 2 }
 0x432   :  { %v5648_v62 = vpop.permute.xlu1 %5647 }
 0x433   :  { %v5682_v48 = vsel %vm5671_vm0, %v5648_v62, %v5650_v9  ;;  %v5683_v2 = vsel %vm5671_vm0, %v5646_v39, %v5648_v62  ;;  %v5652_v61 = vpop.permute.xlu0 %5651 }
 0x434   :  { %v5681_v54 = vsel %vm5671_vm0, %v5650_v9, %v5652_v61  ;;  %10564 = vmatpush.msk.msrb.mxu0 %vm18945_vm11, %v5683_v2  ;;  %10566 = vmatpush.msk.msrb.mxu1 %vm18946_vm7, %v5682_v48  ;;  %vm18951_vm11 = vcmp.ge.s32.totalorder %v18882_v4, 2  ;;  %vm18952_vm7 = vcmp.ge.s32.totalorder %v18870_v10, 2 }
 0x435   :  { %10568 = vmatpush.msk.msrb.mxu2 %vm18947_vm4, %v5681_v54  ;;  %v5662_v9 = vpop.permute.xlu2 %5661  ;;  %vm18953_vm4 = vcmp.ge.s32.totalorder %v18893_v40, 2 }
 0x436   :  { %10561 = vmatmul.msk.f32.vlgmr.msra.gmra.mxu2 %vm18274_vm2, %v14891_v14  ;;  %10563 = vmatmul.msk.f32.vlgmr.msra.gmra.mxu3 %vm18274_vm2, %v14891_v14 }
 0x437   :  { %10565 = vmatmul.msk.f32.vlgmr.msrb.gmra.mxu0 %vm18274_vm2, %v14891_v14  ;;  %10567 = vmatmul.msk.f32.vlgmr.msrb.gmra.mxu1 %vm18274_vm2, %v14891_v14 }
 0x43a   :  { %v5654_v39 = vpop.permute.xlu1 %5653 }
 0x43b   :  { %v5679_v60 = vsel %vm5671_vm0, %v5654_v39, %v5656_v36  ;;  %v5680_v11 = vsel %vm5671_vm0, %v5652_v61, %v5654_v39  ;;  %v5658_v62 = vpop.permute.xlu0 %5657 }
 0x43c   :  { %v5678_v48 = vsel %vm5671_vm0, %v5656_v36, %v5658_v62  ;;  %10570 = vmatpush.msk.msrb.mxu3 %vm18948_vm8, %v5680_v11  ;;  %10572 = vmatpush.msk.msra.mxu0 %vm18949_vm14, %v5679_v60  ;;  %v14966_v11 = vpop.f32.mrf.mxu1  ;;  %vm18955_vm8 = vcmp.ge.s32.totalorder %v18898_v5, 2  ;;  %vm18957_vm14 = vcmp.ge.s32.totalorder %v18894_v21, 2 }
 0x43d   :  { %10574 = vmatpush.msk.msra.mxu1 %vm18950_vm9, %v5678_v48  ;;  %v5668_v61 = vpop.permute.xlu2 %5667  ;;  %v14974_v48 = vpop.f32.mrf.mxu3  ;;  %vm18958_vm9 = vcmp.ge.s32.totalorder %v18895_v6, 2 }
 0x43e   :  { %10569 = vmatmul.msk.f32.vlgmr.msrb.gmra.mxu2 %vm18274_vm2, %v14891_v14  ;;  %10571 = vmatmul.msk.f32.vlgmr.msrb.gmra.mxu3 %vm18274_vm2, %v14891_v14  ;;  %18954 = vst [vmem:[#allocation101_spill] sm:$0xff] %v14974_v48 }
 0x43f   :  { %10573 = vmatmul.msk.f32.vlgmr.msra.gmra.mxu0 %vm18274_vm2, %v14891_v14  ;;  %10575 = vmatmul.msk.f32.vlgmr.msra.gmra.mxu1 %vm18274_vm2, %v14891_v14 }
 0x442   :  { %v5660_v36 = vpop.permute.xlu1 %5659 }
 0x443   :  { %v5664_v2 = vpop.permute.xlu0 %5663  ;;  %v5676_v54 = vsel %vm5671_vm0, %v5660_v36, %v5662_v9  ;;  %v5677_v39 = vsel %vm5671_vm0, %v5658_v62, %v5660_v36  ;;  %v5672_v62 = vsel %vm5671_vm0, %v5668_v61, %v5670_v17 }
 0x444   :  { %v5675_v60 = vsel %vm5671_vm0, %v5662_v9, %v5664_v2  ;;  %10576 = vmatpush.msk.msra.mxu2 %vm18951_vm11, %v5677_v39  ;;  %10578 = vmatpush.msk.msra.mxu3 %vm18952_vm7, %v5676_v54  ;;  %vm18973_vm11 = vcmp.lt.s32.totalorder %v18869_v41, 30  ;;  %vm18975_vm7 = vcmp.lt.s32.totalorder %v18849_v42, 30 }
 0x445   :  { %10580 = vmatpush.msk.msrb.mxu0 %vm18953_vm4, %v5675_v60  ;;  %v14996_v60 = vld [vmem:[%s18038_s1 + $0x68] sm:$0xff]  ;;  %vm18976_vm4 = vcmp.lt.s32.totalorder %v18872_v13, 30 }
 0x446   :  { %10577 = vmatmul.msk.f32.vlgmr.msra.gmra.mxu2 %vm18274_vm2, %v14891_v14  ;;  %10579 = vmatmul.msk.f32.vlgmr.msra.gmra.mxu3 %vm18274_vm2, %v14891_v14 }
 0x447   :  { %10581 = vmatmul.msk.f32.vlgmr.msrb.gmra.mxu0 %vm18274_vm2, %v14891_v14  ;;  %10586 = vmatpush.msk.msrb.mxu3 %vm18955_vm8, %v5672_v62  ;;  %v6423_v62 = vpop.permute.xlu2 %6422  ;;  %vm18979_vm8 = vcmp.lt.s32.totalorder %v18864_v43, 30 }
 0x448   :  { %6097 = vmatpush.msra.mxu0 %v13923_v31  ;;  %v14998_v31 = vpop.f32.mrf.mxu2 }
 0x449   :  { %6157 = vmatpush.msra.mxu3 %v13936_v47  ;;  %18956 = vst [vmem:[#allocation106_spill] sm:$0xff] %v14998_v31  ;;  %v15012_v47 = vpop.f32.mrf.mxu1 }
 0x44a   :  { %6177 = vmatpush.msrb.mxu0 %v13962_v35  ;;  %18959 = vst [vmem:[#allocation108_spill] sm:$0xff] %v15012_v47  ;;  %v15016_v35 = vpop.f32.mrf.mxu3  ;;  %v18972_v47 = vld [vmem:[#allocation44_spill] sm:$0xff] }
 0x44b   :  { %v5666_v9 = vpop.permute.xlu1 %5665  ;;  %v14985_v36 = vpop.permute.xlu0 %6418  ;;  %18960 = vst [vmem:[#allocation86_spill] sm:$0xff] %v15016_v35 }
 0x44c   :  { %v5673_v17 = vsel %vm5671_vm0, %v5666_v9, %v5668_v61  ;;  %v5674_v54 = vsel %vm5671_vm0, %v5664_v2, %v5666_v9  ;;  %v14991_v39 = vpop.f32.mrf.mxu0  ;;  %vm18257_vm0 = vcmp.lt.s32.totalorder %v18784_v28, 126  ;;  %v19001_v28 = vld [vmem:[#allocation69_spill] sm:$0xff] }
 0x44d   :  { %10582 = vmatpush.msk.msrb.mxu1 %vm18957_vm14, %v5674_v54  ;;  %10584 = vmatpush.msk.msrb.mxu2 %vm18958_vm9, %v5673_v17  ;;  %vm18980_vm14 = vcmp.lt.s32.totalorder %v18851_v18, 30  ;;  %vm18984_vm9 = vcmp.lt.s32.totalorder %v18870_v10, 30 }
 0x44e   :  { %10583 = vmatmul.msk.f32.vlgmr.msrb.gmra.mxu1 %vm18274_vm2, %v14891_v14  ;;  %10585 = vmatmul.msk.f32.vlgmr.msrb.gmra.mxu2 %vm18274_vm2, %v14891_v14 }
 0x44f   :  { %10587 = vmatmul.msk.f32.vlgmr.msrb.gmra.mxu3 %vm18274_vm2, %v14891_v14  ;;  %10589 = vmatmul.msk.f32.vlgmr.msra.gmra.mxu0 %vm18274_vm2, %v14996_v60 }
 0x450   :  { %6117 = vmatpush.msra.mxu1 %v13932_v23  ;;  %6137 = vmatpush.msra.mxu2 %v13947_v38  ;;  %v15028_v23 = vpop.f32.mrf.mxu2  ;;  %v18963_v38 = vld [vmem:[#allocation54_spill] sm:$0xff] }
 0x451   :  { %6237 = vmatpush.msrb.mxu3 %v13981_v50  ;;  %6257 = vmatpush.msra.mxu0 %v13999_v3  ;;  %18962 = vst [vmem:[#allocation109_spill] sm:$0xff] %v15028_v23  ;;  %v18966_v50 = vld [vmem:[#allocation41_spill] sm:$0xff]  ;;  %v15038_v3 = vpop.f32.mrf.mxu1 }
 0x452   :  { %6197 = vmatpush.msrb.mxu1 %v13965_v19  ;;  %6217 = vmatpush.msrb.mxu2 %v13968_v63  ;;  %v18964_v19 = vld [vmem:[#allocation7_spill] sm:$0xff]  ;;  %18967 = vst [vmem:[#allocation89_spill] sm:$0xff] %v15038_v3  ;;  %v15040_v9 = vpop.f32.mrf.mxu3 }
 0x453   :  { %v6421_v14 = vpop.permute.xlu1 %6420  ;;  %v6425_v2 = vpop.permute.xlu0 %6424  ;;  %v18965_v63 = vld [vmem:[#allocation43_spill] sm:$0xff]  ;;  %18968 = vst [vmem:[#allocation93_spill] sm:$0xff] %v15040_v9 }
 0x454   :  { %v15022_v61 = vpop.f32.mrf.mxu0 }
 0x455   :  { %18961 = vst [vmem:[#allocation107_spill] sm:$0xff] %v15022_v61 }
 0x456   :  { %10590 = vmatmul.msk.f32.vlgmr.msra.gmra.mxu1 %vm18274_vm2, %v14996_v60  ;;  %10591 = vmatmul.msk.f32.vlgmr.msra.gmra.mxu2 %vm18274_vm2, %v14996_v60 }
 0x457   :  { %10592 = vmatmul.msk.f32.vlgmr.msra.gmra.mxu3 %vm18274_vm2, %v14996_v60  ;;  %10593 = vmatmul.msk.f32.vlgmr.msrb.gmra.mxu0 %vm18274_vm2, %v14996_v60 }
 0x458   :  { %6277 = vmatpush.msra.mxu1 %v18963_v38  ;;  %6297 = vmatpush.msra.mxu2 %v18964_v19  ;;  %v6429_v38 = vpop.permute.xlu2 %6428  ;;  %v6465_v19 = vsel %vm18257_vm0, %v14985_v36, %v6421_v14  ;;  %v15058_v3 = vpop.f32.mrf.mxu2 }
 0x459   :  { %6317 = vmatpush.msra.mxu3 %v18965_v63  ;;  %6337 = vmatpush.msrb.mxu0 %v18966_v50  ;;  %v18969_v63 = vld [vmem:[#allocation42_spill] sm:$0xff]  ;;  %v18970_v50 = vld [vmem:[#allocation47_spill] sm:$0xff]  ;;  %18971 = vst [vmem:[#allocation6_spill] sm:$0xff] %v15058_v3 }
 0x45a   :  { %v15067_v48 = vpop.f32.mrf.mxu3 }
 0x45c   :  { %v6427_v17 = vpop.permute.xlu1 %6426  ;;  %v15042_v54 = vpop.f32.mrf.mxu0 }
 0x45d   :  { %v6431_v23 = vpop.permute.xlu0 %6430 }
 0x45e   :  { %10594 = vmatmul.msk.f32.vlgmr.msrb.gmra.mxu1 %vm18274_vm2, %v14996_v60  ;;  %10595 = vmatmul.msk.f32.vlgmr.msrb.gmra.mxu2 %vm18274_vm2, %v14996_v60 }
 0x45f   :  { %10596 = vmatmul.msk.f32.vlgmr.msrb.gmra.mxu3 %vm18274_vm2, %v14996_v60  ;;  %10597 = vmatmul.msk.f32.vlgmr.msra.gmra.mxu0 %vm18274_vm2, %v14996_v60 }
 0x460   :  { %6357 = vmatpush.msrb.mxu1 %v18969_v63  ;;  %6377 = vmatpush.msrb.mxu2 %v18970_v50  ;;  %v6464_v63 = vsel %vm18257_vm0, %v6421_v14, %v6423_v62  ;;  %v6462_v50 = vsel %vm18257_vm0, %v6425_v2, %v6427_v17  ;;  %v6435_v14 = vpop.permute.xlu2 %6434 }
 0x461   :  { %6397 = vmatpush.msrb.mxu3 %v18972_v47  ;;  %10606 = vmatpush.msk.msra.mxu0 %vm18973_vm11, %v6465_v19  ;;  %v6463_v47 = vsel %vm18257_vm0, %v6423_v62, %v6425_v2  ;;  %v6461_v19 = vsel %vm18257_vm0, %v6427_v17, %v6429_v38  ;;  %v15102_v17 = vld [vmem:[%s18038_s1 + $0x70] sm:$0xff]  ;;  %vm18985_vm11 = vcmp.lt.s32.totalorder %v18893_v40, 30 }
 0x463   :  { %v15063_v9 = vpop.f32.mrf.mxu1 }
 0x464   :  { %18974 = vst [vmem:[#allocation70_spill] sm:$0xff] %v15063_v9  ;;  %v6433_v31 = vpop.permute.xlu1 %6432  ;;  %v15065_v35 = vpop.f32.mrf.mxu0 }
 0x465   :  { %v6437_v9 = vpop.permute.xlu0 %6436 }
 0x466   :  { %10598 = vmatmul.msk.f32.vlgmr.msra.gmra.mxu1 %vm18274_vm2, %v14996_v60  ;;  %10599 = vmatmul.msk.f32.vlgmr.msra.gmra.mxu2 %vm18274_vm2, %v14996_v60 }
 0x467   :  { %10600 = vmatmul.msk.f32.vlgmr.msra.gmra.mxu3 %vm18274_vm2, %v14996_v60  ;;  %10601 = vmatmul.msk.f32.vlgmr.msrb.gmra.mxu0 %vm18274_vm2, %v14996_v60 }
 0x468   :  { %10608 = vmatpush.msk.msra.mxu1 %vm18266_vm1, %v6464_v63  ;;  %10610 = vmatpush.msk.msra.mxu2 %vm18265_vm12, %v6463_v47  ;;  %v6460_v63 = vsel %vm18257_vm0, %v6429_v38, %v6431_v23  ;;  %v15110_v47 = vpop.f32.mrf.mxu3  ;;  %v6441_v38 = vpop.permute.xlu2 %6440  ;;  %vm19005_vm12 = vcmp.ge.s32.totalorder %v18851_v18, 2 }
 0x469   :  { %10612 = vmatpush.msk.msra.mxu3 %vm18975_vm7, %v6462_v50  ;;  %10614 = vmatpush.msk.msrb.mxu0 %vm18976_vm4, %v6461_v19  ;;  %18978 = vst [vmem:[#allocation72_spill] sm:$0xff] %v15110_v47  ;;  %v6459_v19 = vsel %vm18257_vm0, %v6431_v23, %v6433_v31  ;;  %v6458_v50 = vsel %vm18257_vm0, %v6433_v31, %v6435_v14  ;;  %vm4277_vm7 = vcmp.lt.s32.totalorder %v18841_v25, 30  ;;  %vm18988_vm4 = vcmp.ge.s32.totalorder %v18869_v41, 2 }
 0x46a   :  { %v15093_v62 = vpop.f32.mrf.mxu2 }
 0x46b   :  { %v15095_v3 = vpop.f32.mrf.mxu1 }
 0x46c   :  { %18977 = vst [vmem:[#allocation51_spill] sm:$0xff] %v15095_v3  ;;  %v6439_v61 = vpop.permute.xlu1 %6438  ;;  %v15097_v2 = vpop.f32.mrf.mxu0  ;;  %v6457_v3 = vsel %vm18257_vm0, %v6435_v14, %v6437_v9 }
 0x46e   :  { %10602 = vmatmul.msk.f32.vlgmr.msrb.gmra.mxu1 %vm18274_vm2, %v14996_v60  ;;  %10603 = vmatmul.msk.f32.vlgmr.msrb.gmra.mxu2 %vm18274_vm2, %v14996_v60 }
 0x46f   :  { %10604 = vmatmul.msk.f32.vlgmr.msrb.gmra.mxu3 %vm18274_vm2, %v14996_v60  ;;  %10607 = vmatmul.msk.f32.vlgmr.msra.gmra.mxu0 %vm18274_vm2, %v15102_v17  ;;  %v6443_v60 = vpop.permute.xlu0 %6442 }
 0x470   :  { %10616 = vmatpush.msk.msrb.mxu1 %vm18264_vm6, %v6460_v63  ;;  %10618 = vmatpush.msk.msrb.mxu2 %vm18979_vm8, %v6459_v19  ;;  %v6456_v19 = vsel %vm18257_vm0, %v6437_v9, %v6439_v61  ;;  %vm6856_vm8 = vmand %vm4277_vm7, %vm18988_vm4  ;;  %vm4280_vm4 = vcmp.lt.s32.totalorder %v18827_v55, 30  ;;  %vm18268_vm6 = vcmp.lt.s32.totalorder %v18846_v27, 30 }
 0x471   :  { %10620 = vmatpush.msk.msrb.mxu3 %vm18980_vm14, %v6458_v50  ;;  %10622 = vmatpush.msk.msra.mxu0 %vm18262_vm3, %v6457_v3  ;;  %v6455_v3 = vsel %vm18257_vm0, %v6439_v61, %v6441_v38  ;;  %v6454_v50 = vsel %vm18257_vm0, %v6441_v38, %v6443_v60  ;;  %vm18989_vm14 = vcmp.lt.s32.totalorder %v18894_v21, 30 }
 0x472   :  { %v15130_v23 = vpop.f32.mrf.mxu2 }
 0x473   :  { %18981 = vst [vmem:[#allocation91_spill] sm:$0xff] %v15130_v23  ;;  %v15132_v31 = vpop.f32.mrf.mxu1 }
 0x474   :  { %18982 = vst [vmem:[#allocation95_spill] sm:$0xff] %v15132_v31  ;;  %v6445_v47 = vpop.permute.xlu1 %6444  ;;  %v15134_v14 = vpop.f32.mrf.mxu0 }
 0x475   :  { %v6453_v63 = vsel %vm18257_vm0, %v6443_v60, %v6445_v47  ;;  %v15156_v31 = vpop.f32.mrf.mxu3 }
 0x476   :  { %10609 = vmatmul.msk.f32.vlgmr.msra.gmra.mxu1 %vm18274_vm2, %v15102_v17  ;;  %10611 = vmatmul.msk.f32.vlgmr.msra.gmra.mxu2 %vm18274_vm2, %v15102_v17  ;;  %18983 = vst [vmem:[#allocation102_spill] sm:$0xff] %v15156_v31 }
 0x477   :  { %10613 = vmatmul.msk.f32.vlgmr.msra.gmra.mxu3 %vm18274_vm2, %v15102_v17  ;;  %10615 = vmatmul.msk.f32.vlgmr.msrb.gmra.mxu0 %vm18274_vm2, %v15102_v17  ;;  %v6449_v60 = vpop.permute.xlu0 %6448 }
 0x478   :  { %10624 = vmatpush.msk.msra.mxu1 %vm18261_vm13, %v6456_v19  ;;  %10626 = vmatpush.msk.msra.mxu2 %vm18260_vm5, %v6455_v3  ;;  %v6447_v19 = vpop.permute.xlu2 %6446  ;;  %vm18996_vm5 = vcmp.ge.s32.totalorder %v18849_v42, 2 }
 0x479   :  { %10628 = vmatpush.msk.msra.mxu3 %vm18984_vm9, %v6454_v50  ;;  %10630 = vmatpush.msk.msrb.mxu0 %vm18985_vm11, %v6453_v63  ;;  %v6452_v63 = vsel %vm18257_vm0, %v6445_v47, %v6447_v19  ;;  %v6451_v3 = vsel %vm18257_vm0, %v6447_v19, %v6449_v60  ;;  %v6466_v50 = vsel %vm18257_vm0, %v6449_v60, %v14985_v36  ;;  %vm4278_vm9 = vcmp.lt.s32.totalorder %v18825_v32, 30  ;;  %v18990_v47 = vld [vmem:[#allocation46_spill] sm:$0xff]  ;;  %vm6859_vm13 = vmand %vm4280_vm4, %vm18996_vm5 }
 0x47a   :  { %v15162_v61 = vpop.f32.mrf.mxu2  ;;  %vm4279_vm11 = vcmp.lt.s32.totalorder %v18826_v45, 30  ;;  %vm18267_vm5 = vcmp.lt.s32.totalorder %v18831_v57, 30 }
 0x47b   :  { %18986 = vst [vmem:[#allocation84_spill] sm:$0xff] %v15162_v61  ;;  %v15164_v9 = vpop.f32.mrf.mxu1  ;;  %v19009_v61 = vld [vmem:[#allocation76_spill] sm:$0xff] }
 0x47c   :  { %18987 = vst [vmem:[#allocation100_spill] sm:$0xff] %v15164_v9  ;;  %v15167_v38 = vpop.f32.mrf.mxu0 }
 0x47d   :  { %v15200_v36 = vpop.f32.mrf.mxu3 }
 0x47e   :  { %10617 = vmatmul.msk.f32.vlgmr.msrb.gmra.mxu1 %vm18274_vm2, %v15102_v17  ;;  %10619 = vmatmul.msk.f32.vlgmr.msrb.gmra.mxu2 %vm18274_vm2, %v15102_v17  ;;  %18992 = vst [vmem:[#allocation48_spill] sm:$0xff] %v15200_v36  ;;  %v19010_v36 = vld [vmem:[#allocation71_spill] sm:$0xff] }
 0x47f   :  { %10621 = vmatmul.msk.f32.vlgmr.msrb.gmra.mxu3 %vm18274_vm2, %v15102_v17  ;;  %10623 = vmatmul.msk.f32.vlgmr.msra.gmra.mxu0 %vm18274_vm2, %v15102_v17 }
 0x480   :  { %10632 = vmatpush.msk.msrb.mxu1 %vm18989_vm14, %v6452_v63  ;;  %10634 = vmatpush.msk.msrb.mxu2 %vm18258_vm10, %v6451_v3  ;;  %vm18994_vm14 = vcmp.ge.s32.totalorder %v18855_v37, 2  ;;  %vm4281_vm10 = vcmp.lt.s32.totalorder %v18845_v51, 30  ;;  %v18998_v3 = vld [vmem:[#allocation68_spill] sm:$0xff] }
 0x481   :  { %10636 = vmatpush.msk.msrb.mxu3 %vm18259_vm15, %v6466_v50  ;;  %10639 = vmatpush.msk.msra.mxu0 %vm6856_vm8, %v18990_v47  ;;  %vm6857_vm0 = vmand %vm4278_vm9, %vm18994_vm14  ;;  %vm18995_vm8 = vcmp.ge.s32.totalorder %v18857_v33, 2  ;;  %vm18997_vm14 = vcmp.ge.s32.totalorder %v18872_v13, 2  ;;  %v18999_v50 = vld [vmem:[#allocation62_spill] sm:$0xff] }
 0x482   :  { %v15197_v19 = vpop.f32.mrf.mxu2  ;;  %vm6858_vm15 = vmand %vm4279_vm11, %vm18995_vm8  ;;  %v19000_v47 = vld [vmem:[#allocation74_spill] sm:$0xff]  ;;  %vm18270_vm8 = vcmp.lt.s32.totalorder %v18832_v59, 30 }
 0x483   :  { %18991 = vst [vmem:[#allocation103_spill] sm:$0xff] %v15197_v19  ;;  %v15202_v60 = vpop.f32.mrf.mxu1  ;;  %vm6860_vm3 = vmand %vm4281_vm10, %vm18997_vm14  ;;  %vm18269_vm14 = vcmp.lt.s32.totalorder %v18835_v24, 30 }
 0x484   :  { %18993 = vst [vmem:[#allocation85_spill] sm:$0xff] %v15202_v60  ;;  %v15209_v63 = vpop.f32.mrf.mxu0  ;;  %vm6863_vm1 = vmand %vm18269_vm14, %vm19005_vm12  ;;  %vm18271_vm12 = vcmp.lt.s32.totalorder %v18836_v0, 30 }
 0x486   :  { %10625 = vmatmul.msk.f32.vlgmr.msra.gmra.mxu1 %vm18274_vm2, %v15102_v17  ;;  %10627 = vmatmul.msk.f32.vlgmr.msra.gmra.mxu2 %vm18274_vm2, %v15102_v17 }
 0x487   :  { %10629 = vmatmul.msk.f32.vlgmr.msra.gmra.mxu3 %vm18274_vm2, %v15102_v17  ;;  %10631 = vmatmul.msk.f32.vlgmr.msrb.gmra.mxu0 %vm18274_vm2, %v15102_v17 }
 0x488   :  { %10641 = vmatpush.msk.msra.mxu1 %vm6857_vm0, %v18998_v3  ;;  %10643 = vmatpush.msk.msra.mxu2 %vm6858_vm15, %v18999_v50  ;;  %vm19003_vm0 = vcmp.ge.s32.totalorder %v18860_v44, 2  ;;  %v19007_v50 = vld [vmem:[#allocation67_spill] sm:$0xff] }
 0x489   :  { %10645 = vmatpush.msk.msra.mxu3 %vm6859_vm13, %v19000_v47  ;;  %10647 = vmatpush.msk.msrb.mxu0 %vm6860_vm3, %v19001_v28  ;;  %v15240_v19 = vpop.f32.mrf.mxu3  ;;  %vm6861_vm15 = vmand %vm18267_vm5, %vm19003_vm0  ;;  %v15254_v28 = vld [vmem:[%s18038_s1 + $0x78] sm:$0xff]  ;;  %vm19004_vm3 = vcmp.ge.s32.totalorder %v18864_v43, 2  ;;  %vm19006_vm0 = vcmp.ge.s32.totalorder %v18884_v16, 2 }
 0x48a   :  { %v15237_v60 = vpop.f32.mrf.mxu2  ;;  %vm6862_vm13 = vmand %vm18270_vm8, %vm19004_vm3  ;;  %v19008_v47 = vld [vmem:[#allocation64_spill] sm:$0xff]  ;;  %vm4287_vm3 = vcmp.lt.s32.totalorder %v18839_v12, 30  ;;  %v19083_v12 = vld [vmem:[#allocation99_spill] sm:$0xff] }
 0x48b   :  { %v15242_v9 = vpop.f32.mrf.mxu1  ;;  %vm6864_vm5 = vmand %vm18268_vm6, %vm19006_vm0  ;;  %vm18273_vm0 = vcmp.lt.s32.totalorder %v18840_v34, 30  ;;  %vm19012_vm6 = vcmp.ge.s32.totalorder %v18880_v26, 2 }
 0x48c   :  { %19002 = vst [vmem:[#allocation87_spill] sm:$0xff] %v15242_v9  ;;  %v15249_v3 = vpop.f32.mrf.mxu0  ;;  %vm6865_vm14 = vmand %vm18271_vm12, %vm19012_vm6  ;;  %vm19018_vm6 = vcmp.ge.s32.totalorder %v18893_v40, 2 }
 0x48e   :  { %10633 = vmatmul.msk.f32.vlgmr.msrb.gmra.mxu1 %vm18274_vm2, %v15102_v17  ;;  %10635 = vmatmul.msk.f32.vlgmr.msrb.gmra.mxu2 %vm18274_vm2, %v15102_v17 }
 0x48f   :  { %10637 = vmatmul.msk.f32.vlgmr.msrb.gmra.mxu3 %vm18274_vm2, %v15102_v17  ;;  %10640 = vmatmul.msk.f32.vlgmr.msra.gmra.mxu0 %vm18274_vm2, %v15254_v28 }
 0x490   :  { %10649 = vmatpush.msk.msrb.mxu1 %vm6861_vm15, %v19007_v50  ;;  %10651 = vmatpush.msk.msrb.mxu2 %vm6862_vm13, %v19008_v47  ;;  %vm18272_vm15 = vcmp.lt.s32.totalorder %v18858_v29, 30  ;;  %vm19017_vm13 = vcmp.ge.s32.totalorder %v18870_v10, 2  ;;  %v19020_v47 = vld [vmem:[#allocation79_spill] sm:$0xff] }
 0x491   :  { %10653 = vmatpush.msk.msrb.mxu3 %vm6863_vm1, %v19009_v61  ;;  %10655 = vmatpush.msk.msra.mxu0 %vm6864_vm5, %v19010_v36  ;;  %vm19015_vm1 = vcmp.ge.s32.totalorder %v18882_v4, 2  ;;  %v15298_v61 = vpop.f32.mrf.mxu3  ;;  %vm6867_vm8 = vmand %vm18273_vm0, %vm19017_vm13  ;;  %v19019_v36 = vld [vmem:[#allocation75_spill] sm:$0xff]  ;;  %vm4291_vm13 = vcmp.lt.s32.totalorder %v18856_v20, 30 }
 0x492   :  { %v15290_v17 = vpop.f32.mrf.mxu2  ;;  %vm6866_vm5 = vmand %vm4287_vm3, %vm19015_vm1  ;;  %19016 = vst [vmem:[#allocation94_spill] sm:$0xff] %v15298_v61  ;;  %vm4290_vm1 = vcmp.lt.s32.totalorder %v18859_v7, 30  ;;  %v19089_v7 = vld [vmem:[#allocation78_spill] sm:$0xff] }
 0x493   :  { %v15283_v23 = vpop.f32.mrf.mxu1  ;;  %19013 = vst [vmem:[#allocation111_spill] sm:$0xff] %v15290_v17  ;;  %vm6868_vm12 = vmand %vm18272_vm15, %vm19018_vm6  ;;  %vm4292_vm6 = vcmp.lt.s32.totalorder %v18850_v30, 30  ;;  %vm19022_vm15 = vcmp.ge.s32.totalorder %v18894_v21, 2 }
 0x494   :  { %19011 = vst [vmem:[#allocation110_spill] sm:$0xff] %v15283_v23  ;;  %v15292_v50 = vpop.f32.mrf.mxu0 }
 0x495   :  { %19014 = vst [vmem:[#allocation88_spill] sm:$0xff] %v15292_v50 }
 0x496   :  { %10642 = vmatmul.msk.f32.vlgmr.msra.gmra.mxu1 %vm18274_vm2, %v15254_v28  ;;  %10644 = vmatmul.msk.f32.vlgmr.msra.gmra.mxu2 %vm18274_vm2, %v15254_v28 }
 0x497   :  { %10646 = vmatmul.msk.f32.vlgmr.msra.gmra.mxu3 %vm18274_vm2, %v15254_v28  ;;  %10648 = vmatmul.msk.f32.vlgmr.msrb.gmra.mxu0 %vm18274_vm2, %v15254_v28 }
 0x498   :  { %10657 = vmatpush.msk.msra.mxu1 %vm6865_vm14, %v19019_v36  ;;  %10659 = vmatpush.msk.msra.mxu2 %vm6866_vm5, %v19020_v47  ;;  %vm6869_vm14 = vmand %vm4290_vm1, %vm19022_vm15  ;;  %vm19023_vm5 = vcmp.ge.s32.totalorder %v18895_v6, 2  ;;  %v19027_v36 = vld [vmem:[#allocation83_spill] sm:$0xff]  ;;  %v19028_v47 = vld [vmem:[#allocation77_spill] sm:$0xff]  ;;  %vm19042_vm15 = vcmp.lt.s32.totalorder %v18832_v59, 30 }
 0x499   :  { %10661 = vmatpush.msk.msra.mxu3 %vm6867_vm8, %v14604_v52  ;;  %10663 = vmatpush.msk.msrb.mxu0 %vm6868_vm12, %v14600_v15  ;;  %vm6870_vm8 = vmand %vm4291_vm13, %vm19023_vm5  ;;  %vm19025_vm12 = vcmp.ge.s32.totalorder %v18898_v5, 2  ;;  %v15345_v15 = vpop.f32.mrf.mxu3  ;;  %vm19046_vm5 = vcmp.lt.s32.totalorder %v18846_v27, 30 }
 0x49a   :  { %v15335_v52 = vpop.f32.mrf.mxu2  ;;  %vm6871_vm0 = vmand %vm4292_vm6, %vm19025_vm12  ;;  %19026 = vst [vmem:[#allocation105_spill] sm:$0xff] %v15345_v15  ;;  %v19037_v15 = vld [vmem:[#allocation60_spill] sm:$0xff]  ;;  %vm19053_vm12 = vcmp.lt.s32.totalorder %v18840_v34, 30 }
 0x49b   :  { %v15322_v23 = vpop.f32.mrf.mxu1  ;;  %19024 = vst [vmem:[#allocation104_spill] sm:$0xff] %v15335_v52  ;;  %v19030_v52 = vld [vmem:[#allocation55_spill] sm:$0xff] }
 0x49c   :  { %19021 = vst [vmem:[#allocation96_spill] sm:$0xff] %v15322_v23  ;;  %v15325_v61 = vpop.f32.mrf.mxu0  ;;  %v19029_v23 = vld [vmem:[#allocation73_spill] sm:$0xff] }
 0x49e   :  { %10650 = vmatmul.msk.f32.vlgmr.msrb.gmra.mxu1 %vm18274_vm2, %v15254_v28  ;;  %10652 = vmatmul.msk.f32.vlgmr.msrb.gmra.mxu2 %vm18274_vm2, %v15254_v28 }
 0x49f   :  { %10654 = vmatmul.msk.f32.vlgmr.msrb.gmra.mxu3 %vm18274_vm2, %v15254_v28  ;;  %10656 = vmatmul.msk.f32.vlgmr.msra.gmra.mxu0 %vm18274_vm2, %v15254_v28 }
 0x4a0   :  { %10665 = vmatpush.msk.msrb.mxu1 %vm6869_vm14, %v19027_v36  ;;  %10667 = vmatpush.msk.msrb.mxu2 %vm6870_vm8, %v19028_v47  ;;  %v19033_v36 = vld [vmem:[#allocation45_spill] sm:$0xff]  ;;  %vm19044_vm14 = vcmp.lt.s32.totalorder %v18835_v24, 30  ;;  %vm19050_vm8 = vcmp.lt.s32.totalorder %v18836_v0, 30 }
 0x4a1   :  { %10669 = vmatpush.msk.msrb.mxu3 %vm6871_vm0, %v19029_v23  ;;  %10672 = vmatpush.msk.msra.mxu0 %vm4277_vm7, %v19030_v52  ;;  %v19034_v52 = vld [vmem:[#allocation52_spill] sm:$0xff]  ;;  %v15377_v47 = vpop.f32.mrf.mxu3  ;;  %vm19040_vm0 = vcmp.lt.s32.totalorder %v18831_v57, 30 }
 0x4a2   :  { %v15369_v23 = vpop.f32.mrf.mxu2  ;;  %19035 = vst [vmem:[#allocation12_spill] sm:$0xff] %v15377_v47 }
 0x4a3   :  { %v15359_v31 = vpop.f32.mrf.mxu1  ;;  %19032 = vst [vmem:[#allocation13_spill] sm:$0xff] %v15369_v23 }
 0x4a4   :  { %v15357_v17 = vpop.f32.mrf.mxu0  ;;  %19031 = vst [vmem:[#allocation5_spill] sm:$0xff] %v15359_v31  ;;  %v19036_v31 = vld [vmem:[#allocation59_spill] sm:$0xff] }
 0x4a6   :  { %10658 = vmatmul.msk.f32.vlgmr.msra.gmra.mxu1 %vm18274_vm2, %v15254_v28  ;;  %10660 = vmatmul.msk.f32.vlgmr.msra.gmra.mxu2 %vm18274_vm2, %v15254_v28 }
 0x4a7   :  { %10662 = vmatmul.msk.f32.vlgmr.msra.gmra.mxu3 %vm18274_vm2, %v15254_v28  ;;  %10664 = vmatmul.msk.f32.vlgmr.msrb.gmra.mxu0 %vm18274_vm2, %v15254_v28 }
 0x4a8   :  { %10674 = vmatpush.msk.msra.mxu1 %vm4278_vm9, %v19033_v36  ;;  %10676 = vmatpush.msk.msra.mxu2 %vm4279_vm11, %v19034_v52  ;;  %v15390_v36 = vld [vmem:[%s18038_s1 + $0x80] sm:$0xff] }
 0x4a9   :  { %10678 = vmatpush.msk.msra.mxu3 %vm4280_vm4, %v19036_v31  ;;  %10680 = vmatpush.msk.msrb.mxu0 %vm4281_vm10, %v19037_v15  ;;  %v5163_v31 = vadd.f32 %v15237_v60, %v15093_v62  ;;  %v19039_v15 = vld [vmem:[#allocation50_spill] sm:$0xff]  ;;  %v19041_v52 = vld [vmem:[#allocation57_spill] sm:$0xff] }
 0x4aa   :  { %v19045_v62 = vld [vmem:[#allocation49_spill] sm:$0xff] }
 0x4ab   :  { %v15392_v23 = vpop.f32.mrf.mxu1 }
 0x4ac   :  { %v15385_v50 = vpop.f32.mrf.mxu0  ;;  %19038 = vst [vmem:[#allocation9_spill] sm:$0xff] %v15392_v23  ;;  %v19043_v23 = vld [vmem:[#allocation82_spill] sm:$0xff] }
 0x4ae   :  { %10666 = vmatmul.msk.f32.vlgmr.msrb.gmra.mxu1 %vm18274_vm2, %v15254_v28  ;;  %10668 = vmatmul.msk.f32.vlgmr.msrb.gmra.mxu2 %vm18274_vm2, %v15254_v28 }
 0x4af   :  { %10670 = vmatmul.msk.f32.vlgmr.msrb.gmra.mxu3 %vm18274_vm2, %v15254_v28  ;;  %10673 = vmatmul.msk.f32.vlgmr.msra.gmra.mxu0 %vm18274_vm2, %v15390_v36 }
 0x4b0   :  { %10682 = vmatpush.msk.msrb.mxu1 %vm19040_vm0, %v19039_v15  ;;  %10684 = vmatpush.msk.msrb.mxu2 %vm19042_vm15, %v19041_v52  ;;  %v5600_v47 = vpop.f32.mrf.mxu2  ;;  %v19052_v15 = vld [vmem:[#allocation66_spill] sm:$0xff]  ;;  %v19054_v52 = vld [vmem:[#allocation63_spill] sm:$0xff]  ;;  %vm19055_vm0 = vcmp.lt.s32.totalorder %v18858_v29, 30  ;;  %vm19056_vm15 = vcmp.lt.s32.totalorder %v18869_v41, 30 }
 0x4b1   :  { %10686 = vmatpush.msk.msrb.mxu3 %vm19044_vm14, %v19043_v23  ;;  %10688 = vmatpush.msk.msra.mxu0 %vm19046_vm5, %v19045_v62  ;;  %v15416_v60 = vadd.f32 %v5600_v47, %v5163_v31  ;;  %v15418_v28 = vpop.f32.mrf.mxu3  ;;  %v19049_v47 = vld [vmem:[#allocation58_spill] sm:$0xff]  ;;  %v19051_v31 = vld [vmem:[#allocation56_spill] sm:$0xff]  ;;  %vm7650_vm14 = vmand %vm4277_vm7, %vm19056_vm15  ;;  %vm19060_vm7 = vcmp.lt.s32.totalorder %v18855_v37, 30 }
 0x4b2   :  { %vm7651_vm5 = vmand %vm4278_vm9, %vm19060_vm7  ;;  %vm19063_vm9 = vcmp.lt.s32.totalorder %v18872_v13, 30  ;;  %vm19066_vm7 = vcmp.lt.s32.totalorder %v18864_v43, 30  ;;  %v19072_v43 = vld [vmem:[#allocation80_spill] sm:$0xff] }
 0x4b4   :  { %v15420_v9 = vpop.f32.mrf.mxu0  ;;  %v15430_v23 = vpop.f32.mrf.mxu1 }
 0x4b5   :  { %19047 = vst [vmem:[#allocation19_spill] sm:$0xff] %v15420_v9 }
 0x4b6   :  { %10675 = vmatmul.msk.f32.vlgmr.msra.gmra.mxu1 %vm18274_vm2, %v15390_v36  ;;  %10677 = vmatmul.msk.f32.vlgmr.msra.gmra.mxu2 %vm18274_vm2, %v15390_v36  ;;  %19048 = vst [vmem:[#allocation17_spill] sm:$0xff] %v15430_v23 }
 0x4b7   :  { %10679 = vmatmul.msk.f32.vlgmr.msra.gmra.mxu3 %vm18274_vm2, %v15390_v36  ;;  %10681 = vmatmul.msk.f32.vlgmr.msrb.gmra.mxu0 %vm18274_vm2, %v15390_v36 }
 0x4b8   :  { %10690 = vmatpush.msk.msra.mxu1 %vm19050_vm8, %v19049_v47  ;;  %10692 = vmatpush.msk.msra.mxu2 %vm4287_vm3, %v19051_v31  ;;  %v19057_v47 = vld [vmem:[#allocation65_spill] sm:$0xff]  ;;  %vm19061_vm8 = vcmp.lt.s32.totalorder %v18857_v33, 30 }
 0x4b9   :  { %10694 = vmatpush.msk.msra.mxu3 %vm19053_vm12, %v19052_v15  ;;  %10696 = vmatpush.msk.msrb.mxu0 %vm19055_vm0, %v19054_v52  ;;  %v15444_v62 = vpop.f32.mrf.mxu2  ;;  %v15446_v9 = vpop.f32.mrf.mxu3  ;;  %v19058_v31 = vld [vmem:[#allocation61_spill] sm:$0xff]  ;;  %vm7652_vm12 = vmand %vm4279_vm11, %vm19061_vm8  ;;  %vm19062_vm0 = vcmp.lt.s32.totalorder %v18849_v42, 30  ;;  %vm19065_vm11 = vcmp.lt.s32.totalorder %v18831_v57, 30  ;;  %v19073_v57 = vld [vmem:[#allocation90_spill] sm:$0xff] }
 0x4ba   :  { %v19059_v15 = vld [vmem:[#allocation53_spill] sm:$0xff]  ;;  %vm7653_vm15 = vmand %vm4280_vm4, %vm19062_vm0  ;;  %vm19069_vm0 = vcmp.lt.s32.totalorder %v18835_v24, 30 }
 0x4bb   :  { %v10704_v33 = vld [vmem:[%s18038_s1 + $0x88] sm:$0xff] }
 0x4bc   :  { %v15448_v23 = vpop.f32.mrf.mxu0  ;;  %v15476_v52 = vpop.f32.mrf.mxu1 }
 0x4be   :  { %10683 = vmatmul.msk.f32.vlgmr.msrb.gmra.mxu1 %vm18274_vm2, %v15390_v36  ;;  %10685 = vmatmul.msk.f32.vlgmr.msrb.gmra.mxu2 %vm18274_vm2, %v15390_v36 }
 0x4bf   :  { %10687 = vmatmul.msk.f32.vlgmr.msrb.gmra.mxu3 %vm18274_vm2, %v15390_v36  ;;  %10689 = vmatmul.msk.f32.vlgmr.msra.gmra.mxu0 %vm18274_vm2, %v15390_v36 }
 0x4c0   :  { %10698 = vmatpush.msk.msrb.mxu1 %vm4290_vm1, %v19057_v47  ;;  %10700 = vmatpush.msk.msrb.mxu2 %vm4291_vm13, %v19058_v31  ;;  %v4883_v31 = vadd.f32 %v15097_v2, %v14991_v39 }
 0x4c1   :  { %10702 = vmatpush.msk.msrb.mxu3 %vm4292_vm6, %v19059_v15  ;;  %10705 = vmatpush.msk.msra.mxu0 %vm7650_vm14, %v14671_v56  ;;  %v15472_v25 = vpop.f32.mrf.mxu2  ;;  %v15474_v41 = vpop.f32.mrf.mxu3  ;;  %vm7654_vm14 = vmand %vm4281_vm10, %vm19063_vm9  ;;  %vm19064_vm10 = vcmp.lt.s32.totalorder %v18860_v44, 30  ;;  %vm19070_vm9 = vcmp.lt.s32.totalorder %v18884_v16, 30 }
 0x4c2   :  { %vm7655_vm4 = vmand %vm19065_vm11, %vm19064_vm10  ;;  %vm19075_vm11 = vcmp.lt.s32.totalorder %v18880_v26, 30 }
 0x4c4   :  { %v15482_v47 = vpop.f32.mrf.mxu0 }
 0x4c6   :  { %10691 = vmatmul.msk.f32.vlgmr.msra.gmra.mxu1 %vm18274_vm2, %v15390_v36  ;;  %10693 = vmatmul.msk.f32.vlgmr.msra.gmra.mxu2 %vm18274_vm2, %v15390_v36 }
 0x4c7   :  { %10695 = vmatmul.msk.f32.vlgmr.msra.gmra.mxu3 %vm18274_vm2, %v15390_v36  ;;  %10697 = vmatmul.msk.f32.vlgmr.msrb.gmra.mxu0 %vm18274_vm2, %v15390_v36 }
 0x4c8   :  { %10707 = vmatpush.msk.msra.mxu1 %vm7651_vm5, %v14701_v49  ;;  %10709 = vmatpush.msk.msra.mxu2 %vm7652_vm12, %v14697_v1  ;;  %vm19067_vm5 = vcmp.lt.s32.totalorder %v18832_v59, 30  ;;  %vm19068_vm12 = vcmp.lt.s32.totalorder %v18851_v18, 30  ;;  %v19074_v59 = vld [vmem:[#allocation81_spill] sm:$0xff] }
 0x4c9   :  { %10711 = vmatpush.msk.msra.mxu3 %vm7653_vm15, %v14729_v53  ;;  %10713 = vmatpush.msk.msrb.mxu0 %vm7654_vm14, %v14756_v8  ;;  %v15508_v32 = vpop.f32.mrf.mxu2  ;;  %v15510_v45 = vpop.f32.mrf.mxu3  ;;  %vm7656_vm8 = vmand %vm19067_vm5, %vm19066_vm7  ;;  %vm19071_vm14 = vcmp.lt.s32.totalorder %v18846_v27, 30  ;;  %vm19076_vm7 = vcmp.lt.s32.totalorder %v18836_v0, 30  ;;  %v19082_v0 = vld [vmem:[#allocation92_spill] sm:$0xff]  ;;  %v19084_v27 = vld [vmem:[#allocation97_spill] sm:$0xff] }
 0x4ca   :  { %vm7657_vm15 = vmand %vm19069_vm0, %vm19068_vm12  ;;  %vm19078_vm12 = vcmp.lt.s32.totalorder %v18870_v10, 30  ;;  %vm19079_vm0 = vcmp.lt.s32.totalorder %v18840_v34, 30  ;;  %v19085_v34 = vld [vmem:[#allocation98_spill] sm:$0xff] }
 0x4cb   :  { %v15512_v55 = vpop.f32.mrf.mxu1  ;;  %vm7658_vm10 = vmand %vm19071_vm14, %vm19070_vm9  ;;  %vm19080_vm9 = vcmp.lt.s32.totalorder %v18893_v40, 30  ;;  %vm19081_vm14 = vcmp.lt.s32.totalorder %v18858_v29, 30 }
 0x4cc   :  { %v15518_v13 = vpop.f32.mrf.mxu0  ;;  %vm7659_vm5 = vmand %vm19076_vm7, %vm19075_vm11  ;;  %vm19087_vm7 = vcmp.lt.s32.totalorder %v18895_v6, 30 }
 0x4ce   :  { %10699 = vmatmul.msk.f32.vlgmr.msrb.gmra.mxu1 %vm18274_vm2, %v15390_v36  ;;  %10701 = vmatmul.msk.f32.vlgmr.msrb.gmra.mxu2 %vm18274_vm2, %v15390_v36 }
 0x4cf   :  { %10703 = vmatmul.msk.f32.vlgmr.msrb.gmra.mxu3 %vm18274_vm2, %v15390_v36  ;;  %10706 = vmatmul.msk.f32.vlgmr.msra.gmra.mxu0 %vm18274_vm2, %v10704_v33 }
 0x4d0   :  { %10715 = vmatpush.msk.msrb.mxu1 %vm7655_vm4, %v14751_v22  ;;  %10717 = vmatpush.msk.msrb.mxu2 %vm7656_vm8, %v19072_v43  ;;  %vm19077_vm4 = vcmp.lt.s32.totalorder %v18882_v4, 30  ;;  %v5623_v43 = vadd.f32 %v15249_v3, %v4883_v31 }
 0x4d1   :  { %10719 = vmatpush.msk.msrb.mxu3 %vm7657_vm15, %v19073_v57  ;;  %10721 = vmatpush.msk.msra.mxu0 %vm7658_vm10, %v19074_v59  ;;  %v15546_v44 = vpop.f32.mrf.mxu2  ;;  %vm7660_vm8 = vmand %vm4287_vm3, %vm19077_vm4  ;;  %vm19086_vm3 = vcmp.lt.s32.totalorder %v18894_v21, 30  ;;  %vm19088_vm4 = vcmp.lt.s32.totalorder %v18898_v5, 30 }
 0x4d2   :  { %v15548_v24 = vpop.f32.mrf.mxu3  ;;  %vm7661_vm15 = vmand %vm19079_vm0, %vm19078_vm12  ;;  %v6061_v57 = vadd.f32 %v15385_v50, %v5623_v43  ;;  %v6075_v3 = vadd.f32 %v15546_v44, %v15416_v60 }
 0x4d3   :  { %v15550_v37 = vpop.f32.mrf.mxu1  ;;  %vm7662_vm10 = vmand %vm19081_vm14, %vm19080_vm9 }
 0x4d4   :  { %v15556_v51 = vpop.f32.mrf.mxu0  ;;  %vm7663_vm11 = vmand %vm4290_vm1, %vm19086_vm3  ;;  %v6402_v59 = vadd.f32 %v15518_v13, %v6061_v57 }
 0x4d6   :  { %10708 = vmatmul.msk.f32.vlgmr.msra.gmra.mxu1 %vm18274_vm2, %v10704_v33  ;;  %10710 = vmatmul.msk.f32.vlgmr.msra.gmra.mxu2 %vm18274_vm2, %v10704_v33 }
 0x4d7   :  { %10712 = vmatmul.msk.f32.vlgmr.msra.gmra.mxu3 %vm18274_vm2, %v10704_v33  ;;  %10714 = vmatmul.msk.f32.vlgmr.msrb.gmra.mxu0 %vm18274_vm2, %v10704_v33 }
 0x4d8   :  { %10723 = vmatpush.msk.msra.mxu1 %vm7659_vm5, %v19082_v0  ;;  %10725 = vmatpush.msk.msra.mxu2 %vm7660_vm8, %v19083_v12  ;;  %vm7664_vm5 = vmand %vm4291_vm13, %vm19087_vm7 }
 0x4d9   :  { %10727 = vmatpush.msk.msra.mxu3 %vm7661_vm15, %v19084_v27  ;;  %10729 = vmatpush.msk.msrb.mxu0 %vm7662_vm10, %v19085_v34  ;;  %v15578_v42 = vpop.f32.mrf.mxu2  ;;  %vm7665_vm8 = vmand %vm4292_vm6, %vm19088_vm4  ;;  %v5183_v27 = vadd.f32 %v15240_v19, %v15067_v48  ;;  %v5043_v48 = vadd.f32 %v15167_v38, %v15042_v54 }
 0x4da   :  { %v15580_v18 = vpop.f32.mrf.mxu3 }
 0x4db   :  { %v15582_v16 = vpop.f32.mrf.mxu1  ;;  %v5638_v2 = vadd.f32 %v15418_v28, %v5183_v27 }
 0x4dc   :  { %v15584_v29 = vpop.f32.mrf.mxu0 }
 0x4dd   :  { %v6076_v50 = vadd.f32 %v15548_v24, %v5638_v2 }
 0x4de   :  { %10716 = vmatmul.msk.f32.vlgmr.msrb.gmra.mxu1 %vm18274_vm2, %v10704_v33  ;;  %10718 = vmatmul.msk.f32.vlgmr.msrb.gmra.mxu2 %vm18274_vm2, %v10704_v33 }
 0x4df   :  { %10720 = vmatmul.msk.f32.vlgmr.msrb.gmra.mxu3 %vm18274_vm2, %v10704_v33  ;;  %10722 = vmatmul.msk.f32.vlgmr.msra.gmra.mxu0 %vm18274_vm2, %v10704_v33 }
 0x4e0   :  { %10731 = vmatpush.msk.msrb.mxu1 %vm7663_vm11, %v14886_v46  ;;  %10733 = vmatpush.msk.msrb.mxu2 %vm7664_vm5, %v14882_v58 }
 0x4e1   :  { %10735 = vmatpush.msk.msrb.mxu3 %vm7665_vm8, %v19089_v7  ;;  %v15605_v20 = vpop.f32.mrf.mxu2 }
 0x4e2   :  { %v15607_v10 = vpop.f32.mrf.mxu3 }
 0x4e3   :  { %v15609_v26 = vpop.f32.mrf.mxu1 }
 0x4e4   :  { %v6339_v4 = vpop.f32.mrf.mxu0 }
 0x4e6   :  { %10724 = vmatmul.msk.f32.vlgmr.msra.gmra.mxu1 %vm18274_vm2, %v10704_v33  ;;  %10726 = vmatmul.msk.f32.vlgmr.msra.gmra.mxu2 %vm18274_vm2, %v10704_v33 }
 0x4e7   :  { %10728 = vmatmul.msk.f32.vlgmr.msra.gmra.mxu3 %vm18274_vm2, %v10704_v33  ;;  %10730 = vmatmul.msk.f32.vlgmr.msrb.gmra.mxu0 %vm18274_vm2, %v10704_v33 }
 0x4e9   :  { %v15615_v30 = vpop.f32.mrf.mxu2 }
 0x4ea   :  { %v15617_v21 = vpop.f32.mrf.mxu3 }
 0x4eb   :  { %v15619_v6 = vpop.f32.mrf.mxu1 }
 0x4ec   :  { %v6537_v5 = vpop.f32.mrf.mxu0 }
 0x4ed   :  { %v6840_v34 = vadd.f32 %v6537_v5, %v6402_v59  ;;  %v5631_v59 = vadd.f32 %v15325_v61, %v5043_v48 }
 0x4ee   :  { %10732 = vmatmul.msk.f32.vlgmr.msrb.gmra.mxu1 %vm18274_vm2, %v10704_v33  ;;  %10734 = vmatmul.msk.f32.vlgmr.msrb.gmra.mxu2 %vm18274_vm2, %v10704_v33 }
 0x4ef   :  { %10736 = vmatmul.msk.f32.vlgmr.msrb.gmra.mxu3 %vm18274_vm2, %v10704_v33  ;;  %v6069_v60 = vadd.f32 %v15448_v23, %v5631_v59 }
 0x4f1   :  { %v6379_v40 = vpop.f32.mrf.mxu2  ;;  %v6410_v44 = vadd.f32 %v15584_v29, %v6069_v60 }
 0x4f2   :  { %v6399_v56 = vpop.f32.mrf.mxu3  ;;  %v6416_v13 = vadd.f32 %v6379_v40, %v6075_v3 }
 0x4f3   :  { %v15624_v1 = vpop.f32.mrf.mxu1  ;;  %v6417_v31 = vadd.f32 %v6399_v56, %v6076_v50  ;;  %v5123_v56 = vadd.f32 %v15209_v63, %v15065_v35 }
 0x4f4   :  { %v15626_v49 = vpop.f32.mrf.mxu0 }
 0x4f5   :  { %v5635_v27 = vadd.f32 %v15357_v17, %v5123_v56 }
 0x4f7   :  { %v6073_v61 = vadd.f32 %v15482_v47, %v5635_v27  ;;  %v19113_v27 = vld [vmem:[#allocation51_spill] sm:$0xff] }
 0x4f9   :  { %v15628_v53 = vpop.f32.mrf.mxu2  ;;  %v6414_v23 = vadd.f32 %v6339_v4, %v6073_v61  ;;  %v4903_v61 = vadd.f32 %v19113_v27, %v14966_v11  ;;  %v19124_v11 = vld [vmem:[#allocation106_spill] sm:$0xff]  ;;  %v19125_v27 = vld [vmem:[#allocation91_spill] sm:$0xff] }
 0x4fa   :  { %v15630_v22 = vpop.f32.mrf.mxu3 }
 0x4fb   :  { %v15632_v8 = vpop.f32.mrf.mxu1 }
 0x4fc   :  { %v6697_v46 = vpop.f32.mrf.mxu0 }
 0x4fd   :  { %v6848_v54 = vadd.f32 %v6697_v46, %v6410_v44 }
 0x501   :  { %v15634_v58 = vpop.f32.mrf.mxu2 }
 0x502   :  { %v15636_v36 = vpop.f32.mrf.mxu3 }
 0x503   :  { %19090 = vst [vmem:[#allocation10_spill] sm:$0xff] %v15636_v36  ;;  %v15640_v15 = vpop.f32.mrf.mxu1 }
 0x504   :  { %19091 = vst [vmem:[#allocation23_spill] sm:$0xff] %v15640_v15  ;;  %v6777_v33 = vpop.f32.mrf.mxu0 }
 0x505   :  { %v6852_v2 = vadd.f32 %v6777_v33, %v6414_v23  ;;  %v19114_v23 = vld [vmem:[#allocation107_spill] sm:$0xff] }
 0x509   :  { %v15645_v0 = vpop.f32.mrf.mxu2 }
 0x50a   :  { %19092 = vst [vmem:[#allocation20_spill] sm:$0xff] %v15645_v0  ;;  %v15647_v12 = vpop.f32.mrf.mxu3 }
 0x50b   :  { %19093 = vst [vmem:[#allocation11_spill] sm:$0xff] %v15647_v12  ;;  %v15651_v7 = vpop.f32.mrf.mxu1 }
 0x50c   :  { %19094 = vst [vmem:[#allocation15_spill] sm:$0xff] %v15651_v7  ;;  %v6942_v39 = vpop.f32.mrf.mxu0  ;;  %v19120_v7 = vld [vmem:[#allocation86_spill] sm:$0xff] }
 0x50d   :  { %v7245_v15 = vadd.f32 %v6942_v39, %v6840_v34 }
 0x511   :  { %v6817_v43 = vpop.f32.mrf.mxu2 }
 0x512   :  { %v15657_v57 = vadd.f32 %v6817_v43, %v6416_v13  ;;  %v6837_v12 = vpop.f32.mrf.mxu3 }
 0x513   :  { %v15661_v19 = vadd.f32 %v6837_v12, %v6417_v31  ;;  %v15663_v5 = vpop.f32.mrf.mxu1 }
 0x514   :  { %19095 = vst [vmem:[#allocation18_spill] sm:$0xff] %v15657_v57  ;;  %v15665_v28 = vpop.f32.mrf.mxu0 }
 0x515   :  { %19096 = vst [vmem:[#allocation22_spill] sm:$0xff] %v15661_v19  ;;  %v19116_v19 = vld [vmem:[#allocation88_spill] sm:$0xff] }
 0x519   :  { %v15670_v24 = vpop.f32.mrf.mxu2 }
 0x51a   :  { %v15672_v40 = vpop.f32.mrf.mxu3 }
 0x51b   :  { %v15676_v38 = vpop.f32.mrf.mxu1 }
 0x51c   :  { %v7102_v12 = vpop.f32.mrf.mxu0 }
 0x51d   :  { %v15679_v34 = vadd.f32 %v7102_v12, %v6848_v54 }
 0x51f   :  { %19097 = vst [vmem:[#allocation14_spill] sm:$0xff] %v15679_v34 }
 0x521   :  { %v15682_v39 = vpop.f32.mrf.mxu2 }
 0x522   :  { %19098 = vst [vmem:[#allocation16_spill] sm:$0xff] %v15682_v39  ;;  %v15684_v29 = vpop.f32.mrf.mxu3 }
 0x523   :  { %19099 = vst [vmem:[#allocation21_spill] sm:$0xff] %v15684_v29  ;;  %v15686_v3 = vpop.f32.mrf.mxu1  ;;  %v19132_v29 = vld [vmem:[#allocation109_spill] sm:$0xff] }
 0x524   :  { %19100 = vst [vmem:[#allocation27_spill] sm:$0xff] %v15686_v3  ;;  %v7182_v50 = vpop.f32.mrf.mxu0  ;;  %v19130_v3 = vld [vmem:[#allocation108_spill] sm:$0xff] }
 0x525   :  { %v15688_v35 = vadd.f32 %v7182_v50, %v6852_v2  ;;  %v4963_v2 = vadd.f32 %v15134_v14, %v19114_v23  ;;  %v19115_v50 = vld [vmem:[#allocation87_spill] sm:$0xff]  ;;  %v19126_v14 = vld [vmem:[#allocation93_spill] sm:$0xff]  ;;  %v19127_v23 = vld [vmem:[#allocation48_spill] sm:$0xff] }
 0x527   :  { %19101 = vst [vmem:[#allocation29_spill] sm:$0xff] %v15688_v35  ;;  %v19121_v35 = vld [vmem:[#allocation102_spill] sm:$0xff] }
 0x529   :  { %v15690_v63 = vpop.f32.mrf.mxu2 }
 0x52a   :  { %19102 = vst [vmem:[#allocation26_spill] sm:$0xff] %v15690_v63  ;;  %v15692_v46 = vpop.f32.mrf.mxu3 }
 0x52b   :  { %19103 = vst [vmem:[#allocation24_spill] sm:$0xff] %v15692_v46  ;;  %v15694_v17 = vpop.f32.mrf.mxu1  ;;  %v19119_v46 = vld [vmem:[#allocation72_spill] sm:$0xff] }
 0x52c   :  { %19104 = vst [vmem:[#allocation28_spill] sm:$0xff] %v15694_v17  ;;  %v7331_v13 = vpop.f32.mrf.mxu0  ;;  %v19118_v17 = vld [vmem:[#allocation101_spill] sm:$0xff] }
 0x52d   :  { %v4943_v63 = vadd.f32 %v19119_v46, %v19118_v17  ;;  %v19131_v46 = vld [vmem:[#allocation95_spill] sm:$0xff] }
 0x52e   :  { %v4983_v17 = vadd.f32 %v19131_v46, %v19130_v3  ;;  %v19141_v46 = vld [vmem:[#allocation94_spill] sm:$0xff] }
 0x52f   :  { %v5626_v34 = vadd.f32 %v19141_v46, %v4943_v63 }
 0x531   :  { %v15696_v31 = vpop.f32.mrf.mxu2 }
 0x532   :  { %19105 = vst [vmem:[#allocation33_spill] sm:$0xff] %v15696_v31  ;;  %v15698_v47 = vpop.f32.mrf.mxu3  ;;  %v5627_v31 = vadd.f32 %v19116_v19, %v4963_v2  ;;  %v7634_v2 = vadd.f32 %v7331_v13, %v7245_v15 }
 0x533   :  { %19106 = vst [vmem:[#allocation34_spill] sm:$0xff] %v15698_v47  ;;  %v7351_v4 = vpop.f32.mrf.mxu1  ;;  %v5624_v47 = vadd.f32 %v19115_v50, %v4903_v61  ;;  %v5103_v61 = vadd.f32 %v19127_v23, %v19126_v14  ;;  %v19128_v50 = vld [vmem:[#allocation19_spill] sm:$0xff]  ;;  %v19138_v23 = vld [vmem:[#allocation70_spill] sm:$0xff] }
 0x534   :  { %v7411_v43 = vpop.f32.mrf.mxu0  ;;  %v6065_v19 = vadd.f32 %v19128_v50, %v5627_v31  ;;  %v19139_v31 = vld [vmem:[#allocation85_spill] sm:$0xff] }
 0x535   :  { %v5143_v15 = vadd.f32 %v19139_v31, %v19138_v23  ;;  %v15758_v23 = vpop.permute.xlu1 %8059 }
 0x536   :  { %v6406_v13 = vadd.f32 %v15556_v51, %v6065_v19  ;;  %v19146_v51 = vld [vmem:[#allocation13_spill] sm:$0xff] }
 0x539   :  { %v15700_v48 = vpop.f32.mrf.mxu2 }
 0x53a   :  { %v15702_v33 = vpop.f32.mrf.mxu3 }
 0x53b   :  { %v15704_v59 = vpop.f32.mrf.mxu1 }
 0x53c   :  { %19107 = vst [vmem:[#allocation30_spill] sm:$0xff] %v15704_v59  ;;  %v15706_v60 = vpop.f32.mrf.mxu0  ;;  %v19145_v59 = vld [vmem:[#allocation96_spill] sm:$0xff] }
 0x53d   :  { %19108 = vst [vmem:[#allocation25_spill] sm:$0xff] %v15706_v60  ;;  %v19137_v60 = vld [vmem:[#allocation103_spill] sm:$0xff] }
 0x541   :  { %v15708_v44 = vpop.f32.mrf.mxu2 }
 0x542   :  { %19109 = vst [vmem:[#allocation32_spill] sm:$0xff] %v15708_v44  ;;  %v15710_v56 = vpop.f32.mrf.mxu3  ;;  %v4923_v44 = vadd.f32 %v19125_v27, %v19124_v11  ;;  %v19136_v27 = vld [vmem:[#allocation6_spill] sm:$0xff] }
 0x543   :  { %19110 = vst [vmem:[#allocation37_spill] sm:$0xff] %v15710_v56  ;;  %v15712_v54 = vpop.f32.mrf.mxu1  ;;  %v19122_v56 = vld [vmem:[#allocation9_spill] sm:$0xff]  ;;  %v5083_v14 = vadd.f32 %v19137_v60, %v19136_v27  ;;  %v6844_v27 = vadd.f32 %v15626_v49, %v6406_v13 }
 0x544   :  { %19111 = vst [vmem:[#allocation36_spill] sm:$0xff] %v15712_v54  ;;  %v15714_v12 = vpop.f32.mrf.mxu0  ;;  %v5023_v54 = vadd.f32 %v19121_v35, %v19120_v7  ;;  %v19133_v7 = vld [vmem:[#allocation84_spill] sm:$0xff]  ;;  %v19149_v49 = vld [vmem:[#allocation17_spill] sm:$0xff] }
 0x545   :  { %19112 = vst [vmem:[#allocation35_spill] sm:$0xff] %v15714_v12  ;;  %v6062_v12 = vadd.f32 %v19122_v56, %v5624_v47  ;;  %v5003_v35 = vadd.f32 %v19133_v7, %v19132_v29  ;;  %v19134_v47 = vld [vmem:[#allocation89_spill] sm:$0xff]  ;;  %v19135_v56 = vld [vmem:[#allocation100_spill] sm:$0xff]  ;;  %v19142_v29 = vld [vmem:[#allocation110_spill] sm:$0xff]  ;;  %v5633_v19 = vadd.f32 %v19146_v51, %v5083_v14 }
 0x546   :  { %v5628_v7 = vadd.f32 %v19142_v29, %v4983_v17  ;;  %v19148_v17 = vld [vmem:[#allocation5_spill] sm:$0xff]  ;;  %v15791_v29 = vpop.permute.xlu2 %8098 }
 0x547   :  { %v6403_v39 = vadd.f32 %v15550_v37, %v6062_v12  ;;  %v19144_v12 = vld [vmem:[#allocation105_spill] sm:$0xff] }
 0x548   :  { %v5630_v36 = vadd.f32 %v19144_v12, %v5023_v54  ;;  %v7249_v54 = vadd.f32 %v15665_v28, %v6844_v27  ;;  %v19152_v27 = vld [vmem:[#allocation14_spill] sm:$0xff]  ;;  %v19153_v51 = vld [vmem:[#allocation25_spill] sm:$0xff] }
 0x549   :  { %v15722_v57 = vpop.f32.mrf.mxu2 }
 0x54a   :  { %19117 = vst [vmem:[#allocation39_spill] sm:$0xff] %v15722_v57  ;;  %v15729_v0 = vpop.f32.mrf.mxu3  ;;  %v6068_v31 = vadd.f32 %v15474_v41, %v5630_v36  ;;  %v7638_v28 = vadd.f32 %v7411_v43, %v7249_v54 }
 0x54b   :  { %19123 = vst [vmem:[#allocation40_spill] sm:$0xff] %v15729_v0  ;;  %v15736_v57 = vpop.f32.mrf.mxu1  ;;  %v5063_v0 = vadd.f32 %v19135_v56, %v19134_v47  ;;  %v6841_v47 = vadd.f32 %v15624_v1, %v6403_v39  ;;  %v19143_v56 = vld [vmem:[#allocation104_spill] sm:$0xff]  ;;  %v5636_v1 = vadd.f32 %v19148_v17, %v5143_v15  ;;  %v6064_v39 = vadd.f32 %v15446_v9, %v5626_v34 }
 0x54c   :  { %19129 = vst [vmem:[#allocation38_spill] sm:$0xff] %v15736_v57  ;;  %v7736_v11 = vpop.f32.mrf.mxu0  ;;  %v19140_v57 = vld [vmem:[#allocation111_spill] sm:$0xff]  ;;  %v5629_v37 = vadd.f32 %v19143_v56, %v5003_v35  ;;  %v6066_v35 = vadd.f32 %v19149_v49, %v5628_v7  ;;  %v6071_v15 = vadd.f32 %v15508_v32, %v5633_v19  ;;  %v7642_v19 = vadd.f32 %v19153_v51, %v19152_v27 }
 0x54d   :  { %v8039_v50 = vadd.f32 %v7736_v11, %v7634_v2  ;;  %v5625_v3 = vadd.f32 %v19140_v57, %v4923_v44  ;;  %v5632_v60 = vadd.f32 %v19145_v59, %v5063_v0  ;;  %v19147_v2 = vld [vmem:[#allocation12_spill] sm:$0xff]  ;;  %v7246_v44 = vadd.f32 %v15663_v5, %v6841_v47  ;;  %v19165_v27 = vld [vmem:[#allocation15_spill] sm:$0xff] }
 0x54e   :  { %v5634_v57 = vadd.f32 %v19147_v2, %v5103_v61  ;;  %v6067_v5 = vadd.f32 %v15472_v25, %v5629_v37  ;;  %v6405_v9 = vadd.f32 %v15580_v18, %v6064_v39  ;;  %v6407_v13 = vadd.f32 %v15582_v16, %v6066_v35  ;;  %v19150_v37 = vld [vmem:[#allocation30_spill] sm:$0xff]  ;;  %v19155_v35 = vld [vmem:[#allocation16_spill] sm:$0xff] }
 0x54f   :  { %v6063_v63 = vadd.f32 %v15444_v62, %v5625_v3  ;;  %v8062_v0 = vadd.f32 %v15758_v23, %v8039_v50  ;;  %v6070_v11 = vadd.f32 %v15476_v52, %v5632_v60  ;;  %v7635_v14 = vadd.f32 %v7351_v4, %v7246_v44  ;;  %v19151_v60 = vld [vmem:[#allocation10_spill] sm:$0xff] }
 0x550   :  { %v6843_v4 = vadd.f32 %v15630_v22, %v6405_v9  ;;  %v6074_v41 = vadd.f32 %v15512_v55, %v5636_v1  ;;  %v6408_v18 = vadd.f32 %v15605_v20, %v6067_v5  ;;  %v6845_v36 = vadd.f32 %v15632_v8, %v6407_v13  ;;  %v19157_v9 = vld [vmem:[#allocation27_spill] sm:$0xff] }
 0x551   :  { %v15768_v59 = vpop.f32.mrf.mxu2  ;;  %v6404_v61 = vadd.f32 %v15578_v42, %v6063_v63  ;;  %v6072_v42 = vadd.f32 %v15510_v45, %v5634_v57  ;;  %v8078_v46 = vmax.f32 %v8062_v0, 0.0  ;;  %v6409_v16 = vadd.f32 %v15607_v10, %v6068_v31  ;;  %v15807_v57 = vpop.permute.xlu0 %8121  ;;  %v19154_v63 = vld [vmem:[#allocation23_spill] sm:$0xff] }
 0x552   :  { %v15773_v62 = vpop.f32.mrf.mxu3  ;;  %v7248_v43 = vadd.f32 %v15672_v40, %v6843_v4  ;;  %v6412_v22 = vadd.f32 %v15615_v30, %v6071_v15  ;;  %v7250_v55 = vadd.f32 %v15676_v38, %v6845_v36  ;;  %v6415_v47 = vadd.f32 %v15619_v6, %v6074_v41  ;;  %v19160_v41 = vld [vmem:[#allocation11_spill] sm:$0xff]  ;;  %v19161_v36 = vld [vmem:[#allocation37_spill] sm:$0xff] }
 0x553   :  { %v7756_v34 = vpop.f32.mrf.mxu1  ;;  %v6842_v50 = vadd.f32 %v15628_v53, %v6404_v61  ;;  %v6411_v53 = vadd.f32 %v15609_v26, %v6070_v11  ;;  %v8101_v26 = vmul.f32 %v15791_v29, %v8078_v46  ;;  %v6846_v56 = vadd.f32 %v15634_v58, %v6408_v18  ;;  %v19156_v61 = vld [vmem:[#allocation21_spill] sm:$0xff]  ;;  %v19159_v46 = vld [vmem:[#allocation20_spill] sm:$0xff] }
 0x554   :  { %v8040_v52 = vadd.f32 %v7756_v34, %v7635_v14  ;;  %v7816_v3 = vpop.f32.mrf.mxu0  ;;  %v7637_v10 = vadd.f32 %v15702_v33, %v7248_v43  ;;  %v7639_v30 = vadd.f32 %v19150_v37, %v7250_v55  ;;  %v19162_v43 = vld [vmem:[#allocation36_spill] sm:$0xff]  ;;  %v6853_v51 = vadd.f32 %v19165_v27, %v6415_v47 }
 0x555   :  { %v8043_v25 = vadd.f32 %v7816_v3, %v7638_v28  ;;  %v7247_v32 = vadd.f32 %v15670_v24, %v6842_v50  ;;  %v6413_v24 = vadd.f32 %v15617_v21, %v6072_v42  ;;  %v6849_v44 = vadd.f32 %v19154_v63, %v6411_v53  ;;  %v19158_v50 = vld [vmem:[#allocation32_spill] sm:$0xff] }
 0x556   :  { %v8063_v8 = vadd.f32 %v15758_v23, %v8040_v52  ;;  %v15812_v39 = vadd.f32 %v15807_v57, %v8101_v26  ;;  %v7251_v11 = vadd.f32 %v19155_v35, %v6846_v56  ;;  %v19163_v26 = vld [vmem:[#allocation29_spill] sm:$0xff] }
 0x557   :  { %v8066_v45 = vadd.f32 %v15758_v23, %v8043_v25  ;;  %v7636_v20 = vadd.f32 %v15700_v48, %v7247_v32  ;;  %v6847_v48 = vadd.f32 %v19151_v60, %v6409_v16  ;;  %v7254_v28 = vadd.f32 %v19157_v9, %v6849_v44  ;;  %v19170_v9 = vld [vmem:[#allocation40_spill] sm:$0xff] }
 0x558   :  { %v8079_v6 = vmax.f32 %v8063_v8, 0.0  ;;  %v7640_v52 = vadd.f32 %v19158_v50, %v7251_v11  ;;  %v6850_v25 = vadd.f32 %v19159_v46, %v6412_v22  ;;  %v6851_v18 = vadd.f32 %v19160_v41, %v6413_v24  ;;  %v19164_v22 = vld [vmem:[#allocation35_spill] sm:$0xff] }
 0x559   :  { %v8082_v7 = vmax.f32 %v8066_v45, 0.0  ;;  %v7776_v40 = vpop.f32.mrf.mxu2  ;;  %v7252_v14 = vadd.f32 %v19156_v61, %v6847_v48  ;;  %v7643_v45 = vadd.f32 %v19162_v43, %v7254_v28  ;;  %v19169_v11 = vld [vmem:[#allocation39_spill] sm:$0xff] }
 0x55a   :  { %v8041_v12 = vadd.f32 %v7776_v40, %v7636_v20  ;;  %v7796_v38 = vpop.f32.mrf.mxu3  ;;  %v8102_v3 = vmul.f32 %v15791_v29, %v8079_v6 }
 0x55b   :  { %v8105_v21 = vmul.f32 %v15791_v29, %v8082_v7  ;;  %v8042_v33 = vadd.f32 %v7796_v38, %v7637_v10  ;;  %v7836_v2 = vpop.f32.mrf.mxu1  ;;  %v7641_v32 = vadd.f32 %v19161_v36, %v7252_v14  ;;  %v7646_v7 = vadd.f32 %v19164_v22, %v19163_v26 }
 0x55c   :  { %v8064_v58 = vadd.f32 %v15758_v23, %v8041_v12  ;;  %v8044_v17 = vadd.f32 %v7836_v2, %v7639_v30  ;;  %v7896_v1 = vpop.f32.mrf.mxu0  ;;  %v15844_v30 = vadd.f32 %v15807_v57, %v8102_v3  ;;  %v19166_v2 = vld [vmem:[#allocation26_spill] sm:$0xff] }
 0x55d   :  { %v15815_v54 = vadd.f32 %v15807_v57, %v8105_v21  ;;  %v8065_v0 = vadd.f32 %v15758_v23, %v8042_v33  ;;  %v8047_v49 = vadd.f32 %v7896_v1, %v7642_v19  ;;  %v7255_v63 = vadd.f32 %v19166_v2, %v6850_v25 }
 0x55e   :  { %v8080_v5 = vmax.f32 %v8064_v58, 0.0  ;;  %v8067_v31 = vadd.f32 %v15758_v23, %v8044_v17  ;;  %v19167_v17 = vld [vmem:[#allocation24_spill] sm:$0xff] }
 0x55f   :  { %v8081_v34 = vmax.f32 %v8065_v0, 0.0  ;;  %v8070_v15 = vadd.f32 %v15758_v23, %v8047_v49  ;;  %v11268_v13 = vpack.i.bf16 %v15812_v39, %v15815_v54  ;;  %v7256_v1 = vadd.f32 %v19167_v17, %v6851_v18  ;;  %v19168_v0 = vld [vmem:[#allocation28_spill] sm:$0xff] }
 0x560   :  { %v8103_v42 = vmul.f32 %v15791_v29, %v8080_v5  ;;  %v8083_v4 = vmax.f32 %v8067_v31, 0.0  ;;  %v7258_v49 = vadd.f32 %v19168_v0, %v6853_v51  ;;  %v7644_v61 = vadd.f32 %v19169_v11, %v7255_v63 }
 0x561   :  { %v8104_v16 = vmul.f32 %v15791_v29, %v8081_v34  ;;  %11269 = vrot.lane.b32.xlu2 %v11268_v13, %s11387_s22  ;;  %v7856_v53 = vpop.f32.mrf.mxu2  ;;  %v8086_v40 = vmax.f32 %v8070_v15, 0.0  ;;  %v7645_v28 = vadd.f32 %v19170_v9, %v7256_v1  ;;  %v19171_v13 = vld [vmem:[#allocation38_spill] sm:$0xff] }
 0x562   :  { %v15835_v55 = vadd.f32 %v15807_v57, %v8103_v42  ;;  %v8106_v20 = vmul.f32 %v15791_v29, %v8083_v4  ;;  %v8045_v8 = vadd.f32 %v7856_v53, %v7640_v52  ;;  %v7876_v10 = vpop.f32.mrf.mxu3  ;;  %v7647_v50 = vadd.f32 %v19171_v13, %v7258_v49  ;;  %v19176_v13 = vld [vmem:[#allocation8_spill] sm:$0xff] }
 0x563   :  { %v15841_v24 = vadd.f32 %v15807_v57, %v8104_v16  ;;  %v8046_v56 = vadd.f32 %v7876_v10, %v7641_v32  ;;  %v7916_v37 = vpop.f32.mrf.mxu1  ;;  %v8109_v47 = vmul.f32 %v15791_v29, %v8086_v40  ;;  %v19174_v40 = vld [vmem:[#allocation22_spill] sm:$0xff]  ;;  %vm19177_vm1 = vcmp.lt.s32.totalorder %v19176_v13, 126 }
 0x564   :  { %v15847_v12 = vadd.f32 %v15807_v57, %v8106_v20  ;;  %v8068_v38 = vadd.f32 %v15758_v23, %v8045_v8  ;;  %v8048_v60 = vadd.f32 %v7916_v37, %v7643_v45  ;;  %v7976_v48 = vpop.f32.mrf.mxu0  ;;  %v19172_v20 = vld [vmem:[#allocation18_spill] sm:$0xff]  ;;  %v19173_v8 = vld [vmem:[#allocation33_spill] sm:$0xff]  ;;  %vm19181_vm13 = vmmov %vm19177_vm1 }
 0x565   :  { %v8069_v19 = vadd.f32 %v15758_v23, %v8046_v56  ;;  %v8051_v21 = vadd.f32 %v7976_v48, %v7646_v7  ;;  %v11253_v33 = vpack.i.bf16 %v15841_v24, %v15835_v55  ;;  %v8132_v46 = vadd.f32 %v15807_v57, %v8109_v47  ;;  %v19175_v56 = vld [vmem:[#allocation34_spill] sm:$0xff]  ;;  %vm19182_vm6 = vmmov %vm19177_vm1 }
 0x566   :  { %v8084_v44 = vmax.f32 %v8068_v38, 0.0  ;;  %v8071_v6 = vadd.f32 %v15758_v23, %v8048_v60  ;;  %v11258_v58 = vpack.i.bf16 %v15847_v12, %v15844_v30  ;;  %v7259_v10 = vadd.f32 %v19173_v8, %v19172_v20  ;;  %vm19183_vm12 = vmmov %vm19177_vm1 }
 0x567   :  { %v8085_v35 = vmax.f32 %v8069_v19, 0.0  ;;  %11254 = vrot.lane.b32.xlu1 %v11253_v33, %s11387_s22  ;;  %v8074_v31 = vadd.f32 %v15758_v23, %v8051_v21  ;;  %v7260_v37 = vadd.f32 %v19175_v56, %v19174_v40  ;;  %vm19184_vm0 = vmmov %vm19177_vm1 }
 0x568   :  { %v8107_v14 = vmul.f32 %v15791_v29, %v8084_v44  ;;  %v8087_v5 = vmax.f32 %v8071_v6, 0.0  ;;  %11259 = vrot.lane.b32.xlu0 %v11258_v58, %s11387_s22  ;;  %v7648_v60 = vadd.f32 %v15768_v59, %v7259_v10  ;;  %vm19187_vm15 = vmmov %vm19184_vm0 }
 0x569   :  { %v8108_v34 = vmul.f32 %v15791_v29, %v8085_v35  ;;  %v7936_v15 = vpop.f32.mrf.mxu2  ;;  %v8090_v32 = vmax.f32 %v8074_v31, 0.0  ;;  %v7649_v19 = vadd.f32 %v15773_v62, %v7260_v37  ;;  %vm19188_vm9 = vmmov %vm19184_vm0 }
 0x56a   :  { %v15870_v52 = vadd.f32 %v15807_v57, %v8107_v14  ;;  %v8110_v3 = vmul.f32 %v15791_v29, %v8087_v5  ;;  %v8049_v42 = vadd.f32 %v7936_v15, %v7644_v61  ;;  %v7956_v4 = vpop.f32.mrf.mxu3  ;;  %vm19189_vm14 = vmmov %vm19184_vm0 }
 0x56b   :  { %v15875_v25 = vadd.f32 %v15807_v57, %v8108_v34  ;;  %v8050_v41 = vadd.f32 %v7956_v4, %v7645_v28  ;;  %v7996_v18 = vpop.f32.mrf.mxu1  ;;  %v8113_v48 = vmul.f32 %v15791_v29, %v8090_v32  ;;  %vm19191_vm10 = vmmov %vm19184_vm0 }
 0x56c   :  { %v15878_v36 = vadd.f32 %v15807_v57, %v8110_v3  ;;  %v8072_v16 = vadd.f32 %v15758_v23, %v8049_v42  ;;  %v8052_v53 = vadd.f32 %v7996_v18, %v7647_v50  ;;  %vm19192_vm3 = vmmov %vm19184_vm0 }
 0x56d   :  { %v8073_v43 = vadd.f32 %v15758_v23, %v8050_v41  ;;  %v11263_v45 = vpack.i.bf16 %v15875_v25, %v15870_v52  ;;  %v15905_v17 = vadd.f32 %v15807_v57, %v8113_v48  ;;  %vm19193_vm11 = vmmov %vm19184_vm0 }
 0x56e   :  { %v8088_v26 = vmax.f32 %v8072_v16, 0.0  ;;  %v8075_v22 = vadd.f32 %v15758_v23, %v8052_v53  ;;  %v11273_v7 = vpack.i.bf16 %v15878_v36, %v8132_v46  ;;  %vm19194_vm2 = vmmov %vm19193_vm11 }
 0x56f   :  { %v8089_v38 = vmax.f32 %v8073_v43, 0.0  ;;  %11264 = vrot.lane.b32.xlu1 %v11263_v45, %s11387_s22 }
 0x570   :  { %v8111_v27 = vmul.f32 %v15791_v29, %v8088_v26  ;;  %v8091_v51 = vmax.f32 %v8075_v22, 0.0  ;;  %11274 = vrot.lane.b32.xlu2 %v11273_v7, %s11387_s22  ;;  %v18297_v26 = vshra.s32 %v19176_v13, 3 }
 0x571   :  { %v8112_v21 = vmul.f32 %v15791_v29, %v8089_v38  ;;  %v8016_v33 = vpop.f32.mrf.mxu2 }
 0x572   :  { %v15898_v2 = vadd.f32 %v15807_v57, %v8111_v27  ;;  %v8114_v63 = vmul.f32 %v15791_v29, %v8091_v51  ;;  %v8053_v44 = vadd.f32 %v8016_v33, %v7648_v60  ;;  %v8036_v6 = vpop.f32.mrf.mxu3 }
 0x573   :  { %v15902_v59 = vadd.f32 %v15807_v57, %v8112_v21  ;;  %v8054_v58 = vadd.f32 %v8036_v6, %v7649_v19 }
 0x574   :  { %v15908_v1 = vadd.f32 %v15807_v57, %v8114_v63  ;;  %v8076_v62 = vadd.f32 %v15758_v23, %v8053_v44  ;;  %v15986_v44 = vand.u32 7, %v19176_v13 }
 0x575   :  { %v8077_v0 = vadd.f32 %v15758_v23, %v8054_v58  ;;  %v11278_v49 = vpack.i.bf16 %v15902_v59, %v15898_v2 }
 0x576   :  { %v8092_v47 = vmax.f32 %v8076_v62, 0.0  ;;  %v11283_v35 = vpack.i.bf16 %v15908_v1, %v15905_v17  ;;  %19190 = vst [vmem:[#allocation41_spill] sm:$0xff] %v15986_v44 }
 0x577   :  { %v8093_v11 = vmax.f32 %v8077_v0, 0.0  ;;  %11279 = vrot.lane.b32.xlu0 %v11278_v49, %s11387_s22 }
 0x578   :  { %v8115_v61 = vmul.f32 %v15791_v29, %v8092_v47  ;;  %11284 = vrot.lane.b32.xlu1 %v11283_v35, %s11387_s22  ;;  %v8400_v47 = vshll.u32 %v15986_v44, 2 }
 0x579   :  { %v8116_v14 = vmul.f32 %v15791_v29, %v8093_v11  ;;  %v19178_v29 = vlaneseq }
 0x57a   :  { %v8138_v5 = vadd.f32 %v15807_v57, %v8115_v61 }
 0x57b   :  { %v8139_v23 = vadd.f32 %v15807_v57, %v8116_v14  ;;  %v15932_v3 = vshrl.u32 %v19178_v29, 7 }
 0x57d   :  { %v11288_v31 = vpack.i.bf16 %v8139_v23, %v8138_v5  ;;  %19179 = vst [vmem:[#allocation31_spill] sm:$0xff] %v15932_v3  ;;  %v15941_v10 = vadd.s32 376, %v15932_v3  ;;  %v15989_v6 = vadd.s32 504, %v15932_v3  ;;  %v15998_v58 = vadd.s32 248, %v15932_v3 }
 0x57e   :  { %v16001_v62 = vadd.s32 368, %v15932_v3  ;;  %v16005_v35 = vadd.s32 496, %v15932_v3  ;;  %v16009_v11 = vadd.s32 112, %v15932_v3  ;;  %v16012_v61 = vadd.s32 240, %v15932_v3 }
 0x57f   :  { %11289 = vrot.lane.b32.xlu2 %v11288_v31, %s11387_s22  ;;  %v16015_v14 = vadd.s32 360, %v15932_v3  ;;  %v16412_v44 = vadd.s32 168, %v15932_v3 }
 0x581   :  { %19206 = vst [vmem:[#allocation64_spill] sm:$0xff] %v16412_v44 }
 0x5bb   :  { %v11270_v9 = vpop.permute.xlu2 %11269 }
 0x5bc   :  { %v11272_v42 = vunpack.i.h.bf16 %v11270_v9  ;;  %v11271_v57 = vunpack.i.l.bf16 %v11270_v9 }
 0x5ca   :  { %v15923_v28 = vpop.permute.xlu2 %11274 }
 0x5cb   :  { %v11277_v34 = vunpack.i.h.bf16 %v15923_v28  ;;  %v11276_v15 = vunpack.i.l.bf16 %v15923_v28 }
 0x5cd   :  { %v8178_v50 = vsel %vm19177_vm1, %v11276_v15, %v11277_v34 }
 0x5ce   :  { %v15934_v4 = vmax.f32 %v8132_v46, %v8178_v50 }
 0x5d0   :  { %19180 = vst [vmem:[#allocation54_spill] sm:$0xff] %v15934_v4 }
 0x5d9   :  { %v11255_v41 = vpop.permute.xlu1 %11254  ;;  %v15936_v18 = vpop.permute.xlu2 %11289 }
 0x5da   :  { %v11257_v32 = vunpack.i.h.bf16 %v11255_v41  ;;  %v11256_v16 = vunpack.i.l.bf16 %v11255_v41  ;;  %v11292_v53 = vunpack.i.h.bf16 %v15936_v18  ;;  %v11291_v43 = vunpack.i.l.bf16 %v15936_v18  ;;  %v11260_v45 = vpop.permute.xlu0 %11259 }
 0x5db   :  { %v11262_v20 = vunpack.i.h.bf16 %v11260_v45  ;;  %v11261_v8 = vunpack.i.l.bf16 %v11260_v45  ;;  %v16038_v41 = vadd.s32 104, %v15932_v3  ;;  %v16169_v18 = vadd.s32 472, %v15932_v3 }
 0x5dc   :  { %v8183_v46 = vsel %vm19181_vm13, %v11257_v32, %v11271_v57  ;;  %v8184_v22 = vsel %vm19182_vm6, %v11256_v16, %v11257_v32  ;;  %v8172_v7 = vsel %vm19183_vm12, %v11291_v43, %v11292_v53  ;;  %v8187_v40 = vsel %vm19184_vm0, %v11292_v53, %v11272_v42 }
 0x5dd   :  { %v15955_v56 = vmax.f32 %v15835_v55, %v8184_v22  ;;  %v15958_v37 = vmax.f32 %v15841_v24, %v8183_v46  ;;  %v15960_v38 = vmax.f32 %v8138_v5, %v8172_v7  ;;  %v15962_v60 = vmax.f32 %v8139_v23, %v8187_v40 }
 0x5de   :  { %v8182_v48 = vsel %vm19187_vm15, %v11271_v57, %v11262_v20  ;;  %v8185_v27 = vsel %vm19188_vm9, %v11261_v8, %v11256_v16  ;;  %v8186_v51 = vsel %vm19189_vm14, %v11272_v42, %v11261_v8  ;;  %v8398_v55 = vshll.u32 %v18297_v26, 7 }
 0x5df   :  { %19185 = vst [vmem:[#allocation7_spill] sm:$0xff] %v15960_v38  ;;  %v15973_v19 = vmax.f32 %v15812_v39, %v8186_v51  ;;  %v15976_v24 = vmax.f32 %v15844_v30, %v8185_v27  ;;  %v15979_v21 = vmax.f32 %v15815_v54, %v8182_v48  ;;  %v11298_v33 = vpack.i.bf16 %v15958_v37, %v15955_v56 }
 0x5e0   :  { %19186 = vst [vmem:[#allocation43_spill] sm:$0xff] %v15962_v60  ;;  %v11323_v63 = vpack.i.bf16 %v15962_v60, %v15960_v38  ;;  %v15995_v54 = vadd.s32 120, %v15932_v3  ;;  %v16018_v5 = vadd.s32 488, %v15932_v3  ;;  %v16026_v50 = vadd.s32 %v8400_v47, %v8398_v55 }
 0x5e1   :  { %v11265_v39 = vpop.permute.xlu1 %11264  ;;  %11299 = vrot.lane.b32.xlu0 %v11298_v33, %s11384_s16  ;;  %v11293_v30 = vpack.i.bf16 %v15976_v24, %v15973_v19  ;;  %v16080_v32 = vadd.s32 352, %v15932_v3  ;;  %v16091_v53 = vadd.s32 480, %v15932_v3  ;;  %v16114_v7 = vadd.s32 96, %v15932_v3 }
 0x5e2   :  { %v11267_v0 = vunpack.i.h.bf16 %v11265_v39  ;;  %v11266_v49 = vunpack.i.l.bf16 %v11265_v39  ;;  %vm8449_vm7 = vcmp.eq.s32.totalorder %v15941_v10, %v16026_v50  ;;  %vm8465_vm5 = vcmp.eq.s32.totalorder %v15989_v6, %v16026_v50 }
 0x5e3   :  { %11294 = vrot.lane.b32.xlu1 %v11293_v30, %s11384_s16  ;;  %vm8417_vm4 = vcmp.eq.s32.totalorder %v15995_v54, %v16026_v50  ;;  %vm8433_vm8 = vcmp.eq.s32.totalorder %v15998_v58, %v16026_v50  ;;  %vm8448_vm1 = vcmp.eq.s32.totalorder %v16001_v62, %v16026_v50  ;;  %vm8464_vm13 = vcmp.eq.s32.totalorder %v16005_v35, %v16026_v50 }
 0x5e4   :  { %v8179_v23 = vsel %vm19191_vm10, %v11267_v0, %v11276_v15  ;;  %v8180_v31 = vsel %vm19192_vm3, %v11266_v49, %v11267_v0  ;;  %v8181_v9 = vsel %vm19193_vm11, %v11262_v20, %v11266_v49  ;;  %v16063_v15 = vadd.s32 232, %v15932_v3 }
 0x5e5   :  { %v16029_v29 = vmax.f32 %v15847_v12, %v8181_v9  ;;  %v16032_v42 = vmax.f32 %v15870_v52, %v8180_v31  ;;  %v16035_v57 = vmax.f32 %v15875_v25, %v8179_v23  ;;  %v18387_v25 = vmov 1.0  }
 0x5e6   :  { %10900 = vmatpush.msk.msra.mxu2 %vm8449_vm7, %v18387_v25  ;;  %10916 = vmatpush.msk.msra.mxu3 %vm8465_vm5, %v18387_v25  ;;  %vm8416_vm6 = vcmp.eq.s32.totalorder %v16009_v11, %v16026_v50  ;;  %vm8432_vm12 = vcmp.eq.s32.totalorder %v16012_v61, %v16026_v50  ;;  %vm18275_vm0 = vcmp.eq.s32.totalorder %v16015_v14, %v16026_v50  ;;  %v16131_v27 = vadd.s32 224, %v15932_v3 }
 0x5e7   :  { %v11308_v12 = vpack.i.bf16 %v16029_v29, %v16035_v57  ;;  %v11303_v52 = vpack.i.bf16 %v16032_v42, %v15979_v21  ;;  %10868 = vmatpush.msk.msra.mxu0 %vm8417_vm4, %v18387_v25  ;;  %10884 = vmatpush.msk.msra.mxu1 %vm8433_vm8, %v18387_v25  ;;  %vm8463_vm15 = vcmp.eq.s32.totalorder %v16018_v5, %v16026_v50  ;;  %v16134_v51 = vadd.s32 344, %v15932_v3 }
 0x5e8   :  { %vm18300_vm9 = vcmp.eq.s32.totalorder %v16038_v41, %v16026_v50  ;;  %10901 = vmatpush.msk.msra.mxu2 %vm8448_vm1, %v18387_v25  ;;  %10917 = vmatpush.msk.msra.mxu3 %vm8464_vm13, %v18387_v25  ;;  %vm18283_vm14 = vcmp.eq.s32.totalorder %v16063_v15, %v16026_v50  ;;  %vm18282_vm10 = vcmp.eq.s32.totalorder %v16080_v32, %v16026_v50  ;;  %v16219_v0 = vadd.s32 336, %v15932_v3 }
 0x5e9   :  { %v11280_v16 = vpop.permute.xlu0 %11279  ;;  %11309 = vrot.lane.b32.xlu0 %v11308_v12, %s11384_s16  ;;  %11304 = vrot.lane.b32.xlu2 %v11303_v52, %s11384_s16  ;;  %vm18276_vm3 = vcmp.eq.s32.totalorder %v16091_v53, %v16026_v50  ;;  %v16222_v49 = vadd.s32 464, %v15932_v3  ;;  %v16232_v47 = vadd.s32 80, %v15932_v3  ;;  %v16235_v23 = vadd.s32 208, %v15932_v3 }
 0x5ea   :  { %v11282_v45 = vunpack.i.h.bf16 %v11280_v16  ;;  %v11281_v20 = vunpack.i.l.bf16 %v11280_v16  ;;  %v11285_v8 = vpop.permute.xlu1 %11284  ;;  %10869 = vmatpush.msk.msra.mxu0 %vm8416_vm6, %v18387_v25  ;;  %10885 = vmatpush.msk.msra.mxu1 %vm8432_vm12, %v18387_v25  ;;  %v16238_v31 = vadd.s32 328, %v15932_v3  ;;  %v16250_v9 = vadd.s32 456, %v15932_v3 }
 0x5eb   :  { %v11287_v46 = vunpack.i.h.bf16 %v11285_v8  ;;  %v11286_v22 = vunpack.i.l.bf16 %v11285_v8  ;;  %8220 = vrot.lane.b32.xlu1 %v15934_v4, %s11384_s16  ;;  %10902 = vmatpush.msk.msra.mxu2 %vm18275_vm0, %v18387_v25  ;;  %vm19198_vm0 = vmmov %vm19194_vm2  ;;  %v16253_v12 = vadd.s32 72, %v15932_v3  ;;  %v16285_v52 = vadd.s32 320, %v15932_v3 }
 0x5ec   :  { %v8176_v40 = vsel %vm19193_vm11, %v11281_v20, %v11282_v45  ;;  %v8177_v48 = vsel %vm19194_vm2, %v11277_v34, %v11281_v20  ;;  %vm19197_vm11 = vmmov %vm19194_vm2  ;;  %10918 = vmatpush.msk.msra.mxu3 %vm8463_vm15, %v18387_v25  ;;  %10870 = vmatpush.msk.msra.mxu0 %vm18300_vm9, %v18387_v25  ;;  %v16288_v16 = vadd.s32 448, %v15932_v3  ;;  %v16304_v20 = vadd.s32 192, %v15932_v3 }
 0x5ed   :  { %v16137_v28 = vmax.f32 %v15878_v36, %v8177_v48  ;;  %v16140_v34 = vmax.f32 %v15898_v2, %v8176_v40  ;;  %v8173_v55 = vsel %vm19194_vm2, %v11287_v46, %v11291_v43  ;;  %v8174_v33 = vsel %vm19197_vm11, %v11286_v22, %v11287_v46  ;;  %10886 = vmatpush.msk.msra.mxu1 %vm18283_vm14, %v18387_v25 }
 0x5ee   :  { %v8175_v36 = vsel %vm19198_vm0, %v11282_v45, %v11286_v22  ;;  %v16155_v39 = vmax.f32 %v15905_v17, %v8174_v33  ;;  %v16158_v2 = vmax.f32 %v15908_v1, %v8173_v55  ;;  %10903 = vmatpush.msk.msra.mxu2 %vm18282_vm10, %v18387_v25  ;;  %10919 = vmatpush.msk.msra.mxu3 %vm18276_vm3, %v18387_v25  ;;  %v16187_v17 = vadd.s32 88, %v15932_v3 }
 0x5ef   :  { %19195 = vst [vmem:[#allocation42_spill] sm:$0xff] %v16137_v28  ;;  %v16172_v43 = vmax.f32 %v15902_v59, %v8175_v36  ;;  %vm18281_vm0 = vcmp.eq.s32.totalorder %v16114_v7, %v16026_v50  ;;  %vm18277_vm2 = vcmp.eq.s32.totalorder %v16131_v27, %v16026_v50  ;;  %vm18278_vm11 = vcmp.eq.s32.totalorder %v16134_v51, %v16026_v50 }
 0x5f0   :  { %19196 = vst [vmem:[#allocation47_spill] sm:$0xff] %v16140_v34  ;;  %v11318_v59 = vpack.i.bf16 %v16155_v39, %v16137_v28  ;;  %10871 = vmatpush.msk.msra.mxu0 %vm18281_vm0, %v18387_v25  ;;  %10887 = vmatpush.msk.msra.mxu1 %vm18277_vm2, %v18387_v25  ;;  %vm18280_vm3 = vcmp.eq.s32.totalorder %v16169_v18, %v16026_v50  ;;  %v16204_v1 = vadd.s32 216, %v15932_v3  ;;  %v16301_v45 = vadd.s32 64, %v15932_v3 }
 0x5f1   :  { %19199 = vst [vmem:[#allocation44_spill] sm:$0xff] %v16155_v39  ;;  %v11313_v30 = vpack.i.bf16 %v16172_v43, %v16140_v34  ;;  %10904 = vmatpush.msk.msra.mxu2 %vm18278_vm11, %v18387_v25  ;;  %10920 = vmatpush.msk.msra.mxu3 %vm18280_vm3, %v18387_v25  ;;  %vm18279_vm2 = vcmp.eq.s32.totalorder %v16187_v17, %v16026_v50  ;;  %v16307_v8 = vadd.s32 312, %v15932_v3  ;;  %v16322_v46 = vadd.s32 440, %v15932_v3 }
 0x5f2   :  { %19200 = vst [vmem:[#allocation46_spill] sm:$0xff] %v16158_v2  ;;  %11319 = vrot.lane.b32.xlu0 %v11318_v59, %s11384_s16  ;;  %10872 = vmatpush.msk.msra.mxu0 %vm18279_vm2, %v18387_v25  ;;  %vm18285_vm11 = vcmp.eq.s32.totalorder %v16204_v1, %v16026_v50  ;;  %vm18284_vm2 = vcmp.eq.s32.totalorder %v16219_v0, %v16026_v50  ;;  %v16325_v22 = vadd.s32 56, %v15932_v3  ;;  %v16342_v40 = vadd.s32 184, %v15932_v3 }
 0x5f3   :  { %19201 = vst [vmem:[#allocation68_spill] sm:$0xff] %v16172_v43  ;;  %11324 = vrot.lane.b32.xlu1 %v11323_v63, %s11384_s16  ;;  %11314 = vrot.lane.b32.xlu2 %v11313_v30, %s11384_s16  ;;  %vm18291_vm3 = vcmp.eq.s32.totalorder %v16222_v49, %v16026_v50  ;;  %vm18286_vm0 = vcmp.eq.s32.totalorder %v16232_v47, %v16026_v50  ;;  %v16270_v63 = vadd.s32 200, %v15932_v3  ;;  %v16357_v48 = vadd.s32 304, %v15932_v3 }
 0x5f4   :  { %10888 = vmatpush.msk.msra.mxu1 %vm18285_vm11, %v18387_v25  ;;  %10905 = vmatpush.msk.msra.mxu2 %vm18284_vm2, %v18387_v25  ;;  %vm18288_vm10 = vcmp.eq.s32.totalorder %v16235_v23, %v16026_v50  ;;  %vm18287_vm14 = vcmp.eq.s32.totalorder %v16238_v31, %v16026_v50  ;;  %vm18290_vm2 = vcmp.eq.s32.totalorder %v16250_v9, %v16026_v50  ;;  %v16360_v55 = vadd.s32 432, %v15932_v3 }
 0x5f5   :  { %10921 = vmatpush.msk.msra.mxu3 %vm18291_vm3, %v18387_v25  ;;  %10873 = vmatpush.msk.msra.mxu0 %vm18286_vm0, %v18387_v25  ;;  %vm18289_vm11 = vcmp.eq.s32.totalorder %v16253_v12, %v16026_v50  ;;  %vm18293_vm0 = vcmp.eq.s32.totalorder %v16270_v63, %v16026_v50  ;;  %vm18295_vm3 = vcmp.eq.s32.totalorder %v16307_v8, %v16026_v50  ;;  %v16373_v33 = vadd.s32 48, %v15932_v3 }
 0x5f6   :  { %10889 = vmatpush.msk.msra.mxu1 %vm18288_vm10, %v18387_v25  ;;  %10906 = vmatpush.msk.msra.mxu2 %vm18287_vm14, %v18387_v25  ;;  %vm18292_vm14 = vcmp.eq.s32.totalorder %v16285_v52, %v16026_v50  ;;  %vm18299_vm10 = vcmp.eq.s32.totalorder %v16288_v16, %v16026_v50  ;;  %v16376_v36 = vadd.s32 176, %v15932_v3  ;;  %v16379_v59 = vadd.s32 296, %v15932_v3 }
 0x5f7   :  { %10922 = vmatpush.msk.msra.mxu3 %vm18290_vm2, %v18387_v25  ;;  %10874 = vmatpush.msk.msra.mxu0 %vm18289_vm11, %v18387_v25  ;;  %vm18294_vm11 = vcmp.eq.s32.totalorder %v16301_v45, %v16026_v50  ;;  %vm18296_vm2 = vcmp.eq.s32.totalorder %v16304_v20, %v16026_v50  ;;  %v16392_v30 = vadd.s32 424, %v15932_v3  ;;  %v16395_v26 = vadd.s32 40, %v15932_v3 }
 0x5f8   :  { %10890 = vmatpush.msk.msra.mxu1 %vm18293_vm0, %v18387_v25  ;;  %10907 = vmatpush.msk.msra.mxu2 %vm18292_vm14, %v18387_v25  ;;  %vm18298_vm14 = vcmp.eq.s32.totalorder %v16322_v46, %v16026_v50  ;;  %vm18304_vm0 = vcmp.eq.s32.totalorder %v16325_v22, %v16026_v50  ;;  %19202 = vst [vmem:[#allocation62_spill] sm:$0xff] %v16376_v36  ;;  %v16427_v39 = vadd.s32 288, %v15932_v3  ;;  %v16443_v60 = vadd.s32 32, %v15932_v3 }
 0x5f9   :  { %10923 = vmatpush.msk.msra.mxu3 %vm18299_vm10, %v18387_v25  ;;  %10875 = vmatpush.msk.msra.mxu0 %vm18294_vm11, %v18387_v25  ;;  %vm18303_vm11 = vcmp.eq.s32.totalorder %v16342_v40, %v16026_v50  ;;  %19203 = vst [vmem:[#allocation74_spill] sm:$0xff] %v16379_v59  ;;  %vm18311_vm10 = vcmp.eq.s32.totalorder %v16376_v36, %v16026_v50  ;;  %v16446_v38 = vadd.s32 160, %v15932_v3  ;;  %v16449_v28 = vadd.s32 280, %v15932_v3 }
 0x5fa   :  { %10891 = vmatpush.msk.msra.mxu1 %vm18296_vm2, %v18387_v25  ;;  %10908 = vmatpush.msk.msra.mxu2 %vm18295_vm3, %v18387_v25  ;;  %vm18317_vm3 = vcmp.eq.s32.totalorder %v16357_v48, %v16026_v50  ;;  %vm18307_vm2 = vcmp.eq.s32.totalorder %v16360_v55, %v16026_v50  ;;  %19204 = vst [vmem:[#allocation69_spill] sm:$0xff] %v16392_v30  ;;  %v16464_v4 = vadd.s32 408, %v15932_v3  ;;  %v16467_v43 = vadd.s32 24, %v15932_v3 }
 0x5fb   :  { %8230 = vrot.lane.b32.xlu2 %v16158_v2, %s11384_s16  ;;  %10924 = vmatpush.msk.msra.mxu3 %vm18298_vm14, %v18387_v25  ;;  %19205 = vst [vmem:[#allocation67_spill] sm:$0xff] %v16395_v26  ;;  %vm18312_vm14 = vcmp.eq.s32.totalorder %v16373_v33, %v16026_v50  ;;  %vm18316_vm9 = vcmp.eq.s32.totalorder %v16379_v59, %v16026_v50  ;;  %v16430_v2 = vadd.s32 416, %v15932_v3  ;;  %v16484_v34 = vadd.s32 152, %v15932_v3 }
 0x5fc   :  { %10876 = vmatpush.msk.msra.mxu0 %vm18304_vm0, %v18387_v25  ;;  %10892 = vmatpush.msk.msra.mxu1 %vm18303_vm11, %v18387_v25  ;;  %vm18315_vm11 = vcmp.eq.s32.totalorder %v16392_v30, %v16026_v50  ;;  %vm18320_vm0 = vcmp.eq.s32.totalorder %v16395_v26, %v16026_v50  ;;  %19207 = vst [vmem:[#allocation76_spill] sm:$0xff] %v16427_v39  ;;  %v16502_v26 = vadd.s32 400, %v15932_v3  ;;  %v16521_v30 = vadd.s32 264, %v15932_v3 }
 0x5fd   :  { %10909 = vmatpush.msk.msra.mxu2 %vm18317_vm3, %v18387_v25  ;;  %10925 = vmatpush.msk.msra.mxu3 %vm18307_vm2, %v18387_v25  ;;  %19208 = vst [vmem:[#allocation71_spill] sm:$0xff] %v16430_v2  ;;  %vm18319_vm2 = vcmp.eq.s32.totalorder %v16412_v44, %v16026_v50  ;;  %vm18332_vm3 = vcmp.eq.s32.totalorder %v16449_v28, %v16026_v50  ;;  %v16499_v44 = vadd.s32 272, %v15932_v3 }
 0x5fe   :  { %10877 = vmatpush.msk.msra.mxu0 %vm18312_vm14, %v18387_v25  ;;  %10893 = vmatpush.msk.msra.mxu1 %vm18311_vm10, %v18387_v25  ;;  %19209 = vst [vmem:[#allocation75_spill] sm:$0xff] %v16443_v60  ;;  %vm18333_vm10 = vcmp.eq.s32.totalorder %v16427_v39, %v16026_v50  ;;  %vm18323_vm14 = vcmp.eq.s32.totalorder %v16430_v2, %v16026_v50  ;;  %v16515_v2 = vadd.s32 16, %v15932_v3  ;;  %v16518_v39 = vadd.s32 144, %v15932_v3 }
 0x5ff   :  { %19210 = vst [vmem:[#allocation79_spill] sm:$0xff] %v16446_v38  ;;  %10910 = vmatpush.msk.msra.mxu2 %vm18316_vm9, %v18387_v25  ;;  %10926 = vmatpush.msk.msra.mxu3 %vm18315_vm11, %v18387_v25  ;;  %vm18328_vm11 = vcmp.eq.s32.totalorder %v16443_v60, %v16026_v50  ;;  %vm18327_vm9 = vcmp.eq.s32.totalorder %v16446_v38, %v16026_v50  ;;  %v16536_v38 = vadd.s32 392, %v15932_v3  ;;  %v16539_v60 = vadd.s32 8, %v15932_v3  ;;  %v19329_v61 = vld [vmem:[#allocation62_spill] sm:$0xff] }
 0x600   :  { %19211 = vst [vmem:[#allocation83_spill] sm:$0xff] %v16449_v28  ;;  %10878 = vmatpush.msk.msra.mxu0 %vm18320_vm0, %v18387_v25  ;;  %10894 = vmatpush.msk.msra.mxu1 %vm18319_vm2, %v18387_v25  ;;  %vm18331_vm2 = vcmp.eq.s32.totalorder %v16464_v4, %v16026_v50  ;;  %vm18336_vm0 = vcmp.eq.s32.totalorder %v16467_v43, %v16026_v50  ;;  %v16700_v28 = vadd.s32 864, %v15932_v3 }
 0x601   :  { %19212 = vst [vmem:[#allocation77_spill] sm:$0xff] %v16464_v4  ;;  %10911 = vmatpush.msk.msra.mxu2 %vm18333_vm10, %v18387_v25  ;;  %10927 = vmatpush.msk.msra.mxu3 %vm18323_vm14, %v18387_v25  ;;  %vm18335_vm14 = vcmp.eq.s32.totalorder %v16484_v34, %v16026_v50  ;;  %vm18348_vm10 = vcmp.eq.s32.totalorder %v16521_v30, %v16026_v50  ;;  %v16556_v4 = vadd.s32 136, %v15932_v3  ;;  %v19333_v5 = vld [vmem:[#allocation69_spill] sm:$0xff] }
 0x602   :  { %19213 = vst [vmem:[#allocation73_spill] sm:$0xff] %v16467_v43  ;;  %10879 = vmatpush.msk.msra.mxu0 %vm18328_vm11, %v18387_v25  ;;  %10895 = vmatpush.msk.msra.mxu1 %vm18327_vm9, %v18387_v25  ;;  %vm18342_vm9 = vcmp.eq.s32.totalorder %v16499_v44, %v16026_v50  ;;  %vm18339_vm11 = vcmp.eq.s32.totalorder %v16502_v26, %v16026_v50  ;;  %v16574_v43 = vadd.s32 384, %v15932_v3 }
 0x603   :  { %19214 = vst [vmem:[#allocation55_spill] sm:$0xff] %v16484_v34  ;;  %10912 = vmatpush.msk.msra.mxu2 %vm18332_vm3, %v18387_v25  ;;  %10928 = vmatpush.msk.msra.mxu3 %vm18331_vm2, %v18387_v25  ;;  %vm18344_vm2 = vcmp.eq.s32.totalorder %v16515_v2, %v16026_v50  ;;  %vm18343_vm3 = vcmp.eq.s32.totalorder %v16518_v39, %v16026_v50  ;;  %v16571_v34 = vadd.s32 256, %v15932_v3 }
 0x604   :  { %19215 = vst [vmem:[#allocation45_spill] sm:$0xff] %v16499_v44  ;;  %10880 = vmatpush.msk.msra.mxu0 %vm18336_vm0, %v18387_v25  ;;  %10896 = vmatpush.msk.msra.mxu1 %vm18335_vm14, %v18387_v25  ;;  %vm18347_vm14 = vcmp.eq.s32.totalorder %v16536_v38, %v16026_v50  ;;  %vm18352_vm0 = vcmp.eq.s32.totalorder %v16539_v60, %v16026_v50  ;;  %v16590_v44 = vadd.s32 1016, %v15932_v3 }
 0x605   :  { %19216 = vst [vmem:[#allocation52_spill] sm:$0xff] %v16502_v26  ;;  %10913 = vmatpush.msk.msra.mxu2 %vm18342_vm9, %v18387_v25  ;;  %10929 = vmatpush.msk.msra.mxu3 %vm18339_vm11, %v18387_v25  ;;  %vm18351_vm11 = vcmp.eq.s32.totalorder %v16556_v4, %v16026_v50  ;;  %v16587_v26 = vadd.s32 888, %v15932_v3  ;;  %vm18364_vm9 = vcmp.eq.s32.totalorder %v15932_v3, %v16026_v50 }
 0x606   :  { %19217 = vst [vmem:[#allocation59_spill] sm:$0xff] %v16515_v2  ;;  %10881 = vmatpush.msk.msra.mxu0 %vm18344_vm2, %v18387_v25  ;;  %10897 = vmatpush.msk.msra.mxu1 %vm18343_vm3, %v18387_v25  ;;  %vm18356_vm3 = vcmp.eq.s32.totalorder %v16571_v34, %v16026_v50  ;;  %vm18355_vm2 = vcmp.eq.s32.totalorder %v16574_v43, %v16026_v50  ;;  %v16610_v2 = vadd.s32 632, %v15932_v3 }
 0x607   :  { %19218 = vst [vmem:[#allocation60_spill] sm:$0xff] %v16518_v39  ;;  %10914 = vmatpush.msk.msra.mxu2 %vm18348_vm10, %v18387_v25  ;;  %10930 = vmatpush.msk.msra.mxu3 %vm18347_vm14, %v18387_v25  ;;  %v16607_v39 = vadd.s32 128, %v15932_v3  ;;  %vm18360_vm14 = vcmp.eq.s32.totalorder %v16587_v26, %v16026_v50  ;;  %vm18359_vm10 = vcmp.eq.s32.totalorder %v16590_v44, %v16026_v50 }
 0x608   :  { %19219 = vst [vmem:[#allocation50_spill] sm:$0xff] %v16521_v30  ;;  %10882 = vmatpush.msk.msra.mxu0 %vm18352_vm0, %v18387_v25  ;;  %10898 = vmatpush.msk.msra.mxu1 %vm18351_vm11, %v18387_v25  ;;  %v16628_v30 = vadd.s32 880, %v15932_v3  ;;  %vm18368_vm0 = vcmp.eq.s32.totalorder %v16610_v2, %v16026_v50 }
 0x609   :  { %19220 = vst [vmem:[#allocation57_spill] sm:$0xff] %v16536_v38  ;;  %v16625_v38 = vadd.s32 760, %v15932_v3  ;;  %10915 = vmatpush.msk.msra.mxu2 %vm18356_vm3, %v18387_v25  ;;  %10931 = vmatpush.msk.msra.mxu3 %vm18355_vm2, %v18387_v25  ;;  %vm18363_vm11 = vcmp.eq.s32.totalorder %v16607_v39, %v16026_v50 }
 0x60a   :  { %19221 = vst [vmem:[#allocation82_spill] sm:$0xff] %v16539_v60  ;;  %v16646_v60 = vadd.s32 624, %v15932_v3  ;;  %vm18372_vm3 = vcmp.eq.s32.totalorder %v16628_v30, %v16026_v50  ;;  %10883 = vmatpush.msk.msra.mxu0 %vm18364_vm9, %v18387_v25  ;;  %10899 = vmatpush.msk.msra.mxu1 %vm18363_vm11, %v18387_v25 }
 0x60b   :  { %19222 = vst [vmem:[#allocation49_spill] sm:$0xff] %v16556_v4  ;;  %v16643_v4 = vadd.s32 1008, %v15932_v3  ;;  %10964 = vmatpush.msk.msrb.mxu2 %vm18360_vm14, %v18387_v25  ;;  %10980 = vmatpush.msk.msrb.mxu3 %vm18359_vm10, %v18387_v25  ;;  %vm18367_vm2 = vcmp.eq.s32.totalorder %v16625_v38, %v16026_v50 }
 0x60c   :  { %19223 = vst [vmem:[#allocation58_spill] sm:$0xff] %v16571_v34  ;;  %v16664_v34 = vadd.s32 872, %v15932_v3  ;;  %vm18376_vm14 = vcmp.eq.s32.totalorder %v16646_v60, %v16026_v50  ;;  %10932 = vmatpush.msk.msrb.mxu0 %vm18368_vm0, %v18387_v25  ;;  %10948 = vmatpush.msk.msrb.mxu1 %vm18367_vm2, %v18387_v25 }
 0x60d   :  { %19224 = vst [vmem:[#allocation56_spill] sm:$0xff] %v16574_v43  ;;  %v16661_v43 = vadd.s32 752, %v15932_v3  ;;  %vm18371_vm10 = vcmp.eq.s32.totalorder %v16643_v4, %v16026_v50  ;;  %10965 = vmatpush.msk.msrb.mxu2 %vm18372_vm3, %v18387_v25  ;;  %vm18396_vm3 = vcmp.eq.s32.totalorder %v16700_v28, %v16026_v50 }
 0x60e   :  { %19225 = vst [vmem:[#allocation66_spill] sm:$0xff] %v16587_v26  ;;  %v16682_v26 = vadd.s32 616, %v15932_v3  ;;  %vm18379_vm9 = vcmp.eq.s32.totalorder %v16664_v34, %v16026_v50  ;;  %10981 = vmatpush.msk.msrb.mxu3 %vm18371_vm10, %v18387_v25  ;;  %10933 = vmatpush.msk.msrb.mxu0 %vm18376_vm14, %v18387_v25 }
 0x60f   :  { %19226 = vst [vmem:[#allocation63_spill] sm:$0xff] %v16590_v44  ;;  %v16679_v44 = vadd.s32 1000, %v15932_v3  ;;  %vm18375_vm11 = vcmp.eq.s32.totalorder %v16661_v43, %v16026_v50  ;;  %10966 = vmatpush.msk.msrb.mxu2 %vm18379_vm9, %v18387_v25 }
 0x610   :  { %19227 = vst [vmem:[#allocation65_spill] sm:$0xff] %v16607_v39  ;;  %v16697_v39 = vadd.s32 744, %v15932_v3  ;;  %vm18380_vm0 = vcmp.eq.s32.totalorder %v16682_v26, %v16026_v50  ;;  %10949 = vmatpush.msk.msrb.mxu1 %vm18375_vm11, %v18387_v25 }
 0x611   :  { %19228 = vst [vmem:[#allocation61_spill] sm:$0xff] %v16610_v2  ;;  %vm18378_vm2 = vcmp.eq.s32.totalorder %v16679_v44, %v16026_v50  ;;  %v16718_v2 = vadd.s32 608, %v15932_v3  ;;  %10934 = vmatpush.msk.msrb.mxu0 %vm18380_vm0, %v18387_v25  ;;  %10967 = vmatpush.msk.msrb.mxu2 %vm18396_vm3, %v18387_v25 }
 0x612   :  { %19229 = vst [vmem:[#allocation53_spill] sm:$0xff] %v16625_v38  ;;  %v16715_v38 = vadd.s32 992, %v15932_v3  ;;  %vm18397_vm10 = vcmp.eq.s32.totalorder %v16697_v39, %v16026_v50  ;;  %10982 = vmatpush.msk.msrb.mxu3 %vm18378_vm2, %v18387_v25 }
 0x613   :  { %19230 = vst [vmem:[#allocation80_spill] sm:$0xff] %v16628_v30  ;;  %v16736_v30 = vadd.s32 856, %v15932_v3  ;;  %vm18393_vm14 = vcmp.eq.s32.totalorder %v16718_v2, %v16026_v50  ;;  %10950 = vmatpush.msk.msrb.mxu1 %vm18397_vm10, %v18387_v25 }
 0x614   :  { %19231 = vst [vmem:[#allocation90_spill] sm:$0xff] %v16643_v4  ;;  %v16733_v4 = vadd.s32 736, %v15932_v3  ;;  %vm18395_vm11 = vcmp.eq.s32.totalorder %v16715_v38, %v16026_v50  ;;  %10935 = vmatpush.msk.msrb.mxu0 %vm18393_vm14, %v18387_v25 }
 0x615   :  { %19232 = vst [vmem:[#allocation81_spill] sm:$0xff] %v16646_v60  ;;  %vm18391_vm9 = vcmp.eq.s32.totalorder %v16736_v30, %v16026_v50  ;;  %10983 = vmatpush.msk.msrb.mxu3 %vm18395_vm11, %v18387_v25  ;;  %v16876_v60 = vadd.s32 824, %v15932_v3 }
 0x616   :  { %19233 = vst [vmem:[#allocation92_spill] sm:$0xff] %v16661_v43  ;;  %v16751_v43 = vadd.s32 984, %v15932_v3  ;;  %vm18392_vm2 = vcmp.eq.s32.totalorder %v16733_v4, %v16026_v50  ;;  %10968 = vmatpush.msk.msrb.mxu2 %vm18391_vm9, %v18387_v25 }
 0x617   :  { %19234 = vst [vmem:[#allocation99_spill] sm:$0xff] %v16664_v34  ;;  %10951 = vmatpush.msk.msrb.mxu1 %vm18392_vm2, %v18387_v25  ;;  %v16857_v34 = vadd.s32 960, %v15932_v3 }
 0x618   :  { %19235 = vst [vmem:[#allocation97_spill] sm:$0xff] %v16679_v44  ;;  %vm18390_vm0 = vcmp.eq.s32.totalorder %v16751_v43, %v16026_v50  ;;  %v16838_v44 = vadd.s32 584, %v15932_v3 }
 0x619   :  { %19236 = vst [vmem:[#allocation98_spill] sm:$0xff] %v16682_v26  ;;  %10984 = vmatpush.msk.msrb.mxu3 %vm18390_vm0, %v18387_v25  ;;  %v16810_v25 = vadd.s32 840, %v15932_v3  ;;  %v19252_v26 = vmov 1.0  }
 0x61a   :  { %19237 = vst [vmem:[#allocation78_spill] sm:$0xff] %v16697_v39  ;;  %v16807_v39 = vadd.s32 720, %v15932_v3 }
 0x61b   :  { %19238 = vst [vmem:[#allocation51_spill] sm:$0xff] %v16700_v28  ;;  %v16798_v28 = vadd.s32 848, %v15932_v3  ;;  %vm18412_vm10 = vcmp.eq.s32.totalorder %v16810_v25, %v16026_v50 }
 0x61c   :  { %19239 = vst [vmem:[#allocation107_spill] sm:$0xff] %v16715_v38  ;;  %v16792_v38 = vadd.s32 600, %v15932_v3  ;;  %vm18407_vm3 = vcmp.eq.s32.totalorder %v16807_v39, %v16026_v50 }
 0x61d   :  { %19240 = vst [vmem:[#allocation87_spill] sm:$0xff] %v16718_v2  ;;  %v16795_v2 = vadd.s32 728, %v15932_v3  ;;  %vm18409_vm2 = vcmp.eq.s32.totalorder %v16798_v28, %v16026_v50 }
 0x61e   :  { %19241 = vst [vmem:[#allocation88_spill] sm:$0xff] %v16733_v4  ;;  %v16801_v4 = vadd.s32 976, %v15932_v3  ;;  %vm18413_vm0 = vcmp.eq.s32.totalorder %v16792_v38, %v16026_v50  ;;  %10969 = vmatpush.msk.msrb.mxu2 %vm18409_vm2, %v19252_v26  ;;  %vm18419_vm2 = vcmp.eq.s32.totalorder %v16857_v34, %v16026_v50 }
 0x61f   :  { %19242 = vst [vmem:[#allocation101_spill] sm:$0xff] %v16736_v30  ;;  %v16804_v30 = vadd.s32 592, %v15932_v3  ;;  %vm18399_vm9 = vcmp.eq.s32.totalorder %v16795_v2, %v16026_v50  ;;  %10936 = vmatpush.msk.msrb.mxu0 %vm18413_vm0, %v19252_v26  ;;  %vm18437_vm0 = vcmp.eq.s32.totalorder %v16876_v60, %v16026_v50 }
 0x620   :  { %19243 = vst [vmem:[#allocation72_spill] sm:$0xff] %v16751_v43  ;;  %v16813_v43 = vadd.s32 968, %v15932_v3  ;;  %vm18403_vm14 = vcmp.eq.s32.totalorder %v16801_v4, %v16026_v50  ;;  %10952 = vmatpush.msk.msrb.mxu1 %vm18399_vm9, %v19252_v26  ;;  %10970 = vmatpush.msk.msrb.mxu2 %vm18412_vm10, %v19252_v26 }
 0x621   :  { %19244 = vst [vmem:[#allocation86_spill] sm:$0xff] %v16792_v38  ;;  %vm18408_vm11 = vcmp.eq.s32.totalorder %v16804_v30, %v16026_v50  ;;  %10985 = vmatpush.msk.msrb.mxu3 %vm18403_vm14, %v19252_v26  ;;  %v16854_v38 = vadd.s32 832, %v15932_v3  ;;  %vm8475_vm14 = vcmp.eq.s32.totalorder %v16838_v44, %v16026_v50 }
 0x622   :  { %19245 = vst [vmem:[#allocation102_spill] sm:$0xff] %v16795_v2  ;;  %vm18411_vm9 = vcmp.eq.s32.totalorder %v16813_v43, %v16026_v50  ;;  %v16851_v2 = vadd.s32 712, %v15932_v3  ;;  %10937 = vmatpush.msk.msrb.mxu0 %vm18408_vm11, %v19252_v26  ;;  %10953 = vmatpush.msk.msrb.mxu1 %vm18407_vm3, %v19252_v26 }
 0x623   :  { %19246 = vst [vmem:[#allocation9_spill] sm:$0xff] %v16798_v28  ;;  %v16873_v28 = vadd.s32 704, %v15932_v3  ;;  %10986 = vmatpush.msk.msrb.mxu3 %vm18411_vm9, %v19252_v26  ;;  %vm18421_vm11 = vcmp.eq.s32.totalorder %v16854_v38, %v16026_v50 }
 0x624   :  { %19247 = vst [vmem:[#allocation106_spill] sm:$0xff] %v16801_v4  ;;  %v16870_v4 = vadd.s32 576, %v15932_v3  ;;  %vm18415_vm3 = vcmp.eq.s32.totalorder %v16851_v2, %v16026_v50  ;;  %10938 = vmatpush.msk.msrb.mxu0 %vm8475_vm14, %v19252_v26  ;;  %10971 = vmatpush.msk.msrb.mxu2 %vm18421_vm11, %v19252_v26 }
 0x625   :  { %19248 = vst [vmem:[#allocation91_spill] sm:$0xff] %v16804_v30  ;;  %10954 = vmatpush.msk.msrb.mxu1 %vm18415_vm3, %v19252_v26  ;;  %vm18422_vm10 = vcmp.eq.s32.totalorder %v16873_v28, %v16026_v50  ;;  %10987 = vmatpush.msk.msrb.mxu3 %vm18419_vm2, %v19252_v26 }
 0x626   :  { %19249 = vst [vmem:[#allocation93_spill] sm:$0xff] %v16807_v39  ;;  %v16893_v39 = vadd.s32 952, %v15932_v3  ;;  %vm18420_vm9 = vcmp.eq.s32.totalorder %v16870_v4, %v16026_v50  ;;  %10972 = vmatpush.msk.msrb.mxu2 %vm18437_vm0, %v19252_v26 }
 0x627   :  { %19250 = vst [vmem:[#allocation48_spill] sm:$0xff] %v16810_v25  ;;  %v16929_v25 = vadd.s32 944, %v15932_v3  ;;  %10939 = vmatpush.msk.msrb.mxu0 %vm18420_vm9, %v19252_v26  ;;  %10955 = vmatpush.msk.msrb.mxu1 %vm18422_vm10, %v19252_v26 }
 0x628   :  { %19251 = vst [vmem:[#allocation19_spill] sm:$0xff] %v16813_v43  ;;  %v16910_v43 = vadd.s32 568, %v15932_v3  ;;  %vm18436_vm3 = vcmp.eq.s32.totalorder %v16893_v39, %v16026_v50 }
 0x629   :  { %19253 = vst [vmem:[#allocation108_spill] sm:$0xff] %v16838_v44  ;;  %v16926_v44 = vadd.s32 816, %v15932_v3  ;;  %10988 = vmatpush.msk.msrb.mxu3 %vm18436_vm3, %v19252_v26  ;;  %vm18431_vm10 = vcmp.eq.s32.totalorder %v16929_v25, %v16026_v50 }
 0x62a   :  { %19254 = vst [vmem:[#allocation95_spill] sm:$0xff] %v16851_v2  ;;  %v16923_v2 = vadd.s32 696, %v15932_v3  ;;  %vm18433_vm2 = vcmp.eq.s32.totalorder %v16910_v43, %v16026_v50 }
 0x62b   :  { %19255 = vst [vmem:[#allocation109_spill] sm:$0xff] %v16854_v38  ;;  %vm18432_vm11 = vcmp.eq.s32.totalorder %v16926_v44, %v16026_v50  ;;  %10940 = vmatpush.msk.msrb.mxu0 %vm18433_vm2, %v19252_v26  ;;  %10989 = vmatpush.msk.msrb.mxu3 %vm18431_vm10, %v19252_v26  ;;  %v17060_v38 = vadd.s32 784, %v15932_v3 }
 0x62c   :  { %19256 = vst [vmem:[#allocation84_spill] sm:$0xff] %v16857_v34  ;;  %vm18427_vm9 = vcmp.eq.s32.totalorder %v16923_v2, %v16026_v50  ;;  %10973 = vmatpush.msk.msrb.mxu2 %vm18432_vm11, %v19252_v26  ;;  %v16992_v34 = vadd.s32 800, %v15932_v3 }
 0x62d   :  { %19257 = vst [vmem:[#allocation89_spill] sm:$0xff] %v16870_v4  ;;  %10956 = vmatpush.msk.msrb.mxu1 %vm18427_vm9, %v19252_v26  ;;  %v16973_v4 = vadd.s32 936, %v15932_v3 }
 0x62e   :  { %19258 = vst [vmem:[#allocation100_spill] sm:$0xff] %v16873_v28  ;;  %v16956_v28 = vadd.s32 560, %v15932_v3  ;;  %vm18447_vm0 = vcmp.eq.s32.totalorder %v16992_v34, %v16026_v50 }
 0x62f   :  { %19259 = vst [vmem:[#allocation6_spill] sm:$0xff] %v16876_v60  ;;  %v16970_v60 = vadd.s32 808, %v15932_v3  ;;  %vm18449_vm2 = vcmp.eq.s32.totalorder %v16973_v4, %v16026_v50 }
 0x630   :  { %19260 = vst [vmem:[#allocation103_spill] sm:$0xff] %v16893_v39  ;;  %v16967_v39 = vadd.s32 688, %v15932_v3  ;;  %vm18435_vm9 = vcmp.eq.s32.totalorder %v16956_v28, %v16026_v50  ;;  %10990 = vmatpush.msk.msrb.mxu3 %vm18449_vm2, %v19252_v26 }
 0x631   :  { %19261 = vst [vmem:[#allocation70_spill] sm:$0xff] %v16910_v43  ;;  %v16989_v43 = vadd.s32 680, %v15932_v3  ;;  %10941 = vmatpush.msk.msrb.mxu0 %vm18435_vm9, %v19252_v26  ;;  %vm18439_vm11 = vcmp.eq.s32.totalorder %v16970_v60, %v16026_v50 }
 0x632   :  { %19262 = vst [vmem:[#allocation85_spill] sm:$0xff] %v16923_v2  ;;  %v16986_v2 = vadd.s32 552, %v15932_v3  ;;  %vm18453_vm10 = vcmp.eq.s32.totalorder %v16967_v39, %v16026_v50  ;;  %10974 = vmatpush.msk.msrb.mxu2 %vm18439_vm11, %v19252_v26 }
 0x633   :  { %19263 = vst [vmem:[#allocation111_spill] sm:$0xff] %v16926_v44  ;;  %10957 = vmatpush.msk.msrb.mxu1 %vm18453_vm10, %v19252_v26  ;;  %vm18448_vm3 = vcmp.eq.s32.totalorder %v16989_v43, %v16026_v50  ;;  %v17041_v44 = vadd.s32 920, %v15932_v3  ;;  %vm18463_vm10 = vcmp.eq.s32.totalorder %v17060_v38, %v16026_v50 }
 0x634   :  { %19264 = vst [vmem:[#allocation94_spill] sm:$0xff] %v16929_v25  ;;  %v17005_v25 = vadd.s32 928, %v15932_v3  ;;  %vm18443_vm9 = vcmp.eq.s32.totalorder %v16986_v2, %v16026_v50  ;;  %10975 = vmatpush.msk.msrb.mxu2 %vm18447_vm0, %v19252_v26 }
 0x635   :  { %19265 = vst [vmem:[#allocation110_spill] sm:$0xff] %v16956_v28  ;;  %v17022_v28 = vadd.s32 544, %v15932_v3  ;;  %10942 = vmatpush.msk.msrb.mxu0 %vm18443_vm9, %v19252_v26  ;;  %10958 = vmatpush.msk.msrb.mxu1 %vm18448_vm3, %v19252_v26  ;;  %vm18465_vm2 = vcmp.eq.s32.totalorder %v17041_v44, %v16026_v50 }
 0x636   :  { %19266 = vst [vmem:[#allocation104_spill] sm:$0xff] %v16967_v39  ;;  %vm18452_vm11 = vcmp.eq.s32.totalorder %v17005_v25, %v16026_v50  ;;  %v17038_v39 = vadd.s32 792, %v15932_v3 }
 0x637   :  { %19267 = vst [vmem:[#allocation105_spill] sm:$0xff] %v16970_v60  ;;  %v17035_v60 = vadd.s32 672, %v15932_v3  ;;  %vm18451_vm9 = vcmp.eq.s32.totalorder %v17022_v28, %v16026_v50  ;;  %10991 = vmatpush.msk.msrb.mxu3 %vm18452_vm11, %v19252_v26 }
 0x638   :  { %19268 = vst [vmem:[#allocation96_spill] sm:$0xff] %v16973_v4  ;;  %v17057_v4 = vadd.s32 664, %v15932_v3  ;;  %10943 = vmatpush.msk.msrb.mxu0 %vm18451_vm9, %v19252_v26  ;;  %vm18455_vm3 = vcmp.eq.s32.totalorder %v17038_v39, %v16026_v50 }
 0x639   :  { %19269 = vst [vmem:[#allocation13_spill] sm:$0xff] %v16986_v2  ;;  %v17054_v2 = vadd.s32 536, %v15932_v3  ;;  %vm18469_vm0 = vcmp.eq.s32.totalorder %v17035_v60, %v16026_v50  ;;  %10976 = vmatpush.msk.msrb.mxu2 %vm18455_vm3, %v19252_v26  ;;  %10992 = vmatpush.msk.msrb.mxu3 %vm18465_vm2, %v19252_v26 }
 0x63a   :  { %19270 = vst [vmem:[#allocation12_spill] sm:$0xff] %v16989_v43  ;;  %10959 = vmatpush.msk.msrb.mxu1 %vm18469_vm0, %v19252_v26  ;;  %vm18464_vm11 = vcmp.eq.s32.totalorder %v17057_v4, %v16026_v50  ;;  %v17132_v43 = vadd.s32 768, %v15932_v3 }
 0x63b   :  { %19271 = vst [vmem:[#allocation5_spill] sm:$0xff] %v16992_v34  ;;  %v17077_v34 = vadd.s32 912, %v15932_v3  ;;  %vm18459_vm9 = vcmp.eq.s32.totalorder %v17054_v2, %v16026_v50  ;;  %10977 = vmatpush.msk.msrb.mxu2 %vm18463_vm10, %v19252_v26 }
 0x63c   :  { %19272 = vst [vmem:[#allocation17_spill] sm:$0xff] %v17005_v25  ;;  %10944 = vmatpush.msk.msrb.mxu0 %vm18459_vm9, %v19252_v26  ;;  %v17113_v25 = vadd.s32 904, %v15932_v3  ;;  %10960 = vmatpush.msk.msrb.mxu1 %vm18464_vm11, %v19252_v26  ;;  %vm18491_vm0 = vcmp.eq.s32.totalorder %v17132_v43, %v16026_v50 }
 0x63d   :  { %19273 = vst [vmem:[#allocation30_spill] sm:$0xff] %v17022_v28  ;;  %v17094_v28 = vadd.s32 528, %v15932_v3  ;;  %vm18468_vm3 = vcmp.eq.s32.totalorder %v17077_v34, %v16026_v50 }
 0x63e   :  { %19274 = vst [vmem:[#allocation10_spill] sm:$0xff] %v17035_v60  ;;  %v17110_v60 = vadd.s32 776, %v15932_v3  ;;  %10993 = vmatpush.msk.msrb.mxu3 %vm18468_vm3, %v19252_v26  ;;  %vm18473_vm2 = vcmp.eq.s32.totalorder %v17113_v25, %v16026_v50 }
 0x63f   :  { %19275 = vst [vmem:[#allocation14_spill] sm:$0xff] %v17038_v39  ;;  %v17107_v39 = vadd.s32 656, %v15932_v3  ;;  %vm18467_vm9 = vcmp.eq.s32.totalorder %v17094_v28, %v16026_v50 }
 0x640   :  { %19276 = vst [vmem:[#allocation25_spill] sm:$0xff] %v17041_v44  ;;  %v17129_v44 = vadd.s32 648, %v15932_v3  ;;  %10945 = vmatpush.msk.msrb.mxu0 %vm18467_vm9, %v19252_v26  ;;  %vm18471_vm11 = vcmp.eq.s32.totalorder %v17110_v60, %v16026_v50  ;;  %10994 = vmatpush.msk.msrb.mxu3 %vm18473_vm2, %v19252_v26 }
 0x641   :  { %19277 = vst [vmem:[#allocation23_spill] sm:$0xff] %v17054_v2  ;;  %v17126_v2 = vadd.s32 520, %v15932_v3  ;;  %vm8484_vm10 = vcmp.eq.s32.totalorder %v17107_v39, %v16026_v50  ;;  %10978 = vmatpush.msk.msrb.mxu2 %vm18471_vm11, %v19252_v26 }
 0x642   :  { %19278 = vst [vmem:[#allocation16_spill] sm:$0xff] %v17057_v4  ;;  %10961 = vmatpush.msk.msrb.mxu1 %vm8484_vm10, %v19252_v26  ;;  %vm18474_vm3 = vcmp.eq.s32.totalorder %v17129_v44, %v16026_v50 }
 0x643   :  { %19279 = vst [vmem:[#allocation21_spill] sm:$0xff] %v17060_v38  ;;  %v17149_v38 = vadd.s32 896, %v15932_v3  ;;  %vm8467_vm9 = vcmp.eq.s32.totalorder %v17126_v2, %v16026_v50  ;;  %10979 = vmatpush.msk.msrb.mxu2 %vm18491_vm0, %v19252_v26 }
 0x644   :  { %19280 = vst [vmem:[#allocation27_spill] sm:$0xff] %v17077_v34  ;;  %10946 = vmatpush.msk.msrb.mxu0 %vm8467_vm9, %v19252_v26  ;;  %10962 = vmatpush.msk.msrb.mxu1 %vm18474_vm3, %v19252_v26 }
 0x645   :  { %19281 = vst [vmem:[#allocation32_spill] sm:$0xff] %v17094_v28  ;;  %v17166_v28 = vadd.s32 512, %v15932_v3  ;;  %vm18481_vm11 = vcmp.eq.s32.totalorder %v17149_v38, %v16026_v50 }
 0x646   :  { %19282 = vst [vmem:[#allocation20_spill] sm:$0xff] %v17107_v39  ;;  %10995 = vmatpush.msk.msrb.mxu3 %vm18481_vm11, %v19252_v26  ;;  %vm19291_vm11 = vcmp.lt.s32.totalorder %v19176_v13, 64 }
 0x647   :  { %19283 = vst [vmem:[#allocation11_spill] sm:$0xff] %v17110_v60  ;;  %v17179_v60 = vadd.s32 640, %v15932_v3  ;;  %vm18483_vm2 = vcmp.eq.s32.totalorder %v17166_v28, %v16026_v50 }
 0x648   :  { %19284 = vst [vmem:[#allocation37_spill] sm:$0xff] %v17113_v25  ;;  %10947 = vmatpush.msk.msrb.mxu0 %vm18483_vm2, %v19252_v26  ;;  %vm19292_vm2 = vmmov %vm19291_vm11 }
 0x649   :  { %19285 = vst [vmem:[#allocation36_spill] sm:$0xff] %v17126_v2  ;;  %vm18489_vm3 = vcmp.eq.s32.totalorder %v17179_v60, %v16026_v50  ;;  %vm19294_vm0 = vmmov %vm19292_vm2 }
 0x64a   :  { %19286 = vst [vmem:[#allocation29_spill] sm:$0xff] %v17129_v44  ;;  %10963 = vmatpush.msk.msrb.mxu1 %vm18489_vm3, %v19252_v26  ;;  %vm19293_vm3 = vmmov %vm19292_vm2 }
 0x64b   :  { %19287 = vst [vmem:[#allocation35_spill] sm:$0xff] %v17132_v43  ;;  %v11305_v43 = vpop.permute.xlu2 %11304 }
 0x64c   :  { %19288 = vst [vmem:[#allocation15_spill] sm:$0xff] %v17149_v38  ;;  %v11306_v2 = vunpack.i.l.bf16 %v11305_v43 }
 0x64d   :  { %19289 = vst [vmem:[#allocation26_spill] sm:$0xff] %v17166_v28 }
 0x64e   :  { %19290 = vst [vmem:[#allocation24_spill] sm:$0xff] %v17179_v60 }
 0x653   :  { %v11300_v44 = vpop.permute.xlu0 %11299 }
 0x654   :  { %v11302_v25 = vunpack.i.h.bf16 %v11300_v44  ;;  %v11301_v39 = vunpack.i.l.bf16 %v11300_v44 }
 0x655   :  { %v17205_v38 = vpop.permute.xlu1 %11294 }
 0x656   :  { %v8247_v34 = vsel %vm19291_vm11, %v11302_v25, %v11306_v2  ;;  %v8248_v28 = vsel %vm19292_vm2, %v11301_v39, %v11302_v25  ;;  %v11297_v4 = vunpack.i.h.bf16 %v17205_v38  ;;  %v11296_v30 = vunpack.i.l.bf16 %v17205_v38 }
 0x657   :  { %v8254_v60 = vmax.f32 %v15955_v56, %v8248_v28  ;;  %v8255_v3 = vmax.f32 %v15958_v37, %v8247_v34  ;;  %vm19306_vm2 = vcmp.eq.s32.totalorder %v16134_v51, %v16026_v50  ;;  %vm19307_vm11 = vcmp.eq.s32.totalorder %v16169_v18, %v16026_v50  ;;  %v19347_v51 = vld [vmem:[#allocation83_spill] sm:$0xff]  ;;  %v19349_v28 = vld [vmem:[#allocation77_spill] sm:$0xff] }
 0x658   :  { %v8249_v59 = vsel %vm19293_vm3, %v11297_v4, %v11301_v39  ;;  %v8250_v44 = vsel %vm19294_vm0, %v11296_v30, %v11297_v4  ;;  %v11307_v4 = vunpack.i.h.bf16 %v11305_v43  ;;  %vm19304_vm3 = vcmp.eq.s32.totalorder %v16114_v7, %v16026_v50  ;;  %v19343_v7 = vld [vmem:[#allocation75_spill] sm:$0xff] }
 0x659   :  { %v8252_v36 = vmax.f32 %v15973_v19, %v8250_v44  ;;  %v8253_v25 = vmax.f32 %v15976_v24, %v8249_v59  ;;  %8842 = vmatmul.f32.vlgmr.msra.gmra.mxu2 %v8254_v60  ;;  %8862 = vmatmul.f32.vlgmr.msra.gmra.mxu3 %v8255_v3  ;;  %v19354_v18 = vld [vmem:[#allocation55_spill] sm:$0xff]  ;;  %v19389_v44 = vld [vmem:[#allocation65_spill] sm:$0xff] }
 0x65a   :  { %11028 = vmatpush.msk.msra.mxu2 %vm8449_vm7, %v19252_v26  ;;  %11044 = vmatpush.msk.msra.mxu3 %vm8465_vm5, %v19252_v26  ;;  %vm19295_vm7 = vmmov %vm19294_vm0  ;;  %v19387_v59 = vld [vmem:[#allocation31_spill] sm:$0xff] }
 0x65b   :  { %8802 = vmatmul.f32.vlgmr.msra.gmra.mxu0 %v8252_v36  ;;  %v11310_v56 = vpop.permute.xlu0 %11309  ;;  %8822 = vmatmul.f32.vlgmr.msra.gmra.mxu1 %v8253_v25  ;;  %vm19296_vm5 = vmmov %vm19294_vm0  ;;  %v19385_v36 = vld [vmem:[#allocation63_spill] sm:$0xff]  ;;  %v19391_v25 = vld [vmem:[#allocation61_spill] sm:$0xff] }
 0x65c   :  { %10996 = vmatpush.msk.msra.mxu0 %vm8417_vm4, %v19252_v26  ;;  %v11311_v3 = vunpack.i.l.bf16 %v11310_v56  ;;  %11012 = vmatpush.msk.msra.mxu1 %vm8433_vm8, %v19252_v26  ;;  %v11312_v10 = vunpack.i.h.bf16 %v11310_v56  ;;  %vm19297_vm4 = vcmp.eq.s32.totalorder %v16015_v14, %v16026_v50  ;;  %vm19298_vm8 = vmmov %vm19294_vm0  ;;  %v19331_v14 = vld [vmem:[#allocation74_spill] sm:$0xff]  ;;  %v19393_v56 = vld [vmem:[#allocation53_spill] sm:$0xff] }
 0x65d   :  { %11029 = vmatpush.msk.msra.mxu2 %vm8448_vm1, %v19252_v26  ;;  %11045 = vmatpush.msk.msra.mxu3 %vm8464_vm13, %v19252_v26  ;;  %v17247_v37 = vpop.permute.xlu1 %8220  ;;  %vm19299_vm1 = vmmov %vm19294_vm0  ;;  %vm19300_vm13 = vcmp.eq.s32.totalorder %v16038_v41, %v16026_v50  ;;  %vm19305_vm0 = vcmp.eq.s32.totalorder %v16131_v27, %v16026_v50  ;;  %v19337_v41 = vld [vmem:[#allocation64_spill] sm:$0xff]  ;;  %v19345_v27 = vld [vmem:[#allocation79_spill] sm:$0xff] }
 0x65e   :  { %v8244_v60 = vsel %vm19295_vm7, %v11307_v4, %v11311_v3  ;;  %v8243_v19 = vsel %vm19296_vm5, %v11311_v3, %v17247_v37  ;;  %10997 = vmatpush.msk.msra.mxu0 %vm8416_vm6, %v19252_v26  ;;  %11013 = vmatpush.msk.msra.mxu1 %vm8432_vm12, %v19252_v26  ;;  %v8245_v54 = vsel %vm19298_vm8, %v11312_v10, %v11307_v4  ;;  %v19395_v4 = vld [vmem:[#allocation80_spill] sm:$0xff]  ;;  %v19397_v3 = vld [vmem:[#allocation90_spill] sm:$0xff] }
 0x65f   :  { %v8258_v24 = vmax.f32 %v16032_v42, %v8244_v60  ;;  %v8259_v6 = vmax.f32 %v16035_v57, %v8243_v19  ;;  %11030 = vmatpush.msk.msra.mxu2 %vm19297_vm4, %v19252_v26  ;;  %11046 = vmatpush.msk.msra.mxu3 %vm8463_vm15, %v19252_v26  ;;  %v8246_v58 = vsel %vm19299_vm1, %v11306_v2, %v11312_v10  ;;  %v19335_v57 = vld [vmem:[#allocation67_spill] sm:$0xff]  ;;  %v19352_v2 = vld [vmem:[#allocation73_spill] sm:$0xff] }
 0x660   :  { %10998 = vmatpush.msk.msra.mxu0 %vm19300_vm13, %v19252_v26  ;;  %vm19301_vm6 = vcmp.eq.s32.totalorder %v16063_v15, %v16026_v50  ;;  %vm19302_vm12 = vcmp.eq.s32.totalorder %v16080_v32, %v16026_v50  ;;  %vm19303_vm15 = vcmp.eq.s32.totalorder %v16091_v53, %v16026_v50  ;;  %v8256_v62 = vmax.f32 %v15979_v21, %v8246_v58  ;;  %v11315_v21 = vpop.permute.xlu2 %11314  ;;  %v19339_v32 = vld [vmem:[#allocation76_spill] sm:$0xff]  ;;  %v19341_v53 = vld [vmem:[#allocation71_spill] sm:$0xff]  ;;  %v19399_v10 = vld [vmem:[#allocation81_spill] sm:$0xff] }
 0x661   :  { %11014 = vmatpush.msk.msra.mxu1 %vm19301_vm6, %v19252_v26  ;;  %11031 = vmatpush.msk.msra.mxu2 %vm19302_vm12, %v19252_v26  ;;  %v8257_v35 = vmax.f32 %v16029_v29, %v8245_v54  ;;  %vm19308_vm7 = vcmp.eq.s32.totalorder %v16187_v17, %v16026_v50  ;;  %vm19309_vm5 = vcmp.eq.s32.totalorder %v16204_v1, %v16026_v50  ;;  %v11317_v29 = vunpack.i.h.bf16 %v11315_v21  ;;  %v19357_v17 = vld [vmem:[#allocation45_spill] sm:$0xff]  ;;  %v19359_v1 = vld [vmem:[#allocation52_spill] sm:$0xff]  ;;  %v19403_v60 = vld [vmem:[#allocation99_spill] sm:$0xff] }
 0x662   :  { %11047 = vmatpush.msk.msra.mxu3 %vm19303_vm15, %v19252_v26  ;;  %8922 = vmatmul.f32.vlgmr.msrb.gmra.mxu2 %v8258_v24  ;;  %vm19310_vm4 = vcmp.eq.s32.totalorder %v16219_v0, %v16026_v50  ;;  %vm19311_vm8 = vcmp.eq.s32.totalorder %v16222_v49, %v16026_v50  ;;  %vm19312_vm1 = vcmp.eq.s32.totalorder %v16232_v47, %v16026_v50  ;;  %v11316_v42 = vunpack.i.l.bf16 %v11315_v21  ;;  %v19361_v0 = vld [vmem:[#allocation59_spill] sm:$0xff]  ;;  %v19363_v49 = vld [vmem:[#allocation60_spill] sm:$0xff]  ;;  %v19405_v19 = vld [vmem:[#allocation97_spill] sm:$0xff] }
 0x663   :  { %8942 = vmatmul.f32.vlgmr.msrb.gmra.mxu3 %v8259_v6  ;;  %10999 = vmatpush.msk.msra.mxu0 %vm19304_vm3, %v19252_v26  ;;  %vm19313_vm13 = vcmp.eq.s32.totalorder %v16235_v23, %v16026_v50  ;;  %vm19314_vm6 = vcmp.eq.s32.totalorder %v16238_v31, %v16026_v50  ;;  %vm19315_vm12 = vcmp.eq.s32.totalorder %v16250_v9, %v16026_v50  ;;  %v19365_v47 = vld [vmem:[#allocation47_spill] sm:$0xff]  ;;  %v19366_v31 = vld [vmem:[#allocation50_spill] sm:$0xff]  ;;  %v19368_v9 = vld [vmem:[#allocation57_spill] sm:$0xff] }
 0x664   :  { %11015 = vmatpush.msk.msra.mxu1 %vm19305_vm0, %v19252_v26  ;;  %11032 = vmatpush.msk.msra.mxu2 %vm19306_vm2, %v19252_v26  ;;  %vm19316_vm15 = vcmp.eq.s32.totalorder %v16253_v12, %v16026_v50  ;;  %vm19317_vm3 = vcmp.eq.s32.totalorder %v16270_v63, %v16026_v50  ;;  %vm19318_vm0 = vcmp.eq.s32.totalorder %v16285_v52, %v16026_v50  ;;  %v17390_v11 = vpop.permute.xlu0 %11319  ;;  %v19372_v52 = vld [vmem:[#allocation68_spill] sm:$0xff]  ;;  %v19407_v24 = vld [vmem:[#allocation98_spill] sm:$0xff]  ;;  %v19411_v54 = vld [vmem:[#allocation51_spill] sm:$0xff] }
 0x665   :  { %11048 = vmatpush.msk.msra.mxu3 %vm19307_vm11, %v19252_v26  ;;  %8882 = vmatmul.f32.vlgmr.msrb.gmra.mxu0 %v8256_v62  ;;  %vm19319_vm2 = vcmp.eq.s32.totalorder %v16288_v16, %v16026_v50  ;;  %vm19320_vm11 = vcmp.eq.s32.totalorder %v16301_v45, %v16026_v50  ;;  %v11322_v15 = vunpack.i.h.bf16 %v17390_v11  ;;  %v11321_v39 = vunpack.i.l.bf16 %v17390_v11  ;;  %v19373_v45 = vld [vmem:[#allocation82_spill] sm:$0xff]  ;;  %v19413_v58 = vld [vmem:[#allocation107_spill] sm:$0xff]  ;;  %v19419_v21 = vld [vmem:[#allocation101_spill] sm:$0xff] }
 0x666   :  { %8902 = vmatmul.f32.vlgmr.msrb.gmra.mxu1 %v8257_v35  ;;  %11000 = vmatpush.msk.msra.mxu0 %vm19308_vm7, %v19252_v26  ;;  %vm19321_vm7 = vcmp.eq.s32.totalorder %v16304_v20, %v16026_v50  ;;  %v19375_v20 = vld [vmem:[#allocation49_spill] sm:$0xff]  ;;  %v19409_v6 = vld [vmem:[#allocation78_spill] sm:$0xff]  ;;  %v19415_v62 = vld [vmem:[#allocation87_spill] sm:$0xff] }
 0x667   :  { %11016 = vmatpush.msk.msra.mxu1 %vm19309_vm5, %v19252_v26  ;;  %11033 = vmatpush.msk.msra.mxu2 %vm19310_vm4, %v19252_v26  ;;  %vm19322_vm5 = vcmp.eq.s32.totalorder %v16307_v8, %v16026_v50  ;;  %vm19323_vm4 = vcmp.eq.s32.totalorder %v16322_v46, %v16026_v50  ;;  %v19377_v8 = vld [vmem:[#allocation58_spill] sm:$0xff]  ;;  %v19379_v46 = vld [vmem:[#allocation56_spill] sm:$0xff]  ;;  %v19508_v11 = vld [vmem:[#allocation29_spill] sm:$0xff] }
 0x668   :  { %11049 = vmatpush.msk.msra.mxu3 %vm19311_vm8, %v19252_v26  ;;  %11001 = vmatpush.msk.msra.mxu0 %vm19312_vm1, %v19252_v26  ;;  %vm19324_vm8 = vcmp.eq.s32.totalorder %v16325_v22, %v16026_v50  ;;  %vm19325_vm1 = vcmp.eq.s32.totalorder %v16342_v40, %v16026_v50  ;;  %v19381_v22 = vld [vmem:[#allocation54_spill] sm:$0xff]  ;;  %v19417_v35 = vld [vmem:[#allocation88_spill] sm:$0xff] }
 0x669   :  { %11017 = vmatpush.msk.msra.mxu1 %vm19313_vm13, %v19252_v26  ;;  %11034 = vmatpush.msk.msra.mxu2 %vm19314_vm6, %v19252_v26  ;;  %vm19326_vm13 = vcmp.eq.s32.totalorder %v16357_v48, %v16026_v50  ;;  %vm19327_vm6 = vcmp.eq.s32.totalorder %v16360_v55, %v16026_v50  ;;  %v19382_v48 = vld [vmem:[#allocation42_spill] sm:$0xff] }
 0x66a   :  { %11050 = vmatpush.msk.msra.mxu3 %vm19315_vm12, %v19252_v26  ;;  %11002 = vmatpush.msk.msra.mxu0 %vm19316_vm15, %v19252_v26  ;;  %vm19328_vm12 = vcmp.eq.s32.totalorder %v16373_v33, %v16026_v50  ;;  %vm19330_vm15 = vcmp.eq.s32.totalorder %v19329_v61, %v16026_v50  ;;  %v19383_v33 = vld [vmem:[#allocation66_spill] sm:$0xff]  ;;  %v19421_v61 = vld [vmem:[#allocation72_spill] sm:$0xff] }
 0x66b   :  { %11018 = vmatpush.msk.msra.mxu1 %vm19317_vm3, %v19252_v26  ;;  %11035 = vmatpush.msk.msra.mxu2 %vm19318_vm0, %v19252_v26  ;;  %vm19332_vm3 = vcmp.eq.s32.totalorder %v19331_v14, %v16026_v50  ;;  %vm19334_vm0 = vcmp.eq.s32.totalorder %v19333_v5, %v16026_v50  ;;  %v19423_v14 = vld [vmem:[#allocation86_spill] sm:$0xff] }
 0x66c   :  { %11051 = vmatpush.msk.msra.mxu3 %vm19319_vm2, %v19252_v26  ;;  %11003 = vmatpush.msk.msra.mxu0 %vm19320_vm11, %v19252_v26  ;;  %vm19336_vm2 = vcmp.eq.s32.totalorder %v19335_v57, %v16026_v50  ;;  %vm19338_vm11 = vcmp.eq.s32.totalorder %v19337_v41, %v16026_v50  ;;  %v19425_v5 = vld [vmem:[#allocation102_spill] sm:$0xff]  ;;  %v19431_v57 = vld [vmem:[#allocation91_spill] sm:$0xff]  ;;  %v19433_v41 = vld [vmem:[#allocation93_spill] sm:$0xff] }
 0x66d   :  { %11019 = vmatpush.msk.msra.mxu1 %vm19321_vm7, %v19252_v26  ;;  %11036 = vmatpush.msk.msra.mxu2 %vm19322_vm5, %v19252_v26  ;;  %vm19340_vm7 = vcmp.eq.s32.totalorder %v19339_v32, %v16026_v50  ;;  %vm19342_vm5 = vcmp.eq.s32.totalorder %v19341_v53, %v16026_v50  ;;  %v19435_v32 = vld [vmem:[#allocation48_spill] sm:$0xff]  ;;  %v19437_v53 = vld [vmem:[#allocation19_spill] sm:$0xff] }
 0x66e   :  { %11052 = vmatpush.msk.msra.mxu3 %vm19323_vm4, %v19252_v26  ;;  %11004 = vmatpush.msk.msra.mxu0 %vm19324_vm8, %v19252_v26  ;;  %vm19344_vm4 = vcmp.eq.s32.totalorder %v19343_v7, %v16026_v50  ;;  %vm19346_vm8 = vcmp.eq.s32.totalorder %v19345_v27, %v16026_v50  ;;  %v19440_v27 = vld [vmem:[#allocation95_spill] sm:$0xff] }
 0x66f   :  { %11020 = vmatpush.msk.msra.mxu1 %vm19325_vm1, %v19252_v26  ;;  %11037 = vmatpush.msk.msra.mxu2 %vm19326_vm13, %v19252_v26  ;;  %vm19348_vm1 = vcmp.eq.s32.totalorder %v19347_v51, %v16026_v50  ;;  %vm19350_vm13 = vcmp.eq.s32.totalorder %v19349_v28, %v16026_v50  ;;  %v19442_v51 = vld [vmem:[#allocation109_spill] sm:$0xff]  ;;  %v19444_v28 = vld [vmem:[#allocation84_spill] sm:$0xff] }
 0x670   :  { %11053 = vmatpush.msk.msra.mxu3 %vm19327_vm6, %v19252_v26  ;;  %11005 = vmatpush.msk.msra.mxu0 %vm19328_vm12, %v19252_v26  ;;  %vm19351_vm6 = vcmp.lt.s32.totalorder %v19176_v13, 64  ;;  %vm19353_vm12 = vcmp.eq.s32.totalorder %v19352_v2, %v16026_v50  ;;  %v19450_v2 = vld [vmem:[#allocation6_spill] sm:$0xff] }
 0x671   :  { %11021 = vmatpush.msk.msra.mxu1 %vm19330_vm15, %v19252_v26  ;;  %11038 = vmatpush.msk.msra.mxu2 %vm19332_vm3, %v19252_v26  ;;  %v8240_v34 = vsel %vm19351_vm6, %v11316_v42, %v11317_v29  ;;  %vm19355_vm15 = vcmp.eq.s32.totalorder %v19354_v18, %v16026_v50  ;;  %vm19356_vm3 = vmmov %vm19351_vm6  ;;  %vm19376_vm6 = vcmp.eq.s32.totalorder %v19375_v20, %v16026_v50  ;;  %v19452_v18 = vld [vmem:[#allocation103_spill] sm:$0xff]  ;;  %v19476_v20 = vld [vmem:[#allocation17_spill] sm:$0xff] }
 0x672   :  { %11054 = vmatpush.msk.msra.mxu3 %vm19334_vm0, %v19252_v26  ;;  %11006 = vmatpush.msk.msra.mxu0 %vm19336_vm2, %v19252_v26  ;;  %v8239_v43 = vsel %vm19356_vm3, %v11317_v29, %v11322_v15  ;;  %vm19358_vm0 = vcmp.eq.s32.totalorder %v19357_v17, %v16026_v50  ;;  %vm19360_vm2 = vcmp.eq.s32.totalorder %v19359_v1, %v16026_v50  ;;  %v19427_v29 = vld [vmem:[#allocation9_spill] sm:$0xff]  ;;  %v19458_v1 = vld [vmem:[#allocation111_spill] sm:$0xff] }
 0x673   :  { %11022 = vmatpush.msk.msra.mxu1 %vm19338_vm11, %v19252_v26  ;;  %11039 = vmatpush.msk.msra.mxu2 %vm19340_vm7, %v19252_v26  ;;  %vm19362_vm11 = vcmp.eq.s32.totalorder %v19361_v0, %v16026_v50  ;;  %vm19364_vm7 = vcmp.eq.s32.totalorder %v19363_v49, %v16026_v50  ;;  %v8262_v23 = vmax.f32 %v19365_v47, %v8240_v34  ;;  %v19446_v34 = vld [vmem:[#allocation89_spill] sm:$0xff]  ;;  %v19460_v0 = vld [vmem:[#allocation94_spill] sm:$0xff]  ;;  %v11325_v49 = vpop.permute.xlu1 %11324 }
 0x674   :  { %11055 = vmatpush.msk.msra.mxu3 %vm19342_vm5, %v19252_v26  ;;  %11007 = vmatpush.msk.msra.mxu0 %vm19344_vm4, %v19252_v26  ;;  %vm19367_vm5 = vcmp.eq.s32.totalorder %v19366_v31, %v16026_v50  ;;  %vm19369_vm4 = vcmp.eq.s32.totalorder %v19368_v9, %v16026_v50  ;;  %v8263_v16 = vmax.f32 %v19372_v52, %v8239_v43  ;;  %v19454_v43 = vld [vmem:[#allocation70_spill] sm:$0xff]  ;;  %v19456_v17 = vld [vmem:[#allocation85_spill] sm:$0xff]  ;;  %v19468_v9 = vld [vmem:[#allocation96_spill] sm:$0xff]  ;;  %v11327_v52 = vunpack.i.h.bf16 %v11325_v49 }
 0x675   :  { %11023 = vmatpush.msk.msra.mxu1 %vm19346_vm8, %v19252_v26  ;;  %11040 = vmatpush.msk.msra.mxu2 %vm19348_vm1, %v19252_v26  ;;  %vm19370_vm8 = vmmov %vm19356_vm3  ;;  %v19462_v47 = vld [vmem:[#allocation110_spill] sm:$0xff]  ;;  %v19466_v31 = vld [vmem:[#allocation105_spill] sm:$0xff] }
 0x676   :  { %11056 = vmatpush.msk.msra.mxu3 %vm19350_vm13, %v19252_v26  ;;  %11008 = vmatpush.msk.msra.mxu0 %vm19353_vm12, %v19252_v26  ;;  %v8241_v12 = vsel %vm19370_vm8, %v11321_v39, %v11316_v42  ;;  %vm19371_vm1 = vmmov %vm19356_vm3  ;;  %vm19374_vm13 = vcmp.eq.s32.totalorder %v19373_v45, %v16026_v50  ;;  %vm19378_vm12 = vcmp.eq.s32.totalorder %v19377_v8, %v16026_v50  ;;  %v19429_v42 = vld [vmem:[#allocation106_spill] sm:$0xff]  ;;  %v19474_v45 = vld [vmem:[#allocation5_spill] sm:$0xff] }
 0x677   :  { %11024 = vmatpush.msk.msra.mxu1 %vm19355_vm15, %v19252_v26  ;;  %11041 = vmatpush.msk.msra.mxu2 %vm19358_vm0, %v19252_v26  ;;  %v8242_v63 = vsel %vm19371_vm1, %v17247_v37, %v11321_v39  ;;  %vm19380_vm15 = vcmp.eq.s32.totalorder %v19379_v46, %v16026_v50  ;;  %v8261_v55 = vmax.f32 %v19382_v48, %v8241_v12  ;;  %v19401_v37 = vld [vmem:[#allocation92_spill] sm:$0xff]  ;;  %v19470_v12 = vld [vmem:[#allocation13_spill] sm:$0xff]  ;;  %v19478_v8 = vld [vmem:[#allocation30_spill] sm:$0xff] }
 0x678   :  { %11057 = vmatpush.msk.msra.mxu3 %vm19360_vm2, %v19252_v26  ;;  %11009 = vmatpush.msk.msra.mxu0 %vm19362_vm11, %v19252_v26  ;;  %v8260_v40 = vmax.f32 %v19381_v22, %v8242_v63  ;;  %vm19384_vm3 = vcmp.eq.s32.totalorder %v19383_v33, %v16026_v50  ;;  %vm19386_vm0 = vcmp.eq.s32.totalorder %v19385_v36, %v16026_v50  ;;  %v19448_v39 = vld [vmem:[#allocation100_spill] sm:$0xff]  ;;  %v19480_v46 = vld [vmem:[#allocation10_spill] sm:$0xff]  ;;  %v19486_v48 = vld [vmem:[#allocation23_spill] sm:$0xff] }
 0x679   :  { %11025 = vmatpush.msk.msra.mxu1 %vm19364_vm7, %v19252_v26  ;;  %11042 = vmatpush.msk.msra.mxu2 %vm19367_vm5, %v19252_v26  ;;  %vm19388_vm2 = vcmp.eq.s32.totalorder %v19387_v59, %v16026_v50  ;;  %vm19390_vm11 = vcmp.eq.s32.totalorder %v19389_v44, %v16026_v50  ;;  %vm19392_vm7 = vcmp.eq.s32.totalorder %v19391_v25, %v16026_v50  ;;  %v19472_v63 = vld [vmem:[#allocation12_spill] sm:$0xff]  ;;  %v19482_v22 = vld [vmem:[#allocation14_spill] sm:$0xff]  ;;  %v19492_v59 = vld [vmem:[#allocation21_spill] sm:$0xff]  ;;  %v8231_v25 = vpop.permute.xlu2 %8230 }
 0x67a   :  { %11058 = vmatpush.msk.msra.mxu3 %vm19369_vm4, %v19252_v26  ;;  %11010 = vmatpush.msk.msra.mxu0 %vm19374_vm13, %v19252_v26  ;;  %vm19394_vm5 = vcmp.eq.s32.totalorder %v19393_v56, %v16026_v50  ;;  %vm19396_vm4 = vcmp.eq.s32.totalorder %v19395_v4, %v16026_v50  ;;  %vm19398_vm8 = vcmp.eq.s32.totalorder %v19397_v3, %v16026_v50  ;;  %v19494_v44 = vld [vmem:[#allocation27_spill] sm:$0xff]  ;;  %v19496_v56 = vld [vmem:[#allocation32_spill] sm:$0xff] }
 0x67b   :  { %11026 = vmatpush.msk.msra.mxu1 %vm19376_vm6, %v19252_v26  ;;  %11043 = vmatpush.msk.msra.mxu2 %vm19378_vm12, %v19252_v26  ;;  %vm19400_vm1 = vcmp.eq.s32.totalorder %v19399_v10, %v16026_v50  ;;  %vm19402_vm13 = vcmp.eq.s32.totalorder %v19401_v37, %v16026_v50  ;;  %vm19404_vm6 = vcmp.eq.s32.totalorder %v19403_v60, %v16026_v50  ;;  %v19501_v3 = vld [vmem:[#allocation11_spill] sm:$0xff]  ;;  %v19503_v10 = vld [vmem:[#allocation37_spill] sm:$0xff] }
 0x67c   :  { %11059 = vmatpush.msk.msra.mxu3 %vm19380_vm15, %v19252_v26  ;;  %9002 = vmatmul.f32.vlgmr.msra.gmra.mxu2 %v8262_v23  ;;  %vm19406_vm12 = vcmp.eq.s32.totalorder %v19405_v19, %v16026_v50  ;;  %vm19408_vm15 = vcmp.eq.s32.totalorder %v19407_v24, %v16026_v50  ;;  %v19464_v23 = vld [vmem:[#allocation104_spill] sm:$0xff]  ;;  %v19505_v37 = vld [vmem:[#allocation7_spill] sm:$0xff] }
 0x67d   :  { %9022 = vmatmul.f32.vlgmr.msra.gmra.mxu3 %v8263_v16  ;;  %11092 = vmatpush.msk.msrb.mxu2 %vm19384_vm3, %v19252_v26  ;;  %vm19410_vm3 = vcmp.eq.s32.totalorder %v19409_v6, %v16026_v50  ;;  %v11326_v16 = vunpack.i.l.bf16 %v11325_v49  ;;  %v19506_v19 = vld [vmem:[#allocation43_spill] sm:$0xff] }
 0x67e   :  { %11108 = vmatpush.msk.msrb.mxu3 %vm19386_vm0, %v19252_v26  ;;  %11011 = vmatpush.msk.msra.mxu0 %vm19388_vm2, %v19252_v26  ;;  %vm19412_vm0 = vcmp.eq.s32.totalorder %v19411_v54, %v16026_v50  ;;  %vm19414_vm2 = vcmp.eq.s32.totalorder %v19413_v58, %v16026_v50  ;;  %v19512_v54 = vld [vmem:[#allocation15_spill] sm:$0xff]  ;;  %v19514_v58 = vld [vmem:[#allocation46_spill] sm:$0xff] }
 0x67f   :  { %11027 = vmatpush.msk.msra.mxu1 %vm19390_vm11, %v19252_v26  ;;  %8962 = vmatmul.f32.vlgmr.msra.gmra.mxu0 %v8260_v40  ;;  %vm19416_vm11 = vcmp.eq.s32.totalorder %v19415_v62, %v16026_v50  ;;  %v19484_v40 = vld [vmem:[#allocation25_spill] sm:$0xff] }
 0x680   :  { %8982 = vmatmul.f32.vlgmr.msra.gmra.mxu1 %v8261_v55  ;;  %11060 = vmatpush.msk.msrb.mxu0 %vm19392_vm7, %v19252_v26  ;;  %vm19418_vm7 = vcmp.eq.s32.totalorder %v19417_v35, %v16026_v50  ;;  %v19488_v55 = vld [vmem:[#allocation16_spill] sm:$0xff] }
 0x681   :  { %11076 = vmatpush.msk.msrb.mxu1 %vm19394_vm5, %v19252_v26  ;;  %11093 = vmatpush.msk.msrb.mxu2 %vm19396_vm4, %v19252_v26  ;;  %vm19420_vm5 = vcmp.eq.s32.totalorder %v19419_v21, %v16026_v50  ;;  %vm19422_vm4 = vcmp.eq.s32.totalorder %v19421_v61, %v16026_v50  ;;  %v19515_v35 = vld [vmem:[#allocation44_spill] sm:$0xff]  ;;  %v19516_v61 = vld [vmem:[#allocation26_spill] sm:$0xff] }
 0x682   :  { %11109 = vmatpush.msk.msrb.mxu3 %vm19398_vm8, %v19252_v26  ;;  %11061 = vmatpush.msk.msrb.mxu0 %vm19400_vm1, %v19252_v26  ;;  %vm19424_vm8 = vcmp.eq.s32.totalorder %v19423_v14, %v16026_v50  ;;  %vm19426_vm1 = vcmp.eq.s32.totalorder %v19425_v5, %v16026_v50  ;;  %v19518_v14 = vld [vmem:[#allocation24_spill] sm:$0xff] }
 0x683   :  { %11077 = vmatpush.msk.msrb.mxu1 %vm19402_vm13, %v19252_v26  ;;  %11094 = vmatpush.msk.msrb.mxu2 %vm19404_vm6, %v19252_v26  ;;  %vm19428_vm13 = vcmp.eq.s32.totalorder %v19427_v29, %v16026_v50  ;;  %vm19430_vm6 = vcmp.eq.s32.totalorder %v19429_v42, %v16026_v50 }
 0x684   :  { %11110 = vmatpush.msk.msrb.mxu3 %vm19406_vm12, %v19252_v26  ;;  %11062 = vmatpush.msk.msrb.mxu0 %vm19408_vm15, %v19252_v26  ;;  %vm19432_vm12 = vcmp.eq.s32.totalorder %v19431_v57, %v16026_v50  ;;  %vm19434_vm15 = vcmp.eq.s32.totalorder %v19433_v41, %v16026_v50 }
 0x685   :  { %11078 = vmatpush.msk.msrb.mxu1 %vm19410_vm3, %v19252_v26  ;;  %11095 = vmatpush.msk.msrb.mxu2 %vm19412_vm0, %v19252_v26  ;;  %vm19436_vm3 = vcmp.eq.s32.totalorder %v19435_v32, %v16026_v50  ;;  %vm19438_vm0 = vcmp.eq.s32.totalorder %v19437_v53, %v16026_v50 }
 0x686   :  { %11111 = vmatpush.msk.msrb.mxu3 %vm19414_vm2, %v19252_v26  ;;  %11063 = vmatpush.msk.msrb.mxu0 %vm19416_vm11, %v19252_v26  ;;  %vm19441_vm2 = vcmp.eq.s32.totalorder %v19440_v27, %v16026_v50  ;;  %vm19443_vm11 = vcmp.eq.s32.totalorder %v19442_v51, %v16026_v50 }
 0x687   :  { %11079 = vmatpush.msk.msrb.mxu1 %vm19418_vm7, %v19252_v26  ;;  %11096 = vmatpush.msk.msrb.mxu2 %vm19420_vm5, %v19252_v26  ;;  %vm19445_vm7 = vcmp.eq.s32.totalorder %v19444_v28, %v16026_v50  ;;  %vm19447_vm5 = vcmp.eq.s32.totalorder %v19446_v34, %v16026_v50 }
 0x688   :  { %11112 = vmatpush.msk.msrb.mxu3 %vm19422_vm4, %v19252_v26  ;;  %11064 = vmatpush.msk.msrb.mxu0 %vm19424_vm8, %v19252_v26  ;;  %vm19451_vm4 = vcmp.eq.s32.totalorder %v19450_v2, %v16026_v50  ;;  %vm19453_vm8 = vcmp.eq.s32.totalorder %v19452_v18, %v16026_v50 }
 0x689   :  { %11080 = vmatpush.msk.msrb.mxu1 %vm19426_vm1, %v19252_v26  ;;  %11097 = vmatpush.msk.msrb.mxu2 %vm19428_vm13, %v19252_v26  ;;  %vm19455_vm1 = vcmp.eq.s32.totalorder %v19454_v43, %v16026_v50  ;;  %vm19457_vm13 = vcmp.eq.s32.totalorder %v19456_v17, %v16026_v50 }
 0x68a   :  { %11113 = vmatpush.msk.msrb.mxu3 %vm19430_vm6, %v19252_v26  ;;  %11065 = vmatpush.msk.msrb.mxu0 %vm19432_vm12, %v19252_v26  ;;  %vm19459_vm6 = vcmp.eq.s32.totalorder %v19458_v1, %v16026_v50  ;;  %vm19461_vm12 = vcmp.eq.s32.totalorder %v19460_v0, %v16026_v50 }
 0x68b   :  { %11081 = vmatpush.msk.msrb.mxu1 %vm19434_vm15, %v19252_v26  ;;  %11098 = vmatpush.msk.msrb.mxu2 %vm19436_vm3, %v19252_v26  ;;  %vm19463_vm15 = vcmp.eq.s32.totalorder %v19462_v47, %v16026_v50  ;;  %vm19465_vm3 = vcmp.eq.s32.totalorder %v19464_v23, %v16026_v50 }
 0x68c   :  { %11114 = vmatpush.msk.msrb.mxu3 %vm19438_vm0, %v19252_v26  ;;  %11066 = vmatpush.msk.msrb.mxu0 %vm8475_vm14, %v19252_v26  ;;  %vm19449_vm14 = vcmp.eq.s32.totalorder %v19448_v39, %v16026_v50  ;;  %vm19467_vm0 = vcmp.eq.s32.totalorder %v19466_v31, %v16026_v50 }
 0x68d   :  { %11082 = vmatpush.msk.msrb.mxu1 %vm19441_vm2, %v19252_v26  ;;  %11099 = vmatpush.msk.msrb.mxu2 %vm19443_vm11, %v19252_v26  ;;  %vm19469_vm2 = vcmp.eq.s32.totalorder %v19468_v9, %v16026_v50  ;;  %vm19471_vm11 = vcmp.eq.s32.totalorder %v19470_v12, %v16026_v50 }
 0x68e   :  { %11115 = vmatpush.msk.msrb.mxu3 %vm19445_vm7, %v19252_v26  ;;  %11067 = vmatpush.msk.msrb.mxu0 %vm19447_vm5, %v19252_v26  ;;  %vm19473_vm7 = vcmp.eq.s32.totalorder %v19472_v63, %v16026_v50  ;;  %vm19475_vm5 = vcmp.eq.s32.totalorder %v19474_v45, %v16026_v50 }
 0x68f   :  { %11083 = vmatpush.msk.msrb.mxu1 %vm19449_vm14, %v19252_v26  ;;  %11100 = vmatpush.msk.msrb.mxu2 %vm19451_vm4, %v19252_v26  ;;  %vm19477_vm14 = vcmp.eq.s32.totalorder %v19476_v20, %v16026_v50  ;;  %vm19479_vm4 = vcmp.eq.s32.totalorder %v19478_v8, %v16026_v50  ;;  %v11150_v8 = vld [vmem:[%s18039_s2 + $0x30] sm:$0xff] }
 0x690   :  { %11116 = vmatpush.msk.msrb.mxu3 %vm19453_vm8, %v19252_v26  ;;  %11068 = vmatpush.msk.msrb.mxu0 %vm19455_vm1, %v19252_v26  ;;  %vm19481_vm8 = vcmp.eq.s32.totalorder %v19480_v46, %v16026_v50  ;;  %vm19483_vm1 = vcmp.eq.s32.totalorder %v19482_v22, %v16026_v50  ;;  %v11152_v46 = vld [vmem:[%s18039_s2 + $0x40] sm:$0xff]  ;;  %v11151_v22 = vld [vmem:[%s18039_s2 + $0x38] sm:$0xff] }
 0x691   :  { %11084 = vmatpush.msk.msrb.mxu1 %vm19457_vm13, %v19252_v26  ;;  %11101 = vmatpush.msk.msrb.mxu2 %vm19459_vm6, %v19252_v26  ;;  %vm19485_vm13 = vcmp.eq.s32.totalorder %v19484_v40, %v16026_v50  ;;  %vm19487_vm6 = vcmp.eq.s32.totalorder %v19486_v48, %v16026_v50  ;;  %v19520_v40 = vshra.s32 %v19176_v13, 3 }
 0x692   :  { %11117 = vmatpush.msk.msrb.mxu3 %vm19461_vm12, %v19252_v26  ;;  %11069 = vmatpush.msk.msrb.mxu0 %vm19463_vm15, %v19252_v26  ;;  %vm19489_vm12 = vcmp.eq.s32.totalorder %v19488_v55, %v16026_v50  ;;  %vm19490_vm15 = vcmp.lt.s32.totalorder %v19176_v13, 64  ;;  %v11136_v13 = vld [vmem:[%s18038_s1 + $0xb0] sm:$0xff] }
 0x693   :  { %11085 = vmatpush.msk.msrb.mxu1 %vm19465_vm3, %v19252_v26  ;;  %11102 = vmatpush.msk.msrb.mxu2 %vm19467_vm0, %v19252_v26  ;;  %v8236_v33 = vsel %vm19490_vm15, %v11326_v16, %v11327_v52  ;;  %vm19491_vm3 = vmmov %vm19490_vm15  ;;  %vm19493_vm0 = vcmp.eq.s32.totalorder %v19492_v59, %v16026_v50  ;;  %v17800_v48 = vand.u32 7, %v19520_v40  ;;  %vm19521_vm15 = vcmask 64512   ;;  %v19522_v59 = vld [vmem:[#allocation41_spill] sm:$0xff] }
 0x694   :  { %11118 = vmatpush.msk.msrb.mxu3 %vm19469_vm2, %v19252_v26  ;;  %11070 = vmatpush.msk.msrb.mxu0 %vm19471_vm11, %v19252_v26  ;;  %v8251_v36 = vsel %vm19491_vm3, %v11327_v52, %v11296_v30  ;;  %vm19495_vm2 = vcmp.eq.s32.totalorder %v19494_v44, %v16026_v50  ;;  %vm19497_vm11 = vcmp.eq.s32.totalorder %v19496_v56, %v16026_v50  ;;  %v11133_v56 = vld [vmem:[%s18038_s1 + $0xa8] sm:$0xff] }
 0x695   :  { %11086 = vmatpush.msk.msrb.mxu1 %vm19473_vm7, %v19252_v26  ;;  %11103 = vmatpush.msk.msrb.mxu2 %vm19475_vm5, %v19252_v26  ;;  %vm19499_vm7 = vmmov %vm19491_vm3  ;;  %v8266_v60 = vmax.f32 %v19505_v37, %v8236_v33  ;;  %v8267_v24 = vmax.f32 %v19506_v19, %v8251_v36  ;;  %v11125_v33 = vld [vmem:[%s18038_s1 + $0x98] sm:$0xff]  ;;  %v11124_v37 = vld [vmem:[%s18038_s1 + $0x90] sm:$0xff] }
 0x696   :  { %11119 = vmatpush.msk.msrb.mxu3 %vm19477_vm14, %v19252_v26  ;;  %11071 = vmatpush.msk.msrb.mxu0 %vm19479_vm4, %v19252_v26  ;;  %v8237_v30 = vsel %vm19499_vm7, %v8231_v25, %v11326_v16  ;;  %vm19500_vm5 = vmmov %vm19491_vm3  ;;  %vm19502_vm14 = vcmp.eq.s32.totalorder %v19501_v3, %v16026_v50  ;;  %vm19504_vm4 = vcmp.eq.s32.totalorder %v19503_v10, %v16026_v50  ;;  %vm9114_vm3 = vcmp.lt.s32.totalorder %v17800_v48, 7  ;;  %v11144_v3 = vld [vmem:[%s18038_s1 + $0xc8] sm:$0xff]  ;;  %v11141_v19 = vld [vmem:[%s18038_s1 + $0xc0] sm:$0xff] }
 0x697   :  { %11087 = vmatpush.msk.msrb.mxu1 %vm19481_vm8, %v19252_v26  ;;  %11104 = vmatpush.msk.msrb.mxu2 %vm19483_vm1, %v19252_v26  ;;  %v8238_v4 = vsel %vm19500_vm5, %v11322_v15, %v8231_v25  ;;  %v19510_v15 = vld [vmem:[#allocation35_spill] sm:$0xff]  ;;  %vm19513_vm1 = vcmp.eq.s32.totalorder %v19512_v54, %v16026_v50  ;;  %v8265_v62 = vmax.f32 %v19514_v58, %v8237_v30  ;;  %vm9115_vm5 = vcmp.ge.s32.totalorder %v19522_v59, 1 }
 0x698   :  { %11120 = vmatpush.msk.msrb.mxu3 %vm19485_vm13, %v19252_v26  ;;  %11072 = vmatpush.msk.msrb.mxu0 %vm19487_vm6, %v19252_v26  ;;  %vm19511_vm8 = vcmp.eq.s32.totalorder %v19510_v15, %v16026_v50  ;;  %v8264_v21 = vmax.f32 %v19515_v35, %v8238_v4  ;;  %vm19519_vm13 = vcmp.eq.s32.totalorder %v19518_v14, %v16026_v50  ;;  %vm9110_vm6 = vcmask 523264   ;;  %v11147_v25 = vld [vmem:[%s18038_s1 + $0xd0] sm:$0xff]  ;;  %v11130_v4 = vld [vmem:[%s18038_s1 + $0xa0] sm:$0xff] }
 0x699   :  { %11088 = vmatpush.msk.msrb.mxu1 %vm19489_vm12, %v19252_v26  ;;  %11105 = vmatpush.msk.msrb.mxu2 %vm19493_vm0, %v19252_v26  ;;  %vm9113_vm12 = vcmp.ge.s32.totalorder %v17800_v48, 1  ;;  %vm9116_vm0 = vcmp.lt.s32.totalorder %v19522_v59, 7 }
 0x69a   :  { %11121 = vmatpush.msk.msrb.mxu3 %vm19495_vm2, %v19252_v26  ;;  %11073 = vmatpush.msk.msrb.mxu0 %vm19497_vm11, %v19252_v26  ;;  %vm19523_vm2 = vmmov %vm19521_vm15 }
 0x69b   :  { %11089 = vmatpush.msk.msrb.mxu1 %vm8484_vm10, %v19252_v26  ;;  %11106 = vmatpush.msk.msrb.mxu2 %vm19502_vm14, %v19252_v26  ;;  %vm19509_vm10 = vcmp.eq.s32.totalorder %v19508_v11, %v16026_v50  ;;  %vm9363_vm11 = vmand %vm9114_vm3, %vm9116_vm0 }
 0x69c   :  { %11122 = vmatpush.msk.msrb.mxu3 %vm19504_vm4, %v19252_v26  ;;  %11074 = vmatpush.msk.msrb.mxu0 %vm8467_vm9, %v19252_v26  ;;  %vm19517_vm9 = vcmp.eq.s32.totalorder %v19516_v61, %v16026_v50  ;;  %vm19524_vm7 = vmmov %vm19523_vm2 }
 0x69d   :  { %11090 = vmatpush.msk.msrb.mxu1 %vm19509_vm10, %v19252_v26  ;;  %11107 = vmatpush.msk.msrb.mxu2 %vm19511_vm8, %v19252_v26  ;;  %vm9180_vm14 = vmand %vm9113_vm12, %vm9116_vm0 }
 0x69e   :  { %11123 = vmatpush.msk.msrb.mxu3 %vm19513_vm1, %v19252_v26  ;;  %9082 = vmatmul.f32.vlgmr.msrb.gmra.mxu2 %v8266_v60  ;;  %vm9300_vm4 = vmand %vm9114_vm3, %vm9115_vm5 }
 0x69f   :  { %9102 = vmatmul.f32.vlgmr.msrb.gmra.mxu3 %v8267_v24  ;;  %11075 = vmatpush.msk.msrb.mxu0 %vm19517_vm9, %v19252_v26  ;;  %vm19525_vm10 = vmmov %vm19523_vm2  ;;  %v11138_v24 = vld [vmem:[%s18038_s1 + $0xb8] sm:$0xff] }
 0x6a0   :  { %11091 = vmatpush.msk.msrb.mxu1 %vm19519_vm13, %v19252_v26  ;;  %9042 = vmatmul.f32.vlgmr.msrb.gmra.mxu0 %v8264_v21  ;;  %vm19526_vm8 = vmmov %vm19523_vm2 }
 0x6a1   :  { %9062 = vmatmul.f32.vlgmr.msrb.gmra.mxu1 %v8265_v62  ;;  %vm9119_vm1 = vmand %vm9113_vm12, %vm9115_vm5 }
 0x6a2   :  { %vm19527_vm9 = vmmov %vm19523_vm2 }
 0x6a3   :  { %vm19528_vm13 = vmmov %vm19523_vm2 }
 0x6d8   :  { %v8803_v5 = vpop.f32.mrf.mxu0  ;;  %v8823_v29 = vpop.f32.mrf.mxu1 }
 0x6d9   :  { %v8824_v42 = vadd.f32 %v8823_v29, %v8803_v5 }
 0x6dc   :  { %v8843_v57 = vpop.f32.mrf.mxu2  ;;  %v8863_v32 = vpop.f32.mrf.mxu3 }
 0x6dd   :  { %v8844_v41 = vadd.f32 %v8843_v57, %v8824_v42 }
 0x6df   :  { %v8864_v53 = vadd.f32 %v8863_v32, %v8844_v41 }
 0x6e2   :  { %v8883_v7 = vpop.f32.mrf.mxu0 }
 0x6e3   :  { %v8884_v27 = vadd.f32 %v8883_v7, %v8864_v53  ;;  %v8903_v51 = vpop.f32.mrf.mxu1 }
 0x6e5   :  { %v8904_v28 = vadd.f32 %v8903_v51, %v8884_v27  ;;  %v8923_v34 = vpop.f32.mrf.mxu2 }
 0x6e6   :  { %v8943_v2 = vpop.f32.mrf.mxu3 }
 0x6e7   :  { %v8924_v39 = vadd.f32 %v8923_v34, %v8904_v28 }
 0x6e9   :  { %v8944_v18 = vadd.f32 %v8943_v2, %v8924_v39 }
 0x6fc   :  { %v8963_v43 = vpop.f32.mrf.mxu0 }
 0x6fd   :  { %v8983_v50 = vpop.f32.mrf.mxu1 }
 0x6fe   :  { %v8984_v17 = vadd.f32 %v8983_v50, %v8963_v43 }
 0x6ff   :  { %v9003_v26 = vpop.f32.mrf.mxu2 }
 0x700   :  { %v9004_v1 = vadd.f32 %v9003_v26, %v8984_v17  ;;  %v9023_v0 = vpop.f32.mrf.mxu3 }
 0x702   :  { %v9024_v49 = vadd.f32 %v9023_v0, %v9004_v1  ;;  %v11179_v1 = vld [vmem:[%s18039_s2 + $0x48] sm:$0xff]  ;;  %v11181_v0 = vld [vmem:[%s18039_s2 + $0x58] sm:$0xff] }
 0x71d   :  { %v9043_v47 = vpop.f32.mrf.mxu0 }
 0x71e   :  { %v9044_v23 = vadd.f32 %v9043_v47, %v9024_v49  ;;  %v9063_v31 = vpop.f32.mrf.mxu1  ;;  %v11180_v49 = vld [vmem:[%s18039_s2 + $0x50] sm:$0xff]  ;;  %v11153_v47 = vld [vmem:[%s18038_s1 + $0xd8] sm:$0xff] }
 0x720   :  { %v9064_v9 = vadd.f32 %v9063_v31, %v9044_v23  ;;  %v11167_v31 = vld [vmem:[%s18038_s1 + $0x100] sm:$0xff] }
 0x721   :  { %v9083_v12 = vpop.f32.mrf.mxu2 }
 0x722   :  { %v9084_v63 = vadd.f32 %v9083_v12, %v9064_v9  ;;  %v9103_v52 = vpop.f32.mrf.mxu3  ;;  %v11159_v12 = vld [vmem:[%s18038_s1 + $0xe8] sm:$0xff] }
 0x724   :  { %v9104_v16 = vadd.f32 %v9103_v52, %v9084_v63 }
 0x726   :  { %9107 = vrot.lane.b32.xlu0 %v9104_v16, %s11384_s16  ;;  %s11394_s16 = smov 119   ;;  %v11154_v16 = vld [vmem:[%s18038_s1 + $0xe0] sm:$0xff] }
 0x798   :  { %v9108_v45 = vpop.permute.xlu0 %9107 }
 0x799   :  { %v9111_v20 = vsel %vm9110_vm6, %v8944_v18, %v9108_v45  ;;  %vm19529_vm6 = vmmov %vm19523_vm2  ;;  %v11162_v45 = vld [vmem:[%s18038_s1 + $0xf0] sm:$0xff] }
 0x79a   :  { %9210 = vrot.lane.b32.xlu0 %v9111_v20, %s11377_s14  ;;  %9125 = vrot.lane.b32.xlu2 %v9111_v20, %s11389_s28 }
 0x79b   :  { %9178 = vrot.lane.b32.xlu1 %v9111_v20, %s11390_s29  ;;  %s11401_s29 = smov 28  }
 0x7a2   :  { %9330 = vrot.lane.b32.xlu0 %v9111_v20, %s11391_s8  ;;  %9298 = vrot.lane.b32.xlu2 %v9111_v20, %s11392_s9  ;;  %s11402_s9 = smov 36  }
 0x7a3   :  { %9117 = vrot.lane.b32.xlu1 %v9111_v20, %s11393_s10  ;;  %s11404_s10 = smov 4  }
 0x7aa   :  { %9397 = vperm.xlu0 %11251, %v11150_v8   ;;  %9361 = vrot.lane.b32.xlu2 %v9111_v20, %s11394_s16 }
 0x7ab   :  { %9267 = vrot.lane.b32.xlu1 %v9111_v20, %s11378_s19 }
 0x7b2   :  { %9414 = vperm.xlu2 %11250, %v11152_v46  }
 0x7b3   :  { %9406 = vperm.xlu1 %11252, %v11151_v22   ;;  %v11165_v22 = vld [vmem:[%s18038_s1 + $0xf8] sm:$0xff] }
 0x7f4   :  { %v9126_v55 = vpop.permute.xlu2 %9125 }
 0x7f5   :  { %11126 = vmatpush.msk.msra.mxu0 %vm9113_vm12, %v9126_v55  ;;  %vm19530_vm12 = vmmov %vm19523_vm2  ;;  %v11173_v55 = vld [vmem:[%s18038_s1 + $0x110] sm:$0xff] }
 0x7f6   :  { %11127 = vmatmul.msk.f32.vlgmr.msra.gmra.mxu0 %vm19521_vm15, %v11125_v33  ;;  %vm9424_vm15 = vcmp.ge.s32.totalorder %v17800_v48, 2 }
 0x7f7   :  { %9261 = vmatpush.msrb.mxu0 %v9111_v20  ;;  %v11170_v20 = vld [vmem:[%s18038_s1 + $0x108] sm:$0xff] }
 0x7fc   :  { %v9299_v36 = vpop.permute.xlu2 %9298 }
 0x7fe   :  { %11137 = vmatmul.msk.f32.vlgmr.msrb.gmra.mxu0 %vm19523_vm2, %v11136_v13 }
 0x804   :  { %v9362_v44 = vpop.permute.xlu2 %9361 }
 0x805   :  { %11148 = vmatpush.msk.msra.mxu0 %vm9363_vm11, %v9362_v44  ;;  %vm9427_vm11 = vcmp.lt.s32.totalorder %v19522_v59, 6 }
 0x806   :  { %11149 = vmatmul.msk.f32.vlgmr.msra.gmra.mxu0 %vm19524_vm7, %v11147_v25  ;;  %vm19531_vm7 = vmmov %vm19523_vm2 }
 0x80c   :  { %v9211_v38 = vpop.permute.xlu0 %9210  ;;  %v9415_v2 = vpop.permute.xlu2 %9414 }
 0x80d   :  { %v9179_v30 = vpop.permute.xlu1 %9178  ;;  %11134 = vmatpush.msk.msra.mxu3 %vm9115_vm5, %v9211_v38  ;;  %vm9491_vm5 = vmand %vm9424_vm15, %vm9427_vm11 }
 0x80e   :  { %11131 = vmatpush.msk.msra.mxu2 %vm9180_vm14, %v9179_v30  ;;  %11135 = vmatmul.msk.f32.vlgmr.msra.gmra.mxu3 %vm19525_vm10, %v11133_v56  ;;  %vm19532_vm14 = vmmov %vm19523_vm2  ;;  %vm9425_vm10 = vcmp.lt.s32.totalorder %v17800_v48, 6 }
 0x80f   :  { %11132 = vmatmul.msk.f32.vlgmr.msra.gmra.mxu2 %vm19526_vm8, %v11130_v4 }
 0x810   :  { %11142 = vmatpush.msk.msrb.mxu2 %vm9300_vm4, %v9299_v36  ;;  %vm19533_vm4 = vmmov %vm19523_vm2  ;;  %v11176_v36 = vld [vmem:[%s18038_s1 + $0x118] sm:$0xff] }
 0x814   :  { %v9331_v10 = vpop.permute.xlu0 %9330 }
 0x815   :  { %v9118_v60 = vpop.permute.xlu1 %9117  ;;  %11145 = vmatpush.msk.msrb.mxu3 %vm9114_vm3, %v9331_v10  ;;  %vm9426_vm3 = vcmp.ge.s32.totalorder %v19522_v59, 2 }
 0x816   :  { %11128 = vmatpush.msk.msra.mxu1 %vm9119_vm1, %v9118_v60  ;;  %11146 = vmatmul.msk.f32.vlgmr.msrb.gmra.mxu3 %vm19527_vm9, %v11144_v3  ;;  %vm9611_vm8 = vmand %vm9425_vm10, %vm9426_vm3 }
 0x817   :  { %11129 = vmatmul.msk.f32.vlgmr.msra.gmra.mxu1 %vm19528_vm13, %v11124_v37  ;;  %11143 = vmatmul.msk.f32.vlgmr.msrb.gmra.mxu2 %vm19529_vm6, %v11141_v19  ;;  %vm19534_vm1 = vmmov %vm19523_vm2 }
 0x818   :  { %vm19535_vm9 = vmmov %vm19534_vm1 }
 0x819   :  { %vm19536_vm13 = vmmov %vm19534_vm1 }
 0x81a   :  { %vm9674_vm6 = vmand %vm9425_vm10, %vm9427_vm11 }
 0x81c   :  { %v9398_v27 = vpop.permute.xlu0 %9397 }
 0x81d   :  { %v9268_v6 = vpop.permute.xlu1 %9267 }
 0x81e   :  { %11139 = vmatpush.msk.msrb.mxu1 %vm9116_vm0, %v9268_v6  ;;  %vm9430_vm0 = vmand %vm9424_vm15, %vm9426_vm3 }
 0x81f   :  { %11140 = vmatmul.msk.f32.vlgmr.msrb.gmra.mxu1 %vm19530_vm12, %v11138_v24  ;;  %vm19537_vm12 = vmmov %vm19534_vm1 }
 0x825   :  { %v9407_v34 = vpop.permute.xlu1 %9406 }
 0x873   :  { %v9152_v11 = vpop.f32.mrf.mxu0 }
 0x87b   :  { %v9263_v35 = vpop.f32.mrf.mxu0 }
 0x883   :  { %v9389_v32 = vpop.f32.mrf.mxu0 }
 0x891   :  { %v9237_v58 = vpop.f32.mrf.mxu3 }
 0x892   :  { %v9206_v15 = vpop.f32.mrf.mxu2 }
 0x894   :  { %v9175_v54 = vpop.f32.mrf.mxu1 }
 0x895   :  { %v9176_v62 = vadd.f32 %v9175_v54, %v9152_v11 }
 0x897   :  { %v9209_v21 = vadd.f32 %v9206_v15, %v9176_v62 }
 0x899   :  { %v9240_v61 = vadd.f32 %v9237_v58, %v9209_v21  ;;  %v9357_v57 = vpop.f32.mrf.mxu3 }
 0x89a   :  { %v9326_v29 = vpop.f32.mrf.mxu2 }
 0x89b   :  { %v9266_v14 = vadd.f32 %v9263_v35, %v9240_v61 }
 0x89c   :  { %v9294_v5 = vpop.f32.mrf.mxu1 }
 0x89d   :  { %v9297_v42 = vadd.f32 %v9294_v5, %v9266_v14 }
 0x89f   :  { %v9329_v41 = vadd.f32 %v9326_v29, %v9297_v42 }
 0x8a1   :  { %v9360_v53 = vadd.f32 %v9357_v57, %v9329_v41 }
 0x8a3   :  { %v9392_v7 = vadd.f32 %v9389_v32, %v9360_v53  ;;  %v11208_v32 = vld [vmem:[%s18039_s2 + $0x60] sm:$0xff]  ;;  %v11210_v53 = vld [vmem:[%s18039_s2 + $0x70] sm:$0xff] }
 0x8a5   :  { %v9400_v51 = vadd.f32 %v9398_v27, %v9392_v7  ;;  %v11209_v7 = vld [vmem:[%s18039_s2 + $0x68] sm:$0xff] }
 0x8a7   :  { %v9401_v28 = vmax.f32 %v9400_v51, 0.0  ;;  %v11188_v51 = vld [vmem:[%s18038_s1 + $0x130] sm:$0xff] }
 0x8a9   :  { %v9409_v39 = vmul.f32 %v9407_v34, %v9401_v28  ;;  %v11182_v28 = vld [vmem:[%s18038_s1 + $0x120] sm:$0xff] }
 0x8ab   :  { %v9417_v18 = vadd.f32 %v9415_v2, %v9409_v39  ;;  %v11183_v39 = vld [vmem:[%s18038_s1 + $0x128] sm:$0xff] }
 0x8ad   :  { %9418 = vrot.lane.b32.xlu0 %v9417_v18, %s11378_s19  ;;  %s11407_s19 = smov [#allocation2]  }
 0x91f   :  { %v9419_v43 = vpop.permute.xlu0 %9418 }
 0x920   :  { %v9420_v50 = vmax.f32 %v9417_v18, %v9419_v43  ;;  %v11191_v43 = vld [vmem:[%s18038_s1 + $0x138] sm:$0xff] }
 0x922   :  { %9421 = vrot.lane.b32.xlu1 %v9420_v50, %s11391_s8  ;;  %s11399_s8 = smov 110  }
 0x994   :  { %v9422_v26 = vpop.permute.xlu1 %9421 }
 0x995   :  { %v9423_v17 = vmax.f32 %v9420_v50, %v9422_v26  ;;  %v11194_v26 = vld [vmem:[%s18038_s1 + $0x140] sm:$0xff] }
 0x997   :  { %9436 = vrot.lane.b32.xlu1 %v9423_v17, %s11395_s20  ;;  %9489 = vrot.lane.b32.xlu0 %v9423_v17, %s11396_s21 }
 0x998   :  { %9428 = vrot.lane.b32.xlu2 %v9423_v17, %s11397_s23 }
 0x99f   :  { %9609 = vrot.lane.b32.xlu1 %v9423_v17, %s11398_s0  ;;  %9521 = vrot.lane.b32.xlu0 %v9423_v17, %s11386_s18  ;;  %s11403_s18 = smov 92  }
 0x9a0   :  { %9578 = vrot.lane.b32.xlu2 %v9423_v17, %s11387_s22 }
 0x9a7   :  { %9708 = vperm.xlu1 %11252, %v11179_v1   ;;  %9672 = vrot.lane.b32.xlu0 %v9423_v17, %s11399_s8  ;;  %s10163_s8 = sshll.u32 %s11407_s19, 4  ;;  %s10164_s8 = int_to_ptr.vmem [resolvable:$true] %s10163_s8 }
 0x9a8   :  { %9641 = vrot.lane.b32.xlu2 %v9423_v17, %s11400_s26 }
 0x9af   :  { %9725 = vperm.xlu0 %11251, %v11181_v0   ;;  %v11202_v0 = vld [vmem:[%s18038_s1 + $0x158] sm:$0xff] }
 0x9b0   :  { %9717 = vperm.xlu2 %11250, %v11180_v49  }
 0x9f2   :  { %v9429_v23 = vpop.permute.xlu2 %9428 }
 0x9f3   :  { %11157 = vmatpush.msk.msra.mxu2 %vm9430_vm0, %v9429_v23  ;;  %vm9738_vm0 = vcmp.lt.s32.totalorder %v19522_v59, 4  ;;  %v11199_v23 = vld [vmem:[%s18038_s1 + $0x150] sm:$0xff] }
 0x9f4   :  { %11158 = vmatmul.msk.f32.vlgmr.msra.gmra.mxu2 %vm19523_vm2, %v11153_v47  ;;  %v11205_v47 = vld [vmem:[%s18038_s1 + $0x160] sm:$0xff] }
 0x9fa   :  { %v9579_v9 = vpop.permute.xlu2 %9578 }
 0x9fb   :  { %11168 = vmatpush.msk.msrb.mxu2 %vm9427_vm11, %v9579_v9  ;;  %vm19539_vm11 = vmmov %vm19534_vm1 }
 0x9fc   :  { %11169 = vmatmul.msk.f32.vlgmr.msrb.gmra.mxu2 %vm19531_vm7, %v11167_v31  ;;  %vm9737_vm7 = vcmp.ge.s32.totalorder %v19522_v59, 4 }
 0xa02   :  { %v9642_v40 = vpop.permute.xlu2 %9641 }
 0xa09   :  { %v9437_v63 = vpop.permute.xlu1 %9436  ;;  %v9490_v52 = vpop.permute.xlu0 %9489 }
 0xa0a   :  { %11155 = vmatpush.msk.msra.mxu1 %vm9424_vm15, %v9437_v63  ;;  %11160 = vmatpush.msk.msra.mxu3 %vm9491_vm5, %v9490_v52  ;;  %vm19538_vm15 = vmmov %vm19534_vm1  ;;  %v9718_v21 = vpop.permute.xlu2 %9717 }
 0xa0b   :  { %11161 = vmatmul.msk.f32.vlgmr.msra.gmra.mxu3 %vm19532_vm14, %v11159_v12  ;;  %11156 = vmatmul.msk.f32.vlgmr.msra.gmra.mxu1 %vm19533_vm4, %v11154_v16  ;;  %vm9736_vm14 = vcmp.lt.s32.totalorder %v17800_v48, 4 }
 0xa0c   :  { %9572 = vmatpush.msrb.mxu1 %v9423_v17  ;;  %vm9985_vm4 = vmand %vm9736_vm14, %vm9738_vm0  ;;  %v11196_v17 = vld [vmem:[%s18038_s1 + $0x148] sm:$0xff] }
 0xa11   :  { %v9610_v8 = vpop.permute.xlu1 %9609  ;;  %v9522_v46 = vpop.permute.xlu0 %9521 }
 0xa12   :  { %11163 = vmatpush.msk.msrb.mxu0 %vm9426_vm3, %v9522_v46  ;;  %11171 = vmatpush.msk.msrb.mxu3 %vm9611_vm8, %v9610_v8  ;;  %vm9735_vm3 = vcmp.ge.s32.totalorder %v17800_v48, 4  ;;  %vm19541_vm8 = vmmov %vm19534_vm1 }
 0xa13   :  { %11164 = vmatmul.msk.f32.vlgmr.msrb.gmra.mxu0 %vm19534_vm1, %v11162_v45  ;;  %11172 = vmatmul.msk.f32.vlgmr.msrb.gmra.mxu3 %vm19535_vm9, %v11170_v20  ;;  %vm9802_vm2 = vmand %vm9735_vm3, %vm9738_vm0 }
 0xa14   :  { %11174 = vmatpush.msk.msra.mxu0 %vm9425_vm10, %v9642_v40  ;;  %11166 = vmatmul.msk.f32.vlgmr.msrb.gmra.mxu1 %vm19536_vm13, %v11165_v22  ;;  %vm9741_vm5 = vmand %vm9735_vm3, %vm9737_vm7 }
 0xa15   :  { %vm19540_vm10 = vmmov %vm19534_vm1 }
 0xa16   :  { %vm19542_vm9 = vmmov %vm19534_vm1 }
 0xa17   :  { %vm19543_vm13 = vmmov %vm19534_vm1 }
 0xa19   :  { %v9673_v33 = vpop.permute.xlu0 %9672  ;;  %v9709_v58 = vpop.permute.xlu1 %9708 }
 0xa1a   :  { %11177 = vmatpush.msk.msra.mxu1 %vm9674_vm6, %v9673_v33  ;;  %vm9922_vm6 = vmand %vm9736_vm14, %vm9737_vm7 }
 0xa1b   :  { %11175 = vmatmul.msk.f32.vlgmr.msra.gmra.mxu0 %vm19537_vm12, %v11173_v55  ;;  %vm19544_vm12 = vmmov %vm19534_vm1 }
 0xa1c   :  { %11178 = vmatmul.msk.f32.vlgmr.msra.gmra.mxu1 %vm19538_vm15, %v11176_v36  ;;  %vm19545_vm15 = vmmov %vm19534_vm1 }
 0xa21   :  { %v9726_v14 = vpop.permute.xlu0 %9725 }
 0xa77   :  { %v9486_v44 = vpop.f32.mrf.mxu2 }
 0xa7f   :  { %v9605_v10 = vpop.f32.mrf.mxu2 }
 0xa88   :  { %v9463_v13 = vpop.f32.mrf.mxu1 }
 0xa89   :  { %v9487_v25 = vadd.f32 %v9486_v44, %v9463_v13 }
 0xa8e   :  { %v9517_v56 = vpop.f32.mrf.mxu3 }
 0xa8f   :  { %v9520_v38 = vadd.f32 %v9517_v56, %v9487_v25 }
 0xa90   :  { %v9548_v30 = vpop.f32.mrf.mxu0 }
 0xa91   :  { %v9551_v4 = vadd.f32 %v9548_v30, %v9520_v38  ;;  %v9574_v3 = vpop.f32.mrf.mxu1 }
 0xa93   :  { %v9577_v37 = vadd.f32 %v9574_v3, %v9551_v4 }
 0xa95   :  { %v9608_v60 = vadd.f32 %v9605_v10, %v9577_v37 }
 0xa96   :  { %v9637_v19 = vpop.f32.mrf.mxu3 }
 0xa97   :  { %v9640_v24 = vadd.f32 %v9637_v19, %v9608_v60 }
 0xa98   :  { %v9668_v6 = vpop.f32.mrf.mxu0 }
 0xa99   :  { %v9671_v11 = vadd.f32 %v9668_v6, %v9640_v24  ;;  %v9700_v15 = vpop.f32.mrf.mxu1 }
 0xa9b   :  { %v9703_v54 = vadd.f32 %v9700_v15, %v9671_v11 }
 0xa9d   :  { %v9711_v62 = vadd.f32 %v9709_v58, %v9703_v54  ;;  %v10083_v58 = vld [vmem:[%s18040_s3] sm:$0xff] }
 0xa9f   :  { %v9712_v35 = vmax.f32 %v9711_v62, 0.0 }
 0xaa1   :  { %v9720_v61 = vmul.f32 %v9718_v21, %v9712_v35 }
 0xaa3   :  { %v9728_v5 = vadd.f32 %v9726_v14, %v9720_v61 }
 0xaa5   :  { %9729 = vrot.lane.b32.xlu1 %v9728_v5, %s11387_s22 }
 0xb17   :  { %v9730_v29 = vpop.permute.xlu1 %9729 }
 0xb18   :  { %v9731_v42 = vmax.f32 %v9728_v5, %v9730_v29  ;;  %v10127_v29 = vld [vmem:[%s18042_s5 + $0x18] sm:$0xff] }
 0xb1a   :  { %9732 = vrot.lane.b32.xlu2 %v9731_v42, %s11400_s26  ;;  %s11406_s26 = smov 100  }
 0xb74   :  { %v9733_v57 = vpop.permute.xlu2 %9732 }
 0xb75   :  { %v9734_v41 = vmax.f32 %v9731_v42, %v9733_v57  ;;  %v10126_v42 = vld [vmem:[%s18042_s5 + $0x10] sm:$0xff]  ;;  %v10125_v57 = vld [vmem:[%s18042_s5 + $0x8] sm:$0xff] }
 0xb77   :  { %9800 = vrot.lane.b32.xlu2 %v9734_v41, %s11401_s29  ;;  %9739 = vrot.lane.b32.xlu1 %v9734_v41, %s11402_s9  ;;  %s10165_s29 = sshll.u32 %s18044_s7, 4  ;;  %s10166_s29 = int_to_ptr.hbm [resolvable:$true] %s10165_s29 }
 0xb78   :  { %9747 = vrot.lane.b32.xlu0 %v9734_v41, %s11374_s30 }
 0xb7f   :  { %9983 = vrot.lane.b32.xlu2 %v9734_v41, %s11403_s18  ;;  %9832 = vrot.lane.b32.xlu1 %v9734_v41, %s11404_s10 }
 0xb80   :  { %9889 = vrot.lane.b32.xlu0 %v9734_v41, %s11405_s11 }
 0xb87   :  { %10019 = vperm.xlu2 %11250, %v11208_v32   ;;  %9952 = vrot.lane.b32.xlu1 %v9734_v41, %s11380_s25  ;;  %v11328_v32 = vld [vmem:[%s18041_s4] ss:$0 sm:$0xff] }
 0xb88   :  { %9920 = vrot.lane.b32.xlu0 %v9734_v41, %s11406_s26 }
 0xb8f   :  { %10036 = vperm.xlu1 %11252, %v11210_v53  }
 0xb90   :  { %10028 = vperm.xlu0 %11251, %v11209_v7  }
 0xbd1   :  { %v9801_v27 = vpop.permute.xlu2 %9800 }
 0xbd2   :  { %11189 = vmatpush.msk.msrb.mxu0 %vm9802_vm2, %v9801_v27  ;;  %vm19547_vm2 = vmmov %vm19534_vm1  ;;  %v11329_v27 = vld [vmem:[%s18041_s4 + $0x1] ss:$0 sm:$0xff] }
 0xbd3   :  { %11190 = vmatmul.msk.f32.vlgmr.msrb.gmra.mxu0 %vm19539_vm11, %v11188_v51  ;;  %vm10132_vm11 = vcmask 261120  }
 0xbd9   :  { %v9984_v18 = vpop.permute.xlu2 %9983 }
 0xbe1   :  { %v10020_v44 = vpop.permute.xlu2 %10019 }
 0xbe9   :  { %v9740_v34 = vpop.permute.xlu1 %9739 }
 0xbea   :  { %v9748_v2 = vpop.permute.xlu0 %9747  ;;  %11186 = vmatpush.msk.msra.mxu3 %vm9741_vm5, %v9740_v34 }
 0xbeb   :  { %11184 = vmatpush.msk.msra.mxu2 %vm9735_vm3, %v9748_v2  ;;  %11187 = vmatmul.msk.f32.vlgmr.msra.gmra.mxu3 %vm19540_vm10, %v11182_v28  ;;  %vm19546_vm3 = vmmov %vm19534_vm1  ;;  %v11330_v28 = vld [vmem:[%s18041_s4 + $0x2] ss:$0 sm:$0xff]  ;;  %v11331_v2 = vld [vmem:[%s18043_s6] ss:$0 sm:$0xff] }
 0xbec   :  { %11185 = vmatmul.msk.f32.vlgmr.msra.gmra.mxu2 %vm19541_vm8, %v11183_v39 }
 0xbed   :  { %9883 = vmatpush.msrb.mxu2 %v9734_v41  ;;  %v10124_v41 = vld [vmem:[%s18042_s5] sm:$0xff] }
 0xbef   :  { %11206 = vmatpush.msk.msra.mxu2 %vm9985_vm4, %v9984_v18 }
 0xbf1   :  { %v9833_v50 = vpop.permute.xlu1 %9832 }
 0xbf2   :  { %v9890_v1 = vpop.permute.xlu0 %9889  ;;  %11192 = vmatpush.msk.msrb.mxu1 %vm9737_vm7, %v9833_v50  ;;  %vm10156_vm7 = vcmask 74752  }
 0xbf3   :  { %11197 = vmatpush.msk.msrb.mxu3 %vm9738_vm0, %v9890_v1  ;;  %11193 = vmatmul.msk.f32.vlgmr.msrb.gmra.mxu1 %vm19534_vm1, %v11191_v43  ;;  %vm10081_vm0 = vcmask 1040384  }
 0xbf4   :  { %11195 = vmatmul.msk.f32.vlgmr.msrb.gmra.mxu2 %vm19542_vm9, %v11194_v26  ;;  %11198 = vmatmul.msk.f32.vlgmr.msrb.gmra.mxu3 %vm19543_vm13, %v11196_v17 }
 0xbf5   :  { %10106 = vmatpush.msra.mxu3 %v10083_v58 }
 0xbf9   :  { %v9953_v49 = vpop.permute.xlu1 %9952 }
 0xbfa   :  { %v9921_v31 = vpop.permute.xlu0 %9920  ;;  %11203 = vmatpush.msk.msra.mxu1 %vm9736_vm14, %v9953_v49 }
 0xbfb   :  { %11200 = vmatpush.msk.msra.mxu0 %vm9922_vm6, %v9921_v31  ;;  %11204 = vmatmul.msk.f32.vlgmr.msra.gmra.mxu1 %vm19544_vm12, %v11202_v0 }
 0xbfc   :  { %11207 = vmatmul.msk.f32.vlgmr.msra.gmra.mxu2 %vm19545_vm15, %v11205_v47  ;;  %11201 = vmatmul.msk.f32.vlgmr.msra.gmra.mxu0 %vm19546_vm3, %v11199_v23 }
 0xbfd   :  { %10148 = vmatpush.msrb.mxu0 %v10127_v29 }
 0xbff   :  { %10149 = vmatpush.msrb.mxu0 %v10126_v42 }
 0xc01   :  { %v10037_v4 = vpop.permute.xlu1 %10036  ;;  %10150 = vmatpush.msrb.mxu0 %v10125_v57 }
 0xc02   :  { %v10029_v38 = vpop.permute.xlu0 %10028 }
 0xc03   :  { %10151 = vmatpush.msrb.mxu0 %v10124_v41 }
 0xc50   :  { %v9828_v12 = vpop.f32.mrf.mxu0 }
 0xc6e   :  { %v9797_v59 = vpop.f32.mrf.mxu3 }
 0xc6f   :  { %v9774_v9 = vpop.f32.mrf.mxu2 }
 0xc70   :  { %v9798_v63 = vadd.f32 %v9797_v59, %v9774_v9  ;;  %v9859_v16 = vpop.f32.mrf.mxu1 }
 0xc72   :  { %v9831_v52 = vadd.f32 %v9828_v12, %v9798_v63 }
 0xc74   :  { %v9862_v45 = vadd.f32 %v9859_v16, %v9831_v52 }
 0xc77   :  { %v9885_v20 = vpop.f32.mrf.mxu2  ;;  %v9916_v8 = vpop.f32.mrf.mxu3 }
 0xc78   :  { %v9888_v46 = vadd.f32 %v9885_v20, %v9862_v45  ;;  %v9979_v40 = vpop.f32.mrf.mxu1 }
 0xc79   :  { %v9948_v22 = vpop.f32.mrf.mxu0 }
 0xc7a   :  { %v9919_v48 = vadd.f32 %v9916_v8, %v9888_v46 }
 0xc7c   :  { %v9951_v55 = vadd.f32 %v9948_v22, %v9919_v48 }
 0xc7e   :  { %v9982_v33 = vadd.f32 %v9979_v40, %v9951_v55 }
 0xc7f   :  { %v10011_v36 = vpop.f32.mrf.mxu2 }
 0xc80   :  { %v10014_v13 = vadd.f32 %v10011_v36, %v9982_v33 }
 0xc82   :  { %v10022_v25 = vadd.f32 %v10020_v44, %v10014_v13 }
 0xc84   :  { %v10023_v56 = vmax.f32 %v10022_v25, 0.0 }
 0xc86   :  { %v10031_v30 = vmul.f32 %v10029_v38, %v10023_v56 }
 0xc88   :  { %v10039_v3 = vadd.f32 %v10037_v4, %v10031_v30 }
 0xc8a   :  { %10040 = vrot.lane.b32.xlu2 %v10039_v3, %s11405_s11 }
 0xce4   :  { %v10041_v10 = vpop.permute.xlu2 %10040 }
 0xce5   :  { %v10042_v37 = vmax.f32 %v10039_v3, %v10041_v10 }
 0xce7   :  { %10043 = vrot.lane.b32.xlu0 %v10042_v37, %s11380_s25 }
 0xd59   :  { %v10044_v60 = vpop.permute.xlu0 %10043 }
 0xd5a   :  { %v10045_v19 = vmax.f32 %v10042_v37, %v10044_v60 }
 0xd5c   :  { %10046 = vxpose.xlu1.b32.start.end [1/1] (short) (narrow) %v10045_v19, 72 }
 0xe00   :  { %v10062_v24 = vpop.trf.xlu1 }
 0xe08   :  { %v10063_v6 = vpop.trf.xlu1 }
 0xe10   :  { %v10064_v11 = vpop.trf.xlu1 }
 0xe18   :  { %v10065_v15 = vpop.trf.xlu1 }
 0xe20   :  { %v10066_v54 = vpop.trf.xlu1 }
 0xe28   :  { %v10067_v62 = vpop.trf.xlu1 }
 0xe30   :  { %v10068_v35 = vpop.trf.xlu1 }
 0xe38   :  { %v10069_v21 = vpop.trf.xlu1 }
 0xe40   :  { %v10070_v61 = vpop.trf.xlu1 }
 0xe41   :  { %v10079_v14 = vrot.slane %v10070_v61, 7 }
 0xe43   :  { %v10082_v5 = vsel %vm10081_vm0, %v10062_v24, %v10079_v14 }
 0xe44   :  { %11211 = vmatmul.msk.f32.vlgmr.msra.gmra.mxu3 %vm19547_vm2, %v10082_v5 }
 0xec7   :  { %v10108_v53 = vpop.f32.mrf.mxu3 }
 0xec8   :  { %v10109_v7 = vadd.f32 %v11328_v32, %v10108_v53 }
 0xeca   :  { %v10111_v51 = vmax.f32 %v10109_v7, 0.0 }
 0xecc   :  { %v10117_v34 = vmul.f32 %v11329_v27, %v10111_v51 }
 0xece   :  { %v10123_v39 = vadd.f32 %v11330_v28, %v10117_v34 }
 0xed0   :  { %11214 = vmatmul.msk.f32.vlgmr.msrb.gmra.mxu0 %vm10132_vm11, %v10123_v39 }
 0xf4d   :  { %v10153_v18 = vpop.f32.mrf.mxu0 }
 0xf4e   :  { %v10154_v43 = vadd.f32 %v11331_v2, %v10153_v18 }
 0xf50   :  { %10157 = vst.msk [vmem:[#allocation2] sm:$0x3] %vm10156_vm7, %v10154_v43 }
 0xf51   :  { %10168 = dma.vmem_to_hbm [thread:$0]  %s10164_s8, 32, %s10166_s29, [#allocation3]  }
 0xf52   :  { %11372 = dma.done.wait [#allocation3], 32  }
 0xf53   :  { %11373 = vsyncadd [#allocation3], 4294967264 }
 0xf54   :  { %10173 = vsyncpa [#allocation3], 1 }

</bundles_post_ra>
